<compile_context>
chip_gen: v7x
topology: tpu7x:2x2x1
jax: 0.10.0
libtpu: 0.0.40
codegen_flags: <defaults>
</compile_context>

<pallas_src>
import functools

import jax
import jax.numpy as jnp
import numpy as np
from jax.experimental import pallas as pl
from jax.experimental.pallas import tpu as pltpu


# Layer geometry fixed by the PyTorch module's forward():
#   conv1: 1 ->16, k=4, s=2 : 28x28 -> 13x13
#   conv2: 16-> 8, k=3, s=2 : 13x13 ->  6x6
#   conv3: 8 -> 4, k=3, s=1 :  6x6  ->  4x4
#   dense: 64 -> 1, sigmoid
_A1_PITCH = 256   # lane pitch of one conv1 output row (13*16 = 208, padded up)
_A2_PITCH = 128   # lane pitch of one conv2 output row ( 6*8  =  48, padded up)


# ----------------------------------------------------------------------------
# Fused kernel factory: whole Discriminator forward for one (BT, ...) tile.
# ----------------------------------------------------------------------------
def _make_disc_kernel(in_pitch):
    """in_pitch: lane pitch of one 28-wide input image row.
    28 = baseline layout (v5e); 64 = aligned-window layout (v6e/v7x)."""
    k1 = 4 * in_pitch   # conv1 window width in lanes (KH=4 rows)

    def kernel(x_ref, w1_ref, b1_ref, w2_ref, b2_ref, w3_ref, b3_ref,
               wd_ref, bd_ref, o_ref, act1_ref, act2_ref):
        f32 = jnp.float32
        bt = x_ref.shape[0]

        def leaky(v):                       # nn.LeakyReLU(0.2)
            return jnp.where(v >= 0, v, 0.2 * v)

        # ---- conv1: one MXU matmul per output row ---------------------------
        # Output row `oh` consumes 4 consecutive input rows (stride 2), i.e. a
        # single contiguous k1-lane slice.  w1/b1 are N-padded to the full
        # activation pitch, so every store below is an aligned full-pitch vst
        # and the pad lanes get rewritten with leaky(0)=0 every step — no
        # scratch memset is required.
        w1 = w1_ref[...]                                              # (k1, 256)
        b1 = jnp.broadcast_to(b1_ref[...], (bt, _A1_PITCH))           # hoisted
        for oh in range(13):
            xs = x_ref[:, 2 * in_pitch * oh:2 * in_pitch * oh + k1]   # (bt, k1)
            y = jnp.dot(xs, w1, preferred_element_type=f32) + b1      # (bt, 256)
            act1_ref[:, _A1_PITCH * oh:_A1_PITCH * (oh + 1)] = leaky(y)

        # ---- conv2 ----------------------------------------------------------
        w2 = w2_ref[...]                                              # (768, 128)
        b2 = jnp.broadcast_to(b2_ref[...], (bt, _A2_PITCH))           # hoisted
        for oh in range(6):
            lo = 2 * _A1_PITCH * oh
            xs = act1_ref[:, lo:lo + 3 * _A1_PITCH]                   # (bt, 768)
            y = jnp.dot(xs, w2, preferred_element_type=f32) + b2      # (bt, 128)
            act2_ref[:, _A2_PITCH * oh:_A2_PITCH * (oh + 1)] = leaky(y)

        # ---- conv3 (all 4 output rows folded into ONE matmul) + dense -------
        w3 = w3_ref[...]                                              # (768, 64)
        y3 = leaky(jnp.dot(act2_ref[...], w3, preferred_element_type=f32)
                   + b3_ref[...])                                     # (bt, 64)
        # 64->1 dense on the VPU: multiply + single lane reduction.
        z = bd_ref[...] + jnp.sum(y3 * wd_ref[...], axis=1, keepdims=True)
        o_ref[...] = pl.reciprocal(1.0 + jnp.exp(-z), approx=False).astype(o_ref.dtype)

    return kernel


# ----------------------------------------------------------------------------
# One-time parameter preparation (PyTorch layout -> kernel weight slabs).
# Pure gathers/masks/pads/transposes: numerically exact.
# ----------------------------------------------------------------------------
def _conv_weight_slab(w, stride, w_in):
    """Fold width-im2col (incl. stride) + channel contraction into a matmul.

    w: PyTorch conv weight (Cout, Cin, KH, KW).
    Returns slab (KH * W_in * Cin, OW * Cout) such that for output row `oh`
      y[b, ow*Cout + co] = xs[b, :] @ slab, where
      xs[b, i*W_in*Cin + p*Cin + ci] = input[b, ci, stride*oh + i, p].
    """
    cout, cin, kh, kw = w.shape
    ow = (w_in - kw) // stride + 1
    p = np.arange(w_in)[:, None]                       # input column
    q = np.arange(ow)[None, :]                         # output column
    j = p - stride * q                                 # kernel column (maybe OOB)
    valid = (j >= 0) & (j < kw)                        # (W_in, OW)
    j_clip = np.clip(j, 0, kw - 1)
    g = w[:, :, :, j_clip]                             # (Cout, Cin, KH, W_in, OW)
    g = jnp.where(valid[None, None, None], g, 0.0)
    slab = jnp.transpose(g, (2, 3, 1, 4, 0))           # (KH, W_in, Cin, OW, Cout)
    return slab.reshape(kh * w_in * cin, ow * cout)


def _pad_rows(slab, kh, row_len, pitch):
    """Insert zero K-rows so the slab matches a `pitch`-strided activation row."""
    n = slab.shape[1]
    s = slab.reshape(kh, row_len, n)
    s = jnp.pad(s, ((0, 0), (0, pitch - row_len), (0, 0)))
    return s.reshape(kh * pitch, n)


def _pad_cols(mat, n_to):
    """Zero-pad the N dimension up to the activation lane pitch."""
    return jnp.pad(mat, ((0, 0), (0, n_to - mat.shape[1])))


def prepare_params(params, wide_input_pitch):
    in_pitch = 64 if wide_input_pitch else 28

    # conv1 slab -> (4*in_pitch, 256): K padded to the input row pitch (wide
    # layout only), N padded to the act1 lane pitch.
    w1 = _conv_weight_slab(params["w1"], stride=2, w_in=28)              # (112, 208)
    if wide_input_pitch:
        w1 = _pad_rows(w1, kh=4, row_len=28, pitch=in_pitch)             # (256, 208)
    w1 = _pad_cols(w1, _A1_PITCH)
    b1 = _pad_cols(jnp.tile(params["b1"], 13).reshape(1, 13 * 16), _A1_PITCH)

    # conv2 slab -> (3*256, 128)
    w2 = _pad_cols(_pad_rows(_conv_weight_slab(params["w2"], stride=2, w_in=13),
                             kh=3, row_len=13 * 16, pitch=_A1_PITCH), _A2_PITCH)
    b2 = _pad_cols(jnp.tile(params["b2"], 6).reshape(1, 6 * 8), _A2_PITCH)

    # conv3: fold the 4 output rows into one (6*128, 64) slab so all of conv3
    # is a single MXU matmul.  Column order stays (oh, ow, co).
    w3_row = _pad_rows(_conv_weight_slab(params["w3"], stride=1, w_in=6),
                       kh=3, row_len=6 * 8, pitch=_A2_PITCH)             # (384, 16)
    w3 = jnp.zeros((6 * _A2_PITCH, 64), jnp.float32)
    for oh in range(4):
        w3 = w3.at[_A2_PITCH * oh:_A2_PITCH * oh + 3 * _A2_PITCH,
                   16 * oh:16 * (oh + 1)].set(w3_row)
    b3 = jnp.tile(params["b3"], 16).reshape(1, 64)

    # PyTorch flattens NCHW -> index co*16 + oh*4 + ow; the kernel's conv3
    # columns are oh*16 + ow*4 + co, so permute the dense weight instead.
    wd = jnp.transpose(params["wd"].reshape(4, 4, 4), (1, 2, 0)).reshape(1, 64)
    bd = params["bd"].reshape(1, 1)
    return {"w1": w1, "b1": b1, "w2": w2, "b2": b2, "w3": w3, "b3": b3,
            "wd": wd, "bd": bd}


# ----------------------------------------------------------------------------
# Forward: a single pallas_call, grid over batch tiles.
# ----------------------------------------------------------------------------
def discriminator_forward(prep, x, *, bt, wide_input_pitch):
    """x: (B, 784) float32 -> (B,) sigmoid scores."""
    B = x.shape[0]
    assert B % bt == 0 and bt % 8 == 0, "batch tile must divide B and be 8-aligned"
    in_pitch = 64 if wide_input_pitch else 28
    if wide_input_pitch:
        # Re-pitch image rows to 64 lanes so every conv1 window slice starts on
        # a vreg boundary (free K-pad on 256-deep MXUs).
        x_in = jnp.pad(x.reshape(B, 28, 28),
                       ((0, 0), (0, 0), (0, in_pitch - 28))).reshape(B, 28 * in_pitch)
    else:
        x_in = x

    resident = lambda i: (0, 0)   # weights: same block every step -> stay in VMEM

    out = pl.pallas_call(
        _make_disc_kernel(in_pitch),
        out_shape=jax.ShapeDtypeStruct((B, 1), jnp.float32),
        grid=(B // bt,),
        in_specs=[
            pl.BlockSpec((bt, 28 * in_pitch), lambda i: (i, 0)),
            pl.BlockSpec(prep["w1"].shape, resident),
            pl.BlockSpec(prep["b1"].shape, resident),
            pl.BlockSpec(prep["w2"].shape, resident),
            pl.BlockSpec(prep["b2"].shape, resident),
            pl.BlockSpec(prep["w3"].shape, resident),
            pl.BlockSpec(prep["b3"].shape, resident),
            pl.BlockSpec(prep["wd"].shape, resident),
            pl.BlockSpec(prep["bd"].shape, resident),
        ],
        out_specs=pl.BlockSpec((bt, 1), lambda i: (i, 0)),
        scratch_shapes=[
            pltpu.VMEM((bt, 13 * _A1_PITCH), jnp.float32),   # conv1 activations
            pltpu.VMEM((bt, 6 * _A2_PITCH), jnp.float32),    # conv2 activations
        ],
        compiler_params=pltpu.CompilerParams(
            dimension_semantics=("parallel",),       # megacore split when grid > 1
            vmem_limit_bytes=32 * 1024 * 1024,
        ),
    )(x_in.astype(jnp.float32), prep["w1"], prep["b1"], prep["w2"], prep["b2"],
      prep["w3"], prep["b3"], prep["wd"], prep["bd"])
    return out[:, 0]


# ----------------------------------------------------------------------------
# Per-generation tiling choices.
# ----------------------------------------------------------------------------
def _device_kind():
    try:
        return jax.devices()[0].device_kind.lower()
    except Exception:
        return ""


# ----------------------------------------------------------------------------
# Parameters (deterministic, PyTorch-like fan_in uniform init)
# ----------------------------------------------------------------------------
def init_params(key):
    def uni(k, shape, fan_in):
        bound = 1.0 / np.sqrt(fan_in)
        return jax.random.uniform(k, shape, jnp.float32, -bound, bound)

    ks = jax.random.split(key, 8)
    return {
        "w1": uni(ks[0], (16, 1, 4, 4), 1 * 4 * 4),
        "b1": uni(ks[1], (16,), 1 * 4 * 4),
        "w2": uni(ks[2], (8, 16, 3, 3), 16 * 3 * 3),
        "b2": uni(ks[3], (8,), 16 * 3 * 3),
        "w3": uni(ks[4], (4, 8, 3, 3), 8 * 3 * 3),
        "b3": uni(ks[5], (4,), 8 * 3 * 3),
        "wd": uni(ks[6], (1, 64), 64),
        "bd": uni(ks[7], (1,), 64),
    }


# ----------------------------------------------------------------------------
# Pure-JAX reference (lax conv), used only for verification.
# ----------------------------------------------------------------------------
def reference_forward(params, x):
    B = x.shape[0]
    h = x.reshape(B, 1, 28, 28)

    def conv(h, w, b, stride):
        y = jax.lax.conv_general_dilated(
            h, w, window_strides=(stride, stride), padding="VALID",
            dimension_numbers=("NCHW", "OIHW", "NCHW"))
        y = y + b.reshape(1, -1, 1, 1)
        return jnp.where(y >= 0, y, 0.2 * y)

    h = conv(h, params["w1"], params["b1"], 2)
    h = conv(h, params["w2"], params["b2"], 2)
    h = conv(h, params["w3"], params["b3"], 1)
    h = h.reshape(B, -1)
    logits = h @ params["wd"].T + params["bd"]
    return jnp.squeeze(jax.nn.sigmoid(logits))


if __name__ == "__main__":
    key = jax.random.PRNGKey(0)
    k_x, k_p = jax.random.split(key)

    batch = 64     # the module's own batch_size; spatial 28x28 is fixed by it
    x = jax.random.normal(k_x, (batch, 784), dtype=jnp.float32)
    params = init_params(k_p)

    kind = _device_kind()
    n_tc = 2 if "v7" in kind else 1                 # TensorCores sharing the grid
    bt = batch // n_tc if batch % (8 * n_tc) == 0 else batch
    wide = ("v6" in kind) or ("v7" in kind)          # 256-deep MXU: free K-pad

    prep = prepare_params(params, wide)              # one-time weight preparation
    fwd = jax.jit(functools.partial(discriminator_forward,
                                    bt=bt, wide_input_pitch=wide))
    out = jax.block_until_ready(fwd(prep, x))

    ref = jax.block_until_ready(reference_forward(params, x))
    np.testing.assert_allclose(np.asarray(out), np.asarray(ref),
                               rtol=3e-4, atol=3e-5)
    assert out.shape == (batch,)

    print("KERNEL_OK")
</pallas_src>

<mosaic_0001>
module attributes {stable_mosaic.version = 11 : i64} {
  func.func @kernel(%arg0: i32, %arg1: memref<64x784xf32, #tpu.memory_space<vmem>>, %arg2: memref<112x256xf32, #tpu.memory_space<vmem>>, %arg3: memref<1x256xf32, #tpu.memory_space<vmem>>, %arg4: memref<768x128xf32, #tpu.memory_space<vmem>>, %arg5: memref<1x128xf32, #tpu.memory_space<vmem>>, %arg6: memref<768x64xf32, #tpu.memory_space<vmem>>, %arg7: memref<1x64xf32, #tpu.memory_space<vmem>>, %arg8: memref<1x64xf32, #tpu.memory_space<vmem>>, %arg9: memref<1x1xf32, #tpu.memory_space<vmem>>, %arg10: memref<64x1xf32, #tpu.memory_space<vmem>>, %arg11: memref<64x3328xf32, #tpu.memory_space<vmem>>, %arg12: memref<64x768xf32, #tpu.memory_space<vmem>>) attributes {dimension_semantics = [#tpu.dimension_semantics<parallel>], iteration_bounds = array<i64: 1>, scalar_prefetch = 0 : i64, scratch_operands = 2 : i64, tpu.core_type = #tpu.core_type<tc>, window_params = [{transform_indices = @transform_0, window_bounds = array<i64: 64, 784>}, {pipeline_mode = #tpu.pipeline_mode<synchronous>, transform_indices = @transform_1, window_bounds = array<i64: 112, 256>}, {pipeline_mode = #tpu.pipeline_mode<synchronous>, transform_indices = @transform_2, window_bounds = array<i64: 1, 256>}, {pipeline_mode = #tpu.pipeline_mode<synchronous>, transform_indices = @transform_3, window_bounds = array<i64: 768, 128>}, {pipeline_mode = #tpu.pipeline_mode<synchronous>, transform_indices = @transform_4, window_bounds = array<i64: 1, 128>}, {pipeline_mode = #tpu.pipeline_mode<synchronous>, transform_indices = @transform_5, window_bounds = array<i64: 768, 64>}, {pipeline_mode = #tpu.pipeline_mode<synchronous>, transform_indices = @transform_6, window_bounds = array<i64: 1, 64>}, {pipeline_mode = #tpu.pipeline_mode<synchronous>, transform_indices = @transform_7, window_bounds = array<i64: 1, 64>}, {pipeline_mode = #tpu.pipeline_mode<synchronous>, transform_indices = @transform_8, window_bounds = array<i64: 1, 1>}, {transform_indices = @transform_9, window_bounds = array<i64: 64, 1>}]} {
    %c0 = arith.constant 0 : index
    %c0_0 = arith.constant 0 : index
    %0 = vector.load %arg2[%c0, %c0_0] : memref<112x256xf32, #tpu.memory_space<vmem>>, vector<112x256xf32>
    %c0_1 = arith.constant 0 : index
    %c0_2 = arith.constant 0 : index
    %1 = vector.load %arg3[%c0_1, %c0_2] : memref<1x256xf32, #tpu.memory_space<vmem>>, vector<1x256xf32>
    %2 = vector.shape_cast %1 : vector<1x256xf32> to vector<1x256xf32>
    %3 = vector.broadcast %2 : vector<1x256xf32> to vector<64x256xf32>
    %c0_3 = arith.constant 0 : index
    %c0_4 = arith.constant 0 : index
    %4 = vector.load %arg1[%c0_3, %c0_4] : memref<64x784xf32, #tpu.memory_space<vmem>>, vector<64x112xf32>
    %cst = arith.constant dense<0.000000e+00> : vector<64x256xf32>
    %5 = tpu.matmul %4, %0, %cst {dimension_numbers = #tpu.dot_dimension_numbers<[1], [0], [0], [1], [0, 0, 1, 1], [], []>} : vector<64x112xf32>, vector<112x256xf32>, vector<64x256xf32> -> vector<64x256xf32>
    %6 = arith.addf %5, %3 : vector<64x256xf32>
    %cst_5 = arith.constant 0.000000e+00 : f32
    %7 = vector.broadcast %cst_5 : f32 to vector<64x256xf32>
    %8 = arith.cmpf oge, %6, %7 : vector<64x256xf32>
    %cst_6 = arith.constant 2.000000e-01 : f32
    %9 = vector.broadcast %cst_6 : f32 to vector<64x256xf32>
    %10 = arith.mulf %9, %6 : vector<64x256xf32>
    %11 = arith.select %8, %6, %10 : vector<64x256xi1>, vector<64x256xf32>
    %c0_7 = arith.constant 0 : index
    %c0_8 = arith.constant 0 : index
    %12 = vector.load %arg11[%c0_7, %c0_8] : memref<64x3328xf32, #tpu.memory_space<vmem>>, vector<64x256xf32>
    tpu.vector_store %arg11[%c0_7, %c0_8], %11 {strides = array<i32>} : memref<64x3328xf32, #tpu.memory_space<vmem>>, vector<64x256xf32>,
    %c0_9 = arith.constant 0 : index
    %c56 = arith.constant 56 : index
    %13 = vector.load %arg1[%c0_9, %c56] : memref<64x784xf32, #tpu.memory_space<vmem>>, vector<64x112xf32>
    %cst_10 = arith.constant dense<0.000000e+00> : vector<64x256xf32>
    %14 = tpu.matmul %13, %0, %cst_10 {dimension_numbers = #tpu.dot_dimension_numbers<[1], [0], [0], [1], [0, 0, 1, 1], [], []>} : vector<64x112xf32>, vector<112x256xf32>, vector<64x256xf32> -> vector<64x256xf32>
    %15 = arith.addf %14, %3 : vector<64x256xf32>
    %cst_11 = arith.constant 0.000000e+00 : f32
    %16 = vector.broadcast %cst_11 : f32 to vector<64x256xf32>
    %17 = arith.cmpf oge, %15, %16 : vector<64x256xf32>
    %cst_12 = arith.constant 2.000000e-01 : f32
    %18 = vector.broadcast %cst_12 : f32 to vector<64x256xf32>
    %19 = arith.mulf %18, %15 : vector<64x256xf32>
    %20 = arith.select %17, %15, %19 : vector<64x256xi1>, vector<64x256xf32>
    %c0_13 = arith.constant 0 : index
    %c256 = arith.constant 256 : index
    %21 = vector.load %arg11[%c0_13, %c256] : memref<64x3328xf32, #tpu.memory_space<vmem>>, vector<64x256xf32>
    tpu.vector_store %arg11[%c0_13, %c256], %20 {strides = array<i32>} : memref<64x3328xf32, #tpu.memory_space<vmem>>, vector<64x256xf32>,
    %c0_14 = arith.constant 0 : index
    %c112 = arith.constant 112 : index
    %22 = vector.load %arg1[%c0_14, %c112] : memref<64x784xf32, #tpu.memory_space<vmem>>, vector<64x112xf32>
    %cst_15 = arith.constant dense<0.000000e+00> : vector<64x256xf32>
    %23 = tpu.matmul %22, %0, %cst_15 {dimension_numbers = #tpu.dot_dimension_numbers<[1], [0], [0], [1], [0, 0, 1, 1], [], []>} : vector<64x112xf32>, vector<112x256xf32>, vector<64x256xf32> -> vector<64x256xf32>
    %24 = arith.addf %23, %3 : vector<64x256xf32>
    %cst_16 = arith.constant 0.000000e+00 : f32
    %25 = vector.broadcast %cst_16 : f32 to vector<64x256xf32>
    %26 = arith.cmpf oge, %24, %25 : vector<64x256xf32>
    %cst_17 = arith.constant 2.000000e-01 : f32
    %27 = vector.broadcast %cst_17 : f32 to vector<64x256xf32>
    %28 = arith.mulf %27, %24 : vector<64x256xf32>
    %29 = arith.select %26, %24, %28 : vector<64x256xi1>, vector<64x256xf32>
    %c0_18 = arith.constant 0 : index
    %c512 = arith.constant 512 : index
    %30 = vector.load %arg11[%c0_18, %c512] : memref<64x3328xf32, #tpu.memory_space<vmem>>, vector<64x256xf32>
    tpu.vector_store %arg11[%c0_18, %c512], %29 {strides = array<i32>} : memref<64x3328xf32, #tpu.memory_space<vmem>>, vector<64x256xf32>,
    %c0_19 = arith.constant 0 : index
    %c168 = arith.constant 168 : index
    %31 = vector.load %arg1[%c0_19, %c168] : memref<64x784xf32, #tpu.memory_space<vmem>>, vector<64x112xf32>
    %cst_20 = arith.constant dense<0.000000e+00> : vector<64x256xf32>
    %32 = tpu.matmul %31, %0, %cst_20 {dimension_numbers = #tpu.dot_dimension_numbers<[1], [0], [0], [1], [0, 0, 1, 1], [], []>} : vector<64x112xf32>, vector<112x256xf32>, vector<64x256xf32> -> vector<64x256xf32>
    %33 = arith.addf %32, %3 : vector<64x256xf32>
    %cst_21 = arith.constant 0.000000e+00 : f32
    %34 = vector.broadcast %cst_21 : f32 to vector<64x256xf32>
    %35 = arith.cmpf oge, %33, %34 : vector<64x256xf32>
    %cst_22 = arith.constant 2.000000e-01 : f32
    %36 = vector.broadcast %cst_22 : f32 to vector<64x256xf32>
    %37 = arith.mulf %36, %33 : vector<64x256xf32>
    %38 = arith.select %35, %33, %37 : vector<64x256xi1>, vector<64x256xf32>
    %c0_23 = arith.constant 0 : index
    %c768 = arith.constant 768 : index
    %39 = vector.load %arg11[%c0_23, %c768] : memref<64x3328xf32, #tpu.memory_space<vmem>>, vector<64x256xf32>
    tpu.vector_store %arg11[%c0_23, %c768], %38 {strides = array<i32>} : memref<64x3328xf32, #tpu.memory_space<vmem>>, vector<64x256xf32>,
    %c0_24 = arith.constant 0 : index
    %c224 = arith.constant 224 : index
    %40 = vector.load %arg1[%c0_24, %c224] : memref<64x784xf32, #tpu.memory_space<vmem>>, vector<64x112xf32>
    %cst_25 = arith.constant dense<0.000000e+00> : vector<64x256xf32>
    %41 = tpu.matmul %40, %0, %cst_25 {dimension_numbers = #tpu.dot_dimension_numbers<[1], [0], [0], [1], [0, 0, 1, 1], [], []>} : vector<64x112xf32>, vector<112x256xf32>, vector<64x256xf32> -> vector<64x256xf32>
    %42 = arith.addf %41, %3 : vector<64x256xf32>
    %cst_26 = arith.constant 0.000000e+00 : f32
    %43 = vector.broadcast %cst_26 : f32 to vector<64x256xf32>
    %44 = arith.cmpf oge, %42, %43 : vector<64x256xf32>
    %cst_27 = arith.constant 2.000000e-01 : f32
    %45 = vector.broadcast %cst_27 : f32 to vector<64x256xf32>
    %46 = arith.mulf %45, %42 : vector<64x256xf32>
    %47 = arith.select %44, %42, %46 : vector<64x256xi1>, vector<64x256xf32>
    %c0_28 = arith.constant 0 : index
    %c1024 = arith.constant 1024 : index
    %48 = vector.load %arg11[%c0_28, %c1024] : memref<64x3328xf32, #tpu.memory_space<vmem>>, vector<64x256xf32>
    tpu.vector_store %arg11[%c0_28, %c1024], %47 {strides = array<i32>} : memref<64x3328xf32, #tpu.memory_space<vmem>>, vector<64x256xf32>,
    %c0_29 = arith.constant 0 : index
    %c280 = arith.constant 280 : index
    %49 = vector.load %arg1[%c0_29, %c280] : memref<64x784xf32, #tpu.memory_space<vmem>>, vector<64x112xf32>
    %cst_30 = arith.constant dense<0.000000e+00> : vector<64x256xf32>
    %50 = tpu.matmul %49, %0, %cst_30 {dimension_numbers = #tpu.dot_dimension_numbers<[1], [0], [0], [1], [0, 0, 1, 1], [], []>} : vector<64x112xf32>, vector<112x256xf32>, vector<64x256xf32> -> vector<64x256xf32>
    %51 = arith.addf %50, %3 : vector<64x256xf32>
    %cst_31 = arith.constant 0.000000e+00 : f32
    %52 = vector.broadcast %cst_31 : f32 to vector<64x256xf32>
    %53 = arith.cmpf oge, %51, %52 : vector<64x256xf32>
    %cst_32 = arith.constant 2.000000e-01 : f32
    %54 = vector.broadcast %cst_32 : f32 to vector<64x256xf32>
    %55 = arith.mulf %54, %51 : vector<64x256xf32>
    %56 = arith.select %53, %51, %55 : vector<64x256xi1>, vector<64x256xf32>
    %c0_33 = arith.constant 0 : index
    %c1280 = arith.constant 1280 : index
    %57 = vector.load %arg11[%c0_33, %c1280] : memref<64x3328xf32, #tpu.memory_space<vmem>>, vector<64x256xf32>
    tpu.vector_store %arg11[%c0_33, %c1280], %56 {strides = array<i32>} : memref<64x3328xf32, #tpu.memory_space<vmem>>, vector<64x256xf32>,
    %c0_34 = arith.constant 0 : index
    %c336 = arith.constant 336 : index
    %58 = vector.load %arg1[%c0_34, %c336] : memref<64x784xf32, #tpu.memory_space<vmem>>, vector<64x112xf32>
    %cst_35 = arith.constant dense<0.000000e+00> : vector<64x256xf32>
    %59 = tpu.matmul %58, %0, %cst_35 {dimension_numbers = #tpu.dot_dimension_numbers<[1], [0], [0], [1], [0, 0, 1, 1], [], []>} : vector<64x112xf32>, vector<112x256xf32>, vector<64x256xf32> -> vector<64x256xf32>
    %60 = arith.addf %59, %3 : vector<64x256xf32>
    %cst_36 = arith.constant 0.000000e+00 : f32
    %61 = vector.broadcast %cst_36 : f32 to vector<64x256xf32>
    %62 = arith.cmpf oge, %60, %61 : vector<64x256xf32>
    %cst_37 = arith.constant 2.000000e-01 : f32
    %63 = vector.broadcast %cst_37 : f32 to vector<64x256xf32>
    %64 = arith.mulf %63, %60 : vector<64x256xf32>
    %65 = arith.select %62, %60, %64 : vector<64x256xi1>, vector<64x256xf32>
    %c0_38 = arith.constant 0 : index
    %c1536 = arith.constant 1536 : index
    %66 = vector.load %arg11[%c0_38, %c1536] : memref<64x3328xf32, #tpu.memory_space<vmem>>, vector<64x256xf32>
    tpu.vector_store %arg11[%c0_38, %c1536], %65 {strides = array<i32>} : memref<64x3328xf32, #tpu.memory_space<vmem>>, vector<64x256xf32>,
    %c0_39 = arith.constant 0 : index
    %c392 = arith.constant 392 : index
    %67 = vector.load %arg1[%c0_39, %c392] : memref<64x784xf32, #tpu.memory_space<vmem>>, vector<64x112xf32>
    %cst_40 = arith.constant dense<0.000000e+00> : vector<64x256xf32>
    %68 = tpu.matmul %67, %0, %cst_40 {dimension_numbers = #tpu.dot_dimension_numbers<[1], [0], [0], [1], [0, 0, 1, 1], [], []>} : vector<64x112xf32>, vector<112x256xf32>, vector<64x256xf32> -> vector<64x256xf32>
    %69 = arith.addf %68, %3 : vector<64x256xf32>
    %cst_41 = arith.constant 0.000000e+00 : f32
    %70 = vector.broadcast %cst_41 : f32 to vector<64x256xf32>
    %71 = arith.cmpf oge, %69, %70 : vector<64x256xf32>
    %cst_42 = arith.constant 2.000000e-01 : f32
    %72 = vector.broadcast %cst_42 : f32 to vector<64x256xf32>
    %73 = arith.mulf %72, %69 : vector<64x256xf32>
    %74 = arith.select %71, %69, %73 : vector<64x256xi1>, vector<64x256xf32>
    %c0_43 = arith.constant 0 : index
    %c1792 = arith.constant 1792 : index
    %75 = vector.load %arg11[%c0_43, %c1792] : memref<64x3328xf32, #tpu.memory_space<vmem>>, vector<64x256xf32>
    tpu.vector_store %arg11[%c0_43, %c1792], %74 {strides = array<i32>} : memref<64x3328xf32, #tpu.memory_space<vmem>>, vector<64x256xf32>,
    %c0_44 = arith.constant 0 : index
    %c448 = arith.constant 448 : index
    %76 = vector.load %arg1[%c0_44, %c448] : memref<64x784xf32, #tpu.memory_space<vmem>>, vector<64x112xf32>
    %cst_45 = arith.constant dense<0.000000e+00> : vector<64x256xf32>
    %77 = tpu.matmul %76, %0, %cst_45 {dimension_numbers = #tpu.dot_dimension_numbers<[1], [0], [0], [1], [0, 0, 1, 1], [], []>} : vector<64x112xf32>, vector<112x256xf32>, vector<64x256xf32> -> vector<64x256xf32>
    %78 = arith.addf %77, %3 : vector<64x256xf32>
    %cst_46 = arith.constant 0.000000e+00 : f32
    %79 = vector.broadcast %cst_46 : f32 to vector<64x256xf32>
    %80 = arith.cmpf oge, %78, %79 : vector<64x256xf32>
    %cst_47 = arith.constant 2.000000e-01 : f32
    %81 = vector.broadcast %cst_47 : f32 to vector<64x256xf32>
    %82 = arith.mulf %81, %78 : vector<64x256xf32>
    %83 = arith.select %80, %78, %82 : vector<64x256xi1>, vector<64x256xf32>
    %c0_48 = arith.constant 0 : index
    %c2048 = arith.constant 2048 : index
    %84 = vector.load %arg11[%c0_48, %c2048] : memref<64x3328xf32, #tpu.memory_space<vmem>>, vector<64x256xf32>
    tpu.vector_store %arg11[%c0_48, %c2048], %83 {strides = array<i32>} : memref<64x3328xf32, #tpu.memory_space<vmem>>, vector<64x256xf32>,
    %c0_49 = arith.constant 0 : index
    %c504 = arith.constant 504 : index
    %85 = vector.load %arg1[%c0_49, %c504] : memref<64x784xf32, #tpu.memory_space<vmem>>, vector<64x112xf32>
    %cst_50 = arith.constant dense<0.000000e+00> : vector<64x256xf32>
    %86 = tpu.matmul %85, %0, %cst_50 {dimension_numbers = #tpu.dot_dimension_numbers<[1], [0], [0], [1], [0, 0, 1, 1], [], []>} : vector<64x112xf32>, vector<112x256xf32>, vector<64x256xf32> -> vector<64x256xf32>
    %87 = arith.addf %86, %3 : vector<64x256xf32>
    %cst_51 = arith.constant 0.000000e+00 : f32
    %88 = vector.broadcast %cst_51 : f32 to vector<64x256xf32>
    %89 = arith.cmpf oge, %87, %88 : vector<64x256xf32>
    %cst_52 = arith.constant 2.000000e-01 : f32
    %90 = vector.broadcast %cst_52 : f32 to vector<64x256xf32>
    %91 = arith.mulf %90, %87 : vector<64x256xf32>
    %92 = arith.select %89, %87, %91 : vector<64x256xi1>, vector<64x256xf32>
    %c0_53 = arith.constant 0 : index
    %c2304 = arith.constant 2304 : index
    %93 = vector.load %arg11[%c0_53, %c2304] : memref<64x3328xf32, #tpu.memory_space<vmem>>, vector<64x256xf32>
    tpu.vector_store %arg11[%c0_53, %c2304], %92 {strides = array<i32>} : memref<64x3328xf32, #tpu.memory_space<vmem>>, vector<64x256xf32>,
    %c0_54 = arith.constant 0 : index
    %c560 = arith.constant 560 : index
    %94 = vector.load %arg1[%c0_54, %c560] : memref<64x784xf32, #tpu.memory_space<vmem>>, vector<64x112xf32>
    %cst_55 = arith.constant dense<0.000000e+00> : vector<64x256xf32>
    %95 = tpu.matmul %94, %0, %cst_55 {dimension_numbers = #tpu.dot_dimension_numbers<[1], [0], [0], [1], [0, 0, 1, 1], [], []>} : vector<64x112xf32>, vector<112x256xf32>, vector<64x256xf32> -> vector<64x256xf32>
    %96 = arith.addf %95, %3 : vector<64x256xf32>
    %cst_56 = arith.constant 0.000000e+00 : f32
    %97 = vector.broadcast %cst_56 : f32 to vector<64x256xf32>
    %98 = arith.cmpf oge, %96, %97 : vector<64x256xf32>
    %cst_57 = arith.constant 2.000000e-01 : f32
    %99 = vector.broadcast %cst_57 : f32 to vector<64x256xf32>
    %100 = arith.mulf %99, %96 : vector<64x256xf32>
    %101 = arith.select %98, %96, %100 : vector<64x256xi1>, vector<64x256xf32>
    %c0_58 = arith.constant 0 : index
    %c2560 = arith.constant 2560 : index
    %102 = vector.load %arg11[%c0_58, %c2560] : memref<64x3328xf32, #tpu.memory_space<vmem>>, vector<64x256xf32>
    tpu.vector_store %arg11[%c0_58, %c2560], %101 {strides = array<i32>} : memref<64x3328xf32, #tpu.memory_space<vmem>>, vector<64x256xf32>,
    %c0_59 = arith.constant 0 : index
    %c616 = arith.constant 616 : index
    %103 = vector.load %arg1[%c0_59, %c616] : memref<64x784xf32, #tpu.memory_space<vmem>>, vector<64x112xf32>
    %cst_60 = arith.constant dense<0.000000e+00> : vector<64x256xf32>
    %104 = tpu.matmul %103, %0, %cst_60 {dimension_numbers = #tpu.dot_dimension_numbers<[1], [0], [0], [1], [0, 0, 1, 1], [], []>} : vector<64x112xf32>, vector<112x256xf32>, vector<64x256xf32> -> vector<64x256xf32>
    %105 = arith.addf %104, %3 : vector<64x256xf32>
    %cst_61 = arith.constant 0.000000e+00 : f32
    %106 = vector.broadcast %cst_61 : f32 to vector<64x256xf32>
    %107 = arith.cmpf oge, %105, %106 : vector<64x256xf32>
    %cst_62 = arith.constant 2.000000e-01 : f32
    %108 = vector.broadcast %cst_62 : f32 to vector<64x256xf32>
    %109 = arith.mulf %108, %105 : vector<64x256xf32>
    %110 = arith.select %107, %105, %109 : vector<64x256xi1>, vector<64x256xf32>
    %c0_63 = arith.constant 0 : index
    %c2816 = arith.constant 2816 : index
    %111 = vector.load %arg11[%c0_63, %c2816] : memref<64x3328xf32, #tpu.memory_space<vmem>>, vector<64x256xf32>
    tpu.vector_store %arg11[%c0_63, %c2816], %110 {strides = array<i32>} : memref<64x3328xf32, #tpu.memory_space<vmem>>, vector<64x256xf32>,
    %c0_64 = arith.constant 0 : index
    %c672 = arith.constant 672 : index
    %112 = vector.load %arg1[%c0_64, %c672] : memref<64x784xf32, #tpu.memory_space<vmem>>, vector<64x112xf32>
    %cst_65 = arith.constant dense<0.000000e+00> : vector<64x256xf32>
    %113 = tpu.matmul %112, %0, %cst_65 {dimension_numbers = #tpu.dot_dimension_numbers<[1], [0], [0], [1], [0, 0, 1, 1], [], []>} : vector<64x112xf32>, vector<112x256xf32>, vector<64x256xf32> -> vector<64x256xf32>
    %114 = arith.addf %113, %3 : vector<64x256xf32>
    %cst_66 = arith.constant 0.000000e+00 : f32
    %115 = vector.broadcast %cst_66 : f32 to vector<64x256xf32>
    %116 = arith.cmpf oge, %114, %115 : vector<64x256xf32>
    %cst_67 = arith.constant 2.000000e-01 : f32
    %117 = vector.broadcast %cst_67 : f32 to vector<64x256xf32>
    %118 = arith.mulf %117, %114 : vector<64x256xf32>
    %119 = arith.select %116, %114, %118 : vector<64x256xi1>, vector<64x256xf32>
    %c0_68 = arith.constant 0 : index
    %c3072 = arith.constant 3072 : index
    %120 = vector.load %arg11[%c0_68, %c3072] : memref<64x3328xf32, #tpu.memory_space<vmem>>, vector<64x256xf32>
    tpu.vector_store %arg11[%c0_68, %c3072], %119 {strides = array<i32>} : memref<64x3328xf32, #tpu.memory_space<vmem>>, vector<64x256xf32>,
    %c0_69 = arith.constant 0 : index
    %c0_70 = arith.constant 0 : index
    %121 = vector.load %arg4[%c0_69, %c0_70] : memref<768x128xf32, #tpu.memory_space<vmem>>, vector<768x128xf32>
    %c0_71 = arith.constant 0 : index
    %c0_72 = arith.constant 0 : index
    %122 = vector.load %arg5[%c0_71, %c0_72] : memref<1x128xf32, #tpu.memory_space<vmem>>, vector<1x128xf32>
    %123 = vector.shape_cast %122 : vector<1x128xf32> to vector<1x128xf32>
    %124 = vector.broadcast %123 : vector<1x128xf32> to vector<64x128xf32>
    %c0_73 = arith.constant 0 : index
    %c0_74 = arith.constant 0 : index
    %125 = vector.load %arg11[%c0_73, %c0_74] : memref<64x3328xf32, #tpu.memory_space<vmem>>, vector<64x768xf32>
    %cst_75 = arith.constant dense<0.000000e+00> : vector<64x128xf32>
    %126 = tpu.matmul %125, %121, %cst_75 {dimension_numbers = #tpu.dot_dimension_numbers<[1], [0], [0], [1], [0, 0, 1, 1], [], []>} : vector<64x768xf32>, vector<768x128xf32>, vector<64x128xf32> -> vector<64x128xf32>
    %127 = arith.addf %126, %124 : vector<64x128xf32>
    %cst_76 = arith.constant 0.000000e+00 : f32
    %128 = vector.broadcast %cst_76 : f32 to vector<64x128xf32>
    %129 = arith.cmpf oge, %127, %128 : vector<64x128xf32>
    %cst_77 = arith.constant 2.000000e-01 : f32
    %130 = vector.broadcast %cst_77 : f32 to vector<64x128xf32>
    %131 = arith.mulf %130, %127 : vector<64x128xf32>
    %132 = arith.select %129, %127, %131 : vector<64x128xi1>, vector<64x128xf32>
    %c0_78 = arith.constant 0 : index
    %c0_79 = arith.constant 0 : index
    %133 = vector.load %arg12[%c0_78, %c0_79] : memref<64x768xf32, #tpu.memory_space<vmem>>, vector<64x128xf32>
    tpu.vector_store %arg12[%c0_78, %c0_79], %132 {strides = array<i32>} : memref<64x768xf32, #tpu.memory_space<vmem>>, vector<64x128xf32>,
    %c0_80 = arith.constant 0 : index
    %c512_81 = arith.constant 512 : index
    %134 = vector.load %arg11[%c0_80, %c512_81] : memref<64x3328xf32, #tpu.memory_space<vmem>>, vector<64x768xf32>
    %cst_82 = arith.constant dense<0.000000e+00> : vector<64x128xf32>
    %135 = tpu.matmul %134, %121, %cst_82 {dimension_numbers = #tpu.dot_dimension_numbers<[1], [0], [0], [1], [0, 0, 1, 1], [], []>} : vector<64x768xf32>, vector<768x128xf32>, vector<64x128xf32> -> vector<64x128xf32>
    %136 = arith.addf %135, %124 : vector<64x128xf32>
    %cst_83 = arith.constant 0.000000e+00 : f32
    %137 = vector.broadcast %cst_83 : f32 to vector<64x128xf32>
    %138 = arith.cmpf oge, %136, %137 : vector<64x128xf32>
    %cst_84 = arith.constant 2.000000e-01 : f32
    %139 = vector.broadcast %cst_84 : f32 to vector<64x128xf32>
    %140 = arith.mulf %139, %136 : vector<64x128xf32>
    %141 = arith.select %138, %136, %140 : vector<64x128xi1>, vector<64x128xf32>
    %c0_85 = arith.constant 0 : index
    %c128 = arith.constant 128 : index
    %142 = vector.load %arg12[%c0_85, %c128] : memref<64x768xf32, #tpu.memory_space<vmem>>, vector<64x128xf32>
    tpu.vector_store %arg12[%c0_85, %c128], %141 {strides = array<i32>} : memref<64x768xf32, #tpu.memory_space<vmem>>, vector<64x128xf32>,
    %c0_86 = arith.constant 0 : index
    %c1024_87 = arith.constant 1024 : index
    %143 = vector.load %arg11[%c0_86, %c1024_87] : memref<64x3328xf32, #tpu.memory_space<vmem>>, vector<64x768xf32>
    %cst_88 = arith.constant dense<0.000000e+00> : vector<64x128xf32>
    %144 = tpu.matmul %143, %121, %cst_88 {dimension_numbers = #tpu.dot_dimension_numbers<[1], [0], [0], [1], [0, 0, 1, 1], [], []>} : vector<64x768xf32>, vector<768x128xf32>, vector<64x128xf32> -> vector<64x128xf32>
    %145 = arith.addf %144, %124 : vector<64x128xf32>
    %cst_89 = arith.constant 0.000000e+00 : f32
    %146 = vector.broadcast %cst_89 : f32 to vector<64x128xf32>
    %147 = arith.cmpf oge, %145, %146 : vector<64x128xf32>
    %cst_90 = arith.constant 2.000000e-01 : f32
    %148 = vector.broadcast %cst_90 : f32 to vector<64x128xf32>
    %149 = arith.mulf %148, %145 : vector<64x128xf32>
    %150 = arith.select %147, %145, %149 : vector<64x128xi1>, vector<64x128xf32>
    %c0_91 = arith.constant 0 : index
    %c256_92 = arith.constant 256 : index
    %151 = vector.load %arg12[%c0_91, %c256_92] : memref<64x768xf32, #tpu.memory_space<vmem>>, vector<64x128xf32>
    tpu.vector_store %arg12[%c0_91, %c256_92], %150 {strides = array<i32>} : memref<64x768xf32, #tpu.memory_space<vmem>>, vector<64x128xf32>,
    %c0_93 = arith.constant 0 : index
    %c1536_94 = arith.constant 1536 : index
    %152 = vector.load %arg11[%c0_93, %c1536_94] : memref<64x3328xf32, #tpu.memory_space<vmem>>, vector<64x768xf32>
    %cst_95 = arith.constant dense<0.000000e+00> : vector<64x128xf32>
    %153 = tpu.matmul %152, %121, %cst_95 {dimension_numbers = #tpu.dot_dimension_numbers<[1], [0], [0], [1], [0, 0, 1, 1], [], []>} : vector<64x768xf32>, vector<768x128xf32>, vector<64x128xf32> -> vector<64x128xf32>
    %154 = arith.addf %153, %124 : vector<64x128xf32>
    %cst_96 = arith.constant 0.000000e+00 : f32
    %155 = vector.broadcast %cst_96 : f32 to vector<64x128xf32>
    %156 = arith.cmpf oge, %154, %155 : vector<64x128xf32>
    %cst_97 = arith.constant 2.000000e-01 : f32
    %157 = vector.broadcast %cst_97 : f32 to vector<64x128xf32>
    %158 = arith.mulf %157, %154 : vector<64x128xf32>
    %159 = arith.select %156, %154, %158 : vector<64x128xi1>, vector<64x128xf32>
    %c0_98 = arith.constant 0 : index
    %c384 = arith.constant 384 : index
    %160 = vector.load %arg12[%c0_98, %c384] : memref<64x768xf32, #tpu.memory_space<vmem>>, vector<64x128xf32>
    tpu.vector_store %arg12[%c0_98, %c384], %159 {strides = array<i32>} : memref<64x768xf32, #tpu.memory_space<vmem>>, vector<64x128xf32>,
    %c0_99 = arith.constant 0 : index
    %c2048_100 = arith.constant 2048 : index
    %161 = vector.load %arg11[%c0_99, %c2048_100] : memref<64x3328xf32, #tpu.memory_space<vmem>>, vector<64x768xf32>
    %cst_101 = arith.constant dense<0.000000e+00> : vector<64x128xf32>
    %162 = tpu.matmul %161, %121, %cst_101 {dimension_numbers = #tpu.dot_dimension_numbers<[1], [0], [0], [1], [0, 0, 1, 1], [], []>} : vector<64x768xf32>, vector<768x128xf32>, vector<64x128xf32> -> vector<64x128xf32>
    %163 = arith.addf %162, %124 : vector<64x128xf32>
    %cst_102 = arith.constant 0.000000e+00 : f32
    %164 = vector.broadcast %cst_102 : f32 to vector<64x128xf32>
    %165 = arith.cmpf oge, %163, %164 : vector<64x128xf32>
    %cst_103 = arith.constant 2.000000e-01 : f32
    %166 = vector.broadcast %cst_103 : f32 to vector<64x128xf32>
    %167 = arith.mulf %166, %163 : vector<64x128xf32>
    %168 = arith.select %165, %163, %167 : vector<64x128xi1>, vector<64x128xf32>
    %c0_104 = arith.constant 0 : index
    %c512_105 = arith.constant 512 : index
    %169 = vector.load %arg12[%c0_104, %c512_105] : memref<64x768xf32, #tpu.memory_space<vmem>>, vector<64x128xf32>
    tpu.vector_store %arg12[%c0_104, %c512_105], %168 {strides = array<i32>} : memref<64x768xf32, #tpu.memory_space<vmem>>, vector<64x128xf32>,
    %c0_106 = arith.constant 0 : index
    %c2560_107 = arith.constant 2560 : index
    %170 = vector.load %arg11[%c0_106, %c2560_107] : memref<64x3328xf32, #tpu.memory_space<vmem>>, vector<64x768xf32>
    %cst_108 = arith.constant dense<0.000000e+00> : vector<64x128xf32>
    %171 = tpu.matmul %170, %121, %cst_108 {dimension_numbers = #tpu.dot_dimension_numbers<[1], [0], [0], [1], [0, 0, 1, 1], [], []>} : vector<64x768xf32>, vector<768x128xf32>, vector<64x128xf32> -> vector<64x128xf32>
    %172 = arith.addf %171, %124 : vector<64x128xf32>
    %cst_109 = arith.constant 0.000000e+00 : f32
    %173 = vector.broadcast %cst_109 : f32 to vector<64x128xf32>
    %174 = arith.cmpf oge, %172, %173 : vector<64x128xf32>
    %cst_110 = arith.constant 2.000000e-01 : f32
    %175 = vector.broadcast %cst_110 : f32 to vector<64x128xf32>
    %176 = arith.mulf %175, %172 : vector<64x128xf32>
    %177 = arith.select %174, %172, %176 : vector<64x128xi1>, vector<64x128xf32>
    %c0_111 = arith.constant 0 : index
    %c640 = arith.constant 640 : index
    %178 = vector.load %arg12[%c0_111, %c640] : memref<64x768xf32, #tpu.memory_space<vmem>>, vector<64x128xf32>
    tpu.vector_store %arg12[%c0_111, %c640], %177 {strides = array<i32>} : memref<64x768xf32, #tpu.memory_space<vmem>>, vector<64x128xf32>,
    %c0_112 = arith.constant 0 : index
    %c0_113 = arith.constant 0 : index
    %179 = vector.load %arg6[%c0_112, %c0_113] : memref<768x64xf32, #tpu.memory_space<vmem>>, vector<768x64xf32>
    %c0_114 = arith.constant 0 : index
    %c0_115 = arith.constant 0 : index
    %180 = vector.load %arg12[%c0_114, %c0_115] : memref<64x768xf32, #tpu.memory_space<vmem>>, vector<64x768xf32>
    %cst_116 = arith.constant dense<0.000000e+00> : vector<64x64xf32>
    %181 = tpu.matmul %180, %179, %cst_116 {dimension_numbers = #tpu.dot_dimension_numbers<[1], [0], [0], [1], [0, 0, 1, 1], [], []>} : vector<64x768xf32>, vector<768x64xf32>, vector<64x64xf32> -> vector<64x64xf32>
    %c0_117 = arith.constant 0 : index
    %c0_118 = arith.constant 0 : index
    %182 = vector.load %arg7[%c0_117, %c0_118] : memref<1x64xf32, #tpu.memory_space<vmem>>, vector<1x64xf32>
    %183 = vector.broadcast %182 : vector<1x64xf32> to vector<64x64xf32>
    %184 = arith.addf %181, %183 : vector<64x64xf32>
    %cst_119 = arith.constant 0.000000e+00 : f32
    %185 = vector.broadcast %cst_119 : f32 to vector<64x64xf32>
    %186 = arith.cmpf oge, %184, %185 : vector<64x64xf32>
    %cst_120 = arith.constant 2.000000e-01 : f32
    %187 = vector.broadcast %cst_120 : f32 to vector<64x64xf32>
    %188 = arith.mulf %187, %184 : vector<64x64xf32>
    %189 = arith.select %186, %184, %188 : vector<64x64xi1>, vector<64x64xf32>
    %c0_121 = arith.constant 0 : index
    %c0_122 = arith.constant 0 : index
    %190 = vector.load %arg9[%c0_121, %c0_122] : memref<1x1xf32, #tpu.memory_space<vmem>>, vector<1x1xf32>
    %c0_123 = arith.constant 0 : index
    %c0_124 = arith.constant 0 : index
    %191 = vector.load %arg8[%c0_123, %c0_124] : memref<1x64xf32, #tpu.memory_space<vmem>>, vector<1x64xf32>
    %192 = vector.broadcast %191 : vector<1x64xf32> to vector<64x64xf32>
    %193 = arith.mulf %189, %192 : vector<64x64xf32>
    %cst_125 = arith.constant dense<0.000000e+00> : vector<64xf32>
    %194 = vector.multi_reduction <add>, %193, %cst_125 [1] : vector<64x64xf32> to vector<64xf32>
    %195 = vector.shape_cast %194 : vector<64xf32> to vector<64x1xf32>
    %196 = vector.broadcast %190 : vector<1x1xf32> to vector<64x1xf32>
    %197 = arith.addf %196, %195 : vector<64x1xf32>
    %cst_126 = arith.constant 0.000000e+00 : f32
    %198 = vector.broadcast %cst_126 : f32 to vector<64x1xf32>
    %199 = arith.subf %198, %197 : vector<64x1xf32>
    %200 = math.exp %199 : vector<64x1xf32>
    %cst_127 = arith.constant 1.000000e+00 : f32
    %201 = vector.broadcast %cst_127 : f32 to vector<64x1xf32>
    %202 = arith.addf %201, %200 : vector<64x1xf32>
    %203 = tpu.reciprocal %202 : vector<64x1xf32> -> vector<64x1xf32>
    %c0_128 = arith.constant 0 : index
    %c0_129 = arith.constant 0 : index
    %204 = vector.load %arg10[%c0_128, %c0_129] : memref<64x1xf32, #tpu.memory_space<vmem>>, vector<64x1xf32>
    tpu.vector_store %arg10[%c0_128, %c0_129], %203 {strides = array<i32>} : memref<64x1xf32, #tpu.memory_space<vmem>>, vector<64x1xf32>,
    return
  }
  func.func @transform_0(%arg0: i32) -> (i32, i32) {
    %c0_i32 = arith.constant 0 : i32
    %c0_i32_0 = arith.constant 0 : i32
    return %arg0, %c0_i32 : i32, i32
  }
  func.func @transform_1(%arg0: i32) -> (i32, i32) {
    %c0_i32 = arith.constant 0 : i32
    %c0_i32_0 = arith.constant 0 : i32
    %c0_i32_1 = arith.constant 0 : i32
    return %c0_i32, %c0_i32_0 : i32, i32
  }
  func.func @transform_2(%arg0: i32) -> (i32, i32) {
    %c0_i32 = arith.constant 0 : i32
    %c0_i32_0 = arith.constant 0 : i32
    %c0_i32_1 = arith.constant 0 : i32
    return %c0_i32, %c0_i32_0 : i32, i32
  }
  func.func @transform_3(%arg0: i32) -> (i32, i32) {
    %c0_i32 = arith.constant 0 : i32
    %c0_i32_0 = arith.constant 0 : i32
    %c0_i32_1 = arith.constant 0 : i32
    return %c0_i32, %c0_i32_0 : i32, i32
  }
  func.func @transform_4(%arg0: i32) -> (i32, i32) {
    %c0_i32 = arith.constant 0 : i32
    %c0_i32_0 = arith.constant 0 : i32
    %c0_i32_1 = arith.constant 0 : i32
    return %c0_i32, %c0_i32_0 : i32, i32
  }
  func.func @transform_5(%arg0: i32) -> (i32, i32) {
    %c0_i32 = arith.constant 0 : i32
    %c0_i32_0 = arith.constant 0 : i32
    %c0_i32_1 = arith.constant 0 : i32
    return %c0_i32, %c0_i32_0 : i32, i32
  }
  func.func @transform_6(%arg0: i32) -> (i32, i32) {
    %c0_i32 = arith.constant 0 : i32
    %c0_i32_0 = arith.constant 0 : i32
    %c0_i32_1 = arith.constant 0 : i32
    return %c0_i32, %c0_i32_0 : i32, i32
  }
  func.func @transform_7(%arg0: i32) -> (i32, i32) {
    %c0_i32 = arith.constant 0 : i32
    %c0_i32_0 = arith.constant 0 : i32
    %c0_i32_1 = arith.constant 0 : i32
    return %c0_i32, %c0_i32_0 : i32, i32
  }
  func.func @transform_8(%arg0: i32) -> (i32, i32) {
    %c0_i32 = arith.constant 0 : i32
    %c0_i32_0 = arith.constant 0 : i32
    %c0_i32_1 = arith.constant 0 : i32
    return %c0_i32, %c0_i32_0 : i32, i32
  }
  func.func @transform_9(%arg0: i32) -> (i32, i32) {
    %c0_i32 = arith.constant 0 : i32
    %c0_i32_0 = arith.constant 0 : i32
    return %arg0, %c0_i32 : i32, i32
  }
}

</mosaic_0001>

<bundles_post_ra>
// kernel: discriminator_forward.1
= control target key start
LH: loop header
LB: loop body
LE: loop exit
PB: predicated region body
PF: predicated region fallthrough
CT: control target
= control target key end

     0   :  { %s13174_s0 = inlined_call_operand.hbm [shape: f32[64,784], index: 0, kind: input, shape index: {}]   ;;  %s13175_s1 = inlined_call_operand.vmem [shape: f32[112,256], index: 1, kind: input, shape index: {}]   ;;  %s13176_s2 = inlined_call_operand.vmem [shape: f32[1,256], index: 2, kind: input, shape index: {}]   ;;  %s13177_s3 = inlined_call_operand.vmem [shape: f32[768,128], index: 3, kind: input, shape index: {}]   ;;  %s13178_s4 = inlined_call_operand.vmem [shape: f32[1,128], index: 4, kind: input, shape index: {}]   ;;  %s13179_s5 = inlined_call_operand.vmem [shape: f32[768,64], index: 5, kind: input, shape index: {}]   ;;  %s13180_s6 = inlined_call_operand.vmem [shape: f32[1,64], index: 6, kind: input, shape index: {}]   ;;  %s13181_s7 = inlined_call_operand.vmem [shape: f32[1,64], index: 7, kind: input, shape index: {}]   ;;  %s13182_s8 = inlined_call_operand.<no memory space> [shape: f32[1,1], index: 8, kind: input, shape index: {}]   ;;  %s13183_s9 = inlined_call_operand.vmem [shape: f32[64,1], index: 9, kind: output, shape index: {}]  }
   0x1   :  { %v14_v0 = vstv %s13182_s8 }
   0x2   :  { %15 = vst [vmem:[#allocation4] sm:$0x1] %v14_v0 }
   0x3   :  { %16 = vsyncpa [#allocation6], 0  ;;  %s8914_s11 = smov [#allocation5]   ;;  %s8890_s15 = scalar_lea.hbm %s13174_s0, 7168 }
   0x4   :  { %s22_s12 = sshll.u32 %s8914_s11, 4  ;;  %p8891_p0 = scmp.ne.s32.totalorder %s13174_s0, %s8890_s15  ;;  %s23_s12 = int_to_ptr.vmem [resolvable:$true] %s22_s12 }
   0x5   :  { %p8894_p1 = scmp.lt.u32.totalorder %s8890_s15, %s13174_s0 }
   0x7   :  { %p8896_p2 = pnand %p8894_p1, %p8891_p0 }
   0x9   :  { %8899 = shalt.err (!%p8896_p2)
}
   0xa   :  { %s8900_s8 = scalar_lea.vmem %s23_s12, 7168  ;;  %p8905_p4 = scmp.lt.s32.totalorder %s23_s12, %s23_s12 }
   0xb   :  { %p8901_p3 = scmp.ne.s32.totalorder %s23_s12, %s8900_s8  ;;  %p8906_p5 = scmp.lt.s32.totalorder %s8900_s8, %s8900_s8 }
   0xd   :  { %p8907_p6 = por %p8906_p5, %p8905_p4 }
   0xf   :  { %p8908_p7 = pnand %p8907_p6, %p8901_p3 }
  0x11   :  { %8911 = shalt.err (!%p8908_p7)
}
  0x12   :  { %s8915_s20 = smov 896   ;;  %s8916_s21 = smov 56  }
  0x13   :  { %28 = dma.hbm_to_vmem [thread:$0]  %s13174_s0, 7168, %s23_s12, [#allocation6], %s8915_s20, %s8915_s20, %s8916_s21  }
  0x14   :  { %8912 = dma.done.wait [#allocation6], 7168  }
  0x15   :  { %8913 = vsyncadd [#allocation6], 4294960128  ;;  %v13184_v1 = vmov 0.0   ;;  %v8997_v2 = vld [vmem:[#allocation5 + $0x38] sm:$0xff]  ;;  %v8999_v3 = vld [vmem:[#allocation5] sm:$0xff]  ;;  %s8918_s24 = smov 72  }
  0x16   :  { %185 = vmatprep.mubr.f32.mxu0 %v13184_v1  ;;  %451 = vmatprep.mubr.f32.mxu1 %v13184_v1  ;;  %v9005_v4 = vld [vmem:[#allocation5 + $0x40] sm:$0xff]  ;;  %v9007_v5 = vld [vmem:[#allocation5 + $0x8] sm:$0xff]  ;;  %v9013_v6 = vld [vmem:[#allocation5 + $0x78] sm:$0xff]  ;;  %s8919_s15 = smov 16   ;;  %vm96_vm0 = vcmask 916480   ;;  %vm362_vm1 = vcmask 588800  }
  0x17   :  { %334 = vrot.lane.b32.xlu1 %v8997_v2, %s8918_s24  ;;  %330 = vrot.lane.b32.xlu0 %v8999_v3, %s8918_s24  ;;  %v9015_v7 = vld [vmem:[#allocation5 + $0x70] sm:$0xff]  ;;  %v49_v8 = vld [vmem:[%s13175_s1 + $0x8] sm:$0xff]  ;;  %v48_v11 = vld [vmem:[%s13175_s1] sm:$0xff]  ;;  %s8922_s16 = smov 104   ;;  %s8923_s17 = smov 48   ;;  %vm628_vm2 = vcmask 130048  }
  0x18   :  { %v51_v9 = vld [vmem:[%s13175_s1 + $0x18] sm:$0xff]  ;;  %v50_v12 = vld [vmem:[%s13175_s1 + $0x10] sm:$0xff]  ;;  %v53_v14 = vld [vmem:[%s13175_s1 + $0x28] sm:$0xff]  ;;  %vm894_vm3 = vcmask 719872   ;;  %vm1160_vm4 = vcmask 261120   ;;  %s8924_s18 = smov 64  }
  0x19   :  { %v9023_v10 = vpack.c.bf16 %v51_v9, %v49_v8  ;;  %v9031_v13 = vpack.c.bf16 %v50_v12, %v48_v11  ;;  %v55_v15 = vld [vmem:[%s13175_s1 + $0x38] sm:$0xff]  ;;  %v52_v16 = vld [vmem:[%s13175_s1 + $0x20] sm:$0xff]  ;;  %v54_v18 = vld [vmem:[%s13175_s1 + $0x30] sm:$0xff]  ;;  %s8925_s19 = smov 120   ;;  %s8926_s8 = smov 8   ;;  %vm1426_vm5 = vcmask 850944  }
  0x1a   :  { %v9046_v17 = vpack.c.bf16 %v55_v15, %v53_v14  ;;  %v57_v19 = vld [vmem:[%s13175_s1 + $0x48] sm:$0xff]  ;;  %v9054_v20 = vld [vmem:[#allocation5 + $0xb0] sm:$0xff]  ;;  %v9064_v23 = vpack.c.bf16 %v54_v18, %v52_v16  ;;  %v56_v25 = vld [vmem:[%s13175_s1 + $0x40] sm:$0xff]  ;;  %s8927_s20 = smov 80   ;;  %vm1692_vm6 = vcmask 392192   ;;  %s8928_s21 = smov 24  }
  0x1b   :  { %336 = vrot.lane.b32.xlu1 %v9005_v4, %s8918_s24  ;;  %332 = vrot.lane.b32.xlu0 %v9007_v5, %s8918_s24  ;;  %v9056_v21 = vld [vmem:[#allocation5 + $0xa8] sm:$0xff]  ;;  %v59_v22 = vld [vmem:[%s13175_s1 + $0x58] sm:$0xff]  ;;  %v9089_v30 = vld [vmem:[#allocation5 + $0xe0] sm:$0xff]  ;;  %s8929_s22 = smov 96   ;;  %vm2183_vm7 = vcmask 523264   ;;  %vm2449_vm8 = vcmask 64512  }
  0x1c   :  { %7805 = vmatprep.subr.bf16.mxu0 %v9023_v10  ;;  %7833 = vmatprep.subr.bf16.mxu1 %v9023_v10  ;;  %v9068_v24 = vpack.c.bf16 %v59_v22, %v57_v19  ;;  %v58_v26 = vld [vmem:[%s13175_s1 + $0x50] sm:$0xff]  ;;  %v61_v27 = vld [vmem:[%s13175_s1 + $0x68] sm:$0xff]  ;;  %v63_v28 = vld [vmem:[%s13175_s1 + $0x78] sm:$0xff]  ;;  %vm2715_vm9 = vcmask 654336   ;;  %vm2981_vm10 = vcmask 195584   ;;  %vm3247_vm11 = vcmask 785408  }
  0x1d   :  { %7807 = vmatpush1.bf16.msra.mxu0 %v9031_v13  ;;  %7835 = vmatpush1.bf16.msra.mxu1 %v9031_v13  ;;  %v9087_v29 = vld [vmem:[#allocation5 + $0xe8] sm:$0xff]  ;;  %v9092_v31 = vpack.c.bf16 %v58_v26, %v56_v25  ;;  %v9096_v32 = vpack.c.bf16 %v63_v28, %v61_v27  ;;  %v60_v33 = vld [vmem:[%s13175_s1 + $0x60] sm:$0xff]  ;;  %v67_v36 = vld [vmem:[%s13175_s1 + $0x98] sm:$0xff] }
  0x1e   :  { %7809 = vmatprep.subr.bf16.mxu0 %v9046_v17  ;;  %7837 = vmatprep.subr.bf16.mxu1 %v9046_v17  ;;  %v62_v34 = vld [vmem:[%s13175_s1 + $0x70] sm:$0xff]  ;;  %v65_v35 = vld [vmem:[%s13175_s1 + $0x88] sm:$0xff]  ;;  %v9117_v38 = vld [vmem:[#allocation5 + $0x118] sm:$0xff] }
  0x1f   :  { %340 = vrot.lane.b32.xlu1 %v9013_v6, %s8918_s24  ;;  %338 = vrot.lane.b32.xlu0 %v9015_v7, %s8918_s24  ;;  %v9115_v37 = vld [vmem:[#allocation5 + $0x120] sm:$0xff]  ;;  %v9120_v39 = vpack.c.bf16 %v62_v34, %v60_v33  ;;  %v9124_v40 = vpack.c.bf16 %v67_v36, %v65_v35  ;;  %v66_v42 = vld [vmem:[%s13175_s1 + $0x90] sm:$0xff]  ;;  %v71_v44 = vld [vmem:[%s13175_s1 + $0xb8] sm:$0xff] }
  0x20   :  { %v64_v41 = vld [vmem:[%s13175_s1 + $0x80] sm:$0xff]  ;;  %v69_v43 = vld [vmem:[%s13175_s1 + $0xa8] sm:$0xff]  ;;  %v9145_v46 = vld [vmem:[#allocation5 + $0x150] sm:$0xff] }
  0x21   :  { %7811 = vmatpush1.bf16.msra.mxu0 %v9064_v23  ;;  %7839 = vmatpush1.bf16.msra.mxu1 %v9064_v23  ;;  %v9143_v45 = vld [vmem:[#allocation5 + $0x158] sm:$0xff]  ;;  %v9148_v47 = vpack.c.bf16 %v66_v42, %v64_v41  ;;  %v9152_v48 = vpack.c.bf16 %v71_v44, %v69_v43  ;;  %v70_v50 = vld [vmem:[%s13175_s1 + $0xb0] sm:$0xff]  ;;  %v73_v51 = vld [vmem:[%s13175_s1 + $0xc8] sm:$0xff] }
  0x22   :  { %7813 = vmatprep.subr.bf16.mxu0 %v9068_v24  ;;  %7841 = vmatprep.subr.bf16.mxu1 %v9068_v24  ;;  %v68_v49 = vld [vmem:[%s13175_s1 + $0xa0] sm:$0xff]  ;;  %v75_v52 = vld [vmem:[%s13175_s1 + $0xd8] sm:$0xff]  ;;  %v74_v56 = vld [vmem:[%s13175_s1 + $0xd0] sm:$0xff] }
  0x23   :  { %344 = vrot.lane.b32.xlu1 %v9054_v20, %s8918_s24  ;;  %342 = vrot.lane.b32.xlu0 %v9056_v21, %s8918_s24  ;;  %v9172_v53 = vpack.c.bf16 %v70_v50, %v68_v49  ;;  %v9176_v54 = vpack.c.bf16 %v75_v52, %v73_v51  ;;  %v72_v55 = vld [vmem:[%s13175_s1 + $0xc0] sm:$0xff]  ;;  %v9189_v57 = vld [vmem:[#allocation5 + $0x190] sm:$0xff]  ;;  %v312_v58 = vld [vmem:[#allocation5 + $0x188] sm:$0xff]  ;;  %s8920_s1 = smov 88  }
  0x24   :  { %v9192_v59 = vpack.c.bf16 %v74_v56, %v72_v55  ;;  %v9261_v60 = vld [vmem:[#allocation5 + $0x10] sm:$0xff]  ;;  %v9278_v61 = vld [vmem:[#allocation5 + $0x48] sm:$0xff]  ;;  %v9288_v62 = vld [vmem:[#allocation5 + $0x80] sm:$0xff] }
  0x25   :  { %7815 = vmatpush1.bf16.msra.mxu0 %v9092_v31  ;;  %7843 = vmatpush1.bf16.msra.mxu1 %v9092_v31  ;;  %v9298_v63 = vld [vmem:[#allocation5 + $0xb8] sm:$0xff]  ;;  %v9308_v0 = vld [vmem:[#allocation5 + $0xf0] sm:$0xff]  ;;  %v9395_v34 = vld [vmem:[#allocation5 + $0x88] sm:$0xff] }
  0x26   :  { %7817 = vmatprep.subr.bf16.mxu0 %v9096_v32  ;;  %7845 = vmatprep.subr.bf16.mxu1 %v9096_v32  ;;  %v9355_v15 = vld [vmem:[#allocation5 + $0x18] sm:$0xff]  ;;  %v9375_v25 = vld [vmem:[#allocation5 + $0x50] sm:$0xff]  ;;  %v9418_v44 = vld [vmem:[#allocation5 + $0xc0] sm:$0xff] }
  0x27   :  { %348 = vrot.lane.b32.xlu1 %v9087_v29, %s8918_s24  ;;  %346 = vrot.lane.b32.xlu0 %v9089_v30, %s8918_s24  ;;  %v9439_v55 = vld [vmem:[#allocation5 + $0xf8] sm:$0xff] }
  0x29   :  { %7819 = vmatpush1.bf16.msra.mxu0 %v9120_v39  ;;  %7847 = vmatpush1.bf16.msra.mxu1 %v9120_v39 }
  0x2a   :  { %7821 = vmatprep.subr.bf16.mxu0 %v9124_v40  ;;  %7849 = vmatprep.subr.bf16.mxu1 %v9124_v40 }
  0x2b   :  { %352 = vrot.lane.b32.xlu1 %v9115_v37, %s8918_s24  ;;  %350 = vrot.lane.b32.xlu0 %v9117_v38, %s8918_s24 }
  0x2d   :  { %7823 = vmatpush1.bf16.msra.mxu0 %v9148_v47  ;;  %7851 = vmatpush1.bf16.msra.mxu1 %v9148_v47 }
  0x2e   :  { %7825 = vmatprep.subr.bf16.mxu0 %v9152_v48  ;;  %7853 = vmatprep.subr.bf16.mxu1 %v9152_v48 }
  0x2f   :  { %356 = vrot.lane.b32.xlu1 %v9143_v45, %s8918_s24  ;;  %354 = vrot.lane.b32.xlu0 %v9145_v46, %s8918_s24 }
  0x31   :  { %7827 = vmatpush1.bf16.msra.mxu0 %v9172_v53  ;;  %7855 = vmatpush1.bf16.msra.mxu1 %v9172_v53 }
  0x32   :  { %7829 = vmatprep.subr.bf16.mxu0 %v9176_v54  ;;  %7857 = vmatprep.subr.bf16.mxu1 %v9176_v54 }
  0x33   :  { %598 = vrot.lane.b32.xlu1 %v9007_v5, %s8919_s15  ;;  %596 = vrot.lane.b32.xlu0 %v8999_v3, %s8919_s15 }
  0x35   :  { %7831 = vmatpush1.bf16.msra.mxu0 %v9192_v59  ;;  %7859 = vmatpush1.bf16.msra.mxu1 %v9192_v59 }
  0x36   :  { %7861 = vmatprep.subr.bf16.mxu0 %v9023_v10  ;;  %7889 = vmatprep.subr.bf16.mxu1 %v9023_v10 }
  0x37   :  { %360 = vrot.lane.b32.xlu1 %v9189_v57, %s8918_s24  ;;  %358 = vrot.lane.b32.xlu0 %v312_v58, %s8918_s24  ;;  %s8921_s24 = smov 32  }
  0x38   :  { %6520 = vmatmul.mubr.msk.f32.vlgmr.msra.gmra.mrb[0].mxu0 %vm96_vm0, %v8999_v3  ;;  %v9328_v3 = vld [vmem:[#allocation5 + $0x160] sm:$0xff] }
  0x39   :  { %191 = vmatprep.mubr.f32.mxu0 %v13184_v1  ;;  %7863 = vmatpush1.bf16.msra.mxu0 %v9031_v13 }
  0x3a   :  { %7865 = vmatprep.subr.bf16.mxu0 %v9046_v17 }
  0x3b   :  { %602 = vrot.lane.b32.xlu1 %v9005_v4, %s8919_s15  ;;  %600 = vrot.lane.b32.xlu0 %v8997_v2, %s8919_s15 }
  0x3c   :  { %6521 = vmatmul.mubr.msk.f32.gmra.mrb[2].mxu0 %vm96_vm0, %v8997_v2  ;;  %v9318_v2 = vld [vmem:[#allocation5 + $0x128] sm:$0xff] }
  0x3d   :  { %197 = vmatprep.mubr.f32.mxu0 %v13184_v1  ;;  %7867 = vmatpush1.bf16.msra.mxu0 %v9064_v23 }
  0x3e   :  { %7869 = vmatprep.subr.bf16.mxu0 %v9068_v24 }
  0x3f   :  { %606 = vrot.lane.b32.xlu1 %v9013_v6, %s8919_s15  ;;  %604 = vrot.lane.b32.xlu0 %v9015_v7, %s8919_s15 }
  0x40   :  { %6522 = vmatmul.mubr.msk.f32.gmra.mrb[4].mxu0 %vm96_vm0, %v9015_v7 }
  0x41   :  { %203 = vmatprep.mubr.f32.mxu0 %v13184_v1  ;;  %7871 = vmatpush1.bf16.msra.mxu0 %v9092_v31 }
  0x42   :  { %7873 = vmatprep.subr.bf16.mxu0 %v9096_v32 }
  0x43   :  { %610 = vrot.lane.b32.xlu1 %v9054_v20, %s8919_s15  ;;  %608 = vrot.lane.b32.xlu0 %v9056_v21, %s8919_s15 }
  0x44   :  { %6523 = vmatmul.mubr.msk.f32.gmra.mrb[6].mxu0 %vm96_vm0, %v9056_v21 }
  0x45   :  { %209 = vmatprep.mubr.f32.mxu0 %v13184_v1  ;;  %7875 = vmatpush1.bf16.msra.mxu0 %v9120_v39 }
  0x46   :  { %7877 = vmatprep.subr.bf16.mxu0 %v9124_v40 }
  0x47   :  { %614 = vrot.lane.b32.xlu1 %v9087_v29, %s8919_s15  ;;  %612 = vrot.lane.b32.xlu0 %v9089_v30, %s8919_s15 }
  0x48   :  { %6524 = vmatmul.mubr.msk.f32.gmra.mrb[8].mxu0 %vm96_vm0, %v9089_v30 }
  0x49   :  { %215 = vmatprep.mubr.f32.mxu0 %v13184_v1  ;;  %7879 = vmatpush1.bf16.msra.mxu0 %v9148_v47 }
  0x4a   :  { %7881 = vmatprep.subr.bf16.mxu0 %v9152_v48 }
  0x4b   :  { %618 = vrot.lane.b32.xlu1 %v9115_v37, %s8919_s15  ;;  %616 = vrot.lane.b32.xlu0 %v9117_v38, %s8919_s15 }
  0x4c   :  { %6525 = vmatmul.mubr.msk.f32.gmra.mrb[10].mxu0 %vm96_vm0, %v9117_v38 }
  0x4d   :  { %221 = vmatprep.mubr.f32.mxu0 %v13184_v1  ;;  %7883 = vmatpush1.bf16.msra.mxu0 %v9172_v53 }
  0x4e   :  { %7885 = vmatprep.subr.bf16.mxu0 %v9176_v54 }
  0x4f   :  { %622 = vrot.lane.b32.xlu1 %v9143_v45, %s8919_s15  ;;  %620 = vrot.lane.b32.xlu0 %v9145_v46, %s8919_s15 }
  0x50   :  { %6526 = vmatmul.mubr.msk.f32.gmra.mrb[12].mxu0 %vm96_vm0, %v9145_v46 }
  0x51   :  { %227 = vmatprep.mubr.f32.mxu0 %v13184_v1  ;;  %7887 = vmatpush1.bf16.msra.mxu0 %v9192_v59 }
  0x52   :  { %7917 = vmatprep.subr.bf16.mxu0 %v9023_v10 }
  0x53   :  { %626 = vrot.lane.b32.xlu1 %v9189_v57, %s8919_s15  ;;  %624 = vrot.lane.b32.xlu0 %v312_v58, %s8919_s15 }
  0x54   :  { %6527 = vmatmul.mubr.msk.f32.gmra.mrb[14].mxu0 %vm96_vm0, %v312_v58 }
  0x55   :  { %717 = vmatprep.mubr.f32.mxu0 %v13184_v1 }
  0x57   :  { %864 = vrot.lane.b32.xlu1 %v9261_v60, %s8920_s1  ;;  %862 = vrot.lane.b32.xlu0 %v9007_v5, %s8920_s1 }
  0x5b   :  { %1130 = vrot.lane.b32.xlu1 %v9261_v60, %s8921_s24  ;;  %1128 = vrot.lane.b32.xlu0 %v9007_v5, %s8921_s24 }
  0x5f   :  { %868 = vrot.lane.b32.xlu1 %v9278_v61, %s8920_s1  ;;  %866 = vrot.lane.b32.xlu0 %v9005_v4, %s8920_s1 }
  0x63   :  { %1134 = vrot.lane.b32.xlu1 %v9278_v61, %s8921_s24  ;;  %1132 = vrot.lane.b32.xlu0 %v9005_v4, %s8921_s24 }
  0x67   :  { %872 = vrot.lane.b32.xlu1 %v9288_v62, %s8920_s1  ;;  %870 = vrot.lane.b32.xlu0 %v9013_v6, %s8920_s1 }
  0x6b   :  { %1138 = vrot.lane.b32.xlu1 %v9288_v62, %s8921_s24  ;;  %1136 = vrot.lane.b32.xlu0 %v9013_v6, %s8921_s24  ;;  %v9338_v6 = vld [vmem:[#allocation5 + $0x198] sm:$0xff] }
  0x6f   :  { %876 = vrot.lane.b32.xlu1 %v9298_v63, %s8920_s1  ;;  %874 = vrot.lane.b32.xlu0 %v9054_v20, %s8920_s1 }
  0x73   :  { %1142 = vrot.lane.b32.xlu1 %v9298_v63, %s8921_s24  ;;  %1140 = vrot.lane.b32.xlu0 %v9054_v20, %s8921_s24 }
  0x77   :  { %880 = vrot.lane.b32.xlu1 %v9308_v0, %s8920_s1  ;;  %878 = vrot.lane.b32.xlu0 %v9087_v29, %s8920_s1 }
  0x7b   :  { %1146 = vrot.lane.b32.xlu1 %v9308_v0, %s8921_s24  ;;  %1144 = vrot.lane.b32.xlu0 %v9087_v29, %s8921_s24 }
  0x7f   :  { %884 = vrot.lane.b32.xlu1 %v9318_v2, %s8920_s1  ;;  %882 = vrot.lane.b32.xlu0 %v9115_v37, %s8920_s1 }
  0x83   :  { %1150 = vrot.lane.b32.xlu1 %v9318_v2, %s8921_s24  ;;  %1148 = vrot.lane.b32.xlu0 %v9115_v37, %s8921_s24 }
  0x87   :  { %888 = vrot.lane.b32.xlu1 %v9328_v3, %s8920_s1  ;;  %886 = vrot.lane.b32.xlu0 %v9143_v45, %s8920_s1 }
  0x89   :  { %v335_v4 = vpop.permute.xlu1 %334  ;;  %v331_v5 = vpop.permute.xlu0 %330 }
  0x8b   :  { %1154 = vrot.lane.b32.xlu1 %v9328_v3, %s8921_s24  ;;  %1152 = vrot.lane.b32.xlu0 %v9143_v45, %s8921_s24 }
  0x8d   :  { %v337_v7 = vpop.permute.xlu1 %336  ;;  %v333_v8 = vpop.permute.xlu0 %332 }
  0x8e   :  { %v363_v9 = vsel %vm362_vm1, %v331_v5, %v333_v8  ;;  %v364_v14 = vsel %vm362_vm1, %v335_v4, %v337_v7 }
  0x8f   :  { %892 = vrot.lane.b32.xlu1 %v9338_v6, %s8920_s1  ;;  %890 = vrot.lane.b32.xlu0 %v9189_v57, %s8920_s1 }
  0x90   :  { %6528 = vmatmul.mubr.msk.f32.vlgmr.msra.gmra.mrb[0].mxu1 %vm96_vm0, %v363_v9 }
  0x91   :  { %v341_v11 = vpop.permute.xlu1 %340  ;;  %v339_v12 = vpop.permute.xlu0 %338  ;;  %457 = vmatprep.mubr.f32.mxu1 %v13184_v1  ;;  %7891 = vmatpush1.bf16.msra.mxu1 %v9031_v13 }
  0x92   :  { %7893 = vmatprep.subr.bf16.mxu1 %v9046_v17  ;;  %v365_v19 = vsel %vm362_vm1, %v339_v12, %v341_v11  ;;  %v9479_v11 = vld [vmem:[#allocation5 + $0x168] sm:$0xff] }
  0x93   :  { %1158 = vrot.lane.b32.xlu1 %v9338_v6, %s8921_s24  ;;  %1156 = vrot.lane.b32.xlu0 %v9189_v57, %s8921_s24 }
  0x94   :  { %6529 = vmatmul.mubr.msk.f32.gmra.mrb[2].mxu1 %vm96_vm0, %v364_v14 }
  0x95   :  { %v345_v16 = vpop.permute.xlu1 %344  ;;  %v343_v18 = vpop.permute.xlu0 %342  ;;  %463 = vmatprep.mubr.f32.mxu1 %v13184_v1  ;;  %7895 = vmatpush1.bf16.msra.mxu1 %v9064_v23 }
  0x96   :  { %7897 = vmatprep.subr.bf16.mxu1 %v9068_v24  ;;  %v366_v22 = vsel %vm362_vm1, %v343_v18, %v345_v16 }
  0x97   :  { %1396 = vrot.lane.b32.xlu1 %v9355_v15, %s8922_s16  ;;  %1394 = vrot.lane.b32.xlu0 %v9261_v60, %s8922_s16 }
  0x98   :  { %6530 = vmatmul.mubr.msk.f32.gmra.mrb[4].mxu1 %vm96_vm0, %v365_v19 }
  0x99   :  { %v349_v20 = vpop.permute.xlu1 %348  ;;  %v347_v21 = vpop.permute.xlu0 %346  ;;  %469 = vmatprep.mubr.f32.mxu1 %v13184_v1  ;;  %7899 = vmatpush1.bf16.msra.mxu1 %v9092_v31 }
  0x9a   :  { %7901 = vmatprep.subr.bf16.mxu1 %v9096_v32  ;;  %v367_v28 = vsel %vm362_vm1, %v347_v21, %v349_v20  ;;  %v9496_v20 = vld [vmem:[#allocation5 + $0x1a0] sm:$0xff] }
  0x9b   :  { %1662 = vrot.lane.b32.xlu1 %v9355_v15, %s8923_s17  ;;  %1660 = vrot.lane.b32.xlu0 %v9261_v60, %s8923_s17 }
  0x9c   :  { %6531 = vmatmul.mubr.msk.f32.gmra.mrb[6].mxu1 %vm96_vm0, %v366_v22 }
  0x9d   :  { %v353_v26 = vpop.permute.xlu1 %352  ;;  %v351_v27 = vpop.permute.xlu0 %350  ;;  %475 = vmatprep.mubr.f32.mxu1 %v13184_v1  ;;  %7903 = vmatpush1.bf16.msra.mxu1 %v9120_v39 }
  0x9e   :  { %7905 = vmatprep.subr.bf16.mxu1 %v9124_v40  ;;  %v368_v33 = vsel %vm362_vm1, %v351_v27, %v353_v26 }
  0x9f   :  { %1400 = vrot.lane.b32.xlu1 %v9375_v25, %s8922_s16  ;;  %1398 = vrot.lane.b32.xlu0 %v9278_v61, %s8922_s16 }
  0xa0   :  { %6532 = vmatmul.mubr.msk.f32.gmra.mrb[8].mxu1 %vm96_vm0, %v367_v28 }
  0xa1   :  { %v357_v29 = vpop.permute.xlu1 %356  ;;  %v355_v30 = vpop.permute.xlu0 %354  ;;  %481 = vmatprep.mubr.f32.mxu1 %v13184_v1  ;;  %7907 = vmatpush1.bf16.msra.mxu1 %v9148_v47 }
  0xa2   :  { %7909 = vmatprep.subr.bf16.mxu1 %v9152_v48  ;;  %v369_v38 = vsel %vm362_vm1, %v355_v30, %v357_v29 }
  0xa3   :  { %1666 = vrot.lane.b32.xlu1 %v9375_v25, %s8923_s17  ;;  %1664 = vrot.lane.b32.xlu0 %v9278_v61, %s8923_s17 }
  0xa4   :  { %6533 = vmatmul.mubr.msk.f32.gmra.mrb[10].mxu1 %vm96_vm0, %v368_v33 }
  0xa5   :  { %v599_v35 = vpop.permute.xlu1 %598  ;;  %v597_v36 = vpop.permute.xlu0 %596  ;;  %487 = vmatprep.mubr.f32.mxu1 %v13184_v1  ;;  %7911 = vmatpush1.bf16.msra.mxu1 %v9172_v53 }
  0xa6   :  { %v629_v37 = vsel %vm628_vm2, %v597_v36, %v599_v35  ;;  %7913 = vmatprep.subr.bf16.mxu1 %v9176_v54 }
  0xa7   :  { %1404 = vrot.lane.b32.xlu1 %v9395_v34, %s8922_s16  ;;  %1402 = vrot.lane.b32.xlu0 %v9288_v62, %s8922_s16 }
  0xa8   :  { %6534 = vmatmul.mubr.msk.f32.gmra.mrb[12].mxu1 %vm96_vm0, %v369_v38  ;;  %6536 = vmatmul.mubr.msk.f32.vlgmr.msra.gmra.mrb[16].mxu0 %vm96_vm0, %v629_v37  ;;  %v9541_v38 = vld [vmem:[#allocation5 + $0x58] sm:$0xff] }
  0xa9   :  { %v361_v41 = vpop.permute.xlu1 %360  ;;  %v359_v42 = vpop.permute.xlu0 %358  ;;  %493 = vmatprep.mubr.f32.mxu1 %v13184_v1  ;;  %723 = vmatprep.mubr.f32.mxu0 %v13184_v1 }
  0xaa   :  { %v370_v43 = vsel %vm362_vm1, %v359_v42, %v361_v41  ;;  %7919 = vmatpush1.bf16.msra.mxu0 %v9031_v13  ;;  %7915 = vmatpush1.bf16.msra.mxu1 %v9192_v59 }
  0xab   :  { %1670 = vrot.lane.b32.xlu1 %v9395_v34, %s8923_s17  ;;  %1668 = vrot.lane.b32.xlu0 %v9288_v62, %s8923_s17 }
  0xac   :  { %6535 = vmatmul.mubr.msk.f32.gmra.mrb[14].mxu1 %vm96_vm0, %v370_v43  ;;  %7921 = vmatprep.subr.bf16.mxu0 %v9046_v17 }
  0xad   :  { %v603_v45 = vpop.permute.xlu1 %602  ;;  %v601_v46 = vpop.permute.xlu0 %600  ;;  %983 = vmatprep.mubr.f32.mxu1 %v13184_v1  ;;  %7945 = vmatprep.subr.bf16.mxu1 %v9023_v10 }
  0xae   :  { %v630_v49 = vsel %vm628_vm2, %v601_v46, %v603_v45  ;;  %7923 = vmatpush1.bf16.msra.mxu0 %v9064_v23 }
  0xaf   :  { %1408 = vrot.lane.b32.xlu1 %v9418_v44, %s8922_s16  ;;  %1406 = vrot.lane.b32.xlu0 %v9298_v63, %s8922_s16 }
  0xb0   :  { %6537 = vmatmul.mubr.msk.f32.gmra.mrb[18].mxu0 %vm96_vm0, %v630_v49  ;;  %7925 = vmatprep.subr.bf16.mxu0 %v9068_v24 }
  0xb1   :  { %v607_v50 = vpop.permute.xlu1 %606  ;;  %v605_v51 = vpop.permute.xlu0 %604  ;;  %729 = vmatprep.mubr.f32.mxu0 %v13184_v1 }
  0xb2   :  { %v631_v52 = vsel %vm628_vm2, %v605_v51, %v607_v50  ;;  %7927 = vmatpush1.bf16.msra.mxu0 %v9092_v31  ;;  %v9565_v50 = vld [vmem:[#allocation5 + $0x90] sm:$0xff] }
  0xb3   :  { %1674 = vrot.lane.b32.xlu1 %v9418_v44, %s8923_s17  ;;  %1672 = vrot.lane.b32.xlu0 %v9298_v63, %s8923_s17  ;;  %v9459_v63 = vld [vmem:[#allocation5 + $0x130] sm:$0xff] }
  0xb4   :  { %6538 = vmatmul.mubr.msk.f32.gmra.mrb[20].mxu0 %vm96_vm0, %v631_v52  ;;  %7929 = vmatprep.subr.bf16.mxu0 %v9096_v32 }
  0xb5   :  { %v611_v56 = vpop.permute.xlu1 %610  ;;  %v609_v57 = vpop.permute.xlu0 %608  ;;  %735 = vmatprep.mubr.f32.mxu0 %v13184_v1 }
  0xb6   :  { %v632_v58 = vsel %vm628_vm2, %v609_v57, %v611_v56  ;;  %7931 = vmatpush1.bf16.msra.mxu0 %v9120_v39  ;;  %v9578_v57 = vld [vmem:[#allocation5 + $0xc8] sm:$0xff] }
  0xb7   :  { %1412 = vrot.lane.b32.xlu1 %v9439_v55, %s8922_s16  ;;  %1410 = vrot.lane.b32.xlu0 %v9308_v0, %s8922_s16 }
  0xb8   :  { %6539 = vmatmul.mubr.msk.f32.gmra.mrb[22].mxu0 %vm96_vm0, %v632_v58  ;;  %7933 = vmatprep.subr.bf16.mxu0 %v9124_v40 }
  0xb9   :  { %v615_v60 = vpop.permute.xlu1 %614  ;;  %v613_v61 = vpop.permute.xlu0 %612  ;;  %741 = vmatprep.mubr.f32.mxu0 %v13184_v1 }
  0xba   :  { %v633_v62 = vsel %vm628_vm2, %v613_v61, %v615_v60  ;;  %7935 = vmatpush1.bf16.msra.mxu0 %v9148_v47 }
  0xbb   :  { %1678 = vrot.lane.b32.xlu1 %v9439_v55, %s8923_s17  ;;  %1676 = vrot.lane.b32.xlu0 %v9308_v0, %s8923_s17 }
  0xbc   :  { %6540 = vmatmul.mubr.msk.f32.gmra.mrb[24].mxu0 %vm96_vm0, %v633_v62  ;;  %7937 = vmatprep.subr.bf16.mxu0 %v9152_v48 }
  0xbd   :  { %v619_v4 = vpop.permute.xlu1 %618  ;;  %v617_v5 = vpop.permute.xlu0 %616  ;;  %747 = vmatprep.mubr.f32.mxu0 %v13184_v1 }
  0xbe   :  { %v634_v7 = vsel %vm628_vm2, %v617_v5, %v619_v4  ;;  %7939 = vmatpush1.bf16.msra.mxu0 %v9172_v53 }
  0xbf   :  { %1416 = vrot.lane.b32.xlu1 %v9459_v63, %s8922_s16  ;;  %1414 = vrot.lane.b32.xlu0 %v9318_v2, %s8922_s16 }
  0xc0   :  { %6541 = vmatmul.mubr.msk.f32.gmra.mrb[26].mxu0 %vm96_vm0, %v634_v7  ;;  %7941 = vmatprep.subr.bf16.mxu0 %v9176_v54  ;;  %v9597_v7 = vld [vmem:[#allocation5 + $0x100] sm:$0xff] }
  0xc1   :  { %v623_v0 = vpop.permute.xlu1 %622  ;;  %v621_v8 = vpop.permute.xlu0 %620  ;;  %753 = vmatprep.mubr.f32.mxu0 %v13184_v1 }
  0xc2   :  { %v635_v9 = vsel %vm628_vm2, %v621_v8, %v623_v0  ;;  %7943 = vmatpush1.bf16.msra.mxu0 %v9192_v59 }
  0xc3   :  { %1682 = vrot.lane.b32.xlu1 %v9459_v63, %s8923_s17  ;;  %1680 = vrot.lane.b32.xlu0 %v9318_v2, %s8923_s17 }
  0xc4   :  { %6542 = vmatmul.mubr.msk.f32.gmra.mrb[28].mxu0 %vm96_vm0, %v635_v9  ;;  %7973 = vmatprep.subr.bf16.mxu0 %v9023_v10 }
  0xc5   :  { %v627_v12 = vpop.permute.xlu1 %626  ;;  %v625_v14 = vpop.permute.xlu0 %624  ;;  %759 = vmatprep.mubr.f32.mxu0 %v13184_v1 }
  0xc6   :  { %v636_v16 = vsel %vm628_vm2, %v625_v14, %v627_v12  ;;  %v9606_v12 = vld [vmem:[#allocation5 + $0x138] sm:$0xff] }
  0xc7   :  { %1420 = vrot.lane.b32.xlu1 %v9479_v11, %s8922_s16  ;;  %1418 = vrot.lane.b32.xlu0 %v9328_v3, %s8922_s16 }
  0xc8   :  { %6543 = vmatmul.mubr.msk.f32.gmra.mrb[30].mxu0 %vm96_vm0, %v636_v16 }
  0xc9   :  { %v865_v2 = vpop.permute.xlu1 %864  ;;  %v863_v18 = vpop.permute.xlu0 %862  ;;  %1249 = vmatprep.mubr.f32.mxu0 %v13184_v1 }
  0xca   :  { %v895_v19 = vsel %vm894_vm3, %v863_v18, %v865_v2 }
  0xcb   :  { %1686 = vrot.lane.b32.xlu1 %v9479_v11, %s8923_s17  ;;  %1684 = vrot.lane.b32.xlu0 %v9328_v3, %s8923_s17 }
  0xcc   :  { %6544 = vmatmul.mubr.msk.f32.vlgmr.msra.gmra.mrb[16].mxu1 %vm96_vm0, %v895_v19 }
  0xcd   :  { %v1131_v21 = vpop.permute.xlu1 %1130  ;;  %v1129_v22 = vpop.permute.xlu0 %1128  ;;  %989 = vmatprep.mubr.f32.mxu1 %v13184_v1  ;;  %7947 = vmatpush1.bf16.msra.mxu1 %v9031_v13 }
  0xce   :  { %v1161_v26 = vsel %vm1160_vm4, %v1129_v22, %v1131_v21  ;;  %7949 = vmatprep.subr.bf16.mxu1 %v9046_v17  ;;  %v9622_v22 = vld [vmem:[#allocation5 + $0x170] sm:$0xff] }
  0xcf   :  { %1424 = vrot.lane.b32.xlu1 %v9496_v20, %s8922_s16  ;;  %1422 = vrot.lane.b32.xlu0 %v9338_v6, %s8922_s16 }
  0xd0   :  { %6552 = vmatmul.mubr.msk.f32.vlgmr.msra.gmra.mrb[32].mxu0 %vm96_vm0, %v1161_v26 }
  0xd1   :  { %v869_v3 = vpop.permute.xlu1 %868  ;;  %v867_v27 = vpop.permute.xlu0 %866  ;;  %1255 = vmatprep.mubr.f32.mxu0 %v13184_v1  ;;  %7951 = vmatpush1.bf16.msra.mxu1 %v9064_v23 }
  0xd2   :  { %v896_v28 = vsel %vm894_vm3, %v867_v27, %v869_v3  ;;  %7975 = vmatpush1.bf16.msra.mxu0 %v9031_v13  ;;  %7953 = vmatprep.subr.bf16.mxu1 %v9068_v24 }
  0xd3   :  { %1690 = vrot.lane.b32.xlu1 %v9496_v20, %s8923_s17  ;;  %1688 = vrot.lane.b32.xlu0 %v9338_v6, %s8923_s17  ;;  %v9528_v6 = vld [vmem:[#allocation5 + $0x20] sm:$0xff] }
  0xd4   :  { %6545 = vmatmul.mubr.msk.f32.gmra.mrb[18].mxu1 %vm96_vm0, %v896_v28  ;;  %7977 = vmatprep.subr.bf16.mxu0 %v9046_v17  ;;  %v9631_v28 = vld [vmem:[#allocation5 + $0x1a8] sm:$0xff] }
  0xd5   :  { %v1135_v29 = vpop.permute.xlu1 %1134  ;;  %v1133_v30 = vpop.permute.xlu0 %1132  ;;  %995 = vmatprep.mubr.f32.mxu1 %v13184_v1  ;;  %7955 = vmatpush1.bf16.msra.mxu1 %v9092_v31 }
  0xd6   :  { %v1162_v33 = vsel %vm1160_vm4, %v1133_v30, %v1135_v29  ;;  %7979 = vmatpush1.bf16.msra.mxu0 %v9064_v23  ;;  %7957 = vmatprep.subr.bf16.mxu1 %v9096_v32 }
  0xd7   :  { %2151 = vrot.lane.b32.xlu1 %v9355_v15, %s8924_s18  ;;  %1910 = vrot.lane.b32.xlu0 %v9355_v15, %s8925_s19 }
  0xd8   :  { %6553 = vmatmul.mubr.msk.f32.gmra.mrb[34].mxu0 %vm96_vm0, %v1162_v33  ;;  %7981 = vmatprep.subr.bf16.mxu0 %v9068_v24 }
  0xd9   :  { %v873_v35 = vpop.permute.xlu1 %872  ;;  %v871_v36 = vpop.permute.xlu0 %870  ;;  %1261 = vmatprep.mubr.f32.mxu0 %v13184_v1  ;;  %7959 = vmatpush1.bf16.msra.mxu1 %v9120_v39 }
  0xda   :  { %v897_v37 = vsel %vm894_vm3, %v871_v36, %v873_v35  ;;  %7983 = vmatpush1.bf16.msra.mxu0 %v9092_v31  ;;  %7961 = vmatprep.subr.bf16.mxu1 %v9124_v40 }
  0xdb   :  { %1912 = vrot.lane.b32.xlu1 %v9375_v25, %s8925_s19  ;;  %2153 = vrot.lane.b32.xlu0 %v9528_v6, %s8924_s18 }
  0xdc   :  { %6546 = vmatmul.mubr.msk.f32.gmra.mrb[20].mxu1 %vm96_vm0, %v897_v37  ;;  %7985 = vmatprep.subr.bf16.mxu0 %v9096_v32 }
  0xdd   :  { %v1139_v41 = vpop.permute.xlu1 %1138  ;;  %v1137_v42 = vpop.permute.xlu0 %1136  ;;  %1001 = vmatprep.mubr.f32.mxu1 %v13184_v1  ;;  %7963 = vmatpush1.bf16.msra.mxu1 %v9148_v47 }
  0xde   :  { %v1163_v43 = vsel %vm1160_vm4, %v1137_v42, %v1139_v41  ;;  %7987 = vmatpush1.bf16.msra.mxu0 %v9120_v39  ;;  %7965 = vmatprep.subr.bf16.mxu1 %v9152_v48  ;;  %v9647_v41 = vld [vmem:[#allocation5 + $0x28] sm:$0xff] }
  0xdf   :  { %2157 = vrot.lane.b32.xlu1 %v9541_v38, %s8924_s18  ;;  %2155 = vrot.lane.b32.xlu0 %v9375_v25, %s8924_s18 }
  0xe0   :  { %6554 = vmatmul.mubr.msk.f32.gmra.mrb[36].mxu0 %vm96_vm0, %v1163_v43  ;;  %7989 = vmatprep.subr.bf16.mxu0 %v9124_v40 }
  0xe1   :  { %v877_v45 = vpop.permute.xlu1 %876  ;;  %v875_v46 = vpop.permute.xlu0 %874  ;;  %1267 = vmatprep.mubr.f32.mxu0 %v13184_v1  ;;  %7967 = vmatpush1.bf16.msra.mxu1 %v9172_v53 }
  0xe2   :  { %v898_v49 = vsel %vm894_vm3, %v875_v46, %v877_v45  ;;  %7991 = vmatpush1.bf16.msra.mxu0 %v9148_v47  ;;  %7969 = vmatprep.subr.bf16.mxu1 %v9176_v54 }
  0xe3   :  { %2159 = vrot.lane.b32.xlu1 %v9395_v34, %s8924_s18  ;;  %1914 = vrot.lane.b32.xlu0 %v9395_v34, %s8925_s19 }
  0xe4   :  { %6547 = vmatmul.mubr.msk.f32.gmra.mrb[22].mxu1 %vm96_vm0, %v898_v49  ;;  %7993 = vmatprep.subr.bf16.mxu0 %v9152_v48 }
  0xe5   :  { %v1143_v51 = vpop.permute.xlu1 %1142  ;;  %v1141_v52 = vpop.permute.xlu0 %1140  ;;  %1007 = vmatprep.mubr.f32.mxu1 %v13184_v1  ;;  %7971 = vmatpush1.bf16.msra.mxu1 %v9192_v59 }
  0xe6   :  { %v1164_v56 = vsel %vm1160_vm4, %v1141_v52, %v1143_v51  ;;  %7995 = vmatpush1.bf16.msra.mxu0 %v9172_v53  ;;  %8001 = vmatprep.subr.bf16.mxu1 %v9023_v10  ;;  %v9667_v52 = vld [vmem:[#allocation5 + $0x60] sm:$0xff] }
  0xe7   :  { %1916 = vrot.lane.b32.xlu1 %v9418_v44, %s8925_s19  ;;  %2161 = vrot.lane.b32.xlu0 %v9565_v50, %s8924_s18 }
  0xe8   :  { %6555 = vmatmul.mubr.msk.f32.gmra.mrb[38].mxu0 %vm96_vm0, %v1164_v56  ;;  %7997 = vmatprep.subr.bf16.mxu0 %v9176_v54 }
  0xe9   :  { %v881_v58 = vpop.permute.xlu1 %880  ;;  %v879_v60 = vpop.permute.xlu0 %878  ;;  %1273 = vmatprep.mubr.f32.mxu0 %v13184_v1 }
  0xea   :  { %v899_v61 = vsel %vm894_vm3, %v879_v60, %v881_v58  ;;  %7999 = vmatpush1.bf16.msra.mxu0 %v9192_v59 }
  0xeb   :  { %2165 = vrot.lane.b32.xlu1 %v9578_v57, %s8924_s18  ;;  %2163 = vrot.lane.b32.xlu0 %v9418_v44, %s8924_s18 }
  0xec   :  { %6548 = vmatmul.mubr.msk.f32.gmra.mrb[24].mxu1 %vm96_vm0, %v899_v61  ;;  %8029 = vmatprep.subr.bf16.mxu0 %v9023_v10 }
  0xed   :  { %v1147_v62 = vpop.permute.xlu1 %1146  ;;  %v1145_v4 = vpop.permute.xlu0 %1144  ;;  %1013 = vmatprep.mubr.f32.mxu1 %v13184_v1 }
  0xee   :  { %v1165_v5 = vsel %vm1160_vm4, %v1145_v4, %v1147_v62 }
  0xef   :  { %2167 = vrot.lane.b32.xlu1 %v9439_v55, %s8924_s18  ;;  %1918 = vrot.lane.b32.xlu0 %v9439_v55, %s8925_s19 }
  0xf0   :  { %6556 = vmatmul.mubr.msk.f32.gmra.mrb[40].mxu0 %vm96_vm0, %v1165_v5 }
  0xf1   :  { %v885_v0 = vpop.permute.xlu1 %884  ;;  %v883_v8 = vpop.permute.xlu0 %882  ;;  %1279 = vmatprep.mubr.f32.mxu0 %v13184_v1 }
  0xf2   :  { %v900_v9 = vsel %vm894_vm3, %v883_v8, %v885_v0 }
  0xf3   :  { %1920 = vrot.lane.b32.xlu1 %v9459_v63, %s8925_s19  ;;  %2169 = vrot.lane.b32.xlu0 %v9597_v7, %s8924_s18 }
  0xf4   :  { %6549 = vmatmul.mubr.msk.f32.gmra.mrb[26].mxu1 %vm96_vm0, %v900_v9  ;;  %v9698_v9 = vld [vmem:[#allocation5 + $0x98] sm:$0xff] }
  0xf5   :  { %v1151_v14 = vpop.permute.xlu1 %1150  ;;  %v1149_v16 = vpop.permute.xlu0 %1148  ;;  %1019 = vmatprep.mubr.f32.mxu1 %v13184_v1 }
  0xf6   :  { %v1166_v2 = vsel %vm1160_vm4, %v1149_v16, %v1151_v14 }
  0xf7   :  { %2173 = vrot.lane.b32.xlu1 %v9606_v12, %s8924_s18  ;;  %2171 = vrot.lane.b32.xlu0 %v9459_v63, %s8924_s18 }
  0xf8   :  { %6557 = vmatmul.mubr.msk.f32.gmra.mrb[42].mxu0 %vm96_vm0, %v1166_v2 }
  0xf9   :  { %v889_v18 = vpop.permute.xlu1 %888  ;;  %v887_v19 = vpop.permute.xlu0 %886  ;;  %1285 = vmatprep.mubr.f32.mxu0 %v13184_v1 }
  0xfa   :  { %v901_v21 = vsel %vm894_vm3, %v887_v19, %v889_v18 }
  0xfb   :  { %2175 = vrot.lane.b32.xlu1 %v9479_v11, %s8924_s18  ;;  %1922 = vrot.lane.b32.xlu0 %v9479_v11, %s8925_s19 }
  0xfc   :  { %6550 = vmatmul.mubr.msk.f32.gmra.mrb[28].mxu1 %vm96_vm0, %v901_v21 }
  0xfd   :  { %v1155_v26 = vpop.permute.xlu1 %1154  ;;  %v1153_v3 = vpop.permute.xlu0 %1152  ;;  %1025 = vmatprep.mubr.f32.mxu1 %v13184_v1 }
  0xfe   :  { %v1167_v27 = vsel %vm1160_vm4, %v1153_v3, %v1155_v26 }
  0xff   :  { %1924 = vrot.lane.b32.xlu1 %v9496_v20, %s8925_s19  ;;  %2177 = vrot.lane.b32.xlu0 %v9622_v22, %s8924_s18 }
 0x100   :  { %6558 = vmatmul.mubr.msk.f32.gmra.mrb[44].mxu0 %vm96_vm0, %v1167_v27 }
 0x101   :  { %v893_v29 = vpop.permute.xlu1 %892  ;;  %v891_v30 = vpop.permute.xlu0 %890  ;;  %1291 = vmatprep.mubr.f32.mxu0 %v13184_v1 }
 0x102   :  { %v902_v33 = vsel %vm894_vm3, %v891_v30, %v893_v29  ;;  %v9730_v29 = vld [vmem:[#allocation5 + $0xd0] sm:$0xff] }
 0x103   :  { %2181 = vrot.lane.b32.xlu1 %v9631_v28, %s8924_s18  ;;  %2179 = vrot.lane.b32.xlu0 %v9496_v20, %s8924_s18 }
 0x104   :  { %6551 = vmatmul.mubr.msk.f32.gmra.mrb[30].mxu1 %vm96_vm0, %v902_v33 }
 0x105   :  { %v1159_v35 = vpop.permute.xlu1 %1158  ;;  %v1157_v36 = vpop.permute.xlu0 %1156  ;;  %1515 = vmatprep.mubr.f32.mxu1 %v13184_v1 }
 0x106   :  { %v1168_v37 = vsel %vm1160_vm4, %v1157_v36, %v1159_v35 }
 0x107   :  { %2419 = vrot.lane.b32.xlu1 %v9528_v6, %s8926_s8  ;;  %2417 = vrot.lane.b32.xlu0 %v9355_v15, %s8926_s8 }
 0x108   :  { %6559 = vmatmul.mubr.msk.f32.gmra.mrb[46].mxu0 %vm96_vm0, %v1168_v37 }
 0x109   :  { %v1397_v42 = vpop.permute.xlu1 %1396  ;;  %v1395_v43 = vpop.permute.xlu0 %1394  ;;  %1781 = vmatprep.mubr.f32.mxu0 %v13184_v1 }
 0x10a   :  { %v1427_v45 = vsel %vm1426_vm5, %v1395_v43, %v1397_v42 }
 0x10b   :  { %2685 = vrot.lane.b32.xlu1 %v9647_v41, %s8927_s20  ;;  %2683 = vrot.lane.b32.xlu0 %v9528_v6, %s8927_s20  ;;  %v9664_v51 = vpop.f32.mrb[0].mxu0 }
 0x10c   :  { %6560 = vmatmul.mubr.msk.f32.vlgmr.msra.gmra.mrb[32].mxu1 %vm96_vm0, %v1427_v45  ;;  %v9669_v56 = vpop.f32.mrb[1].mxu0 }
 0x10d   :  { %v1663_v15 = vpop.permute.xlu1 %1662  ;;  %v1661_v46 = vpop.permute.xlu0 %1660  ;;  %1521 = vmatprep.mubr.f32.mxu1 %v13184_v1  ;;  %8003 = vmatpush1.bf16.msra.mxu1 %v9031_v13 }
 0x10e   :  { %v1693_v49 = vsel %vm1692_vm6, %v1661_v46, %v1663_v15  ;;  %8005 = vmatprep.subr.bf16.mxu1 %v9046_v17  ;;  %v9762_v46 = vld [vmem:[#allocation5 + $0x108] sm:$0xff] }
 0x10f   :  { %2423 = vrot.lane.b32.xlu1 %v9541_v38, %s8926_s8  ;;  %2421 = vrot.lane.b32.xlu0 %v9375_v25, %s8926_s8  ;;  %v9680_v25 = vpop.f32.mrb[2].mxu0 }
 0x110   :  { %6568 = vmatmul.mubr.msk.f32.vlgmr.msra.gmra.mrb[48].mxu0 %vm96_vm0, %v1693_v49  ;;  %v9684_v62 = vpop.f32.mrb[3].mxu0 }
 0x111   :  { %v1401_v58 = vpop.permute.xlu1 %1400  ;;  %v1399_v60 = vpop.permute.xlu0 %1398  ;;  %1787 = vmatprep.mubr.f32.mxu0 %v13184_v1  ;;  %8007 = vmatpush1.bf16.msra.mxu1 %v9064_v23 }
 0x112   :  { %v1428_v61 = vsel %vm1426_vm5, %v1399_v60, %v1401_v58  ;;  %8031 = vmatpush1.bf16.msra.mxu0 %v9031_v13  ;;  %8009 = vmatprep.subr.bf16.mxu1 %v9068_v24 }
 0x113   :  { %2689 = vrot.lane.b32.xlu1 %v9667_v52, %s8927_s20  ;;  %2687 = vrot.lane.b32.xlu0 %v9541_v38, %s8927_s20  ;;  %v9695_v8 = vpop.f32.mrb[4].mxu0 }
 0x114   :  { %6561 = vmatmul.mubr.msk.f32.gmra.mrb[34].mxu1 %vm96_vm0, %v1428_v61  ;;  %8033 = vmatprep.subr.bf16.mxu0 %v9046_v17  ;;  %v9701_v14 = vpop.f32.mrb[5].mxu0 }
 0x115   :  { %v1667_v4 = vpop.permute.xlu1 %1666  ;;  %v1665_v5 = vpop.permute.xlu0 %1664  ;;  %1527 = vmatprep.mubr.f32.mxu1 %v13184_v1  ;;  %8011 = vmatpush1.bf16.msra.mxu1 %v9092_v31 }
 0x116   :  { %v1694_v0 = vsel %vm1692_vm6, %v1665_v5, %v1667_v4  ;;  %8035 = vmatpush1.bf16.msra.mxu0 %v9064_v23  ;;  %8013 = vmatprep.subr.bf16.mxu1 %v9096_v32 }
 0x117   :  { %2427 = vrot.lane.b32.xlu1 %v9565_v50, %s8926_s8  ;;  %2425 = vrot.lane.b32.xlu0 %v9395_v34, %s8926_s8  ;;  %v9712_v34 = vpop.f32.mrb[6].mxu0 }
 0x118   :  { %6569 = vmatmul.mubr.msk.f32.gmra.mrb[50].mxu0 %vm96_vm0, %v1694_v0  ;;  %8037 = vmatprep.subr.bf16.mxu0 %v9068_v24  ;;  %v9716_v19 = vpop.f32.mrb[7].mxu0 }
 0x119   :  { %v1405_v16 = vpop.permute.xlu1 %1404  ;;  %v1403_v2 = vpop.permute.xlu0 %1402  ;;  %1793 = vmatprep.mubr.f32.mxu0 %v13184_v1  ;;  %8015 = vmatpush1.bf16.msra.mxu1 %v9120_v39 }
 0x11a   :  { %v1429_v18 = vsel %vm1426_vm5, %v1403_v2, %v1405_v16  ;;  %8039 = vmatpush1.bf16.msra.mxu0 %v9092_v31  ;;  %8017 = vmatprep.subr.bf16.mxu1 %v9124_v40  ;;  %v9787_v2 = vld [vmem:[#allocation5 + $0x140] sm:$0xff] }
 0x11b   :  { %2693 = vrot.lane.b32.xlu1 %v9698_v9, %s8927_s20  ;;  %2691 = vrot.lane.b32.xlu0 %v9565_v50, %s8927_s20  ;;  %v9727_v27 = vpop.f32.mrb[8].mxu0 }
 0x11c   :  { %6562 = vmatmul.mubr.msk.f32.gmra.mrb[36].mxu1 %vm96_vm0, %v1429_v18  ;;  %8041 = vmatprep.subr.bf16.mxu0 %v9096_v32  ;;  %v9733_v30 = vpop.f32.mrb[9].mxu0 }
 0x11d   :  { %v1671_v21 = vpop.permute.xlu1 %1670  ;;  %v1669_v26 = vpop.permute.xlu0 %1668  ;;  %1533 = vmatprep.mubr.f32.mxu1 %v13184_v1  ;;  %8019 = vmatpush1.bf16.msra.mxu1 %v9148_v47 }
 0x11e   :  { %v1695_v3 = vsel %vm1692_vm6, %v1669_v26, %v1671_v21  ;;  %8043 = vmatpush1.bf16.msra.mxu0 %v9120_v39  ;;  %8021 = vmatprep.subr.bf16.mxu1 %v9152_v48 }
 0x11f   :  { %2431 = vrot.lane.b32.xlu1 %v9578_v57, %s8926_s8  ;;  %2429 = vrot.lane.b32.xlu0 %v9418_v44, %s8926_s8  ;;  %v9744_v44 = vpop.f32.mrb[10].mxu0 }
 0x120   :  { %6570 = vmatmul.mubr.msk.f32.gmra.mrb[52].mxu0 %vm96_vm0, %v1695_v3  ;;  %8045 = vmatprep.subr.bf16.mxu0 %v9124_v40  ;;  %v9748_v37 = vpop.f32.mrb[11].mxu0 }
 0x121   :  { %v1409_v33 = vpop.permute.xlu1 %1408  ;;  %v1407_v35 = vpop.permute.xlu0 %1406  ;;  %1799 = vmatprep.mubr.f32.mxu0 %v13184_v1  ;;  %8023 = vmatpush1.bf16.msra.mxu1 %v9172_v53 }
 0x122   :  { %v1430_v36 = vsel %vm1426_vm5, %v1407_v35, %v1409_v33  ;;  %8047 = vmatpush1.bf16.msra.mxu0 %v9148_v47  ;;  %8025 = vmatprep.subr.bf16.mxu1 %v9176_v54  ;;  %v9803_v35 = vld [vmem:[#allocation5 + $0x178] sm:$0xff] }
 0x123   :  { %2697 = vrot.lane.b32.xlu1 %v9730_v29, %s8927_s20  ;;  %2695 = vrot.lane.b32.xlu0 %v9578_v57, %s8927_s20  ;;  %v9759_v15 = vpop.f32.mrb[12].mxu0 }
 0x124   :  { %6563 = vmatmul.mubr.msk.f32.gmra.mrb[38].mxu1 %vm96_vm0, %v1430_v36  ;;  %8049 = vmatprep.subr.bf16.mxu0 %v9152_v48  ;;  %v9765_v49 = vpop.f32.mrb[13].mxu0 }
 0x125   :  { %v1675_v42 = vpop.permute.xlu1 %1674  ;;  %v1673_v43 = vpop.permute.xlu0 %1672  ;;  %1539 = vmatprep.mubr.f32.mxu1 %v13184_v1  ;;  %8027 = vmatpush1.bf16.msra.mxu1 %v9192_v59 }
 0x126   :  { %v1696_v45 = vsel %vm1692_vm6, %v1673_v43, %v1675_v42  ;;  %8051 = vmatpush1.bf16.msra.mxu0 %v9172_v53  ;;  %8057 = vmatprep.subr.bf16.mxu1 %v9023_v10 }
 0x127   :  { %2435 = vrot.lane.b32.xlu1 %v9597_v7, %s8926_s8  ;;  %2433 = vrot.lane.b32.xlu0 %v9439_v55, %s8926_s8  ;;  %v9774_v55 = vpop.f32.mrb[14].mxu0 }
 0x128   :  { %6571 = vmatmul.mubr.msk.f32.gmra.mrb[54].mxu0 %vm96_vm0, %v1696_v45  ;;  %8053 = vmatprep.subr.bf16.mxu0 %v9176_v54  ;;  %v9778_v4 = vpop.f32.mrb[15].mxu0 }
 0x129   :  { %v1413_v58 = vpop.permute.xlu1 %1412  ;;  %v1411_v60 = vpop.permute.xlu0 %1410  ;;  %1805 = vmatprep.mubr.f32.mxu0 %v13184_v1 }
 0x12a   :  { %v1431_v61 = vsel %vm1426_vm5, %v1411_v60, %v1413_v58  ;;  %8055 = vmatpush1.bf16.msra.mxu0 %v9192_v59  ;;  %v9819_v60 = vld [vmem:[#allocation5 + $0x1b0] sm:$0xff] }
 0x12b   :  { %2701 = vrot.lane.b32.xlu1 %v9762_v46, %s8927_s20  ;;  %2699 = vrot.lane.b32.xlu0 %v9597_v7, %s8927_s20 }
 0x12c   :  { %6564 = vmatmul.mubr.msk.f32.gmra.mrb[40].mxu1 %vm96_vm0, %v1431_v61  ;;  %8085 = vmatprep.subr.bf16.mxu0 %v9023_v10 }
 0x12d   :  { %v1679_v5 = vpop.permute.xlu1 %1678  ;;  %v1677_v0 = vpop.permute.xlu0 %1676  ;;  %1545 = vmatprep.mubr.f32.mxu1 %v13184_v1 }
 0x12e   :  { %v1697_v16 = vsel %vm1692_vm6, %v1677_v0, %v1679_v5 }
 0x12f   :  { %2439 = vrot.lane.b32.xlu1 %v9606_v12, %s8926_s8  ;;  %2437 = vrot.lane.b32.xlu0 %v9459_v63, %s8926_s8 }
 0x130   :  { %6572 = vmatmul.mubr.msk.f32.gmra.mrb[56].mxu0 %vm96_vm0, %v1697_v16 }
 0x131   :  { %v1417_v18 = vpop.permute.xlu1 %1416  ;;  %v1415_v21 = vpop.permute.xlu0 %1414  ;;  %1811 = vmatprep.mubr.f32.mxu0 %v13184_v1 }
 0x132   :  { %v1432_v26 = vsel %vm1426_vm5, %v1415_v21, %v1417_v18  ;;  %v3184_v21 = vld [vmem:[#allocation5 + $0x30] sm:$0xff] }
 0x133   :  { %2705 = vrot.lane.b32.xlu1 %v9787_v2, %s8927_s20  ;;  %2703 = vrot.lane.b32.xlu0 %v9606_v12, %s8927_s20 }
 0x134   :  { %6565 = vmatmul.mubr.msk.f32.gmra.mrb[42].mxu1 %vm96_vm0, %v1432_v26 }
 0x135   :  { %v1683_v3 = vpop.permute.xlu1 %1682  ;;  %v1681_v63 = vpop.permute.xlu0 %1680  ;;  %1551 = vmatprep.mubr.f32.mxu1 %v13184_v1 }
 0x136   :  { %v1698_v33 = vsel %vm1692_vm6, %v1681_v63, %v1683_v3 }
 0x137   :  { %2443 = vrot.lane.b32.xlu1 %v9622_v22, %s8926_s8  ;;  %2441 = vrot.lane.b32.xlu0 %v9479_v11, %s8926_s8 }
 0x138   :  { %6573 = vmatmul.mubr.msk.f32.gmra.mrb[58].mxu0 %vm96_vm0, %v1698_v33 }
 0x139   :  { %v1421_v36 = vpop.permute.xlu1 %1420  ;;  %v1419_v42 = vpop.permute.xlu0 %1418  ;;  %1817 = vmatprep.mubr.f32.mxu0 %v13184_v1 }
 0x13a   :  { %v1433_v43 = vsel %vm1426_vm5, %v1419_v42, %v1421_v36 }
 0x13b   :  { %2709 = vrot.lane.b32.xlu1 %v9803_v35, %s8927_s20  ;;  %2707 = vrot.lane.b32.xlu0 %v9622_v22, %s8927_s20 }
 0x13c   :  { %6566 = vmatmul.mubr.msk.f32.gmra.mrb[44].mxu1 %vm96_vm0, %v1433_v43 }
 0x13d   :  { %v1687_v45 = vpop.permute.xlu1 %1686  ;;  %v1685_v11 = vpop.permute.xlu0 %1684  ;;  %1557 = vmatprep.mubr.f32.mxu1 %v13184_v1 }
 0x13e   :  { %v1699_v58 = vsel %vm1692_vm6, %v1685_v11, %v1687_v45 }
 0x13f   :  { %2447 = vrot.lane.b32.xlu1 %v9631_v28, %s8926_s8  ;;  %2445 = vrot.lane.b32.xlu0 %v9496_v20, %s8926_s8 }
 0x140   :  { %6574 = vmatmul.mubr.msk.f32.gmra.mrb[60].mxu0 %vm96_vm0, %v1699_v58 }
 0x141   :  { %v1425_v61 = vpop.permute.xlu1 %1424  ;;  %v1423_v5 = vpop.permute.xlu0 %1422  ;;  %1823 = vmatprep.mubr.f32.mxu0 %v13184_v1 }
 0x142   :  { %v1434_v0 = vsel %vm1426_vm5, %v1423_v5, %v1425_v61 }
 0x143   :  { %2713 = vrot.lane.b32.xlu1 %v9819_v60, %s8927_s20  ;;  %2711 = vrot.lane.b32.xlu0 %v9631_v28, %s8927_s20 }
 0x144   :  { %6567 = vmatmul.mubr.msk.f32.gmra.mrb[46].mxu1 %vm96_vm0, %v1434_v0 }
 0x145   :  { %v1691_v16 = vpop.permute.xlu1 %1690  ;;  %v1689_v20 = vpop.permute.xlu0 %1688  ;;  %2006 = vmatprep.mubr.f32.mxu1 %v13184_v1 }
 0x146   :  { %v1700_v18 = vsel %vm1692_vm6, %v1689_v20, %v1691_v16 }
 0x147   :  { %2951 = vrot.lane.b32.xlu1 %v9647_v41, %s8928_s21  ;;  %2949 = vrot.lane.b32.xlu0 %v9528_v6, %s8928_s21 }
 0x148   :  { %6575 = vmatmul.mubr.msk.f32.gmra.mrb[62].mxu0 %vm96_vm0, %v1700_v18 }
 0x149   :  { %v2152_v26 = vpop.permute.xlu1 %2151  ;;  %v1911_v3 = vpop.permute.xlu0 %1910  ;;  %2272 = vmatprep.mubr.f32.mxu0 %v13184_v1 }
 0x14a   :  { %6576 = vmatmul.mubr.msk.f32.vlgmr.msra.gmra.mrb[48].mxu1 %vm96_vm0, %v1911_v3 }
 0x14b   :  { %3217 = vrot.lane.b32.xlu1 %v3184_v21, %s8929_s22  ;;  %3215 = vrot.lane.b32.xlu0 %v9647_v41, %s8929_s22  ;;  %v3186_v41 = vld [vmem:[#allocation5 + $0x68] sm:$0xff] }
 0x14c   :  { %2012 = vmatprep.mubr.f32.mxu1 %v13184_v1  ;;  %8059 = vmatpush1.bf16.msra.mxu1 %v9031_v13 }
 0x14d   :  { %v1913_v6 = vpop.permute.xlu1 %1912  ;;  %v2154_v63 = vpop.permute.xlu0 %2153  ;;  %8061 = vmatprep.subr.bf16.mxu1 %v9046_v17 }
 0x14e   :  { %v2184_v33 = vsel %vm2183_vm7, %v2152_v26, %v2154_v63  ;;  %6577 = vmatmul.mubr.msk.f32.gmra.mrb[50].mxu1 %vm96_vm0, %v1913_v6  ;;  %v3192_v63 = vld [vmem:[#allocation5 + $0x110] sm:$0xff] }
 0x14f   :  { %2955 = vrot.lane.b32.xlu1 %v9667_v52, %s8928_s21  ;;  %2953 = vrot.lane.b32.xlu0 %v9541_v38, %s8928_s21 }
 0x150   :  { %6584 = vmatmul.mubr.msk.f32.vlgmr.msra.gmra.mrb[64].mxu0 %vm96_vm0, %v2184_v33  ;;  %2018 = vmatprep.mubr.f32.mxu1 %v13184_v1 }
 0x151   :  { %v2158_v36 = vpop.permute.xlu1 %2157  ;;  %v2156_v42 = vpop.permute.xlu0 %2155  ;;  %2278 = vmatprep.mubr.f32.mxu0 %v13184_v1  ;;  %8063 = vmatpush1.bf16.msra.mxu1 %v9064_v23 }
 0x152   :  { %v2185_v43 = vsel %vm2183_vm7, %v2156_v42, %v2158_v36  ;;  %8087 = vmatpush1.bf16.msra.mxu0 %v9031_v13  ;;  %8065 = vmatprep.subr.bf16.mxu1 %v9068_v24 }
 0x153   :  { %3221 = vrot.lane.b32.xlu1 %v3186_v41, %s8929_s22  ;;  %3219 = vrot.lane.b32.xlu0 %v9667_v52, %s8929_s22  ;;  %v3188_v52 = vld [vmem:[#allocation5 + $0xa0] sm:$0xff] }
 0x154   :  { %6585 = vmatmul.mubr.msk.f32.gmra.mrb[66].mxu0 %vm96_vm0, %v2185_v43  ;;  %8089 = vmatprep.subr.bf16.mxu0 %v9046_v17 }
 0x155   :  { %v2160_v38 = vpop.permute.xlu1 %2159  ;;  %v1915_v45 = vpop.permute.xlu0 %1914  ;;  %2284 = vmatprep.mubr.f32.mxu0 %v13184_v1  ;;  %8067 = vmatpush1.bf16.msra.mxu1 %v9092_v31 }
 0x156   :  { %6578 = vmatmul.mubr.msk.f32.gmra.mrb[52].mxu1 %vm96_vm0, %v1915_v45  ;;  %8091 = vmatpush1.bf16.msra.mxu0 %v9064_v23 }
 0x157   :  { %2959 = vrot.lane.b32.xlu1 %v9698_v9, %s8928_s21  ;;  %2957 = vrot.lane.b32.xlu0 %v9565_v50, %s8928_s21 }
 0x158   :  { %2024 = vmatprep.mubr.f32.mxu1 %v13184_v1  ;;  %8069 = vmatprep.subr.bf16.mxu1 %v9096_v32 }
 0x159   :  { %v1917_v11 = vpop.permute.xlu1 %1916  ;;  %v2162_v58 = vpop.permute.xlu0 %2161  ;;  %8093 = vmatprep.subr.bf16.mxu0 %v9068_v24  ;;  %8071 = vmatpush1.bf16.msra.mxu1 %v9120_v39 }
 0x15a   :  { %v2186_v61 = vsel %vm2183_vm7, %v2160_v38, %v2162_v58  ;;  %6579 = vmatmul.mubr.msk.f32.gmra.mrb[54].mxu1 %vm96_vm0, %v1917_v11  ;;  %8095 = vmatpush1.bf16.msra.mxu0 %v9092_v31 }
 0x15b   :  { %3225 = vrot.lane.b32.xlu1 %v3188_v52, %s8929_s22  ;;  %3223 = vrot.lane.b32.xlu0 %v9698_v9, %s8929_s22  ;;  %v3190_v9 = vld [vmem:[#allocation5 + $0xd8] sm:$0xff]  ;;  %v3194_v52 = vld [vmem:[#allocation5 + $0x148] sm:$0xff] }
 0x15c   :  { %6586 = vmatmul.mubr.msk.f32.gmra.mrb[68].mxu0 %vm96_vm0, %v2186_v61  ;;  %2030 = vmatprep.mubr.f32.mxu1 %v13184_v1 }
 0x15d   :  { %v2166_v50 = vpop.permute.xlu1 %2165  ;;  %v2164_v5 = vpop.permute.xlu0 %2163  ;;  %2290 = vmatprep.mubr.f32.mxu0 %v13184_v1  ;;  %8073 = vmatprep.subr.bf16.mxu1 %v9124_v40 }
 0x15e   :  { %v2187_v0 = vsel %vm2183_vm7, %v2164_v5, %v2166_v50  ;;  %8097 = vmatprep.subr.bf16.mxu0 %v9096_v32  ;;  %8075 = vmatpush1.bf16.msra.mxu1 %v9148_v47 }
 0x15f   :  { %2963 = vrot.lane.b32.xlu1 %v9730_v29, %s8928_s21  ;;  %2961 = vrot.lane.b32.xlu0 %v9578_v57, %s8928_s21 }
 0x160   :  { %6587 = vmatmul.mubr.msk.f32.gmra.mrb[70].mxu0 %vm96_vm0, %v2187_v0  ;;  %8077 = vmatprep.subr.bf16.mxu1 %v9152_v48 }
 0x161   :  { %v2168_v16 = vpop.permute.xlu1 %2167  ;;  %v1919_v20 = vpop.permute.xlu0 %1918  ;;  %2296 = vmatprep.mubr.f32.mxu0 %v13184_v1  ;;  %8099 = vmatpush1.bf16.msra.mxu0 %v9120_v39 }
 0x162   :  { %6580 = vmatmul.mubr.msk.f32.gmra.mrb[56].mxu1 %vm96_vm0, %v1919_v20  ;;  %8101 = vmatprep.subr.bf16.mxu0 %v9124_v40 }
 0x163   :  { %v9896_v18 = vpop.f32.mrb[0].mxu1  ;;  %3229 = vrot.lane.b32.xlu1 %v3190_v9, %s8929_s22  ;;  %3227 = vrot.lane.b32.xlu0 %v9730_v29, %s8929_s22 }
 0x164   :  { %v9901_v57 = vpop.f32.mrb[1].mxu1  ;;  %2036 = vmatprep.mubr.f32.mxu1 %v13184_v1  ;;  %8079 = vmatpush1.bf16.msra.mxu1 %v9172_v53 }
 0x165   :  { %v1921_v21 = vpop.permute.xlu1 %1920  ;;  %v2170_v26 = vpop.permute.xlu0 %2169  ;;  %8103 = vmatpush1.bf16.msra.mxu0 %v9148_v47  ;;  %8081 = vmatprep.subr.bf16.mxu1 %v9176_v54 }
 0x166   :  { %v2188_v3 = vsel %vm2183_vm7, %v2168_v16, %v2170_v26  ;;  %6581 = vmatmul.mubr.msk.f32.gmra.mrb[58].mxu1 %vm96_vm0, %v1921_v21  ;;  %8105 = vmatprep.subr.bf16.mxu0 %v9152_v48  ;;  %v3196_v16 = vld [vmem:[#allocation5 + $0x180] sm:$0xff] }
 0x167   :  { %v9910_v6 = vpop.f32.mrb[2].mxu1  ;;  %2967 = vrot.lane.b32.xlu1 %v9762_v46, %s8928_s21  ;;  %2965 = vrot.lane.b32.xlu0 %v9597_v7, %s8928_s21 }
 0x168   :  { %v9916_v29 = vpop.f32.mrb[3].mxu1  ;;  %6588 = vmatmul.mubr.msk.f32.gmra.mrb[72].mxu0 %vm96_vm0, %v2188_v3  ;;  %2042 = vmatprep.mubr.f32.mxu1 %v13184_v1 }
 0x169   :  { %v2174_v33 = vpop.permute.xlu1 %2173  ;;  %v2172_v41 = vpop.permute.xlu0 %2171  ;;  %2302 = vmatprep.mubr.f32.mxu0 %v13184_v1  ;;  %8083 = vmatpush1.bf16.msra.mxu1 %v9192_v59 }
 0x16a   :  { %v2189_v36 = vsel %vm2183_vm7, %v2172_v41, %v2174_v33  ;;  %8107 = vmatpush1.bf16.msra.mxu0 %v9172_v53  ;;  %8113 = vmatprep.subr.bf16.mxu1 %v9023_v10 }
 0x16b   :  { %v9925_v7 = vpop.f32.mrb[4].mxu1  ;;  %3233 = vrot.lane.b32.xlu1 %v3192_v63, %s8929_s22  ;;  %3231 = vrot.lane.b32.xlu0 %v9762_v46, %s8929_s22 }
 0x16c   :  { %v9930_v42 = vpop.f32.mrb[5].mxu1  ;;  %6589 = vmatmul.mubr.msk.f32.gmra.mrb[74].mxu0 %vm96_vm0, %v2189_v36  ;;  %8109 = vmatprep.subr.bf16.mxu0 %v9176_v54 }
 0x16d   :  { %v2176_v43 = vpop.permute.xlu1 %2175  ;;  %v1923_v38 = vpop.permute.xlu0 %1922  ;;  %2308 = vmatprep.mubr.f32.mxu0 %v13184_v1 }
 0x16e   :  { %6582 = vmatmul.mubr.msk.f32.gmra.mrb[60].mxu1 %vm96_vm0, %v1923_v38  ;;  %8111 = vmatpush1.bf16.msra.mxu0 %v9192_v59 }
 0x16f   :  { %v9937_v45 = vpop.f32.mrb[6].mxu1  ;;  %2971 = vrot.lane.b32.xlu1 %v9787_v2, %s8928_s21  ;;  %2969 = vrot.lane.b32.xlu0 %v9606_v12, %s8928_s21 }
 0x170   :  { %v9943_v46 = vpop.f32.mrb[7].mxu1  ;;  %2048 = vmatprep.mubr.f32.mxu1 %v13184_v1  ;;  %8141 = vmatprep.subr.bf16.mxu0 %v9023_v10 }
 0x171   :  { %v1925_v11 = vpop.permute.xlu1 %1924  ;;  %v2178_v58 = vpop.permute.xlu0 %2177 }
 0x172   :  { %v2190_v61 = vsel %vm2183_vm7, %v2176_v43, %v2178_v58  ;;  %6583 = vmatmul.mubr.msk.f32.gmra.mrb[62].mxu1 %vm96_vm0, %v1925_v11 }
 0x173   :  { %v9949_v50 = vpop.f32.mrb[8].mxu1  ;;  %3237 = vrot.lane.b32.xlu1 %v3194_v52, %s8929_s22  ;;  %3235 = vrot.lane.b32.xlu0 %v9787_v2, %s8929_s22  ;;  %v3198_v52 = vld [vmem:[#allocation5 + $0x1b8] sm:$0xff] }
 0x174   :  { %v9954_v12 = vpop.f32.mrb[9].mxu1  ;;  %6590 = vmatmul.mubr.msk.f32.gmra.mrb[76].mxu0 %vm96_vm0, %v2190_v61  ;;  %2538 = vmatprep.mubr.f32.mxu1 %v13184_v1 }
 0x175   :  { %v2182_v10 = vpop.permute.xlu1 %2181  ;;  %v2180_v5 = vpop.permute.xlu0 %2179  ;;  %2314 = vmatprep.mubr.f32.mxu0 %v13184_v1 }
 0x176   :  { %v2191_v0 = vsel %vm2183_vm7, %v2180_v5, %v2182_v10 }
 0x177   :  { %v9960_v9 = vpop.f32.mrb[10].mxu1  ;;  %2975 = vrot.lane.b32.xlu1 %v9803_v35, %s8928_s21  ;;  %2973 = vrot.lane.b32.xlu0 %v9622_v22, %s8928_s21 }
 0x178   :  { %v9966_v2 = vpop.f32.mrb[11].mxu1  ;;  %6591 = vmatmul.mubr.msk.f32.gmra.mrb[78].mxu0 %vm96_vm0, %v2191_v0 }
 0x179   :  { %v2420_v20 = vpop.permute.xlu1 %2419  ;;  %v2418_v21 = vpop.permute.xlu0 %2417  ;;  %2804 = vmatprep.mubr.f32.mxu0 %v13184_v1 }
 0x17a   :  { %v2450_v26 = vsel %vm2449_vm8, %v2418_v21, %v2420_v20 }
 0x17b   :  { %v9971_v3 = vpop.f32.mrb[12].mxu1  ;;  %v9973_v63 = vpop.f32.mrb[16].mxu0  ;;  %3241 = vrot.lane.b32.xlu1 %v3196_v16, %s8929_s22  ;;  %3239 = vrot.lane.b32.xlu0 %v9803_v35, %s8929_s22 }
 0x17c   :  { %v9978_v22 = vpop.f32.mrb[13].mxu1  ;;  %v9980_v33 = vpop.f32.mrb[17].mxu0  ;;  %6592 = vmatmul.mubr.msk.f32.vlgmr.msra.gmra.mrb[64].mxu1 %vm96_vm0, %v2450_v26 }
 0x17d   :  { %v2686_v41 = vpop.permute.xlu1 %2685  ;;  %v2684_v36 = vpop.permute.xlu0 %2683  ;;  %2544 = vmatprep.mubr.f32.mxu1 %v13184_v1  ;;  %8115 = vmatpush1.bf16.msra.mxu1 %v9031_v13 }
 0x17e   :  { %v2716_v43 = vsel %vm2715_vm9, %v2684_v36, %v2686_v41  ;;  %8117 = vmatprep.subr.bf16.mxu1 %v9046_v17 }
 0x17f   :  { %v9987_v38 = vpop.f32.mrb[14].mxu1  ;;  %2979 = vrot.lane.b32.xlu1 %v9819_v60, %s8928_s21  ;;  %2977 = vrot.lane.b32.xlu0 %v9631_v28, %s8928_s21 }
 0x180   :  { %v9993_v35 = vpop.f32.mrb[15].mxu1  ;;  %6600 = vmatmul.mubr.msk.f32.vlgmr.msra.gmra.mrb[80].mxu0 %vm96_vm0, %v2716_v43  ;;  %v3466_v43 = vld [vmem:[%s13177_s3 + $0x88] sm:$0xff] }
 0x181   :  { %v2424_v11 = vpop.permute.xlu1 %2423  ;;  %v2422_v58 = vpop.permute.xlu0 %2421  ;;  %2810 = vmatprep.mubr.f32.mxu0 %v13184_v1  ;;  %8119 = vmatpush1.bf16.msra.mxu1 %v9064_v23 }
 0x182   :  { %v2451_v61 = vsel %vm2449_vm8, %v2422_v58, %v2424_v11  ;;  %8143 = vmatpush1.bf16.msra.mxu0 %v9031_v13  ;;  %8121 = vmatprep.subr.bf16.mxu1 %v9068_v24 }
 0x183   :  { %v10001_v10 = vpop.f32.mrb[18].mxu0  ;;  %3245 = vrot.lane.b32.xlu1 %v3198_v52, %s8929_s22  ;;  %3243 = vrot.lane.b32.xlu0 %v9819_v60, %s8929_s22 }
 0x184   :  { %13305 = vst [vmem:[#allocation8_spill] sm:$0xff] %v10001_v10  ;;  %v10006_v28 = vpop.f32.mrb[19].mxu0  ;;  %6593 = vmatmul.mubr.msk.f32.gmra.mrb[66].mxu1 %vm96_vm0, %v2451_v61  ;;  %8145 = vmatprep.subr.bf16.mxu0 %v9046_v17 }
 0x185   :  { %13306 = vst [vmem:[#allocation9_spill] sm:$0xff] %v10006_v28  ;;  %v2690_v5 = vpop.permute.xlu1 %2689  ;;  %v2688_v0 = vpop.permute.xlu0 %2687  ;;  %2550 = vmatprep.mubr.f32.mxu1 %v13184_v1  ;;  %8123 = vmatpush1.bf16.msra.mxu1 %v9092_v31 }
 0x186   :  { %v2717_v13 = vsel %vm2715_vm9, %v2688_v0, %v2690_v5  ;;  %8147 = vmatpush1.bf16.msra.mxu0 %v9064_v23  ;;  %8125 = vmatprep.subr.bf16.mxu1 %v9096_v32  ;;  %v3497_v0 = vld [vmem:[%s13177_s3 + $0x180] sm:$0xff] }
 0x187   :  { %v10015_v16 = vpop.f32.mrb[20].mxu0  ;;  %6601 = vmatmul.mubr.msk.f32.gmra.mrb[82].mxu0 %vm96_vm0, %v2717_v13  ;;  %8149 = vmatprep.subr.bf16.mxu0 %v9068_v24 }
 0x188   :  { %13307 = vst [vmem:[#allocation10_spill] sm:$0xff] %v10015_v16  ;;  %v10019_v60 = vpop.f32.mrb[21].mxu0  ;;  %2816 = vmatprep.mubr.f32.mxu0 %v13184_v1 }
 0x189   :  { %13308 = vst [vmem:[#allocation11_spill] sm:$0xff] %v10019_v60  ;;  %v2428_v17 = vpop.permute.xlu1 %2427  ;;  %v2426_v20 = vpop.permute.xlu0 %2425  ;;  %8127 = vmatpush1.bf16.msra.mxu1 %v9120_v39 }
 0x18a   :  { %v2452_v21 = vsel %vm2449_vm8, %v2426_v20, %v2428_v17  ;;  %8151 = vmatpush1.bf16.msra.mxu0 %v9092_v31  ;;  %8129 = vmatprep.subr.bf16.mxu1 %v9124_v40 }
 0x18b   :  { %v10026_v23 = vpop.f32.mrb[22].mxu0  ;;  %6594 = vmatmul.mubr.msk.f32.gmra.mrb[68].mxu1 %vm96_vm0, %v2452_v21  ;;  %8153 = vmatprep.subr.bf16.mxu0 %v9096_v32  ;;  %v3465_v32 = vld [vmem:[%s13177_s3 + $0x80] sm:$0xff] }
 0x18c   :  { %13309 = vst [vmem:[#allocation12_spill] sm:$0xff] %v10026_v23  ;;  %v10030_v24 = vpop.f32.mrb[23].mxu0  ;;  %2556 = vmatprep.mubr.f32.mxu1 %v13184_v1 }
 0x18d   :  { %13310 = vst [vmem:[#allocation13_spill] sm:$0xff] %v10030_v24  ;;  %v2694_v26 = vpop.permute.xlu1 %2693  ;;  %v2692_v41 = vpop.permute.xlu0 %2691  ;;  %8131 = vmatpush1.bf16.msra.mxu1 %v9148_v47 }
 0x18e   :  { %v2718_v36 = vsel %vm2715_vm9, %v2692_v41, %v2694_v26  ;;  %8155 = vmatpush1.bf16.msra.mxu0 %v9120_v39  ;;  %8133 = vmatprep.subr.bf16.mxu1 %v9152_v48 }
 0x18f   :  { %v10037_v31 = vpop.f32.mrb[24].mxu0  ;;  %6602 = vmatmul.mubr.msk.f32.gmra.mrb[84].mxu0 %vm96_vm0, %v2718_v36  ;;  %8157 = vmatprep.subr.bf16.mxu0 %v9124_v40  ;;  %v10054_v40 = vpack.c.bf16 %v3466_v43, %v3465_v32 }
 0x190   :  { %13311 = vst [vmem:[#allocation14_spill] sm:$0xff] %v10037_v31  ;;  %v10047_v52 = vpop.f32.mrb[25].mxu0  ;;  %2822 = vmatprep.mubr.f32.mxu0 %v13184_v1 }
 0x191   :  { %13312 = vst [vmem:[#allocation15_spill] sm:$0xff] %v10047_v52  ;;  %v2432_v39 = vpop.permute.xlu1 %2431  ;;  %v2430_v11 = vpop.permute.xlu0 %2429  ;;  %8135 = vmatpush1.bf16.msra.mxu1 %v9172_v53  ;;  %13313 = vst [vmem:[#allocation16_spill] sm:$0xff] %v10054_v40  ;;  %v3486_v52 = vld [vmem:[%s13177_s3 + $0x128] sm:$0xff] }
 0x192   :  { %v2453_v58 = vsel %vm2449_vm8, %v2430_v11, %v2432_v39  ;;  %8159 = vmatpush1.bf16.msra.mxu0 %v9148_v47  ;;  %8137 = vmatprep.subr.bf16.mxu1 %v9176_v54  ;;  %v3498_v47 = vld [vmem:[%s13177_s3 + $0x188] sm:$0xff] }
 0x193   :  { %v10056_v61 = vpop.f32.mrb[26].mxu0  ;;  %6595 = vmatmul.mubr.msk.f32.gmra.mrb[70].mxu1 %vm96_vm0, %v2453_v58  ;;  %8161 = vmatprep.subr.bf16.mxu0 %v9152_v48  ;;  %v10077_v21 = vpack.c.bf16 %v3498_v47, %v3497_v0 }
 0x194   :  { %13314 = vst [vmem:[#allocation17_spill] sm:$0xff] %v10056_v61  ;;  %v10060_v5 = vpop.f32.mrb[27].mxu0  ;;  %2562 = vmatprep.mubr.f32.mxu1 %v13184_v1 }
 0x195   :  { %13315 = vst [vmem:[#allocation18_spill] sm:$0xff] %v10060_v5  ;;  %v2698_v13 = vpop.permute.xlu1 %2697  ;;  %v2696_v17 = vpop.permute.xlu0 %2695  ;;  %8139 = vmatpush1.bf16.msra.mxu1 %v9192_v59  ;;  %13317 = vst [vmem:[#allocation20_spill] sm:$0xff] %v10077_v21 }
 0x196   :  { %v2719_v20 = vsel %vm2715_vm9, %v2696_v17, %v2698_v13  ;;  %8163 = vmatpush1.bf16.msra.mxu0 %v9172_v53  ;;  %8169 = vmatprep.subr.bf16.mxu1 %v10054_v40 }
 0x197   :  { %v10073_v48 = vpop.f32.mrb[28].mxu0  ;;  %6603 = vmatmul.mubr.msk.f32.gmra.mrb[86].mxu0 %vm96_vm0, %v2719_v20  ;;  %8165 = vmatprep.subr.bf16.mxu0 %v9176_v54 }
 0x198   :  { %13316 = vst [vmem:[#allocation19_spill] sm:$0xff] %v10073_v48  ;;  %v10079_v26 = vpop.f32.mrb[29].mxu0  ;;  %2828 = vmatprep.mubr.f32.mxu0 %v13184_v1 }
 0x199   :  { %13318 = vst [vmem:[#allocation21_spill] sm:$0xff] %v10079_v26  ;;  %v2436_v41 = vpop.permute.xlu1 %2435  ;;  %v2434_v36 = vpop.permute.xlu0 %2433  ;;  %v3483_v26 = vld [vmem:[%s13177_s3 + $0x110] sm:$0xff] }
 0x19a   :  { %v2454_v32 = vsel %vm2449_vm8, %v2434_v36, %v2436_v41  ;;  %8167 = vmatpush1.bf16.msra.mxu0 %v9192_v59 }
 0x19b   :  { %v10084_v53 = vpop.f32.mrb[30].mxu0  ;;  %6596 = vmatmul.mubr.msk.f32.gmra.mrb[72].mxu1 %vm96_vm0, %v2454_v32  ;;  %8201 = vmatprep.subr.bf16.mxu0 %v10077_v21 }
 0x19c   :  { %13319 = vst [vmem:[#allocation22_spill] sm:$0xff] %v10084_v53  ;;  %v10088_v43 = vpop.f32.mrb[31].mxu0  ;;  %2568 = vmatprep.mubr.f32.mxu1 %v13184_v1 }
 0x19d   :  { %13320 = vst [vmem:[#allocation23_spill] sm:$0xff] %v10088_v43  ;;  %v2702_v54 = vpop.permute.xlu1 %2701  ;;  %v2700_v39 = vpop.permute.xlu0 %2699 }
 0x19e   :  { %v2720_v11 = vsel %vm2715_vm9, %v2700_v39, %v2702_v54 }
 0x19f   :  { %v10092_v58 = vpop.f32.mrb[16].mxu1  ;;  %6604 = vmatmul.mubr.msk.f32.gmra.mrb[88].mxu0 %vm96_vm0, %v2720_v11 }
 0x1a0   :  { %13321 = vst [vmem:[#allocation24_spill] sm:$0xff] %v10092_v58  ;;  %v10095_v0 = vpop.f32.mrb[17].mxu1  ;;  %2834 = vmatprep.mubr.f32.mxu0 %v13184_v1 }
 0x1a1   :  { %13322 = vst [vmem:[#allocation25_spill] sm:$0xff] %v10095_v0  ;;  %v2440_v59 = vpop.permute.xlu1 %2439  ;;  %v2438_v47 = vpop.permute.xlu0 %2437 }
 0x1a2   :  { %v2455_v13 = vsel %vm2449_vm8, %v2438_v47, %v2440_v59 }
 0x1a3   :  { %v10099_v17 = vpop.f32.mrb[32].mxu0  ;;  %6597 = vmatmul.mubr.msk.f32.gmra.mrb[74].mxu1 %vm96_vm0, %v2455_v13 }
 0x1a4   :  { %13323 = vst [vmem:[#allocation26_spill] sm:$0xff] %v10099_v17  ;;  %v10102_v20 = vpop.f32.mrb[33].mxu0  ;;  %2574 = vmatprep.mubr.f32.mxu1 %v13184_v1 }
 0x1a5   :  { %13324 = vst [vmem:[#allocation27_spill] sm:$0xff] %v10102_v20  ;;  %v2706_v41 = vpop.permute.xlu1 %2705  ;;  %v2704_v36 = vpop.permute.xlu0 %2703  ;;  %v3481_v20 = vld [vmem:[%s13177_s3 + $0x100] sm:$0xff] }
 0x1a6   :  { %v2721_v32 = vsel %vm2715_vm9, %v2704_v36, %v2706_v41 }
 0x1a7   :  { %v10106_v54 = vpop.f32.mrb[18].mxu1  ;;  %6605 = vmatmul.mubr.msk.f32.gmra.mrb[90].mxu0 %vm96_vm0, %v2721_v32 }
 0x1a8   :  { %13325 = vst [vmem:[#allocation28_spill] sm:$0xff] %v10106_v54  ;;  %v10109_v39 = vpop.f32.mrb[19].mxu1  ;;  %2840 = vmatprep.mubr.f32.mxu0 %v13184_v1 }
 0x1a9   :  { %13326 = vst [vmem:[#allocation29_spill] sm:$0xff] %v10109_v39  ;;  %v2444_v11 = vpop.permute.xlu1 %2443  ;;  %v2442_v59 = vpop.permute.xlu0 %2441 }
 0x1aa   :  { %v2456_v47 = vsel %vm2449_vm8, %v2442_v59, %v2444_v11 }
 0x1ab   :  { %v10113_v13 = vpop.f32.mrb[34].mxu0  ;;  %6598 = vmatmul.mubr.msk.f32.gmra.mrb[76].mxu1 %vm96_vm0, %v2456_v47 }
 0x1ac   :  { %13327 = vst [vmem:[#allocation30_spill] sm:$0xff] %v10113_v13  ;;  %v10116_v17 = vpop.f32.mrb[35].mxu0  ;;  %2580 = vmatprep.mubr.f32.mxu1 %v13184_v1 }
 0x1ad   :  { %13328 = vst [vmem:[#allocation31_spill] sm:$0xff] %v10116_v17  ;;  %v2710_v41 = vpop.permute.xlu1 %2709  ;;  %v2708_v36 = vpop.permute.xlu0 %2707 }
 0x1ae   :  { %v2722_v32 = vsel %vm2715_vm9, %v2708_v36, %v2710_v41 }
 0x1af   :  { %v10120_v54 = vpop.f32.mrb[20].mxu1  ;;  %6606 = vmatmul.mubr.msk.f32.gmra.mrb[92].mxu0 %vm96_vm0, %v2722_v32  ;;  %v3449_v32 = vld [vmem:[%s13177_s3] sm:$0xff] }
 0x1b0   :  { %13329 = vst [vmem:[#allocation32_spill] sm:$0xff] %v10120_v54  ;;  %v10123_v39 = vpop.f32.mrb[21].mxu1  ;;  %2846 = vmatprep.mubr.f32.mxu0 %v13184_v1  ;;  %v3450_v54 = vld [vmem:[%s13177_s3 + $0x8] sm:$0xff] }
 0x1b1   :  { %13330 = vst [vmem:[#allocation33_spill] sm:$0xff] %v10123_v39  ;;  %v2448_v11 = vpop.permute.xlu1 %2447  ;;  %v2446_v59 = vpop.permute.xlu0 %2445  ;;  %v10152_v39 = vpack.c.bf16 %v3450_v54, %v3449_v32  ;;  %v3452_v54 = vld [vmem:[%s13177_s3 + $0x18] sm:$0xff]  ;;  %v3499_v32 = vld [vmem:[%s13177_s3 + $0x190] sm:$0xff] }
 0x1b2   :  { %v2457_v47 = vsel %vm2449_vm8, %v2446_v59, %v2448_v11  ;;  %v3467_v59 = vld [vmem:[%s13177_s3 + $0x90] sm:$0xff] }
 0x1b3   :  { %v10127_v13 = vpop.f32.mrb[36].mxu0  ;;  %6599 = vmatmul.mubr.msk.f32.gmra.mrb[78].mxu1 %vm96_vm0, %v2457_v47  ;;  %v3468_v47 = vld [vmem:[%s13177_s3 + $0x98] sm:$0xff] }
 0x1b4   :  { %13331 = vst [vmem:[#allocation34_spill] sm:$0xff] %v10127_v13  ;;  %v10130_v17 = vpop.f32.mrb[37].mxu0  ;;  %3070 = vmatprep.mubr.f32.mxu1 %v13184_v1  ;;  %v10154_v58 = vpack.c.bf16 %v3468_v47, %v3467_v59  ;;  %v3500_v59 = vld [vmem:[%s13177_s3 + $0x198] sm:$0xff] }
 0x1b5   :  { %13332 = vst [vmem:[#allocation35_spill] sm:$0xff] %v10130_v17  ;;  %v2714_v41 = vpop.permute.xlu1 %2713  ;;  %v2712_v36 = vpop.permute.xlu0 %2711  ;;  %v13335_v17 = vmov 0.0   ;;  %v10193_v48 = vpack.c.bf16 %v3500_v59, %v3499_v32  ;;  %v3502_v32 = vld [vmem:[%s13177_s3 + $0x1a8] sm:$0xff] }
 0x1b6   :  { %v2723_v11 = vsel %vm2715_vm9, %v2712_v36, %v2714_v41 }
 0x1b7   :  { %v10146_v1 = vpop.f32.mrb[22].mxu1  ;;  %6607 = vmatmul.mubr.msk.f32.gmra.mrb[94].mxu0 %vm96_vm0, %v2723_v11  ;;  %v3451_v11 = vld [vmem:[%s13177_s3 + $0x10] sm:$0xff]  ;;  %13339 = vst [vmem:[#allocation41_spill] sm:$0xff] %v10193_v48 }
 0x1b8   :  { %13333 = vst [vmem:[#allocation36_spill] sm:$0xff] %v10146_v1  ;;  %v10149_v13 = vpop.f32.mrb[23].mxu1  ;;  %3336 = vmatprep.mubr.f32.mxu0 %v13335_v17  ;;  %v3482_v1 = vld [vmem:[%s13177_s3 + $0x108] sm:$0xff] }
 0x1b9   :  { %13334 = vst [vmem:[#allocation37_spill] sm:$0xff] %v10149_v13  ;;  %v2952_v41 = vpop.permute.xlu1 %2951  ;;  %v2950_v36 = vpop.permute.xlu0 %2949  ;;  %v10188_v53 = vpack.c.bf16 %v3482_v1, %v3481_v20  ;;  %v3453_v1 = vld [vmem:[%s13177_s3 + $0x20] sm:$0xff] }
 0x1ba   :  { %v2982_v13 = vsel %vm2981_vm10, %v2950_v36, %v2952_v41  ;;  %v3469_v41 = vld [vmem:[%s13177_s3 + $0xa0] sm:$0xff]  ;;  %v3470_v36 = vld [vmem:[%s13177_s3 + $0xa8] sm:$0xff] }
 0x1bb   :  { %v10175_v47 = vpop.f32.mrb[38].mxu0  ;;  %6608 = vmatmul.mubr.msk.f32.vlgmr.msra.gmra.mrb[80].mxu1 %vm96_vm0, %v2982_v13  ;;  %13338 = vst [vmem:[#allocation40_spill] sm:$0xff] %v10188_v53  ;;  %v10191_v13 = vpack.c.bf16 %v3452_v54, %v3451_v11  ;;  %v10205_v61 = vpack.c.bf16 %v3470_v36, %v3469_v41  ;;  %v3454_v11 = vld [vmem:[%s13177_s3 + $0x28] sm:$0xff]  ;;  %v3501_v54 = vld [vmem:[%s13177_s3 + $0x1a0] sm:$0xff] }
 0x1bc   :  { %13336 = vst [vmem:[#allocation38_spill] sm:$0xff] %v10175_v47  ;;  %v10184_v0 = vpop.f32.mrb[39].mxu0  ;;  %3076 = vmatprep.mubr.f32.mxu1 %v13335_v17  ;;  %8171 = vmatpush3.bf16.msra.mxu1 %v10152_v39  ;;  %v10235_v31 = vpack.c.bf16 %v3502_v32, %v3501_v54  ;;  %v3503_v54 = vld [vmem:[%s13177_s3 + $0x1b0] sm:$0xff]  ;;  %v3504_v32 = vld [vmem:[%s13177_s3 + $0x1b8] sm:$0xff] }
 0x1bd   :  { %13337 = vst [vmem:[#allocation39_spill] sm:$0xff] %v10184_v0  ;;  %v3218_v47 = vpop.permute.xlu1 %3217  ;;  %v3216_v43 = vpop.permute.xlu0 %3215  ;;  %8173 = vmatprep.subr.bf16.mxu1 %v10154_v58  ;;  %v3484_v0 = vld [vmem:[%s13177_s3 + $0x118] sm:$0xff] }
 0x1be   :  { %v3248_v20 = vsel %vm3247_vm11, %v3216_v43, %v3218_v47  ;;  %v3471_v43 = vld [vmem:[%s13177_s3 + $0xb0] sm:$0xff]  ;;  %v3472_v47 = vld [vmem:[%s13177_s3 + $0xb8] sm:$0xff]  ;;  %v10229_v36 = vpack.c.bf16 %v3484_v0, %v3483_v26  ;;  %13343 = vst [vmem:[#allocation45_spill] sm:$0xff] %v10235_v31 }
 0x1bf   :  { %v10216_v59 = vpop.f32.mrb[24].mxu1  ;;  %6616 = vmatmul.mubr.msk.f32.vlgmr.msra.gmra.mrb[96].mxu0 %vm96_vm0, %v3248_v20  ;;  %v10233_v20 = vpack.c.bf16 %v3454_v11, %v3453_v1  ;;  %v3455_v26 = vld [vmem:[%s13177_s3 + $0x30] sm:$0xff]  ;;  %v10248_v1 = vpack.c.bf16 %v3472_v47, %v3471_v43  ;;  %v3456_v11 = vld [vmem:[%s13177_s3 + $0x38] sm:$0xff] }
 0x1c0   :  { %13340 = vst [vmem:[#allocation42_spill] sm:$0xff] %v10216_v59  ;;  %v10225_v41 = vpop.f32.mrb[25].mxu1  ;;  %3342 = vmatprep.mubr.f32.mxu0 %v13335_v17  ;;  %8203 = vmatpush3.bf16.msra.mxu0 %v10188_v53  ;;  %13342 = vst [vmem:[#allocation44_spill] sm:$0xff] %v10229_v36  ;;  %v10278_v53 = vpack.c.bf16 %v3504_v32, %v3503_v54  ;;  %v3505_v54 = vld [vmem:[%s13177_s3 + $0x1c0] sm:$0xff]  ;;  %v3506_v32 = vld [vmem:[%s13177_s3 + $0x1c8] sm:$0xff] }
 0x1c1   :  { %13341 = vst [vmem:[#allocation43_spill] sm:$0xff] %v10225_v41  ;;  %v2956_v5 = vpop.permute.xlu1 %2955  ;;  %v2954_v59 = vpop.permute.xlu0 %2953  ;;  %8175 = vmatpush3.bf16.msra.mxu1 %v10191_v13  ;;  %8205 = vmatprep.subr.bf16.mxu0 %v10193_v48  ;;  %v3485_v41 = vld [vmem:[%s13177_s3 + $0x120] sm:$0xff]  ;;  %v10321_v16 = vpack.c.bf16 %v3506_v32, %v3505_v54  ;;  %v3507_v54 = vld [vmem:[%s13177_s3 + $0x1d0] sm:$0xff]  ;;  %v3508_v32 = vld [vmem:[%s13177_s3 + $0x1d8] sm:$0xff] }
 0x1c2   :  { %v2983_v0 = vsel %vm2981_vm10, %v2954_v59, %v2956_v5  ;;  %8177 = vmatprep.subr.bf16.mxu1 %v10205_v61  ;;  %v3473_v5 = vld [vmem:[%s13177_s3 + $0xc0] sm:$0xff]  ;;  %v3474_v59 = vld [vmem:[%s13177_s3 + $0xc8] sm:$0xff]  ;;  %v10272_v47 = vpack.c.bf16 %v3486_v52, %v3485_v41  ;;  %13347 = vst [vmem:[#allocation49_spill] sm:$0xff] %v10278_v53  ;;  %v10364_v60 = vpack.c.bf16 %v3508_v32, %v3507_v54 }
 0x1c3   :  { %v10259_v48 = vpop.f32.mrb[40].mxu0  ;;  %6609 = vmatmul.mubr.msk.f32.gmra.mrb[82].mxu1 %vm96_vm0, %v2983_v0  ;;  %v10276_v0 = vpack.c.bf16 %v3456_v11, %v3455_v26  ;;  %v3457_v52 = vld [vmem:[%s13177_s3 + $0x40] sm:$0xff]  ;;  %v10291_v26 = vpack.c.bf16 %v3474_v59, %v3473_v5  ;;  %v3458_v11 = vld [vmem:[%s13177_s3 + $0x48] sm:$0xff]  ;;  %13351 = vst [vmem:[#allocation53_spill] sm:$0xff] %v10321_v16 }
 0x1c4   :  { %13344 = vst [vmem:[#allocation46_spill] sm:$0xff] %v10259_v48  ;;  %v10268_v43 = vpop.f32.mrb[41].mxu0  ;;  %3082 = vmatprep.mubr.f32.mxu1 %v13335_v17  ;;  %8207 = vmatpush3.bf16.msra.mxu0 %v10229_v36  ;;  %13346 = vst [vmem:[#allocation48_spill] sm:$0xff] %v10272_v47  ;;  %v3488_v36 = vld [vmem:[%s13177_s3 + $0x138] sm:$0xff]  ;;  %v3509_v54 = vld [vmem:[%s13177_s3 + $0x1e0] sm:$0xff] }
 0x1c5   :  { %13345 = vst [vmem:[#allocation47_spill] sm:$0xff] %v10268_v43  ;;  %v3222_v23 = vpop.permute.xlu1 %3221  ;;  %v3220_v48 = vpop.permute.xlu0 %3219  ;;  %8179 = vmatpush3.bf16.msra.mxu1 %v10233_v20  ;;  %8209 = vmatprep.subr.bf16.mxu0 %v10235_v31  ;;  %v3487_v43 = vld [vmem:[%s13177_s3 + $0x130] sm:$0xff]  ;;  %13356 = vst [vmem:[#allocation58_spill] sm:$0xff] %v10364_v60  ;;  %v3510_v32 = vld [vmem:[%s13177_s3 + $0x1e8] sm:$0xff] }
 0x1c6   :  { %v3249_v41 = vsel %vm3247_vm11, %v3220_v48, %v3222_v23  ;;  %8181 = vmatprep.subr.bf16.mxu1 %v10248_v1  ;;  %v3475_v23 = vld [vmem:[%s13177_s3 + $0xd0] sm:$0xff]  ;;  %v3476_v48 = vld [vmem:[%s13177_s3 + $0xd8] sm:$0xff]  ;;  %v10315_v59 = vpack.c.bf16 %v3488_v36, %v3487_v43  ;;  %v10407_v28 = vpack.c.bf16 %v3510_v32, %v3509_v54 }
 0x1c7   :  { %v10302_v31 = vpop.f32.mrb[26].mxu1  ;;  %6617 = vmatmul.mubr.msk.f32.gmra.mrb[98].mxu0 %vm96_vm0, %v3249_v41  ;;  %v10319_v41 = vpack.c.bf16 %v3458_v11, %v3457_v52  ;;  %v3459_v36 = vld [vmem:[%s13177_s3 + $0x50] sm:$0xff]  ;;  %v10334_v52 = vpack.c.bf16 %v3476_v48, %v3475_v23  ;;  %v3460_v11 = vld [vmem:[%s13177_s3 + $0x58] sm:$0xff] }
 0x1c8   :  { %13348 = vst [vmem:[#allocation50_spill] sm:$0xff] %v10302_v31  ;;  %v10311_v5 = vpop.f32.mrb[27].mxu1  ;;  %3348 = vmatprep.mubr.f32.mxu0 %v13335_v17  ;;  %8211 = vmatpush3.bf16.msra.mxu0 %v10272_v47  ;;  %13350 = vst [vmem:[#allocation52_spill] sm:$0xff] %v10315_v59  ;;  %v3490_v47 = vld [vmem:[%s13177_s3 + $0x148] sm:$0xff]  ;;  %v3511_v54 = vld [vmem:[%s13177_s3 + $0x1f0] sm:$0xff] }
 0x1c9   :  { %13349 = vst [vmem:[#allocation51_spill] sm:$0xff] %v10311_v5  ;;  %v2960_v24 = vpop.permute.xlu1 %2959  ;;  %v2958_v31 = vpop.permute.xlu0 %2957  ;;  %8183 = vmatpush3.bf16.msra.mxu1 %v10276_v0  ;;  %8213 = vmatprep.subr.bf16.mxu0 %v10278_v53  ;;  %v3489_v5 = vld [vmem:[%s13177_s3 + $0x140] sm:$0xff]  ;;  %13362 = vst [vmem:[#allocation64_spill] sm:$0xff] %v10407_v28  ;;  %v3512_v32 = vld [vmem:[%s13177_s3 + $0x1f8] sm:$0xff] }
 0x1ca   :  { %v2984_v43 = vsel %vm2981_vm10, %v2958_v31, %v2960_v24  ;;  %8185 = vmatprep.subr.bf16.mxu1 %v10291_v26  ;;  %v3477_v24 = vld [vmem:[%s13177_s3 + $0xe0] sm:$0xff]  ;;  %v3478_v31 = vld [vmem:[%s13177_s3 + $0xe8] sm:$0xff]  ;;  %v10358_v48 = vpack.c.bf16 %v3490_v47, %v3489_v5 }
 0x1cb   :  { %v10345_v53 = vpop.f32.mrb[42].mxu0  ;;  %6610 = vmatmul.mubr.msk.f32.gmra.mrb[84].mxu1 %vm96_vm0, %v2984_v43  ;;  %v10362_v43 = vpack.c.bf16 %v3460_v11, %v3459_v36  ;;  %v3461_v47 = vld [vmem:[%s13177_s3 + $0x60] sm:$0xff]  ;;  %v10377_v36 = vpack.c.bf16 %v3478_v31, %v3477_v24  ;;  %v3462_v11 = vld [vmem:[%s13177_s3 + $0x68] sm:$0xff] }
 0x1cc   :  { %13352 = vst [vmem:[#allocation54_spill] sm:$0xff] %v10345_v53  ;;  %v10354_v23 = vpop.f32.mrb[43].mxu0  ;;  %3088 = vmatprep.mubr.f32.mxu1 %v13335_v17  ;;  %8215 = vmatpush3.bf16.msra.mxu0 %v10315_v59  ;;  %13354 = vst [vmem:[#allocation56_spill] sm:$0xff] %v10358_v48  ;;  %v3492_v59 = vld [vmem:[%s13177_s3 + $0x158] sm:$0xff] }
 0x1cd   :  { %13353 = vst [vmem:[#allocation55_spill] sm:$0xff] %v10354_v23  ;;  %v3226_v21 = vpop.permute.xlu1 %3225  ;;  %v3224_v53 = vpop.permute.xlu0 %3223  ;;  %8187 = vmatpush3.bf16.msra.mxu1 %v10319_v41  ;;  %8217 = vmatprep.subr.bf16.mxu0 %v10321_v16  ;;  %13355 = vst [vmem:[#allocation57_spill] sm:$0xff] %v10362_v43  ;;  %v3491_v23 = vld [vmem:[%s13177_s3 + $0x150] sm:$0xff] }
 0x1ce   :  { %v3250_v5 = vsel %vm3247_vm11, %v3224_v53, %v3226_v21  ;;  %8189 = vmatprep.subr.bf16.mxu1 %v10334_v52  ;;  %13357 = vst [vmem:[#allocation59_spill] sm:$0xff] %v10377_v36  ;;  %v3479_v21 = vld [vmem:[%s13177_s3 + $0xf0] sm:$0xff]  ;;  %v3480_v53 = vld [vmem:[%s13177_s3 + $0xf8] sm:$0xff]  ;;  %v10401_v31 = vpack.c.bf16 %v3492_v59, %v3491_v23 }
 0x1cf   :  { %v10388_v16 = vpop.f32.mrb[28].mxu1  ;;  %6618 = vmatmul.mubr.msk.f32.gmra.mrb[100].mxu0 %vm96_vm0, %v3250_v5  ;;  %v10405_v5 = vpack.c.bf16 %v3462_v11, %v3461_v47  ;;  %v3463_v59 = vld [vmem:[%s13177_s3 + $0x70] sm:$0xff]  ;;  %v10420_v47 = vpack.c.bf16 %v3480_v53, %v3479_v21  ;;  %v3464_v11 = vld [vmem:[%s13177_s3 + $0x78] sm:$0xff] }
 0x1d0   :  { %13358 = vst [vmem:[#allocation60_spill] sm:$0xff] %v10388_v16  ;;  %v10397_v24 = vpop.f32.mrb[29].mxu1  ;;  %3354 = vmatprep.mubr.f32.mxu0 %v13335_v17  ;;  %8219 = vmatpush3.bf16.msra.mxu0 %v10358_v48  ;;  %13360 = vst [vmem:[#allocation62_spill] sm:$0xff] %v10401_v31  ;;  %v3494_v48 = vld [vmem:[%s13177_s3 + $0x168] sm:$0xff] }
 0x1d1   :  { %13359 = vst [vmem:[#allocation61_spill] sm:$0xff] %v10397_v24  ;;  %v2964_v10 = vpop.permute.xlu1 %2963  ;;  %v2962_v16 = vpop.permute.xlu0 %2961  ;;  %8191 = vmatpush3.bf16.msra.mxu1 %v10362_v43  ;;  %8221 = vmatprep.subr.bf16.mxu0 %v10364_v60  ;;  %13361 = vst [vmem:[#allocation63_spill] sm:$0xff] %v10405_v5  ;;  %v3493_v24 = vld [vmem:[%s13177_s3 + $0x160] sm:$0xff]  ;;  %v10450_v43 = vpack.c.bf16 %v3512_v32, %v3511_v54 }
 0x1d2   :  { %v2985_v23 = vsel %vm2981_vm10, %v2962_v16, %v2964_v10  ;;  %8193 = vmatprep.subr.bf16.mxu1 %v10377_v36  ;;  %v3529_v10 = vld [vmem:[%s13177_s3 + $0x280] sm:$0xff]  ;;  %v3530_v16 = vld [vmem:[%s13177_s3 + $0x288] sm:$0xff]  ;;  %v10444_v53 = vpack.c.bf16 %v3494_v48, %v3493_v24 }
 0x1d3   :  { %v10431_v60 = vpop.f32.mrb[44].mxu0  ;;  %6611 = vmatmul.mubr.msk.f32.gmra.mrb[86].mxu1 %vm96_vm0, %v2985_v23  ;;  %v10448_v23 = vpack.c.bf16 %v3464_v11, %v3463_v59  ;;  %13367 = vst [vmem:[#allocation69_spill] sm:$0xff] %v10450_v43  ;;  %v10460_v24 = vpack.c.bf16 %v3530_v16, %v3529_v10 }
 0x1d4   :  { %13363 = vst [vmem:[#allocation65_spill] sm:$0xff] %v10431_v60  ;;  %v10440_v21 = vpop.f32.mrb[45].mxu0  ;;  %3094 = vmatprep.mubr.f32.mxu1 %v13335_v17  ;;  %8223 = vmatpush3.bf16.msra.mxu0 %v10401_v31  ;;  %13365 = vst [vmem:[#allocation67_spill] sm:$0xff] %v10444_v53  ;;  %v3496_v31 = vld [vmem:[%s13177_s3 + $0x178] sm:$0xff] }
 0x1d5   :  { %13364 = vst [vmem:[#allocation66_spill] sm:$0xff] %v10440_v21  ;;  %v3230_v36 = vpop.permute.xlu1 %3229  ;;  %v3228_v60 = vpop.permute.xlu0 %3227  ;;  %8195 = vmatpush3.bf16.msra.mxu1 %v10405_v5  ;;  %8225 = vmatprep.subr.bf16.mxu0 %v10407_v28  ;;  %13366 = vst [vmem:[#allocation68_spill] sm:$0xff] %v10448_v23  ;;  %v3495_v21 = vld [vmem:[%s13177_s3 + $0x170] sm:$0xff] }
 0x1d6   :  { %v3251_v48 = vsel %vm3247_vm11, %v3228_v60, %v3230_v36  ;;  %8197 = vmatprep.subr.bf16.mxu1 %v10420_v47  ;;  %13368 = vst [vmem:[#allocation70_spill] sm:$0xff] %v10460_v24  ;;  %v10469_v11 = vpack.c.bf16 %v3496_v31, %v3495_v21  ;;  %v78_v36 = vlaneseq }
 0x1d7   :  { %v10462_v5 = vpop.f32.mrb[30].mxu1  ;;  %6619 = vmatmul.mubr.msk.f32.gmra.mrb[102].mxu0 %vm96_vm0, %v3251_v48 }
 0x1d8   :  { %13369 = vst [vmem:[#allocation71_spill] sm:$0xff] %v10462_v5  ;;  %v10465_v59 = vpop.f32.mrb[31].mxu1  ;;  %3360 = vmatprep.mubr.f32.mxu0 %v13335_v17  ;;  %8227 = vmatpush3.bf16.msra.mxu0 %v10444_v53  ;;  %13371 = vst [vmem:[#allocation73_spill] sm:$0xff] %v10469_v11 }
 0x1d9   :  { %13370 = vst [vmem:[#allocation72_spill] sm:$0xff] %v10465_v59  ;;  %v2968_v54 = vpop.permute.xlu1 %2967  ;;  %v2966_v32 = vpop.permute.xlu0 %2965  ;;  %8199 = vmatpush3.bf16.msra.mxu1 %v10448_v23  ;;  %8229 = vmatprep.subr.bf16.mxu0 %v10450_v43  ;;  %v3515_v23 = vld [vmem:[%s13177_s3 + $0x210] sm:$0xff] }
 0x1da   :  { %v2986_v60 = vsel %vm2981_vm10, %v2966_v32, %v2968_v54  ;;  %8233 = vmatprep.subr.bf16.mxu1 %v10460_v24  ;;  %v79_v54 = vshrl.u32 %v78_v36, 7  ;;  %v76_v36 = vld [vmem:[%s13176_s2] sm:$0x3] }
 0x1db   :  { %v10475_v10 = vpop.f32.mrb[46].mxu0  ;;  %6612 = vmatmul.mubr.msk.f32.gmra.mrb[88].mxu1 %vm96_vm0, %v2986_v60 }
 0x1dc   :  { %13372 = vst [vmem:[#allocation74_spill] sm:$0xff] %v10475_v10  ;;  %v10478_v16 = vpop.f32.mrb[47].mxu0  ;;  %3100 = vmatprep.mubr.f32.mxu1 %v13335_v17  ;;  %8231 = vmatpush3.bf16.msra.mxu0 %v10469_v11  ;;  %v80_v59 = vsub.s32 0, %v79_v54 }
 0x1dd   :  { %13373 = vst [vmem:[#allocation75_spill] sm:$0xff] %v10478_v16  ;;  %v3234_v31 = vpop.permute.xlu1 %3233  ;;  %v3232_v21 = vpop.permute.xlu0 %3231  ;;  %8265 = vmatprep.subr.bf16.mxu0 %v10054_v40 }
 0x1de   :  { %v3252_v48 = vsel %vm3247_vm11, %v3232_v21, %v3234_v31  ;;  %v84_v21 = vsub.s32 1, %v79_v54  ;;  %v10501_v40 = vrot.slane %v76_v36, %v80_v59 }
 0x1df   :  { %v10484_v32 = vpop.f32.mrb[32].mxu1  ;;  %6620 = vmatmul.mubr.msk.f32.gmra.mrb[104].mxu0 %vm96_vm0, %v3252_v48 }
 0x1e0   :  { %13374 = vst [vmem:[#allocation76_spill] sm:$0xff] %v10484_v32  ;;  %v10487_v10 = vpop.f32.mrb[33].mxu1  ;;  %3366 = vmatprep.mubr.f32.mxu0 %v13335_v17 }
 0x1e1   :  { %13375 = vst [vmem:[#allocation77_spill] sm:$0xff] %v10487_v10  ;;  %v2972_v60 = vpop.permute.xlu1 %2971  ;;  %v2970_v5 = vpop.permute.xlu0 %2969 }
 0x1e2   :  { %v2987_v16 = vsel %vm2981_vm10, %v2970_v5, %v2972_v60  ;;  %v10509_v60 = vrot.slane %v76_v36, %v84_v21 }
 0x1e3   :  { %v10491_v11 = vpop.f32.mrb[48].mxu0  ;;  %6613 = vmatmul.mubr.msk.f32.gmra.mrb[90].mxu1 %vm96_vm0, %v2987_v16 }
 0x1e4   :  { %13376 = vst [vmem:[#allocation78_spill] sm:$0xff] %v10491_v11  ;;  %v10497_v31 = vpop.f32.mrb[49].mxu0  ;;  %3106 = vmatprep.mubr.f32.mxu1 %v13335_v17  ;;  %v188_v11 = vadd.f32 %v9664_v51, %v10501_v40  ;;  %v190_v59 = vadd.f32 %v9669_v56, %v10509_v60  ;;  %v456_v51 = vadd.f32 %v9901_v57, %v10509_v60 }
 0x1e5   :  { %13377 = vst [vmem:[#allocation79_spill] sm:$0xff] %v10497_v31  ;;  %v3238_v48 = vpop.permute.xlu1 %3237  ;;  %v3236_v32 = vpop.permute.xlu0 %3235  ;;  %v196_v56 = vadd.f32 %v9684_v62, %v10509_v60  ;;  %v10541_v57 = vadd.f32 %v9712_v34, %v10501_v40  ;;  %v10548_v62 = vadd.f32 %v9896_v18, %v10501_v40  ;;  %v10563_v34 = vadd.f32 %v9910_v6, %v10501_v40 }
 0x1e6   :  { %v3253_v10 = vsel %vm3247_vm11, %v3236_v32, %v3238_v48  ;;  %v250_v36 = vmul.f32 0.2, %v188_v11  ;;  %vm235_vm12 = vcmp.ge.f32.partialorder %v190_v59, 0.0  ;;  %v10567_v18 = vadd.f32 %v9916_v29, %v10509_v60 }
 0x1e7   :  { %v10503_v5 = vpop.f32.mrb[34].mxu1  ;;  %6621 = vmatmul.mubr.msk.f32.gmra.mrb[106].mxu0 %vm96_vm0, %v3253_v10  ;;  %v10583_v6 = vadd.f32 %v9759_v15, %v10501_v40  ;;  %vm234_vm13 = vcmp.ge.f32.partialorder %v188_v11, 0.0  ;;  %vm237_vm14 = vcmp.ge.f32.partialorder %v196_v56, 0.0  ;;  %vm501_vm15 = vcmp.ge.f32.partialorder %v456_v51, 0.0 }
 0x1e8   :  { %13378 = vst [vmem:[#allocation80_spill] sm:$0xff] %v10503_v5  ;;  %v10506_v16 = vpop.f32.mrb[35].mxu1  ;;  %3372 = vmatprep.mubr.f32.mxu0 %v13335_v17  ;;  %v3532_v5 = vld [vmem:[%s13177_s3 + $0x298] sm:$0xff]  ;;  %vm500_vm1 = vcmp.ge.f32.partialorder %v10548_v62, 0.0  ;;  %vm502_vm2 = vcmp.ge.f32.partialorder %v10563_v34, 0.0  ;;  %v266_v24 = vsel %vm234_vm13, %v188_v11, %v250_v36  ;;  %v3533_v36 = vld [vmem:[%s13177_s3 + $0x2a0] sm:$0xff] }
 0x1e9   :  { %13379 = vst [vmem:[#allocation81_spill] sm:$0xff] %v10506_v16  ;;  %v2976_v54 = vpop.permute.xlu1 %2975  ;;  %v2974_v31 = vpop.permute.xlu0 %2973  ;;  %v516_v16 = vmul.f32 0.2, %v10548_v62  ;;  %v518_v53 = vmul.f32 0.2, %v10563_v34  ;;  %vm503_vm4 = vcmp.ge.f32.partialorder %v10567_v18, 0.0 }
 0x1ea   :  { %v2988_v43 = vsel %vm2981_vm10, %v2974_v31, %v2976_v54  ;;  %v10526_v31 = vadd.f32 %v9680_v25, %v10501_v40  ;;  %v251_v25 = vmul.f32 0.2, %v190_v59 }
 0x1eb   :  { %v10516_v32 = vpop.f32.mrb[50].mxu0  ;;  %6614 = vmatmul.mubr.msk.f32.gmra.mrb[92].mxu1 %vm96_vm0, %v2988_v43  ;;  %v10533_v43 = vadd.f32 %v9695_v8, %v10501_v40  ;;  %v10552_v8 = vadd.f32 %v9716_v19, %v10509_v60  ;;  %v10571_v19 = vadd.f32 %v9733_v30, %v10509_v60  ;;  %v3513_v30 = vld [vmem:[%s13177_s3 + $0x200] sm:$0xff] }
 0x1ec   :  { %13380 = vst [vmem:[#allocation82_spill] sm:$0xff] %v10516_v32  ;;  %v10519_v10 = vpop.f32.mrb[51].mxu0  ;;  %3112 = vmatprep.mubr.f32.mxu1 %v13335_v17  ;;  %v10537_v32 = vadd.f32 %v9701_v14, %v10509_v60  ;;  %v10556_v14 = vadd.f32 %v9727_v27, %v10501_v40  ;;  %v10575_v27 = vadd.f32 %v9744_v44, %v10501_v40  ;;  %v3514_v44 = vld [vmem:[%s13177_s3 + $0x208] sm:$0xff]  ;;  %vm236_vm3 = vcmp.ge.f32.partialorder %v10526_v31, 0.0 }
 0x1ed   :  { %13381 = vst [vmem:[#allocation83_spill] sm:$0xff] %v10519_v10  ;;  %v3242_v21 = vpop.permute.xlu1 %3241  ;;  %v3240_v48 = vpop.permute.xlu0 %3239  ;;  %v267_v15 = vsel %vm235_vm12, %v190_v59, %v251_v25  ;;  %vm238_vm5 = vcmp.ge.f32.partialorder %v10533_v43, 0.0  ;;  %vm241_vm6 = vcmp.ge.f32.partialorder %v10552_v8, 0.0  ;;  %vm243_vm12 = vcmp.ge.f32.partialorder %v10571_v19, 0.0 }
 0x1ee   :  { %v3254_v54 = vsel %vm3247_vm11, %v3240_v48, %v3242_v21 }
 0x1ef   :  { %v10543_v10 = vpop.f32.mrb[36].mxu1  ;;  %6622 = vmatmul.mubr.msk.f32.gmra.mrb[108].mxu0 %vm96_vm0, %v3254_v54 }
 0x1f0   :  { %13382 = vst [vmem:[#allocation84_spill] sm:$0xff] %v10543_v10  ;;  %v10558_v21 = vpop.f32.mrb[37].mxu1  ;;  %3378 = vmatprep.mubr.f32.mxu0 %v13335_v17  ;;  %v10579_v17 = vadd.f32 %v9748_v37, %v10509_v60  ;;  %v517_v10 = vmul.f32 0.2, %v456_v51 }
 0x1f1   :  { %13383 = vst [vmem:[#allocation85_spill] sm:$0xff] %v10558_v21  ;;  %v2980_v48 = vpop.permute.xlu1 %2979  ;;  %v2978_v54 = vpop.permute.xlu0 %2977  ;;  %v10594_v21 = vadd.f32 %v9765_v49, %v10509_v60 }
 0x1f2   :  { %v2989_v29 = vsel %vm2981_vm10, %v2978_v54, %v2980_v48  ;;  %v253_v48 = vmul.f32 0.2, %v196_v56  ;;  %v3531_v54 = vld [vmem:[%s13177_s3 + $0x290] sm:$0xff]  ;;  %v533_v11 = vsel %vm501_vm15, %v456_v51, %v517_v10  ;;  %v10651_v51 = vadd.f32 %v9943_v46, %v10509_v60 }
 0x1f3   :  { %v10596_v37 = vpop.f32.mrb[52].mxu0  ;;  %6615 = vmatmul.mubr.msk.f32.gmra.mrb[94].mxu1 %vm96_vm0, %v2989_v29  ;;  %v10610_v29 = vpack.c.bf16 %v3514_v44, %v3513_v30  ;;  %v3516_v30 = vld [vmem:[%s13177_s3 + $0x218] sm:$0xff]  ;;  %v254_v46 = vmul.f32 0.2, %v10533_v43  ;;  %vm245_vm15 = vcmp.ge.f32.partialorder %v10579_v17, 0.0 }
 0x1f4   :  { %13384 = vst [vmem:[#allocation86_spill] sm:$0xff] %v10596_v37  ;;  %v10607_v49 = vpop.f32.mrb[53].mxu0  ;;  %3664 = vmatprep.mubr.f32.mxu1 %v267_v15  ;;  %v519_v37 = vmul.f32 0.2, %v10567_v18  ;;  %v252_v15 = vmul.f32 0.2, %v10526_v31 }
 0x1f5   :  { %13385 = vst [vmem:[#allocation87_spill] sm:$0xff] %v10607_v49  ;;  %v3246_v59 = vpop.permute.xlu1 %3245  ;;  %v3244_v25 = vpop.permute.xlu0 %3243  ;;  %13386 = vst [vmem:[#allocation88_spill] sm:$0xff] %v10610_v29  ;;  %v10618_v49 = vpack.c.bf16 %v3532_v5, %v3531_v54  ;;  %v255_v5 = vmul.f32 0.2, %v10537_v32  ;;  %v3534_v54 = vld [vmem:[%s13177_s3 + $0x2a8] sm:$0xff]  ;;  %vm507_vm10 = vcmp.ge.f32.partialorder %v10651_v51, 0.0 }
 0x1f6   :  { %v3255_v28 = vsel %vm3247_vm11, %v3244_v25, %v3246_v59  ;;  %v269_v59 = vsel %vm237_vm14, %v196_v56, %v253_v48  ;;  %v10655_v56 = vadd.f32 %v9774_v55, %v10501_v40  ;;  %v268_v48 = vsel %vm236_vm3, %v10526_v31, %v252_v15  ;;  %v3535_v15 = vld [vmem:[%s13177_s3 + $0x2b0] sm:$0xff] }
 0x1f7   :  { %13387 = vst [vmem:[#allocation89_spill] sm:$0xff] %v10618_v49  ;;  %v10626_v44 = vpop.f32.mrb[38].mxu1  ;;  %6623 = vmatmul.mubr.msk.f32.gmra.mrb[110].mxu0 %vm96_vm0, %v3255_v28  ;;  %3665 = vmatmul.mubr.f32.vlgmr.msra.gmra.mrb[96].mxu1 %v266_v24  ;;  %v10641_v28 = vadd.f32 %v9925_v7, %v10501_v40  ;;  %v468_v24 = vadd.f32 %v9930_v42, %v10509_v60  ;;  %vm239_vm0 = vcmp.ge.f32.partialorder %v10537_v32, 0.0  ;;  %vm240_vm11 = vcmp.ge.f32.partialorder %v10541_v57, 0.0 }
 0x1f8   :  { %v10645_v10 = vpop.f32.mrb[39].mxu1  ;;  %3669 = vmatprep.mubr.f32.mxu1 %v269_v59  ;;  %3769 = vmatprep.mubr.f32.mxu0 %v533_v11  ;;  %v532_v7 = vsel %vm500_vm1, %v10548_v62, %v516_v16  ;;  %v10661_v42 = vpack.c.bf16 %v3516_v30, %v3515_v23  ;;  %v534_v55 = vsel %vm502_vm2, %v10563_v34, %v518_v53  ;;  %v3517_v16 = vld [vmem:[%s13177_s3 + $0x220] sm:$0xff]  ;;  %v3518_v23 = vld [vmem:[%s13177_s3 + $0x228] sm:$0xff]  ;;  %v257_v34 = vmul.f32 0.2, %v10552_v8  ;;  %v3536_v30 = vld [vmem:[%s13177_s3 + $0x2b8] sm:$0xff] }
 0x1f9   :  { %8235 = vmatpush3.bf16.msra.mxu1 %v10610_v29  ;;  %v10671_v25 = vpack.c.bf16 %v3534_v54, %v3533_v36  ;;  %v271_v31 = vsel %vm239_vm0, %v10537_v32, %v255_v5  ;;  %v535_v53 = vsel %vm503_vm4, %v10567_v18, %v519_v37  ;;  %v10697_v59 = vadd.f32 %v9937_v45, %v10501_v40 }
 0x1fa   :  { %13388 = vst [vmem:[#allocation90_spill] sm:$0xff] %v10661_v42  ;;  %8237 = vmatprep.subr.bf16.mxu1 %v10618_v49  ;;  %v521_v18 = vmul.f32 0.2, %v468_v24  ;;  %vm504_vm8 = vcmp.ge.f32.partialorder %v10641_v28, 0.0  ;;  %vm505_vm9 = vcmp.ge.f32.partialorder %v468_v24, 0.0  ;;  %v10705_v37 = vpack.c.bf16 %v3518_v23, %v3517_v16 }
 0x1fb   :  { %13389 = vst [vmem:[#allocation91_spill] sm:$0xff] %v10671_v25  ;;  %v10679_v62 = vpop.f32.mrb[54].mxu0  ;;  %3670 = vmatmul.mubr.f32.gmra.mrb[98].mxu1 %v268_v48  ;;  %3770 = vmatmul.mubr.f32.vlgmr.msra.gmra.mrb[112].mxu0 %v532_v7  ;;  %v520_v11 = vmul.f32 0.2, %v10641_v28  ;;  %v270_v45 = vsel %vm238_vm5, %v10533_v43, %v254_v46  ;;  %v256_v5 = vmul.f32 0.2, %v10541_v57  ;;  %v10715_v36 = vpack.c.bf16 %v3536_v30, %v3535_v15 }
 0x1fc   :  { %13390 = vst [vmem:[#allocation92_spill] sm:$0xff] %v10679_v62  ;;  %v10699_v32 = vpop.f32.mrb[55].mxu0  ;;  %8267 = vmatpush3.bf16.msra.mxu0 %v10152_v39  ;;  %3674 = vmatprep.mubr.f32.mxu1 %v271_v31  ;;  %13392 = vst [vmem:[#allocation94_spill] sm:$0xff] %v10705_v37  ;;  %v523_v54 = vmul.f32 0.2, %v10651_v51  ;;  %v3519_v7 = vld [vmem:[%s13177_s3 + $0x230] sm:$0xff]  ;;  %v10726_v16 = vadd.f32 %v9778_v4, %v10509_v60  ;;  %v273_v46 = vsel %vm241_vm6, %v10552_v8, %v257_v34 }
 0x1fd   :  { %13391 = vst [vmem:[#allocation93_spill] sm:$0xff] %v10699_v32  ;;  %3774 = vmatprep.mubr.f32.mxu0 %v535_v53  ;;  %8239 = vmatpush3.bf16.msra.mxu1 %v10661_v42  ;;  %13393 = vst [vmem:[#allocation95_spill] sm:$0xff] %v10715_v36  ;;  %v3520_v48 = vld [vmem:[%s13177_s3 + $0x238] sm:$0xff]  ;;  %v259_v23 = vmul.f32 0.2, %v10571_v19  ;;  %v3537_v31 = vld [vmem:[%s13177_s3 + $0x2c0] sm:$0xff]  ;;  %v10743_v53 = vadd.f32 %v9954_v12, %v10509_v60  ;;  %v537_v8 = vsel %vm505_vm9, %v468_v24, %v521_v18 }
 0x1fe   :  { %8269 = vmatprep.subr.bf16.mxu0 %v10154_v58  ;;  %8241 = vmatprep.subr.bf16.mxu1 %v10671_v25  ;;  %v3538_v4 = vld [vmem:[%s13177_s3 + $0x2c8] sm:$0xff]  ;;  %v522_v34 = vmul.f32 0.2, %v10697_v59  ;;  %v10753_v15 = vadd.f32 %v9949_v50, %v10501_v40  ;;  %v536_v12 = vsel %vm504_vm8, %v10641_v28, %v520_v11  ;;  %v10759_v30 = vpack.c.bf16 %v3520_v48, %v3519_v7  ;;  %v3521_v28 = vld [vmem:[%s13177_s3 + $0x240] sm:$0xff]  ;;  %v3539_v7 = vld [vmem:[%s13177_s3 + $0x2d0] sm:$0xff] }
 0x1ff   :  { %v10728_v43 = vpop.f32.mrb[40].mxu1  ;;  %3675 = vmatmul.mubr.f32.gmra.mrb[100].mxu1 %v270_v45  ;;  %3775 = vmatmul.mubr.f32.gmra.mrb[114].mxu0 %v534_v55  ;;  %vm506_vm13 = vcmp.ge.f32.partialorder %v10697_v59, 0.0  ;;  %v272_v24 = vsel %vm240_vm11, %v10541_v57, %v256_v5  ;;  %v539_v50 = vsel %vm507_vm10, %v10651_v51, %v523_v54  ;;  %v258_v18 = vmul.f32 0.2, %v10556_v14  ;;  %v3522_v11 = vld [vmem:[%s13177_s3 + $0x248] sm:$0xff] }
 0x200   :  { %13394 = vst [vmem:[#allocation96_spill] sm:$0xff] %v10728_v43  ;;  %v10745_v55 = vpop.f32.mrb[41].mxu1  ;;  %8271 = vmatpush3.bf16.msra.mxu0 %v10191_v13  ;;  %3679 = vmatprep.mubr.f32.mxu1 %v273_v46  ;;  %13396 = vst [vmem:[#allocation98_spill] sm:$0xff] %v10759_v30  ;;  %v10771_v45 = vpack.c.bf16 %v3538_v4, %v3537_v31  ;;  %v10781_v57 = vadd.f32 %v9960_v9, %v10501_v40  ;;  %vm242_vm14 = vcmp.ge.f32.partialorder %v10556_v14, 0.0  ;;  %v3540_v9 = vld [vmem:[%s13177_s3 + $0x2d8] sm:$0xff] }
 0x201   :  { %13395 = vst [vmem:[#allocation97_spill] sm:$0xff] %v10745_v55  ;;  %3779 = vmatprep.mubr.f32.mxu0 %v537_v8  ;;  %8243 = vmatpush3.bf16.msra.mxu1 %v10705_v37  ;;  %v275_v51 = vsel %vm243_vm12, %v10571_v19, %v259_v23  ;;  %v261_v54 = vmul.f32 0.2, %v10579_v17  ;;  %v10798_v48 = vadd.f32 %v9966_v2, %v10509_v60  ;;  %v525_v23 = vmul.f32 0.2, %v10743_v53 }
 0x202   :  { %8273 = vmatprep.subr.bf16.mxu0 %v10205_v61  ;;  %8245 = vmatprep.subr.bf16.mxu1 %v10715_v36  ;;  %13397 = vst [vmem:[#allocation99_spill] sm:$0xff] %v10771_v45  ;;  %v538_v19 = vsel %vm506_vm13, %v10697_v59, %v522_v34  ;;  %vm509_vm1 = vcmp.ge.f32.partialorder %v10743_v53, 0.0  ;;  %v10810_v2 = vpack.c.bf16 %v3522_v11, %v3521_v28  ;;  %vm508_vm2 = vcmp.ge.f32.partialorder %v10753_v15, 0.0  ;;  %v3541_v28 = vld [vmem:[%s13177_s3 + $0x2e0] sm:$0xff] }
 0x203   :  { %v10783_v5 = vpop.f32.mrb[56].mxu0  ;;  %3680 = vmatmul.mubr.f32.gmra.mrb[102].mxu1 %v272_v24  ;;  %3780 = vmatmul.mubr.f32.gmra.mrb[116].mxu0 %v536_v12  ;;  %v524_v31 = vmul.f32 0.2, %v10753_v15  ;;  %v10816_v4 = vadd.f32 %v9971_v3, %v10501_v40  ;;  %v274_v59 = vsel %vm242_vm14, %v10556_v14, %v258_v18  ;;  %v260_v8 = vmul.f32 0.2, %v10575_v27  ;;  %v3523_v12 = vld [vmem:[%s13177_s3 + $0x250] sm:$0xff] }
 0x204   :  { %13398 = vst [vmem:[#allocation100_spill] sm:$0xff] %v10783_v5  ;;  %v10800_v46 = vpop.f32.mrb[57].mxu0  ;;  %8275 = vmatpush3.bf16.msra.mxu0 %v10233_v20  ;;  %3684 = vmatprep.mubr.f32.mxu1 %v275_v51  ;;  %13400 = vst [vmem:[#allocation102_spill] sm:$0xff] %v10810_v2  ;;  %v10824_v34 = vpack.c.bf16 %v3540_v9, %v3539_v7  ;;  %v3524_v3 = vld [vmem:[%s13177_s3 + $0x258] sm:$0xff]  ;;  %v10834_v24 = vadd.f32 %v9973_v63, %v10501_v40  ;;  %vm244_vm3 = vcmp.ge.f32.partialorder %v10575_v27, 0.0  ;;  %v3542_v63 = vld [vmem:[%s13177_s3 + $0x2e8] sm:$0xff] }
 0x205   :  { %13399 = vst [vmem:[#allocation101_spill] sm:$0xff] %v10800_v46  ;;  %3784 = vmatprep.mubr.f32.mxu0 %v539_v50  ;;  %8247 = vmatpush3.bf16.msra.mxu1 %v10759_v30  ;;  %v277_v14 = vsel %vm245_vm15, %v10579_v17, %v261_v54  ;;  %v263_v18 = vmul.f32 0.2, %v10594_v21  ;;  %v10851_v11 = vadd.f32 %v9978_v22, %v10509_v60  ;;  %vm247_vm0 = vcmp.ge.f32.partialorder %v10594_v21, 0.0  ;;  %v13431_v46 = vld [vmem:[#allocation41_spill] sm:$0xff] }
 0x206   :  { %8277 = vmatprep.subr.bf16.mxu0 %v10248_v1  ;;  %8249 = vmatprep.subr.bf16.mxu1 %v10771_v45  ;;  %13401 = vst [vmem:[#allocation103_spill] sm:$0xff] %v10824_v34  ;;  %v541_v17 = vsel %vm509_vm1, %v10743_v53, %v525_v23  ;;  %v527_v54 = vmul.f32 0.2, %v10798_v48  ;;  %v540_v22 = vsel %vm508_vm2, %v10753_v15, %v524_v31  ;;  %vm511_vm4 = vcmp.ge.f32.partialorder %v10798_v48, 0.0  ;;  %v3525_v15 = vld [vmem:[%s13177_s3 + $0x260] sm:$0xff]  ;;  %v3526_v31 = vld [vmem:[%s13177_s3 + $0x268] sm:$0xff] }
 0x207   :  { %v10836_v50 = vpop.f32.mrb[42].mxu1  ;;  %3685 = vmatmul.mubr.f32.gmra.mrb[104].mxu1 %v274_v59  ;;  %3785 = vmatmul.mubr.f32.gmra.mrb[118].mxu0 %v538_v19  ;;  %v10866_v7 = vpack.c.bf16 %v3524_v3, %v3523_v12  ;;  %v526_v9 = vmul.f32 0.2, %v10781_v57  ;;  %v276_v53 = vsel %vm244_vm3, %v10575_v27, %v260_v8  ;;  %v262_v19 = vmul.f32 0.2, %v10583_v6  ;;  %v3543_v3 = vld [vmem:[%s13177_s3 + $0x2f0] sm:$0xff] }
 0x208   :  { %13402 = vst [vmem:[#allocation104_spill] sm:$0xff] %v10836_v50  ;;  %v10853_v51 = vpop.f32.mrb[43].mxu1  ;;  %8279 = vmatpush3.bf16.msra.mxu0 %v10276_v0  ;;  %3689 = vmatprep.mubr.f32.mxu1 %v277_v14  ;;  %vm510_vm5 = vcmp.ge.f32.partialorder %v10781_v57, 0.0  ;;  %v10876_v23 = vpack.c.bf16 %v3542_v63, %v3541_v28  ;;  %v498_v59 = vadd.f32 %v9993_v35, %v10509_v60  ;;  %vm246_vm6 = vcmp.ge.f32.partialorder %v10583_v6, 0.0  ;;  %v3544_v35 = vld [vmem:[%s13177_s3 + $0x2f8] sm:$0xff] }
 0x209   :  { %13403 = vst [vmem:[#allocation105_spill] sm:$0xff] %v10853_v51  ;;  %3789 = vmatprep.mubr.f32.mxu0 %v541_v17  ;;  %8251 = vmatpush3.bf16.msra.mxu1 %v10810_v2  ;;  %13404 = vst [vmem:[#allocation106_spill] sm:$0xff] %v10866_v7  ;;  %v279_v8 = vsel %vm247_vm0, %v10594_v21, %v263_v18  ;;  %v265_v12 = vmul.f32 0.2, %v10726_v16  ;;  %v722_v14 = vadd.f32 %v9980_v33, %v10509_v60 }
 0x20a   :  { %8281 = vmatprep.subr.bf16.mxu0 %v10291_v26  ;;  %8253 = vmatprep.subr.bf16.mxu1 %v10824_v34  ;;  %13405 = vst [vmem:[#allocation107_spill] sm:$0xff] %v10876_v23  ;;  %v543_v21 = vsel %vm511_vm4, %v10798_v48, %v527_v54  ;;  %vm249_vm8 = vcmp.ge.f32.partialorder %v10726_v16, 0.0  ;;  %v529_v18 = vmul.f32 0.2, %v10851_v11  ;;  %v496_v63 = vadd.f32 %v9987_v38, %v10501_v40 }
 0x20b   :  { %v10886_v27 = vpop.f32.mrb[58].mxu0  ;;  %3690 = vmatmul.mubr.f32.gmra.mrb[106].mxu1 %v276_v53  ;;  %3790 = vmatmul.mubr.f32.gmra.mrb[120].mxu0 %v540_v22  ;;  %v542_v33 = vsel %vm510_vm5, %v10781_v57, %v526_v9  ;;  %vm513_vm9 = vcmp.ge.f32.partialorder %v10851_v11, 0.0  ;;  %v10916_v17 = vpack.c.bf16 %v3526_v31, %v3525_v15  ;;  %v278_v48 = vsel %vm246_vm6, %v10583_v6, %v262_v19  ;;  %v3527_v57 = vld [vmem:[%s13177_s3 + $0x270] sm:$0xff]  ;;  %v3528_v9 = vld [vmem:[%s13177_s3 + $0x278] sm:$0xff] }
 0x20c   :  { %13406 = vst [vmem:[#allocation108_spill] sm:$0xff] %v10886_v27  ;;  %v10901_v28 = vpop.f32.mrb[59].mxu0  ;;  %8283 = vmatpush3.bf16.msra.mxu0 %v10319_v41  ;;  %3694 = vmatprep.mubr.f32.mxu1 %v279_v8  ;;  %v264_v38 = vmul.f32 0.2, %v10655_v56  ;;  %v528_v54 = vmul.f32 0.2, %v10816_v4  ;;  %v10925_v22 = vpack.c.bf16 %v3544_v35, %v3543_v3  ;;  %v281_v6 = vsel %vm249_vm8, %v10726_v16, %v265_v12 }
 0x20d   :  { %13407 = vst [vmem:[#allocation109_spill] sm:$0xff] %v10901_v28  ;;  %3794 = vmatprep.mubr.f32.mxu0 %v543_v21  ;;  %8255 = vmatpush3.bf16.msra.mxu1 %v10866_v7  ;;  %13408 = vst [vmem:[#allocation110_spill] sm:$0xff] %v10916_v17  ;;  %vm248_vm10 = vcmp.ge.f32.partialorder %v10655_v56, 0.0  ;;  %vm512_vm11 = vcmp.ge.f32.partialorder %v10816_v4, 0.0  ;;  %v531_v19 = vmul.f32 0.2, %v498_v59  ;;  %v545_v21 = vsel %vm513_vm9, %v10851_v11, %v529_v18 }
 0x20e   :  { %8285 = vmatprep.subr.bf16.mxu0 %v10334_v52  ;;  %8257 = vmatprep.subr.bf16.mxu1 %v10876_v23  ;;  %13409 = vst [vmem:[#allocation111_spill] sm:$0xff] %v10925_v22  ;;  %v783_v15 = vmul.f32 0.2, %v722_v14  ;;  %v13411_v31 = vld [vmem:[#allocation9_spill] sm:$0xff]  ;;  %vm515_vm12 = vcmp.ge.f32.partialorder %v498_v59, 0.0  ;;  %v10949_v16 = vpack.c.bf16 %v3528_v9, %v3527_v57  ;;  %vm767_vm13 = vcmp.ge.f32.partialorder %v722_v14, 0.0 }
 0x20f   :  { %v10933_v53 = vpop.f32.mrb[44].mxu1  ;;  %3695 = vmatmul.mubr.f32.gmra.mrb[108].mxu1 %v278_v48  ;;  %3795 = vmatmul.mubr.f32.gmra.mrb[122].mxu0 %v542_v33  ;;  %v728_v8 = vadd.f32 %v13411_v31, %v10509_v60  ;;  %v13413_v35 = vld [vmem:[#allocation57_spill] sm:$0xff]  ;;  %v13415_v12 = vld [vmem:[#allocation59_spill] sm:$0xff]  ;;  %v280_v33 = vsel %vm248_vm10, %v10655_v56, %v264_v38  ;;  %v544_v48 = vsel %vm512_vm11, %v10816_v4, %v528_v54  ;;  %v782_v31 = vmul.f32 0.2, %v10834_v24  ;;  %v13416_v11 = vld [vmem:[#allocation8_spill] sm:$0xff] }
 0x210   :  { %13410 = vst [vmem:[#allocation112_spill] sm:$0xff] %v10933_v53  ;;  %v10942_v3 = vpop.f32.mrb[45].mxu1  ;;  %8287 = vmatpush3.bf16.msra.mxu0 %v13413_v35  ;;  %3699 = vmatprep.mubr.f32.mxu1 %v281_v6  ;;  %13414 = vst [vmem:[#allocation57_spill] sm:$0xff] %v10949_v16  ;;  %v530_v6 = vmul.f32 0.2, %v496_v63  ;;  %v726_v18 = vadd.f32 %v13416_v11, %v10501_v40  ;;  %v547_v57 = vsel %vm515_vm12, %v498_v59, %v531_v19  ;;  %v13418_v56 = vld [vmem:[#allocation11_spill] sm:$0xff] }
 0x211   :  { %13412 = vst [vmem:[#allocation9_spill] sm:$0xff] %v10942_v3  ;;  %3799 = vmatprep.mubr.f32.mxu0 %v545_v21  ;;  %8259 = vmatpush3.bf16.msra.mxu1 %v10916_v17  ;;  %vm514_vm14 = vcmp.ge.f32.partialorder %v496_v63, 0.0  ;;  %vm766_vm15 = vcmp.ge.f32.partialorder %v10834_v24, 0.0  ;;  %v785_v9 = vmul.f32 0.2, %v728_v8  ;;  %v734_v4 = vadd.f32 %v13418_v56, %v10509_v60  ;;  %v13420_v54 = vld [vmem:[#allocation63_spill] sm:$0xff] }
 0x212   :  { %8289 = vmatprep.subr.bf16.mxu0 %v13415_v12  ;;  %8261 = vmatprep.subr.bf16.mxu1 %v10925_v22  ;;  %v799_v27 = vsel %vm767_vm13, %v722_v14, %v783_v15  ;;  %vm769_vm1 = vcmp.ge.f32.partialorder %v728_v8, 0.0  ;;  %v546_v59 = vsel %vm514_vm14, %v496_v63, %v530_v6  ;;  %v13421_v19 = vld [vmem:[#allocation20_spill] sm:$0xff]  ;;  %v13422_v11 = vld [vmem:[#allocation10_spill] sm:$0xff]  ;;  %v13424_v14 = vld [vmem:[#allocation13_spill] sm:$0xff]  ;;  %vm768_vm2 = vcmp.ge.f32.partialorder %v726_v18, 0.0 }
 0x213   :  { %v10958_v21 = vpop.f32.mrb[60].mxu0  ;;  %3700 = vmatmul.mubr.f32.gmra.mrb[110].mxu1 %v280_v33  ;;  %3800 = vmatmul.mubr.f32.gmra.mrb[124].mxu0 %v544_v48  ;;  %v798_v33 = vsel %vm766_vm15, %v10834_v24, %v782_v31  ;;  %v784_v48 = vmul.f32 0.2, %v726_v18  ;;  %v732_v56 = vadd.f32 %v13422_v11, %v10501_v40  ;;  %v740_v15 = vadd.f32 %v13424_v14, %v10509_v60  ;;  %v13426_v28 = vld [vmem:[#allocation68_spill] sm:$0xff]  ;;  %v13428_v6 = vld [vmem:[#allocation70_spill] sm:$0xff] }
 0x214   :  { %13417 = vst [vmem:[#allocation59_spill] sm:$0xff] %v10958_v21  ;;  %v10963_v38 = vpop.f32.mrb[61].mxu0  ;;  %8291 = vmatpush3.bf16.msra.mxu0 %v13420_v54  ;;  %3804 = vmatprep.mubr.f32.mxu0 %v547_v57  ;;  %v787_v57 = vmul.f32 0.2, %v734_v4  ;;  %v801_v63 = vsel %vm769_vm1, %v728_v8, %v785_v9  ;;  %vm771_vm3 = vcmp.ge.f32.partialorder %v734_v4, 0.0  ;;  %v13427_v24 = vld [vmem:[#allocation40_spill] sm:$0xff] }
 0x215   :  { %13419 = vst [vmem:[#allocation8_spill] sm:$0xff] %v10963_v38  ;;  %8263 = vmatpush3.bf16.msra.mxu1 %v10949_v16  ;;  %3874 = vmatprep.mubr.f32.mxu1 %v799_v27  ;;  %v786_v31 = vmul.f32 0.2, %v732_v56  ;;  %v800_v14 = vsel %vm768_vm2, %v726_v18, %v784_v48  ;;  %v789_v62 = vmul.f32 0.2, %v740_v15  ;;  %v13432_v8 = vld [vmem:[#allocation15_spill] sm:$0xff] }
 0x216   :  { %8293 = vmatprep.subr.bf16.mxu0 %v10420_v47  ;;  %8297 = vmatprep.subr.bf16.mxu1 %v13421_v19  ;;  %v746_v9 = vadd.f32 %v13432_v8, %v10509_v60  ;;  %v803_v32 = vsel %vm771_vm3, %v734_v4, %v787_v57  ;;  %vm770_vm0 = vcmp.ge.f32.partialorder %v732_v56, 0.0  ;;  %vm773_vm4 = vcmp.ge.f32.partialorder %v740_v15, 0.0  ;;  %v13435_v18 = vld [vmem:[#allocation44_spill] sm:$0xff]  ;;  %v13437_v8 = vld [vmem:[#allocation14_spill] sm:$0xff] }
 0x217   :  { %v10973_v21 = vpop.f32.mrb[46].mxu1  ;;  %3805 = vmatmul.mubr.f32.gmra.mrb[126].mxu0 %v546_v59  ;;  %v13429_v59 = vld [vmem:[#allocation12_spill] sm:$0xff]  ;;  %v13439_v57 = vld [vmem:[#allocation18_spill] sm:$0xff] }
 0x218   :  { %13423 = vst [vmem:[#allocation11_spill] sm:$0xff] %v10973_v21  ;;  %v10977_v38 = vpop.f32.mrb[47].mxu1  ;;  %3875 = vmatmul.mubr.f32.vlgmr.msra.gmra.mrb[112].mxu1 %v798_v33  ;;  %8295 = vmatpush3.bf16.msra.mxu0 %v13426_v28  ;;  %v738_v11 = vadd.f32 %v13429_v59, %v10501_v40  ;;  %v13438_v21 = vld [vmem:[#allocation45_spill] sm:$0xff]  ;;  %v791_v4 = vmul.f32 0.2, %v746_v9  ;;  %vm775_vm6 = vcmp.ge.f32.partialorder %v746_v9, 0.0 }
 0x219   :  { %13425 = vst [vmem:[#allocation63_spill] sm:$0xff] %v10977_v38  ;;  %3879 = vmatprep.mubr.f32.mxu1 %v801_v63  ;;  %4059 = vmatprep.mubr.f32.mxu0 %v799_v27  ;;  %v13441_v38 = vld [vmem:[#allocation48_spill] sm:$0xff] }
 0x21a   :  { %8299 = vmatpush3.bf16.msra.mxu1 %v13427_v24  ;;  %8329 = vmatprep.subr.bf16.mxu0 %v13428_v6  ;;  %v788_v48 = vmul.f32 0.2, %v738_v11  ;;  %vm772_vm5 = vcmp.ge.f32.partialorder %v738_v11, 0.0 }
 0x21b   :  { %v10984_v5 = vpop.f32.mrb[62].mxu0  ;;  %4060 = vmatmul.mubr.f32.vlgmr.msra.gmra.mrb[128].mxu0 %v798_v33  ;;  %8301 = vmatprep.subr.bf16.mxu1 %v13431_v46 }
 0x21c   :  { %13430 = vst [vmem:[#allocation10_spill] sm:$0xff] %v10984_v5  ;;  %v10989_v27 = vpop.f32.mrb[63].mxu0  ;;  %3880 = vmatmul.mubr.f32.gmra.mrb[114].mxu1 %v800_v14  ;;  %8331 = vmatpush3.bf16.msra.mxu0 %v10610_v29  ;;  %v744_v5 = vadd.f32 %v13437_v8, %v10501_v40  ;;  %v804_v53 = vsel %vm772_vm5, %v738_v11, %v788_v48 }
 0x21d   :  { %13433 = vst [vmem:[#allocation13_spill] sm:$0xff] %v10989_v27  ;;  %3884 = vmatprep.mubr.f32.mxu1 %v803_v32  ;;  %4064 = vmatprep.mubr.f32.mxu0 %v801_v63  ;;  %v10992_v59 = vpop.f32.mrb[48].mxu1  ;;  %v802_v27 = vsel %vm770_vm0, %v732_v56, %v786_v31  ;;  %v752_v63 = vadd.f32 %v13439_v57, %v10509_v60 }
 0x21e   :  { %13434 = vst [vmem:[#allocation68_spill] sm:$0xff] %v10992_v59  ;;  %8303 = vmatpush3.bf16.msra.mxu1 %v13435_v18  ;;  %v10995_v33 = vpop.f32.mrb[49].mxu1  ;;  %8333 = vmatprep.subr.bf16.mxu0 %v10618_v49  ;;  %v805_v59 = vsel %vm773_vm4, %v740_v15, %v789_v62  ;;  %v790_v31 = vmul.f32 0.2, %v744_v5  ;;  %v13445_v62 = vld [vmem:[#allocation49_spill] sm:$0xff]  ;;  %vm774_vm8 = vcmp.ge.f32.partialorder %v744_v5, 0.0 }
 0x21f   :  { %13436 = vst [vmem:[#allocation70_spill] sm:$0xff] %v10995_v33  ;;  %4065 = vmatmul.mubr.f32.gmra.mrb[130].mxu0 %v800_v14  ;;  %8305 = vmatprep.subr.bf16.mxu1 %v13438_v21  ;;  %v13443_v14 = vld [vmem:[#allocation17_spill] sm:$0xff]  ;;  %vm777_vm9 = vcmp.ge.f32.partialorder %v752_v63, 0.0 }
 0x220   :  { %3885 = vmatmul.mubr.f32.gmra.mrb[116].mxu1 %v802_v27  ;;  %8335 = vmatpush3.bf16.msra.mxu0 %v10661_v42  ;;  %v750_v8 = vadd.f32 %v13443_v14, %v10501_v40  ;;  %v13446_v15 = vld [vmem:[#allocation21_spill] sm:$0xff]  ;;  %v13448_v14 = vld [vmem:[#allocation52_spill] sm:$0xff] }
 0x221   :  { %3889 = vmatprep.mubr.f32.mxu1 %v805_v59  ;;  %4069 = vmatprep.mubr.f32.mxu0 %v803_v32  ;;  %v11004_v33 = vpop.f32.mrb[50].mxu1  ;;  %v793_v32 = vmul.f32 0.2, %v752_v63 }
 0x222   :  { %13440 = vst [vmem:[#allocation12_spill] sm:$0xff] %v11004_v33  ;;  %8307 = vmatpush3.bf16.msra.mxu1 %v13441_v38  ;;  %v11007_v56 = vpop.f32.mrb[51].mxu1  ;;  %8337 = vmatprep.subr.bf16.mxu0 %v10671_v25  ;;  %v758_v33 = vadd.f32 %v13446_v15, %v10509_v60  ;;  %v792_v11 = vmul.f32 0.2, %v750_v8  ;;  %v806_v15 = vsel %vm774_vm8, %v744_v5, %v790_v31  ;;  %vm776_vm10 = vcmp.ge.f32.partialorder %v750_v8, 0.0  ;;  %v13455_v5 = vld [vmem:[#allocation56_spill] sm:$0xff] }
 0x223   :  { %13442 = vst [vmem:[#allocation15_spill] sm:$0xff] %v11007_v56  ;;  %v11012_v57 = vpop.f32.mrb[64].mxu0  ;;  %4070 = vmatmul.mubr.f32.gmra.mrb[132].mxu0 %v802_v27  ;;  %8309 = vmatprep.subr.bf16.mxu1 %v13445_v62  ;;  %v807_v56 = vsel %vm775_vm6, %v746_v9, %v791_v4  ;;  %v13449_v27 = vld [vmem:[#allocation19_spill] sm:$0xff]  ;;  %v13479_v25 = vld [vmem:[#allocation73_spill] sm:$0xff] }
 0x224   :  { %13444 = vst [vmem:[#allocation14_spill] sm:$0xff] %v11012_v57  ;;  %v11017_v3 = vpop.f32.mrb[65].mxu0  ;;  %3890 = vmatmul.mubr.f32.gmra.mrb[118].mxu1 %v804_v53  ;;  %8339 = vmatpush3.bf16.msra.mxu0 %v10705_v37  ;;  %v756_v48 = vadd.f32 %v13449_v27, %v10501_v40  ;;  %v795_v50 = vmul.f32 0.2, %v758_v33  ;;  %v13452_v9 = vld [vmem:[#allocation23_spill] sm:$0xff]  ;;  %vm779_vm11 = vcmp.ge.f32.partialorder %v758_v33, 0.0 }
 0x225   :  { %13447 = vst [vmem:[#allocation18_spill] sm:$0xff] %v11017_v3  ;;  %3894 = vmatprep.mubr.f32.mxu1 %v807_v56  ;;  %4074 = vmatprep.mubr.f32.mxu0 %v805_v59  ;;  %v13451_v3 = vld [vmem:[#allocation53_spill] sm:$0xff]  ;;  %v764_v4 = vadd.f32 %v13452_v9, %v10509_v60  ;;  %v13457_v9 = vld [vmem:[#allocation22_spill] sm:$0xff] }
 0x226   :  { %8311 = vmatpush3.bf16.msra.mxu1 %v13448_v14  ;;  %8341 = vmatprep.subr.bf16.mxu0 %v10715_v36  ;;  %v809_v36 = vsel %vm777_vm9, %v752_v63, %v793_v32  ;;  %v794_v31 = vmul.f32 0.2, %v756_v48  ;;  %vm778_vm12 = vcmp.ge.f32.partialorder %v756_v48, 0.0 }
 0x227   :  { %v11024_v57 = vpop.f32.mrb[66].mxu0  ;;  %4075 = vmatmul.mubr.f32.gmra.mrb[134].mxu0 %v804_v53  ;;  %8313 = vmatprep.subr.bf16.mxu1 %v13451_v3  ;;  %v797_v63 = vmul.f32 0.2, %v764_v4  ;;  %vm781_vm13 = vcmp.ge.f32.partialorder %v764_v4, 0.0 }
 0x228   :  { %13450 = vst [vmem:[#allocation17_spill] sm:$0xff] %v11024_v57  ;;  %v11029_v59 = vpop.f32.mrb[67].mxu0  ;;  %3895 = vmatmul.mubr.f32.gmra.mrb[120].mxu1 %v806_v15  ;;  %8343 = vmatpush3.bf16.msra.mxu0 %v10759_v30  ;;  %v762_v57 = vadd.f32 %v13457_v9, %v10501_v40  ;;  %v13458_v30 = vld [vmem:[#allocation58_spill] sm:$0xff] }
 0x229   :  { %13453 = vst [vmem:[#allocation21_spill] sm:$0xff] %v11029_v59  ;;  %3899 = vmatprep.mubr.f32.mxu1 %v809_v36  ;;  %4079 = vmatprep.mubr.f32.mxu0 %v807_v56  ;;  %v11032_v27 = vpop.f32.mrb[52].mxu1  ;;  %v808_v59 = vsel %vm776_vm10, %v750_v8, %v792_v11  ;;  %v13459_v56 = vld [vmem:[#allocation25_spill] sm:$0xff] }
 0x22a   :  { %13454 = vst [vmem:[#allocation19_spill] sm:$0xff] %v11032_v27  ;;  %8315 = vmatpush3.bf16.msra.mxu1 %v13455_v5  ;;  %v11035_v53 = vpop.f32.mrb[53].mxu1  ;;  %8345 = vmatprep.subr.bf16.mxu0 %v10771_v45  ;;  %v988_v32 = vadd.f32 %v13459_v56, %v10509_v60  ;;  %v811_v27 = vsel %vm779_vm11, %v758_v33, %v795_v50  ;;  %v13461_v45 = vld [vmem:[#allocation62_spill] sm:$0xff]  ;;  %v796_v11 = vmul.f32 0.2, %v762_v57  ;;  %v13465_v50 = vld [vmem:[#allocation64_spill] sm:$0xff] }
 0x22b   :  { %13456 = vst [vmem:[#allocation23_spill] sm:$0xff] %v11035_v53  ;;  %4080 = vmatmul.mubr.f32.gmra.mrb[136].mxu0 %v806_v15  ;;  %8317 = vmatprep.subr.bf16.mxu1 %v13458_v30  ;;  %v13463_v15 = vld [vmem:[#allocation27_spill] sm:$0xff]  ;;  %vm780_vm14 = vcmp.ge.f32.partialorder %v762_v57, 0.0 }
 0x22c   :  { %3900 = vmatmul.mubr.f32.gmra.mrb[122].mxu1 %v808_v59  ;;  %8347 = vmatpush3.bf16.msra.mxu0 %v10810_v2  ;;  %v1254_v9 = vadd.f32 %v13463_v15, %v10509_v60  ;;  %v810_v2 = vsel %vm778_vm12, %v756_v48, %v794_v31  ;;  %vm1033_vm15 = vcmp.ge.f32.partialorder %v988_v32, 0.0  ;;  %v13469_v48 = vld [vmem:[#allocation26_spill] sm:$0xff]  ;;  %v13470_v31 = vld [vmem:[#allocation67_spill] sm:$0xff] }
 0x22d   :  { %3904 = vmatprep.mubr.f32.mxu1 %v811_v27  ;;  %4084 = vmatprep.mubr.f32.mxu0 %v809_v36  ;;  %v11044_v53 = vpop.f32.mrb[54].mxu1  ;;  %v13466_v36 = vld [vmem:[#allocation24_spill] sm:$0xff] }
 0x22e   :  { %13460 = vst [vmem:[#allocation22_spill] sm:$0xff] %v11044_v53  ;;  %8319 = vmatpush3.bf16.msra.mxu1 %v13461_v45  ;;  %v11047_v8 = vpop.f32.mrb[55].mxu1  ;;  %8349 = vmatprep.subr.bf16.mxu0 %v10824_v34  ;;  %v986_v33 = vadd.f32 %v13466_v36, %v10501_v40  ;;  %v1049_v53 = vmul.f32 0.2, %v988_v32  ;;  %v13468_v34 = vld [vmem:[#allocation29_spill] sm:$0xff]  ;;  %vm1299_vm1 = vcmp.ge.f32.partialorder %v1254_v9, 0.0 }
 0x22f   :  { %13462 = vst [vmem:[#allocation58_spill] sm:$0xff] %v11047_v8  ;;  %v11052_v56 = vpop.f32.mrb[68].mxu0  ;;  %4085 = vmatmul.mubr.f32.gmra.mrb[138].mxu0 %v808_v59  ;;  %8321 = vmatprep.subr.bf16.mxu1 %v13465_v50  ;;  %v813_v8 = vsel %vm781_vm13, %v764_v4, %v797_v63  ;;  %v994_v15 = vadd.f32 %v13468_v34, %v10509_v60  ;;  %v1315_v36 = vmul.f32 0.2, %v1254_v9  ;;  %v13473_v63 = vld [vmem:[#allocation69_spill] sm:$0xff] }
 0x230   :  { %13464 = vst [vmem:[#allocation25_spill] sm:$0xff] %v11052_v56  ;;  %v11057_v51 = vpop.f32.mrb[69].mxu0  ;;  %3905 = vmatmul.mubr.f32.gmra.mrb[124].mxu1 %v810_v2  ;;  %8351 = vmatpush3.bf16.msra.mxu0 %v10866_v7  ;;  %v1252_v59 = vadd.f32 %v13469_v48, %v10501_v40  ;;  %v13471_v56 = vld [vmem:[#allocation31_spill] sm:$0xff]  ;;  %v812_v4 = vsel %vm780_vm14, %v762_v57, %v796_v11  ;;  %v1048_v34 = vmul.f32 0.2, %v986_v33  ;;  %vm1032_vm2 = vcmp.ge.f32.partialorder %v986_v33, 0.0 }
 0x231   :  { %13467 = vst [vmem:[#allocation62_spill] sm:$0xff] %v11057_v51  ;;  %3909 = vmatprep.mubr.f32.mxu1 %v813_v8  ;;  %4089 = vmatprep.mubr.f32.mxu0 %v811_v27  ;;  %v1260_v51 = vadd.f32 %v13471_v56, %v10509_v60  ;;  %v13474_v27 = vld [vmem:[#allocation28_spill] sm:$0xff]  ;;  %v1065_v48 = vsel %vm1033_vm15, %v988_v32, %v1049_v53  ;;  %v13476_v56 = vld [vmem:[#allocation33_spill] sm:$0xff]  ;;  %v13478_v11 = vld [vmem:[#allocation30_spill] sm:$0xff]  ;;  %vm1035_vm3 = vcmp.ge.f32.partialorder %v994_v15, 0.0 }
 0x232   :  { %8323 = vmatpush3.bf16.msra.mxu1 %v13470_v31  ;;  %8353 = vmatprep.subr.bf16.mxu0 %v10876_v23  ;;  %v992_v37 = vadd.f32 %v13474_v27, %v10501_v40  ;;  %v1051_v23 = vmul.f32 0.2, %v994_v15  ;;  %v1314_v57 = vmul.f32 0.2, %v1252_v59  ;;  %v1258_v27 = vadd.f32 %v13478_v11, %v10501_v40  ;;  %v13481_v32 = vld [vmem:[#allocation35_spill] sm:$0xff] }
 0x233   :  { %v11068_v7 = vpop.f32.mrb[70].mxu0  ;;  %4090 = vmatmul.mubr.f32.gmra.mrb[140].mxu0 %v810_v2  ;;  %8325 = vmatprep.subr.bf16.mxu1 %v13473_v63  ;;  %vm1298_vm0 = vcmp.ge.f32.partialorder %v1252_v59, 0.0  ;;  %v1317_v53 = vmul.f32 0.2, %v1260_v51  ;;  %v1064_v11 = vsel %vm1032_vm2, %v986_v33, %v1048_v34  ;;  %vm1301_vm4 = vcmp.ge.f32.partialorder %v1260_v51, 0.0 }
 0x234   :  { %13472 = vst [vmem:[#allocation27_spill] sm:$0xff] %v11068_v7  ;;  %v11073_v43 = vpop.f32.mrb[71].mxu0  ;;  %3910 = vmatmul.mubr.f32.gmra.mrb[126].mxu1 %v812_v4  ;;  %8355 = vmatpush3.bf16.msra.mxu0 %v10916_v17  ;;  %v1000_v7 = vadd.f32 %v13476_v56, %v10509_v60  ;;  %v1266_v56 = vadd.f32 %v13481_v32, %v10509_v60  ;;  %v13483_v17 = vld [vmem:[#allocation32_spill] sm:$0xff]  ;;  %v13484_v32 = vld [vmem:[#allocation37_spill] sm:$0xff]  ;;  %vm1034_vm5 = vcmp.ge.f32.partialorder %v992_v37, 0.0  ;;  %vm1300_vm8 = vcmp.ge.f32.partialorder %v1258_v27, 0.0 }
 0x235   :  { %13475 = vst [vmem:[#allocation64_spill] sm:$0xff] %v11073_v43  ;;  %4094 = vmatprep.mubr.f32.mxu0 %v813_v8  ;;  %4164 = vmatprep.mubr.f32.mxu1 %v1065_v48  ;;  %v11078_v2 = vpop.f32.mrb[56].mxu1  ;;  %v13482_v8 = vld [vmem:[#allocation16_spill] sm:$0xff]  ;;  %v11090_v48 = vsel %vm1299_vm1, %v1254_v9, %v1315_v36  ;;  %v1067_v55 = vsel %vm1035_vm3, %v994_v15, %v1051_v23  ;;  %v13486_v36 = vld [vmem:[#allocation34_spill] sm:$0xff]  ;;  %v13488_v23 = vld [vmem:[#allocation39_spill] sm:$0xff] }
 0x236   :  { %13477 = vst [vmem:[#allocation24_spill] sm:$0xff] %v11078_v2  ;;  %8327 = vmatpush3.bf16.msra.mxu1 %v13479_v25  ;;  %v11083_v43 = vpop.f32.mrb[57].mxu1  ;;  %8357 = vmatprep.subr.bf16.mxu0 %v10925_v22  ;;  %v1050_v2 = vmul.f32 0.2, %v992_v37  ;;  %v1053_v22 = vmul.f32 0.2, %v1000_v7  ;;  %v11104_v33 = vsel %vm1298_vm0, %v1252_v59, %v1314_v57  ;;  %v1264_v34 = vadd.f32 %v13486_v36, %v10501_v40 }
 0x237   :  { %13480 = vst [vmem:[#allocation29_spill] sm:$0xff] %v11083_v43  ;;  %4095 = vmatmul.mubr.f32.gmra.mrb[142].mxu0 %v812_v4  ;;  %8361 = vmatprep.subr.bf16.mxu1 %v13482_v8  ;;  %v998_v43 = vadd.f32 %v13483_v17, %v10501_v40  ;;  %v1006_v4 = vadd.f32 %v13484_v32, %v10509_v60  ;;  %v1316_v17 = vmul.f32 0.2, %v1258_v27  ;;  %vm1037_vm6 = vcmp.ge.f32.partialorder %v1000_v7, 0.0  ;;  %v13490_v57 = vld [vmem:[#allocation36_spill] sm:$0xff] }
 0x238   :  { %8359 = vmatpush3.bf16.msra.mxu0 %v10949_v16  ;;  %4269 = vmatprep.mubr.f32.mxu0 %v11090_v48  ;;  %v1272_v15 = vadd.f32 %v13488_v23, %v10509_v60  ;;  %v11118_v59 = vsel %vm1301_vm4, %v1260_v51, %v1317_v53  ;;  %v1004_v36 = vadd.f32 %v13490_v57, %v10501_v40  ;;  %vm1303_vm9 = vcmp.ge.f32.partialorder %v1266_v56, 0.0  ;;  %v13493_v57 = vld [vmem:[#allocation38_spill] sm:$0xff] }
 0x239   :  { %4165 = vmatmul.mubr.f32.vlgmr.msra.gmra.mrb[128].mxu1 %v1064_v11  ;;  %v11100_v9 = vpop.f32.mrb[58].mxu1  ;;  %8393 = vmatprep.subr.bf16.mxu0 %v13421_v19  ;;  %v1319_v11 = vmul.f32 0.2, %v1266_v56  ;;  %v1055_v23 = vmul.f32 0.2, %v1006_v4  ;;  %v1069_v51 = vsel %vm1037_vm6, %v1000_v7, %v1053_v22  ;;  %vm1036_vm10 = vcmp.ge.f32.partialorder %v998_v43, 0.0 }
 0x23a   :  { %13485 = vst [vmem:[#allocation26_spill] sm:$0xff] %v11100_v9  ;;  %4169 = vmatprep.mubr.f32.mxu1 %v1067_v55  ;;  %8363 = vmatpush3.bf16.msra.mxu1 %v10152_v39  ;;  %v11109_v16 = vpop.f32.mrb[59].mxu1  ;;  %v1052_v55 = vmul.f32 0.2, %v998_v43  ;;  %v1318_v53 = vmul.f32 0.2, %v1264_v34 }
 0x23b   :  { %13487 = vst [vmem:[#allocation67_spill] sm:$0xff] %v11109_v16  ;;  %v11113_v32 = vpop.f32.mrb[72].mxu0  ;;  %4270 = vmatmul.mubr.f32.vlgmr.msra.gmra.mrb[144].mxu0 %v11104_v33  ;;  %8365 = vmatprep.subr.bf16.mxu1 %v10154_v58  ;;  %v1066_v16 = vsel %vm1034_vm5, %v992_v37, %v1050_v2  ;;  %v11135_v37 = vsel %vm1300_vm8, %v1258_v27, %v1316_v17  ;;  %vm1039_vm11 = vcmp.ge.f32.partialorder %v1006_v4, 0.0  ;;  %v1321_v2 = vmul.f32 0.2, %v1272_v15 }
 0x23c   :  { %13489 = vst [vmem:[#allocation31_spill] sm:$0xff] %v11113_v32  ;;  %v11122_v9 = vpop.f32.mrb[73].mxu0  ;;  %8395 = vmatpush3.bf16.msra.mxu0 %v13427_v24  ;;  %4274 = vmatprep.mubr.f32.mxu0 %v11118_v59  ;;  %v13492_v32 = vld [vmem:[#allocation43_spill] sm:$0xff]  ;;  %v11144_v7 = vsel %vm1303_vm9, %v1266_v56, %v1319_v11  ;;  %vm1302_vm12 = vcmp.ge.f32.partialorder %v1264_v34, 0.0  ;;  %v1054_v22 = vmul.f32 0.2, %v1004_v36  ;;  %v1071_v56 = vsel %vm1039_vm11, %v1006_v4, %v1055_v23 }
 0x23d   :  { %13491 = vst [vmem:[#allocation69_spill] sm:$0xff] %v11122_v9  ;;  %v1012_v19 = vadd.f32 %v13492_v32, %v10509_v60  ;;  %4170 = vmatmul.mubr.f32.gmra.mrb[130].mxu1 %v1066_v16  ;;  %8397 = vmatprep.subr.bf16.mxu0 %v13431_v46  ;;  %v1270_v9 = vadd.f32 %v13493_v57, %v10501_v40  ;;  %v13494_v32 = vld [vmem:[#allocation47_spill] sm:$0xff]  ;;  %vm1305_vm13 = vcmp.ge.f32.partialorder %v1272_v15, 0.0  ;;  %vm1038_vm14 = vcmp.ge.f32.partialorder %v1004_v36, 0.0 }
 0x23e   :  { %4174 = vmatprep.mubr.f32.mxu1 %v1069_v51  ;;  %8367 = vmatpush3.bf16.msra.mxu1 %v10191_v13  ;;  %v1278_v16 = vadd.f32 %v13494_v32, %v10509_v60  ;;  %v13496_v51 = vld [vmem:[#allocation42_spill] sm:$0xff]  ;;  %v1068_v57 = vsel %vm1036_vm10, %v998_v43, %v1052_v55  ;;  %v13502_v4 = vld [vmem:[#allocation55_spill] sm:$0xff] }
 0x23f   :  { %v11139_v24 = vpop.f32.mrb[74].mxu0  ;;  %4275 = vmatmul.mubr.f32.gmra.mrb[146].mxu0 %v11135_v37  ;;  %8369 = vmatprep.subr.bf16.mxu1 %v10205_v61  ;;  %v1010_v27 = vadd.f32 %v13496_v51, %v10501_v40  ;;  %v1057_v32 = vmul.f32 0.2, %v1012_v19  ;;  %v1320_v51 = vmul.f32 0.2, %v1270_v9  ;;  %v13500_v43 = vld [vmem:[#allocation46_spill] sm:$0xff]  ;;  %v1284_v23 = vadd.f32 %v13502_v4, %v10509_v60 }
 0x240   :  { %13495 = vst [vmem:[#allocation28_spill] sm:$0xff] %v11139_v24  ;;  %v11148_v17 = vpop.f32.mrb[75].mxu0  ;;  %8399 = vmatpush3.bf16.msra.mxu0 %v13435_v18  ;;  %4279 = vmatprep.mubr.f32.mxu0 %v11144_v7  ;;  %v13498_v24 = vld [vmem:[#allocation51_spill] sm:$0xff]  ;;  %v1276_v55 = vadd.f32 %v13500_v43, %v10501_v40  ;;  %v11165_v18 = vsel %vm1302_vm12, %v1264_v34, %v1318_v53  ;;  %vm1041_vm15 = vcmp.ge.f32.partialorder %v1012_v19, 0.0  ;;  %vm1304_vm1 = vcmp.ge.f32.partialorder %v1270_v9, 0.0  ;;  %v13503_v43 = vld [vmem:[#allocation50_spill] sm:$0xff] }
 0x241   :  { %13497 = vst [vmem:[#allocation33_spill] sm:$0xff] %v11148_v17  ;;  %v1018_v46 = vadd.f32 %v13498_v24, %v10509_v60  ;;  %4175 = vmatmul.mubr.f32.gmra.mrb[132].mxu1 %v1068_v57  ;;  %v11156_v11 = vpop.f32.mrb[60].mxu1  ;;  %8401 = vmatprep.subr.bf16.mxu0 %v13438_v21  ;;  %v1323_v24 = vmul.f32 0.2, %v1278_v16  ;;  %v11172_v57 = vsel %vm1305_vm13, %v1272_v15, %v1321_v2  ;;  %vm1307_vm2 = vcmp.ge.f32.partialorder %v1278_v16, 0.0  ;;  %v13504_v4 = vld [vmem:[#allocation61_spill] sm:$0xff] }
 0x242   :  { %13499 = vst [vmem:[#allocation30_spill] sm:$0xff] %v11156_v11  ;;  %4179 = vmatprep.mubr.f32.mxu1 %v1071_v56  ;;  %8371 = vmatpush3.bf16.msra.mxu1 %v10233_v20  ;;  %v11162_v17 = vpop.f32.mrb[61].mxu1  ;;  %v1056_v56 = vmul.f32 0.2, %v1010_v27  ;;  %v1016_v11 = vadd.f32 %v13503_v43, %v10501_v40  ;;  %v1070_v34 = vsel %vm1038_vm14, %v1004_v36, %v1054_v22  ;;  %vm1040_vm3 = vcmp.ge.f32.partialorder %v1010_v27, 0.0  ;;  %v13506_v36 = vld [vmem:[#allocation54_spill] sm:$0xff] }
 0x243   :  { %13501 = vst [vmem:[#allocation73_spill] sm:$0xff] %v11162_v17  ;;  %4280 = vmatmul.mubr.f32.gmra.mrb[148].mxu0 %v11165_v18  ;;  %8373 = vmatprep.subr.bf16.mxu1 %v10248_v1  ;;  %v1059_v53 = vmul.f32 0.2, %v1018_v46  ;;  %v1024_v17 = vadd.f32 %v13504_v4, %v10509_v60  ;;  %v1073_v15 = vsel %vm1041_vm15, %v1012_v19, %v1057_v32  ;;  %v1322_v43 = vmul.f32 0.2, %v1276_v55  ;;  %v13508_v19 = vld [vmem:[#allocation66_spill] sm:$0xff] }
 0x244   :  { %8403 = vmatpush3.bf16.msra.mxu0 %v13441_v38  ;;  %4284 = vmatprep.mubr.f32.mxu0 %v11172_v57  ;;  %v1282_v22 = vadd.f32 %v13506_v36, %v10501_v40  ;;  %v11191_v21 = vsel %vm1304_vm1, %v1270_v9, %v1320_v51  ;;  %vm1043_vm0 = vcmp.ge.f32.partialorder %v1018_v46, 0.0  ;;  %v1290_v32 = vadd.f32 %v13508_v19, %v10509_v60 }
 0x245   :  { %4180 = vmatmul.mubr.f32.gmra.mrb[134].mxu1 %v1070_v34  ;;  %v11182_v2 = vpop.f32.mrb[62].mxu1  ;;  %8405 = vmatprep.subr.bf16.mxu0 %v13445_v62  ;;  %v1325_v34 = vmul.f32 0.2, %v1284_v23  ;;  %vm1306_vm4 = vcmp.ge.f32.partialorder %v1276_v55, 0.0  ;;  %v1058_v36 = vmul.f32 0.2, %v1016_v11 }
 0x246   :  { %13505 = vst [vmem:[#allocation35_spill] sm:$0xff] %v11182_v2  ;;  %4184 = vmatprep.mubr.f32.mxu1 %v1073_v15  ;;  %8375 = vmatpush3.bf16.msra.mxu1 %v10276_v0  ;;  %v11188_v38 = vpop.f32.mrb[63].mxu1  ;;  %v11200_v15 = vsel %vm1307_vm2, %v1278_v16, %v1323_v24  ;;  %v13510_v2 = vld [vmem:[#allocation60_spill] sm:$0xff]  ;;  %vm1309_vm5 = vcmp.ge.f32.partialorder %v1284_v23, 0.0  ;;  %v1061_v19 = vmul.f32 0.2, %v1024_v17  ;;  %v1075_v16 = vsel %vm1043_vm0, %v1018_v46, %v1059_v53 }
 0x247   :  { %13507 = vst [vmem:[#allocation16_spill] sm:$0xff] %v11188_v38  ;;  %v11195_v4 = vpop.f32.mrb[76].mxu0  ;;  %4285 = vmatmul.mubr.f32.gmra.mrb[150].mxu0 %v11191_v21  ;;  %8377 = vmatprep.subr.bf16.mxu1 %v10291_v26  ;;  %v1022_v9 = vadd.f32 %v13510_v2, %v10501_v40  ;;  %v1072_v38 = vsel %vm1040_vm3, %v1010_v27, %v1056_v56  ;;  %vm1042_vm6 = vcmp.ge.f32.partialorder %v1016_v11, 0.0  ;;  %v1324_v24 = vmul.f32 0.2, %v1282_v22  ;;  %v13513_v2 = vld [vmem:[#allocation65_spill] sm:$0xff] }
 0x248   :  { %13509 = vst [vmem:[#allocation32_spill] sm:$0xff] %v11195_v4  ;;  %v11204_v51 = vpop.f32.mrb[77].mxu0  ;;  %8407 = vmatpush3.bf16.msra.mxu0 %v13448_v14  ;;  %4289 = vmatprep.mubr.f32.mxu0 %v11200_v15  ;;  %v13512_v4 = vld [vmem:[#allocation72_spill] sm:$0xff]  ;;  %v11217_v27 = vsel %vm1306_vm4, %v1276_v55, %v1322_v43  ;;  %vm1045_vm8 = vcmp.ge.f32.partialorder %v1024_v17, 0.0  ;;  %v1327_v56 = vmul.f32 0.2, %v1290_v32  ;;  %v11226_v46 = vsel %vm1309_vm5, %v1284_v23, %v1325_v34 }
 0x249   :  { %13511 = vst [vmem:[#allocation37_spill] sm:$0xff] %v11204_v51  ;;  %v1030_v62 = vadd.f32 %v13512_v4, %v10509_v60  ;;  %4185 = vmatmul.mubr.f32.gmra.mrb[136].mxu1 %v1072_v38  ;;  %8409 = vmatprep.subr.bf16.mxu0 %v13451_v3  ;;  %v1288_v51 = vadd.f32 %v13513_v2, %v10501_v40  ;;  %v13514_v4 = vld [vmem:[#allocation75_spill] sm:$0xff]  ;;  %vm1308_vm9 = vcmp.ge.f32.partialorder %v1282_v22, 0.0  ;;  %v1060_v53 = vmul.f32 0.2, %v1022_v9  ;;  %v13518_v34 = vld [vmem:[#allocation74_spill] sm:$0xff] }
 0x24a   :  { %4189 = vmatprep.mubr.f32.mxu1 %v1075_v16  ;;  %8379 = vmatpush3.bf16.msra.mxu1 %v10319_v41  ;;  %v1296_v38 = vadd.f32 %v13514_v4, %v10509_v60  ;;  %v13516_v16 = vld [vmem:[#allocation71_spill] sm:$0xff]  ;;  %v1074_v2 = vsel %vm1042_vm6, %v1016_v11, %v1058_v36  ;;  %vm1311_vm10 = vcmp.ge.f32.partialorder %v1290_v32, 0.0  ;;  %vm1044_vm11 = vcmp.ge.f32.partialorder %v1022_v9, 0.0 }
 0x24b   :  { %v11221_v14 = vpop.f32.mrb[78].mxu0  ;;  %4290 = vmatmul.mubr.f32.gmra.mrb[152].mxu0 %v11217_v27  ;;  %8381 = vmatprep.subr.bf16.mxu1 %v10334_v52  ;;  %v1028_v55 = vadd.f32 %v13516_v16, %v10501_v40  ;;  %v1063_v4 = vmul.f32 0.2, %v1030_v62  ;;  %v1326_v23 = vmul.f32 0.2, %v1288_v51  ;;  %v1294_v16 = vadd.f32 %v13518_v34, %v10501_v40 }
 0x24c   :  { %13515 = vst [vmem:[#allocation34_spill] sm:$0xff] %v11221_v14  ;;  %v11230_v43 = vpop.f32.mrb[79].mxu0  ;;  %8411 = vmatpush3.bf16.msra.mxu0 %v13455_v5  ;;  %4294 = vmatprep.mubr.f32.mxu0 %v11226_v46  ;;  %v1077_v14 = vsel %vm1045_vm8, %v1024_v17, %v1061_v19  ;;  %v11241_v11 = vsel %vm1308_vm9, %v1282_v22, %v1324_v24  ;;  %vm1047_vm12 = vcmp.ge.f32.partialorder %v1030_v62, 0.0  ;;  %v1329_v36 = vmul.f32 0.2, %v1296_v38 }
 0x24d   :  { %13517 = vst [vmem:[#allocation39_spill] sm:$0xff] %v11230_v43  ;;  %4190 = vmatmul.mubr.f32.gmra.mrb[138].mxu1 %v1074_v2  ;;  %8413 = vmatprep.subr.bf16.mxu0 %v13458_v30  ;;  %v13519_v43 = vld [vmem:[#allocation77_spill] sm:$0xff]  ;;  %v11250_v17 = vsel %vm1311_vm10, %v1290_v32, %v1327_v56  ;;  %vm1310_vm13 = vcmp.ge.f32.partialorder %v1288_v51, 0.0  ;;  %v1076_v22 = vsel %vm1044_vm11, %v1022_v9, %v1060_v53  ;;  %vm1313_vm14 = vcmp.ge.f32.partialorder %v1296_v38, 0.0  ;;  %v13522_v32 = vld [vmem:[#allocation76_spill] sm:$0xff] }
 0x24e   :  { %4194 = vmatprep.mubr.f32.mxu1 %v1077_v14  ;;  %8383 = vmatpush3.bf16.msra.mxu1 %v13413_v35  ;;  %v1520_v2 = vadd.f32 %v13519_v43, %v10509_v60  ;;  %v1062_v14 = vmul.f32 0.2, %v1028_v55  ;;  %v1079_v24 = vsel %vm1047_vm12, %v1030_v62, %v1063_v4  ;;  %vm1046_vm15 = vcmp.ge.f32.partialorder %v1028_v55, 0.0  ;;  %v13523_v53 = vld [vmem:[#allocation81_spill] sm:$0xff] }
 0x24f   :  { %v11245_v5 = vpop.f32.mrb[64].mxu1  ;;  %4295 = vmatmul.mubr.f32.gmra.mrb[154].mxu0 %v11241_v11  ;;  %8385 = vmatprep.subr.bf16.mxu1 %v13415_v12  ;;  %v1328_v43 = vmul.f32 0.2, %v1294_v16  ;;  %v1518_v56 = vadd.f32 %v13522_v32, %v10501_v40  ;;  %v11261_v34 = vsel %vm1310_vm13, %v1288_v51, %v1326_v23  ;;  %v11269_v62 = vsel %vm1313_vm14, %v1296_v38, %v1329_v36  ;;  %v13526_v23 = vld [vmem:[#allocation80_spill] sm:$0xff]  ;;  %v13527_v36 = vld [vmem:[#allocation85_spill] sm:$0xff] }
 0x250   :  { %13520 = vst [vmem:[#allocation36_spill] sm:$0xff] %v11245_v5  ;;  %v11252_v19 = vpop.f32.mrb[65].mxu1  ;;  %8415 = vmatpush3.bf16.msra.mxu0 %v13461_v45  ;;  %4299 = vmatprep.mubr.f32.mxu0 %v11250_v17  ;;  %v1581_v9 = vmul.f32 0.2, %v1520_v2  ;;  %v1526_v5 = vadd.f32 %v13523_v53, %v10509_v60  ;;  %vm1312_vm1 = vcmp.ge.f32.partialorder %v1294_v16, 0.0  ;;  %vm1565_vm2 = vcmp.ge.f32.partialorder %v1520_v2, 0.0 }
 0x251   :  { %13521 = vst [vmem:[#allocation43_spill] sm:$0xff] %v11252_v19  ;;  %4195 = vmatmul.mubr.f32.gmra.mrb[140].mxu1 %v1076_v22  ;;  %8417 = vmatprep.subr.bf16.mxu0 %v13465_v50  ;;  %v1078_v22 = vsel %vm1046_vm15, %v1028_v55, %v1062_v14  ;;  %v1580_v51 = vmul.f32 0.2, %v1518_v56  ;;  %v11280_v38 = vsel %vm1312_vm1, %v1294_v16, %v1328_v43  ;;  %vm1564_vm3 = vcmp.ge.f32.partialorder %v1518_v56, 0.0  ;;  %v13528_v43 = vld [vmem:[#allocation84_spill] sm:$0xff] }
 0x252   :  { %4199 = vmatprep.mubr.f32.mxu1 %v1079_v24  ;;  %8387 = vmatpush3.bf16.msra.mxu1 %v13420_v54  ;;  %v1524_v24 = vadd.f32 %v13526_v23, %v10501_v40  ;;  %v1583_v55 = vmul.f32 0.2, %v1526_v5  ;;  %v1532_v14 = vadd.f32 %v13527_v36, %v10509_v60  ;;  %v1597_v53 = vsel %vm1565_vm2, %v1520_v2, %v1581_v9 }
 0x253   :  { %v11265_v19 = vpop.f32.mrb[80].mxu0  ;;  %4300 = vmatmul.mubr.f32.gmra.mrb[156].mxu0 %v11261_v34  ;;  %8389 = vmatprep.subr.bf16.mxu1 %v10420_v47  ;;  %vm1567_vm0 = vcmp.ge.f32.partialorder %v1526_v5, 0.0  ;;  %v1530_v23 = vadd.f32 %v13528_v43, %v10501_v40  ;;  %v1538_v36 = vadd.f32 %v10645_v10, %v10509_v60 }
 0x254   :  { %13524 = vst [vmem:[#allocation38_spill] sm:$0xff] %v11265_v19  ;;  %v11271_v4 = vpop.f32.mrb[81].mxu0  ;;  %8419 = vmatpush3.bf16.msra.mxu0 %v13470_v31  ;;  %4304 = vmatprep.mubr.f32.mxu0 %v11269_v62  ;;  %v1582_v16 = vmul.f32 0.2, %v1524_v24  ;;  %v1585_v9 = vmul.f32 0.2, %v1532_v14 }
 0x255   :  { %13525 = vst [vmem:[#allocation47_spill] sm:$0xff] %v11271_v4  ;;  %4200 = vmatmul.mubr.f32.gmra.mrb[142].mxu1 %v1078_v22  ;;  %8421 = vmatprep.subr.bf16.mxu0 %v13473_v63  ;;  %vm1566_vm4 = vcmp.ge.f32.partialorder %v1524_v24, 0.0  ;;  %vm1569_vm5 = vcmp.ge.f32.partialorder %v1532_v14, 0.0  ;;  %vm1568_vm6 = vcmp.ge.f32.partialorder %v1530_v23, 0.0  ;;  %vm1571_vm8 = vcmp.ge.f32.partialorder %v1538_v36, 0.0 }
 0x256   :  { %8391 = vmatpush3.bf16.msra.mxu1 %v13426_v28  ;;  %4454 = vmatprep.mubr.f32.mxu1 %v11090_v48  ;;  %v1596_v48 = vsel %vm1564_vm3, %v1518_v56, %v1580_v51  ;;  %v1536_v56 = vadd.f32 %v10626_v44, %v10501_v40  ;;  %v1587_v51 = vmul.f32 0.2, %v1538_v36 }
 0x257   :  { %v11284_v32 = vpop.f32.mrb[66].mxu1  ;;  %4305 = vmatmul.mubr.f32.gmra.mrb[158].mxu0 %v11280_v38  ;;  %8425 = vmatprep.subr.bf16.mxu1 %v13428_v6 }
 0x258   :  { %v11288_v22 = vpop.f32.mrb[67].mxu1  ;;  %8423 = vmatpush3.bf16.msra.mxu0 %v13479_v25  ;;  %4559 = vmatprep.mubr.f32.mxu0 %v1597_v53  ;;  %v1586_v44 = vmul.f32 0.2, %v1536_v56  ;;  %vm1570_vm9 = vcmp.ge.f32.partialorder %v1536_v56, 0.0 }
 0x259   :  { %4455 = vmatmul.mubr.f32.vlgmr.msra.gmra.mrb[144].mxu1 %v11104_v33  ;;  %8457 = vmatprep.subr.bf16.mxu0 %v13482_v8  ;;  %v1599_v33 = vsel %vm1567_vm0, %v1526_v5, %v1583_v55  ;;  %v1598_v5 = vsel %vm1566_vm4, %v1524_v24, %v1582_v16  ;;  %v13532_v55 = vld [vmem:[#allocation97_spill] sm:$0xff]  ;;  %v13535_v16 = vld [vmem:[#allocation94_spill] sm:$0xff] }
 0x25a   :  { %4459 = vmatprep.mubr.f32.mxu1 %v11118_v59  ;;  %8427 = vmatpush3.bf16.msra.mxu1 %v10610_v29  ;;  %v11297_v2 = vpop.f32.mrb[82].mxu0  ;;  %v1584_v59 = vmul.f32 0.2, %v1530_v23 }
 0x25b   :  { %13529 = vst [vmem:[#allocation42_spill] sm:$0xff] %v11297_v2  ;;  %v11301_v53 = vpop.f32.mrb[83].mxu0  ;;  %4560 = vmatmul.mubr.f32.vlgmr.msra.gmra.mrb[160].mxu0 %v1596_v48  ;;  %8429 = vmatprep.subr.bf16.mxu1 %v10618_v49  ;;  %v1544_v48 = vadd.f32 %v13532_v55, %v10509_v60  ;;  %v13537_v55 = vld [vmem:[#allocation105_spill] sm:$0xff]  ;;  %v1603_v2 = vsel %vm1571_vm8, %v1538_v36, %v1587_v51 }
 0x25c   :  { %13530 = vst [vmem:[#allocation51_spill] sm:$0xff] %v11301_v53  ;;  %8459 = vmatpush3.bf16.msra.mxu0 %v10152_v39  ;;  %4564 = vmatprep.mubr.f32.mxu0 %v1599_v33  ;;  %v1601_v33 = vsel %vm1569_vm5, %v1532_v14, %v1585_v9  ;;  %v1600_v14 = vsel %vm1568_vm6, %v1530_v23, %v1584_v59  ;;  %v13540_v23 = vld [vmem:[#allocation104_spill] sm:$0xff] }
 0x25d   :  { %4460 = vmatmul.mubr.f32.gmra.mrb[146].mxu1 %v11135_v37  ;;  %8461 = vmatprep.subr.bf16.mxu0 %v10154_v58  ;;  %v13533_v37 = vld [vmem:[#allocation91_spill] sm:$0xff]  ;;  %v1589_v9 = vmul.f32 0.2, %v1544_v48  ;;  %vm1573_vm10 = vcmp.ge.f32.partialorder %v1544_v48, 0.0  ;;  %v1548_v59 = vadd.f32 %v13540_v23, %v10501_v40  ;;  %v1602_v36 = vsel %vm1570_vm9, %v1536_v56, %v1586_v44  ;;  %v13546_v56 = vld [vmem:[#allocation112_spill] sm:$0xff]  ;;  %v13547_v23 = vld [vmem:[#allocation102_spill] sm:$0xff] }
 0x25e   :  { %4464 = vmatprep.mubr.f32.mxu1 %v11144_v7  ;;  %8431 = vmatpush3.bf16.msra.mxu1 %v10661_v42  ;;  %v11311_v10 = vpop.f32.mrb[68].mxu1  ;;  %v13534_v7 = vld [vmem:[#allocation96_spill] sm:$0xff]  ;;  %v1554_v44 = vadd.f32 %v13546_v56, %v10501_v40 }
 0x25f   :  { %13531 = vst [vmem:[#allocation46_spill] sm:$0xff] %v11311_v10  ;;  %v11315_v43 = vpop.f32.mrb[69].mxu1  ;;  %4565 = vmatmul.mubr.f32.gmra.mrb[162].mxu0 %v1598_v5  ;;  %8433 = vmatprep.subr.bf16.mxu1 %v13533_v37  ;;  %v1542_v24 = vadd.f32 %v13534_v7, %v10501_v40  ;;  %v13541_v7 = vld [vmem:[#allocation98_spill] sm:$0xff]  ;;  %vm1574_vm13 = vcmp.ge.f32.partialorder %v1548_v59, 0.0 }
 0x260   :  { %8463 = vmatpush3.bf16.msra.mxu0 %v10191_v13  ;;  %4569 = vmatprep.mubr.f32.mxu0 %v1601_v33  ;;  %v1550_v33 = vadd.f32 %v13537_v55, %v10509_v60  ;;  %v13543_v55 = vld [vmem:[#allocation9_spill] sm:$0xff]  ;;  %vm1576_vm15 = vcmp.ge.f32.partialorder %v1554_v44, 0.0 }
 0x261   :  { %4465 = vmatmul.mubr.f32.gmra.mrb[148].mxu1 %v11165_v18  ;;  %8465 = vmatprep.subr.bf16.mxu0 %v10205_v61  ;;  %v13539_v18 = vld [vmem:[#allocation95_spill] sm:$0xff]  ;;  %vm1572_vm11 = vcmp.ge.f32.partialorder %v1542_v24, 0.0 }
 0x262   :  { %4469 = vmatprep.mubr.f32.mxu1 %v11172_v57  ;;  %8435 = vmatpush3.bf16.msra.mxu1 %v13535_v16  ;;  %v11325_v5 = vpop.f32.mrb[84].mxu0  ;;  %v1588_v57 = vmul.f32 0.2, %v1542_v24  ;;  %v1591_v51 = vmul.f32 0.2, %v1550_v33  ;;  %vm1575_vm12 = vcmp.ge.f32.partialorder %v1550_v33, 0.0 }
 0x263   :  { %13536 = vst [vmem:[#allocation55_spill] sm:$0xff] %v11325_v5  ;;  %v11329_v53 = vpop.f32.mrb[85].mxu0  ;;  %4570 = vmatmul.mubr.f32.gmra.mrb[164].mxu0 %v1600_v14  ;;  %8437 = vmatprep.subr.bf16.mxu1 %v13539_v18  ;;  %v1605_v5 = vsel %vm1573_vm10, %v1544_v48, %v1589_v9 }
 0x264   :  { %13538 = vst [vmem:[#allocation50_spill] sm:$0xff] %v11329_v53  ;;  %8467 = vmatpush3.bf16.msra.mxu0 %v10233_v20  ;;  %4574 = vmatprep.mubr.f32.mxu0 %v1603_v2  ;;  %v1556_v2 = vadd.f32 %v13543_v55, %v10509_v60  ;;  %v1604_v48 = vsel %vm1572_vm11, %v1542_v24, %v1588_v57  ;;  %v13549_v55 = vld [vmem:[#allocation63_spill] sm:$0xff]  ;;  %v1592_v24 = vmul.f32 0.2, %v1554_v44 }
 0x265   :  { %4470 = vmatmul.mubr.f32.gmra.mrb[150].mxu1 %v11191_v21  ;;  %8469 = vmatprep.subr.bf16.mxu0 %v10248_v1  ;;  %v13545_v21 = vld [vmem:[#allocation99_spill] sm:$0xff]  ;;  %v1607_v4 = vsel %vm1575_vm12, %v1550_v33, %v1591_v51 }
 0x266   :  { %4474 = vmatprep.mubr.f32.mxu1 %v11200_v15  ;;  %8439 = vmatpush3.bf16.msra.mxu1 %v13541_v7  ;;  %v11339_v14 = vpop.f32.mrb[70].mxu1  ;;  %v1590_v15 = vmul.f32 0.2, %v1548_v59  ;;  %v1593_v9 = vmul.f32 0.2, %v1556_v2  ;;  %vm1577_vm14 = vcmp.ge.f32.partialorder %v1556_v2, 0.0 }
 0x267   :  { %13542 = vst [vmem:[#allocation61_spill] sm:$0xff] %v11339_v14  ;;  %v11343_v53 = vpop.f32.mrb[71].mxu1  ;;  %4575 = vmatmul.mubr.f32.gmra.mrb[166].mxu0 %v1602_v36  ;;  %8441 = vmatprep.subr.bf16.mxu1 %v13545_v21  ;;  %v13553_v57 = vld [vmem:[#allocation11_spill] sm:$0xff] }
 0x268   :  { %13544 = vst [vmem:[#allocation54_spill] sm:$0xff] %v11343_v53  ;;  %8471 = vmatpush3.bf16.msra.mxu0 %v10276_v0  ;;  %4579 = vmatprep.mubr.f32.mxu0 %v1605_v5  ;;  %v1562_v5 = vadd.f32 %v13549_v55, %v10509_v60  ;;  %v1560_v55 = vadd.f32 %v13553_v57, %v10501_v40  ;;  %v13559_v57 = vld [vmem:[#allocation83_spill] sm:$0xff] }
 0x269   :  { %4475 = vmatmul.mubr.f32.gmra.mrb[152].mxu1 %v11217_v27  ;;  %8473 = vmatprep.subr.bf16.mxu0 %v10291_v26  ;;  %v13551_v27 = vld [vmem:[#allocation103_spill] sm:$0xff]  ;;  %v1606_v51 = vsel %vm1574_vm13, %v1548_v59, %v1590_v15 }
 0x26a   :  { %4479 = vmatprep.mubr.f32.mxu1 %v11226_v46  ;;  %8443 = vmatpush3.bf16.msra.mxu1 %v13547_v23  ;;  %v11353_v36 = vpop.f32.mrb[86].mxu0  ;;  %v13552_v46 = vld [vmem:[#allocation79_spill] sm:$0xff]  ;;  %vm1579_vm1 = vcmp.ge.f32.partialorder %v1562_v5, 0.0  ;;  %v1594_v59 = vmul.f32 0.2, %v1560_v55  ;;  %vm1578_vm3 = vcmp.ge.f32.partialorder %v1560_v55, 0.0 }
 0x26b   :  { %13548 = vst [vmem:[#allocation66_spill] sm:$0xff] %v11353_v36  ;;  %v11357_v14 = vpop.f32.mrb[87].mxu0  ;;  %4580 = vmatmul.mubr.f32.gmra.mrb[168].mxu0 %v1604_v48  ;;  %8445 = vmatprep.subr.bf16.mxu1 %v13551_v27  ;;  %v1786_v56 = vadd.f32 %v13552_v46, %v10509_v60  ;;  %v13554_v48 = vld [vmem:[#allocation106_spill] sm:$0xff]  ;;  %v13557_v46 = vld [vmem:[#allocation107_spill] sm:$0xff] }
 0x26c   :  { %13550 = vst [vmem:[#allocation60_spill] sm:$0xff] %v11357_v14  ;;  %8475 = vmatpush3.bf16.msra.mxu0 %v10319_v41  ;;  %4584 = vmatprep.mubr.f32.mxu0 %v1607_v4  ;;  %v1595_v4 = vmul.f32 0.2, %v1562_v5  ;;  %v13558_v36 = vld [vmem:[#allocation78_spill] sm:$0xff] }
 0x26d   :  { %4480 = vmatmul.mubr.f32.gmra.mrb[154].mxu1 %v11241_v11  ;;  %8477 = vmatprep.subr.bf16.mxu0 %v10334_v52  ;;  %v1609_v11 = vsel %vm1577_vm14, %v1556_v2, %v1593_v9  ;;  %v1784_v19 = vadd.f32 %v13558_v36, %v10501_v40  ;;  %v13560_v2 = vld [vmem:[#allocation110_spill] sm:$0xff]  ;;  %v1608_v36 = vsel %vm1576_vm15, %v1554_v44, %v1592_v24  ;;  %vm1831_vm2 = vcmp.ge.f32.partialorder %v1786_v56, 0.0 }
 0x26e   :  { %4484 = vmatprep.mubr.f32.mxu1 %v11250_v17  ;;  %8447 = vmatpush3.bf16.msra.mxu1 %v13554_v48  ;;  %v11369_v33 = vpop.f32.mrb[72].mxu1  ;;  %v1847_v17 = vmul.f32 0.2, %v1786_v56 }
 0x26f   :  { %13555 = vst [vmem:[#allocation72_spill] sm:$0xff] %v11369_v33  ;;  %v11371_v14 = vpop.f32.mrb[73].mxu1  ;;  %4585 = vmatmul.mubr.f32.gmra.mrb[170].mxu0 %v1606_v51  ;;  %8449 = vmatprep.subr.bf16.mxu1 %v13557_v46  ;;  %v1792_v33 = vadd.f32 %v13559_v57, %v10509_v60  ;;  %v13563_v51 = vld [vmem:[#allocation111_spill] sm:$0xff]  ;;  %v1846_v57 = vmul.f32 0.2, %v1784_v19  ;;  %vm1830_vm0 = vcmp.ge.f32.partialorder %v1784_v19, 0.0 }
 0x270   :  { %13556 = vst [vmem:[#allocation65_spill] sm:$0xff] %v11371_v14  ;;  %8479 = vmatpush3.bf16.msra.mxu0 %v13413_v35  ;;  %4589 = vmatprep.mubr.f32.mxu0 %v1609_v11  ;;  %v1611_v11 = vsel %vm1579_vm1, %v1562_v5, %v1595_v4  ;;  %v1863_v24 = vsel %vm1831_vm2, %v1786_v56, %v1847_v17  ;;  %v13571_v17 = vld [vmem:[#allocation93_spill] sm:$0xff] }
 0x271   :  { %4485 = vmatmul.mubr.f32.gmra.mrb[156].mxu1 %v11261_v34  ;;  %8481 = vmatprep.subr.bf16.mxu0 %v13415_v12  ;;  %v13564_v34 = vld [vmem:[#allocation82_spill] sm:$0xff]  ;;  %v1610_v4 = vsel %vm1578_vm3, %v1560_v55, %v1594_v59  ;;  %vm1833_vm4 = vcmp.ge.f32.partialorder %v1792_v33, 0.0  ;;  %v1804_v10 = vadd.f32 %v13571_v17, %v10509_v60  ;;  %v13572_v59 = vld [vmem:[#allocation40_spill] sm:$0xff] }
 0x272   :  { %4489 = vmatprep.mubr.f32.mxu1 %v11269_v62  ;;  %8451 = vmatpush3.bf16.msra.mxu1 %v13560_v2  ;;  %v11383_v15 = vpop.f32.mrb[88].mxu0  ;;  %v1790_v14 = vadd.f32 %v13564_v34, %v10501_v40  ;;  %v1849_v62 = vmul.f32 0.2, %v1792_v33 }
 0x273   :  { %13561 = vst [vmem:[#allocation75_spill] sm:$0xff] %v11383_v15  ;;  %v11385_v9 = vpop.f32.mrb[89].mxu0  ;;  %4590 = vmatmul.mubr.f32.gmra.mrb[172].mxu0 %v1608_v36  ;;  %8453 = vmatprep.subr.bf16.mxu1 %v13563_v51  ;;  %v13565_v15 = vld [vmem:[#allocation87_spill] sm:$0xff]  ;;  %v13566_v36 = vld [vmem:[#allocation57_spill] sm:$0xff]  ;;  %vm1837_vm9 = vcmp.ge.f32.partialorder %v1804_v10, 0.0 }
 0x274   :  { %13562 = vst [vmem:[#allocation71_spill] sm:$0xff] %v11385_v9  ;;  %8483 = vmatpush3.bf16.msra.mxu0 %v13420_v54  ;;  %4594 = vmatprep.mubr.f32.mxu0 %v1611_v11  ;;  %v1798_v44 = vadd.f32 %v13565_v15, %v10509_v60  ;;  %v13569_v11 = vld [vmem:[#allocation20_spill] sm:$0xff]  ;;  %v1862_v9 = vsel %vm1830_vm0, %v1784_v19, %v1846_v57  ;;  %v1848_v53 = vmul.f32 0.2, %v1790_v14  ;;  %v13570_v15 = vld [vmem:[#allocation86_spill] sm:$0xff]  ;;  %vm1832_vm5 = vcmp.ge.f32.partialorder %v1790_v14, 0.0 }
 0x275   :  { %4490 = vmatmul.mubr.f32.gmra.mrb[158].mxu1 %v11280_v38  ;;  %8485 = vmatprep.subr.bf16.mxu0 %v10420_v47  ;;  %v1796_v38 = vadd.f32 %v13570_v15, %v10501_v40  ;;  %v1865_v55 = vsel %vm1833_vm4, %v1792_v33, %v1849_v62  ;;  %v13576_v15 = vld [vmem:[#allocation92_spill] sm:$0xff]  ;;  %v1853_v33 = vmul.f32 0.2, %v1804_v10  ;;  %v13577_v62 = vld [vmem:[#allocation101_spill] sm:$0xff] }
 0x276   :  { %8455 = vmatpush3.bf16.msra.mxu1 %v13566_v36  ;;  %4664 = vmatprep.mubr.f32.mxu1 %v1863_v24  ;;  %v11396_v5 = vpop.f32.mrb[74].mxu1  ;;  %v1851_v56 = vmul.f32 0.2, %v1798_v44  ;;  %vm1835_vm6 = vcmp.ge.f32.partialorder %v1798_v44, 0.0  ;;  %v1802_v17 = vadd.f32 %v13576_v15, %v10501_v40 }
 0x277   :  { %13567 = vst [vmem:[#allocation74_spill] sm:$0xff] %v11396_v5  ;;  %v11398_v34 = vpop.f32.mrb[75].mxu1  ;;  %4595 = vmatmul.mubr.f32.gmra.mrb[174].mxu0 %v1610_v4  ;;  %8489 = vmatprep.subr.bf16.mxu1 %v13569_v11  ;;  %v13575_v4 = vld [vmem:[#allocation41_spill] sm:$0xff]  ;;  %v1864_v5 = vsel %vm1832_vm5, %v1790_v14, %v1848_v53  ;;  %vm1834_vm8 = vcmp.ge.f32.partialorder %v1796_v38, 0.0 }
 0x278   :  { %13568 = vst [vmem:[#allocation77_spill] sm:$0xff] %v11398_v34  ;;  %8487 = vmatpush3.bf16.msra.mxu0 %v13426_v28  ;;  %4849 = vmatprep.mubr.f32.mxu0 %v1863_v24  ;;  %v1850_v24 = vmul.f32 0.2, %v1796_v38  ;;  %v1810_v34 = vadd.f32 %v13577_v62, %v10509_v60  ;;  %v13581_v53 = vld [vmem:[#allocation45_spill] sm:$0xff]  ;;  %v1852_v14 = vmul.f32 0.2, %v1802_v17 }
 0x279   :  { %4665 = vmatmul.mubr.f32.vlgmr.msra.gmra.mrb[160].mxu1 %v1862_v9  ;;  %8521 = vmatprep.subr.bf16.mxu0 %v13428_v6  ;;  %vm1836_vm10 = vcmp.ge.f32.partialorder %v1802_v17, 0.0 }
 0x27a   :  { %4669 = vmatprep.mubr.f32.mxu1 %v1865_v55  ;;  %8491 = vmatpush3.bf16.msra.mxu1 %v13572_v59  ;;  %v11408_v19 = vpop.f32.mrb[90].mxu0  ;;  %vm1839_vm11 = vcmp.ge.f32.partialorder %v1810_v34, 0.0 }
 0x27b   :  { %13573 = vst [vmem:[#allocation76_spill] sm:$0xff] %v11408_v19  ;;  %v11410_v57 = vpop.f32.mrb[91].mxu0  ;;  %4850 = vmatmul.mubr.f32.vlgmr.msra.gmra.mrb[176].mxu0 %v1862_v9  ;;  %8493 = vmatprep.subr.bf16.mxu1 %v13575_v4  ;;  %v1867_v19 = vsel %vm1835_vm6, %v1798_v44, %v1851_v56  ;;  %v13578_v9 = vld [vmem:[#allocation44_spill] sm:$0xff]  ;;  %v1855_v44 = vmul.f32 0.2, %v1810_v34  ;;  %v13583_v56 = vld [vmem:[#allocation109_spill] sm:$0xff] }
 0x27c   :  { %13574 = vst [vmem:[#allocation81_spill] sm:$0xff] %v11410_v57  ;;  %8523 = vmatpush3.bf16.msra.mxu0 %v10610_v29  ;;  %4854 = vmatprep.mubr.f32.mxu0 %v1865_v55  ;;  %v13582_v55 = vld [vmem:[#allocation100_spill] sm:$0xff]  ;;  %v1866_v29 = vsel %vm1834_vm8, %v1796_v38, %v1850_v24  ;;  %v13587_v38 = vld [vmem:[#allocation49_spill] sm:$0xff] }
 0x27d   :  { %4670 = vmatmul.mubr.f32.gmra.mrb[162].mxu1 %v1864_v5  ;;  %8525 = vmatprep.subr.bf16.mxu0 %v10618_v49  ;;  %v1808_v62 = vadd.f32 %v13582_v55, %v10501_v40  ;;  %v1816_v49 = vadd.f32 %v13583_v56, %v10509_v60  ;;  %v13588_v24 = vld [vmem:[#allocation108_spill] sm:$0xff] }
 0x27e   :  { %4674 = vmatprep.mubr.f32.mxu1 %v1867_v19  ;;  %8495 = vmatpush3.bf16.msra.mxu1 %v13578_v9  ;;  %v11420_v57 = vpop.f32.mrb[76].mxu1  ;;  %v1814_v56 = vadd.f32 %v13588_v24, %v10501_v40 }
 0x27f   :  { %13579 = vst [vmem:[#allocation80_spill] sm:$0xff] %v11420_v57  ;;  %v11422_v15 = vpop.f32.mrb[77].mxu1  ;;  %4855 = vmatmul.mubr.f32.gmra.mrb[178].mxu0 %v1864_v5  ;;  %8497 = vmatprep.subr.bf16.mxu1 %v13581_v53  ;;  %v1869_v57 = vsel %vm1837_vm9, %v1804_v10, %v1853_v33  ;;  %v13584_v5 = vld [vmem:[#allocation48_spill] sm:$0xff]  ;;  %v1857_v10 = vmul.f32 0.2, %v1816_v49  ;;  %vm1838_vm12 = vcmp.ge.f32.partialorder %v1808_v62, 0.0 }
 0x280   :  { %13580 = vst [vmem:[#allocation85_spill] sm:$0xff] %v11422_v15  ;;  %8527 = vmatpush3.bf16.msra.mxu0 %v10661_v42  ;;  %4859 = vmatprep.mubr.f32.mxu0 %v1867_v19  ;;  %v1854_v19 = vmul.f32 0.2, %v1808_v62  ;;  %v1868_v42 = vsel %vm1836_vm10, %v1802_v17, %v1852_v14  ;;  %v13589_v33 = vld [vmem:[#allocation8_spill] sm:$0xff]  ;;  %vm1841_vm13 = vcmp.ge.f32.partialorder %v1816_v49, 0.0  ;;  %v13593_v17 = vld [vmem:[#allocation59_spill] sm:$0xff] }
 0x281   :  { %4675 = vmatmul.mubr.f32.gmra.mrb[164].mxu1 %v1866_v29  ;;  %8529 = vmatprep.subr.bf16.mxu0 %v13533_v37  ;;  %v1822_v37 = vadd.f32 %v13589_v33, %v10509_v60  ;;  %v1820_v14 = vadd.f32 %v13593_v17, %v10501_v40  ;;  %vm1840_vm14 = vcmp.ge.f32.partialorder %v1814_v56, 0.0 }
 0x282   :  { %4679 = vmatprep.mubr.f32.mxu1 %v1869_v57  ;;  %8499 = vmatpush3.bf16.msra.mxu1 %v13584_v5  ;;  %v11432_v15 = vpop.f32.mrb[92].mxu0  ;;  %v1870_v33 = vsel %vm1838_vm12, %v1808_v62, %v1854_v19  ;;  %v13598_v62 = vld [vmem:[#allocation10_spill] sm:$0xff] }
 0x283   :  { %13585 = vst [vmem:[#allocation84_spill] sm:$0xff] %v11432_v15  ;;  %v11434_v55 = vpop.f32.mrb[93].mxu0  ;;  %4860 = vmatmul.mubr.f32.gmra.mrb[180].mxu0 %v1866_v29  ;;  %8501 = vmatprep.subr.bf16.mxu1 %v13587_v38  ;;  %v1871_v15 = vsel %vm1839_vm11, %v1810_v34, %v1855_v44  ;;  %v13590_v29 = vld [vmem:[#allocation52_spill] sm:$0xff]  ;;  %v1859_v34 = vmul.f32 0.2, %v1822_v37  ;;  %v13594_v44 = vld [vmem:[#allocation13_spill] sm:$0xff]  ;;  %v1826_v19 = vadd.f32 %v13598_v62, %v10501_v40 }
 0x284   :  { %13586 = vst [vmem:[#allocation97_spill] sm:$0xff] %v11434_v55  ;;  %8531 = vmatpush3.bf16.msra.mxu0 %v13535_v16  ;;  %4864 = vmatprep.mubr.f32.mxu0 %v1869_v57  ;;  %v1856_v57 = vmul.f32 0.2, %v1814_v56  ;;  %vm1843_vm15 = vcmp.ge.f32.partialorder %v1822_v37, 0.0  ;;  %vm1842_vm1 = vcmp.ge.f32.partialorder %v1820_v14, 0.0 }
 0x285   :  { %4680 = vmatmul.mubr.f32.gmra.mrb[166].mxu1 %v1868_v42  ;;  %8533 = vmatprep.subr.bf16.mxu0 %v13539_v18  ;;  %v1828_v18 = vadd.f32 %v13594_v44, %v10509_v60  ;;  %vm1844_vm3 = vcmp.ge.f32.partialorder %v1826_v19, 0.0 }
 0x286   :  { %4684 = vmatprep.mubr.f32.mxu1 %v1871_v15  ;;  %8503 = vmatpush3.bf16.msra.mxu1 %v13590_v29  ;;  %v11444_v55 = vpop.f32.mrb[78].mxu1  ;;  %v1872_v44 = vsel %vm1840_vm14, %v1814_v56, %v1856_v57  ;;  %v13601_v56 = vld [vmem:[#allocation18_spill] sm:$0xff] }
 0x287   :  { %13591 = vst [vmem:[#allocation96_spill] sm:$0xff] %v11444_v55  ;;  %v11446_v24 = vpop.f32.mrb[79].mxu1  ;;  %4865 = vmatmul.mubr.f32.gmra.mrb[182].mxu0 %v1868_v42  ;;  %8505 = vmatprep.subr.bf16.mxu1 %v13451_v3  ;;  %v1873_v55 = vsel %vm1841_vm13, %v1816_v49, %v1857_v10  ;;  %v13595_v42 = vld [vmem:[#allocation56_spill] sm:$0xff]  ;;  %v1861_v49 = vmul.f32 0.2, %v1828_v18  ;;  %v13599_v10 = vld [vmem:[#allocation70_spill] sm:$0xff]  ;;  %v2277_v57 = vadd.f32 %v13601_v56, %v10509_v60 }
 0x288   :  { %13592 = vst [vmem:[#allocation94_spill] sm:$0xff] %v11446_v24  ;;  %8535 = vmatpush3.bf16.msra.mxu0 %v13541_v7  ;;  %4869 = vmatprep.mubr.f32.mxu0 %v1871_v15  ;;  %v1858_v15 = vmul.f32 0.2, %v1820_v14  ;;  %vm1845_vm2 = vcmp.ge.f32.partialorder %v1828_v18, 0.0 }
 0x289   :  { %4685 = vmatmul.mubr.f32.gmra.mrb[168].mxu1 %v1870_v33  ;;  %8537 = vmatprep.subr.bf16.mxu0 %v13545_v21  ;;  %v2011_v21 = vadd.f32 %v13599_v10, %v10509_v60  ;;  %vm2322_vm4 = vcmp.ge.f32.partialorder %v2277_v57, 0.0 }
 0x28a   :  { %4689 = vmatprep.mubr.f32.mxu1 %v1873_v55  ;;  %8507 = vmatpush3.bf16.msra.mxu1 %v13595_v42  ;;  %v11456_v24 = vpop.f32.mrb[94].mxu0  ;;  %v1874_v10 = vsel %vm1842_vm1, %v1820_v14, %v1858_v15  ;;  %v2338_v14 = vmul.f32 0.2, %v2277_v57 }
 0x28b   :  { %13596 = vst [vmem:[#allocation105_spill] sm:$0xff] %v11456_v24  ;;  %v11458_v17 = vpop.f32.mrb[95].mxu0  ;;  %4870 = vmatmul.mubr.f32.gmra.mrb[184].mxu0 %v1870_v33  ;;  %8509 = vmatprep.subr.bf16.mxu1 %v13458_v30  ;;  %v1875_v24 = vsel %vm1843_vm15, %v1822_v37, %v1859_v34  ;;  %v13603_v37 = vld [vmem:[#allocation68_spill] sm:$0xff]  ;;  %vm2056_vm0 = vcmp.ge.f32.partialorder %v2011_v21, 0.0 }
 0x28c   :  { %13597 = vst [vmem:[#allocation104_spill] sm:$0xff] %v11458_v17  ;;  %8539 = vmatpush3.bf16.msra.mxu0 %v13547_v23  ;;  %4874 = vmatprep.mubr.f32.mxu0 %v1873_v55  ;;  %v1860_v55 = vmul.f32 0.2, %v1826_v19  ;;  %v2009_v34 = vadd.f32 %v13603_v37, %v10501_v40  ;;  %v2072_v17 = vmul.f32 0.2, %v2011_v21  ;;  %v1877_v23 = vsel %vm1845_vm2, %v1828_v18, %v1861_v49  ;;  %v13609_v49 = vld [vmem:[#allocation12_spill] sm:$0xff] }
 0x28d   :  { %4690 = vmatmul.mubr.f32.gmra.mrb[170].mxu1 %v1872_v44  ;;  %8541 = vmatprep.subr.bf16.mxu0 %v13551_v27 }
 0x28e   :  { %4694 = vmatprep.mubr.f32.mxu1 %v1875_v24  ;;  %8511 = vmatpush3.bf16.msra.mxu1 %v13461_v45  ;;  %v11468_v33 = vpop.f32.mrb[80].mxu1  ;;  %v2071_v18 = vmul.f32 0.2, %v2009_v34  ;;  %vm2055_vm5 = vcmp.ge.f32.partialorder %v2009_v34, 0.0 }
 0x28f   :  { %13600 = vst [vmem:[#allocation9_spill] sm:$0xff] %v11468_v33  ;;  %v11472_v62 = vpop.f32.mrb[81].mxu1  ;;  %4875 = vmatmul.mubr.f32.gmra.mrb[186].mxu0 %v1872_v44  ;;  %8513 = vmatprep.subr.bf16.mxu1 %v13465_v50  ;;  %v13604_v33 = vld [vmem:[#allocation15_spill] sm:$0xff]  ;;  %v13605_v44 = vld [vmem:[#allocation14_spill] sm:$0xff] }
 0x290   :  { %13602 = vst [vmem:[#allocation112_spill] sm:$0xff] %v11472_v62  ;;  %8543 = vmatpush3.bf16.msra.mxu0 %v13554_v48  ;;  %4879 = vmatprep.mubr.f32.mxu0 %v1875_v24  ;;  %v2017_v27 = vadd.f32 %v13604_v33, %v10509_v60  ;;  %v2275_v56 = vadd.f32 %v13605_v44, %v10501_v40  ;;  %v13607_v24 = vld [vmem:[#allocation21_spill] sm:$0xff] }
 0x291   :  { %4695 = vmatmul.mubr.f32.gmra.mrb[172].mxu1 %v1874_v10  ;;  %8545 = vmatprep.subr.bf16.mxu0 %v13557_v46  ;;  %v2283_v15 = vadd.f32 %v13607_v24, %v10509_v60  ;;  %v2015_v33 = vadd.f32 %v13609_v49, %v10501_v40  ;;  %v1876_v44 = vsel %vm1844_vm3, %v1826_v19, %v1860_v55  ;;  %v13610_v46 = vld [vmem:[#allocation23_spill] sm:$0xff]  ;;  %v13613_v55 = vld [vmem:[#allocation62_spill] sm:$0xff] }
 0x292   :  { %4699 = vmatprep.mubr.f32.mxu1 %v1877_v23  ;;  %8515 = vmatpush3.bf16.msra.mxu1 %v13470_v31  ;;  %v11484_v37 = vpop.f32.mrb[96].mxu0  ;;  %v2023_v48 = vadd.f32 %v13610_v46, %v10509_v60  ;;  %v2088_v24 = vsel %vm2056_vm0, %v2011_v21, %v2072_v17  ;;  %vm2058_vm6 = vcmp.ge.f32.partialorder %v2017_v27, 0.0  ;;  %vm2321_vm8 = vcmp.ge.f32.partialorder %v2275_v56, 0.0 }
 0x293   :  { %13606 = vst [vmem:[#allocation63_spill] sm:$0xff] %v11484_v37  ;;  %v11488_v62 = vpop.f32.mrb[97].mxu0  ;;  %4880 = vmatmul.mubr.f32.gmra.mrb[188].mxu0 %v1874_v10  ;;  %8517 = vmatprep.subr.bf16.mxu1 %v13473_v63  ;;  %v2074_v37 = vmul.f32 0.2, %v2017_v27  ;;  %v2337_v10 = vmul.f32 0.2, %v2275_v56  ;;  %v2289_v46 = vadd.f32 %v13613_v55, %v10509_v60  ;;  %v11509_v21 = vsel %vm2322_vm4, %v2277_v57, %v2338_v14 }
 0x294   :  { %13608 = vst [vmem:[#allocation79_spill] sm:$0xff] %v11488_v62  ;;  %8547 = vmatpush3.bf16.msra.mxu0 %v13560_v2  ;;  %4884 = vmatprep.mubr.f32.mxu0 %v1877_v23  ;;  %v13611_v62 = vld [vmem:[#allocation17_spill] sm:$0xff]  ;;  %v2340_v23 = vmul.f32 0.2, %v2283_v15  ;;  %v2087_v17 = vsel %vm2055_vm5, %v2009_v34, %v2071_v18  ;;  %vm2324_vm9 = vcmp.ge.f32.partialorder %v2283_v15, 0.0  ;;  %vm2057_vm10 = vcmp.ge.f32.partialorder %v2015_v33, 0.0 }
 0x295   :  { %4700 = vmatmul.mubr.f32.gmra.mrb[174].mxu1 %v1876_v44  ;;  %8549 = vmatprep.subr.bf16.mxu0 %v13563_v51  ;;  %v2281_v7 = vadd.f32 %v13611_v62, %v10501_v40  ;;  %v2073_v62 = vmul.f32 0.2, %v2015_v33  ;;  %v2076_v55 = vmul.f32 0.2, %v2023_v48  ;;  %v2090_v51 = vsel %vm2058_vm6, %v2017_v27, %v2074_v37  ;;  %v13617_v14 = vld [vmem:[#allocation25_spill] sm:$0xff] }
 0x296   :  { %8519 = vmatpush3.bf16.msra.mxu1 %v13479_v25  ;;  %4954 = vmatprep.mubr.f32.mxu1 %v2088_v24  ;;  %v11501_v19 = vpop.f32.mrb[82].mxu1  ;;  %v13615_v24 = vld [vmem:[#allocation19_spill] sm:$0xff]  ;;  %v11521_v57 = vsel %vm2321_vm8, %v2275_v56, %v2337_v10  ;;  %v2287_v18 = vadd.f32 %v13617_v14, %v10501_v40  ;;  %vm2060_vm11 = vcmp.ge.f32.partialorder %v2023_v48, 0.0  ;;  %v11535_v56 = vsel %vm2324_vm9, %v2283_v15, %v2340_v23  ;;  %v13621_v10 = vld [vmem:[#allocation22_spill] sm:$0xff] }
 0x297   :  { %13612 = vst [vmem:[#allocation11_spill] sm:$0xff] %v11501_v19  ;;  %v11505_v49 = vpop.f32.mrb[83].mxu1  ;;  %4885 = vmatmul.mubr.f32.gmra.mrb[190].mxu0 %v1876_v44  ;;  %8553 = vmatprep.subr.bf16.mxu1 %v13482_v8  ;;  %v2021_v19 = vadd.f32 %v13615_v24, %v10501_v40  ;;  %v2339_v34 = vmul.f32 0.2, %v2281_v7  ;;  %vm2323_vm12 = vcmp.ge.f32.partialorder %v2281_v7, 0.0  ;;  %v2027_v14 = vadd.f32 %v13621_v10, %v10501_v40  ;;  %v13623_v10 = vld [vmem:[#allocation27_spill] sm:$0xff] }
 0x298   :  { %13614 = vst [vmem:[#allocation78_spill] sm:$0xff] %v11505_v49  ;;  %8551 = vmatpush3.bf16.msra.mxu0 %v13566_v36  ;;  %5059 = vmatprep.mubr.f32.mxu0 %v11509_v21  ;;  %v13616_v49 = vld [vmem:[#allocation58_spill] sm:$0xff]  ;;  %vm2326_vm13 = vcmp.ge.f32.partialorder %v2289_v46, 0.0  ;;  %v2092_v15 = vsel %vm2060_vm11, %v2023_v48, %v2076_v55  ;;  %v2341_v23 = vmul.f32 0.2, %v2287_v18  ;;  %v2293_v36 = vadd.f32 %v13623_v10, %v10501_v40 }
 0x299   :  { %v2029_v44 = vadd.f32 %v13616_v49, %v10509_v60  ;;  %4955 = vmatmul.mubr.f32.vlgmr.msra.gmra.mrb[176].mxu1 %v2087_v17  ;;  %8585 = vmatprep.subr.bf16.mxu0 %v13569_v11  ;;  %v2342_v49 = vmul.f32 0.2, %v2289_v46  ;;  %v13619_v17 = vld [vmem:[#allocation64_spill] sm:$0xff]  ;;  %vm2059_vm14 = vcmp.ge.f32.partialorder %v2021_v19, 0.0  ;;  %vm2325_vm1 = vcmp.ge.f32.partialorder %v2287_v18, 0.0 }
 0x29a   :  { %4959 = vmatprep.mubr.f32.mxu1 %v2090_v51  ;;  %8555 = vmatpush3.bf16.msra.mxu1 %v10152_v39  ;;  %v11526_v24 = vpop.f32.mrb[98].mxu0  ;;  %v2295_v27 = vadd.f32 %v13619_v17, %v10509_v60  ;;  %v2075_v51 = vmul.f32 0.2, %v2021_v19  ;;  %v2077_v10 = vmul.f32 0.2, %v2027_v14  ;;  %vm2061_vm3 = vcmp.ge.f32.partialorder %v2027_v14, 0.0 }
 0x29b   :  { %13618 = vst [vmem:[#allocation83_spill] sm:$0xff] %v11526_v24  ;;  %v11530_v37 = vpop.f32.mrb[99].mxu0  ;;  %5060 = vmatmul.mubr.f32.vlgmr.msra.gmra.mrb[192].mxu0 %v11521_v57  ;;  %8557 = vmatprep.subr.bf16.mxu1 %v10154_v58  ;;  %v2089_v24 = vsel %vm2057_vm10, %v2015_v33, %v2073_v62  ;;  %v2078_v17 = vmul.f32 0.2, %v2029_v44  ;;  %v11552_v62 = vsel %vm2323_vm12, %v2281_v7, %v2339_v34  ;;  %vm2062_vm15 = vcmp.ge.f32.partialorder %v2029_v44, 0.0 }
 0x29c   :  { %13620 = vst [vmem:[#allocation110_spill] sm:$0xff] %v11530_v37  ;;  %8587 = vmatpush3.bf16.msra.mxu0 %v13572_v59  ;;  %5064 = vmatprep.mubr.f32.mxu0 %v11535_v56  ;;  %v13622_v37 = vld [vmem:[#allocation29_spill] sm:$0xff]  ;;  %v2091_v34 = vsel %vm2059_vm14, %v2021_v19, %v2075_v51  ;;  %vm2328_vm2 = vcmp.ge.f32.partialorder %v2295_v27, 0.0  ;;  %v11578_v51 = vsel %vm2325_vm1, %v2287_v18, %v2341_v23  ;;  %vm2327_vm4 = vcmp.ge.f32.partialorder %v2293_v36, 0.0 }
 0x29d   :  { %v2035_v11 = vadd.f32 %v13622_v37, %v10509_v60  ;;  %4960 = vmatmul.mubr.f32.gmra.mrb[178].mxu1 %v2089_v24  ;;  %8589 = vmatprep.subr.bf16.mxu0 %v13575_v4  ;;  %v2344_v37 = vmul.f32 0.2, %v2295_v27  ;;  %v13625_v24 = vld [vmem:[#allocation69_spill] sm:$0xff]  ;;  %v2093_v23 = vsel %vm2061_vm3, %v2027_v14, %v2077_v10 }
 0x29e   :  { %4964 = vmatprep.mubr.f32.mxu1 %v2092_v15  ;;  %8559 = vmatpush3.bf16.msra.mxu1 %v10191_v13  ;;  %v11549_v33 = vpop.f32.mrb[84].mxu1  ;;  %v2301_v48 = vadd.f32 %v13625_v24, %v10509_v60  ;;  %v11561_v15 = vsel %vm2326_vm13, %v2289_v46, %v2342_v49  ;;  %v2094_v46 = vsel %vm2062_vm15, %v2029_v44, %v2078_v17  ;;  %v2343_v49 = vmul.f32 0.2, %v2293_v36 }
 0x29f   :  { %13624 = vst [vmem:[#allocation82_spill] sm:$0xff] %v11549_v33  ;;  %v11556_v55 = vpop.f32.mrb[85].mxu1  ;;  %5065 = vmatmul.mubr.f32.gmra.mrb[194].mxu0 %v11552_v62  ;;  %8561 = vmatprep.subr.bf16.mxu1 %v10205_v61  ;;  %v13627_v33 = vld [vmem:[#allocation24_spill] sm:$0xff]  ;;  %v2080_v24 = vmul.f32 0.2, %v2035_v11  ;;  %vm2064_vm0 = vcmp.ge.f32.partialorder %v2035_v11, 0.0 }
 0x2a0   :  { %13626 = vst [vmem:[#allocation87_spill] sm:$0xff] %v11556_v55  ;;  %v2033_v7 = vadd.f32 %v13627_v33, %v10501_v40  ;;  %8591 = vmatpush3.bf16.msra.mxu0 %v13578_v9  ;;  %5069 = vmatprep.mubr.f32.mxu0 %v11561_v15  ;;  %v13628_v55 = vld [vmem:[#allocation67_spill] sm:$0xff]  ;;  %vm2330_vm5 = vcmp.ge.f32.partialorder %v2301_v48, 0.0  ;;  %v11604_v10 = vsel %vm2327_vm4, %v2293_v36, %v2343_v49 }
 0x2a1   :  { %v2041_v4 = vadd.f32 %v13628_v55, %v10509_v60  ;;  %4965 = vmatmul.mubr.f32.gmra.mrb[180].mxu1 %v2091_v34  ;;  %8593 = vmatprep.subr.bf16.mxu0 %v13581_v53  ;;  %v13629_v33 = vld [vmem:[#allocation31_spill] sm:$0xff]  ;;  %v2346_v55 = vmul.f32 0.2, %v2301_v48  ;;  %v13631_v34 = vld [vmem:[#allocation33_spill] sm:$0xff] }
 0x2a2   :  { %v2299_v59 = vadd.f32 %v13629_v33, %v10501_v40  ;;  %4969 = vmatprep.mubr.f32.mxu1 %v2094_v46  ;;  %8563 = vmatpush3.bf16.msra.mxu1 %v10233_v20  ;;  %v11575_v19 = vpop.f32.mrb[100].mxu0  ;;  %v2307_v44 = vadd.f32 %v13631_v34, %v10509_v60  ;;  %v11587_v46 = vsel %vm2328_vm2, %v2295_v27, %v2344_v37  ;;  %v2079_v33 = vmul.f32 0.2, %v2033_v7 }
 0x2a3   :  { %13630 = vst [vmem:[#allocation86_spill] sm:$0xff] %v11575_v19  ;;  %v11582_v17 = vpop.f32.mrb[101].mxu0  ;;  %5070 = vmatmul.mubr.f32.gmra.mrb[196].mxu0 %v11578_v51  ;;  %8565 = vmatprep.subr.bf16.mxu1 %v10248_v1  ;;  %v13633_v19 = vld [vmem:[#allocation26_spill] sm:$0xff]  ;;  %v2082_v34 = vmul.f32 0.2, %v2041_v4  ;;  %v2096_v27 = vsel %vm2064_vm0, %v2035_v11, %v2080_v24  ;;  %vm2063_vm6 = vcmp.ge.f32.partialorder %v2033_v7, 0.0 }
 0x2a4   :  { %13632 = vst [vmem:[#allocation93_spill] sm:$0xff] %v11582_v17  ;;  %v2039_v18 = vadd.f32 %v13633_v19, %v10501_v40  ;;  %8595 = vmatpush3.bf16.msra.mxu0 %v13584_v5  ;;  %5074 = vmatprep.mubr.f32.mxu0 %v11587_v46  ;;  %v13634_v17 = vld [vmem:[#allocation73_spill] sm:$0xff]  ;;  %v2345_v37 = vmul.f32 0.2, %v2299_v59  ;;  %v13635_v19 = vld [vmem:[#allocation28_spill] sm:$0xff]  ;;  %vm2066_vm8 = vcmp.ge.f32.partialorder %v2041_v4, 0.0  ;;  %v2095_v49 = vsel %vm2063_vm6, %v2033_v7, %v2079_v33 }
 0x2a5   :  { %v2047_v53 = vadd.f32 %v13634_v17, %v10509_v60  ;;  %4970 = vmatmul.mubr.f32.gmra.mrb[182].mxu1 %v2093_v23  ;;  %8597 = vmatprep.subr.bf16.mxu0 %v13587_v38  ;;  %v2305_v9 = vadd.f32 %v13635_v19, %v10501_v40  ;;  %v2348_v17 = vmul.f32 0.2, %v2307_v44  ;;  %v13637_v23 = vld [vmem:[#allocation37_spill] sm:$0xff]  ;;  %vm2329_vm9 = vcmp.ge.f32.partialorder %v2299_v59, 0.0 }
 0x2a6   :  { %4974 = vmatprep.mubr.f32.mxu1 %v2096_v27  ;;  %8567 = vmatpush3.bf16.msra.mxu1 %v10276_v0  ;;  %v11601_v14 = vpop.f32.mrb[86].mxu1  ;;  %v2313_v11 = vadd.f32 %v13637_v23, %v10509_v60  ;;  %v11613_v27 = vsel %vm2330_vm5, %v2301_v48, %v2346_v55  ;;  %v2081_v19 = vmul.f32 0.2, %v2039_v18  ;;  %vm2332_vm10 = vcmp.ge.f32.partialorder %v2307_v44, 0.0 }
 0x2a7   :  { %13636 = vst [vmem:[#allocation92_spill] sm:$0xff] %v11601_v14  ;;  %v11608_v24 = vpop.f32.mrb[87].mxu1  ;;  %5075 = vmatmul.mubr.f32.gmra.mrb[198].mxu0 %v11604_v10  ;;  %8569 = vmatprep.subr.bf16.mxu1 %v10291_v26  ;;  %v13639_v14 = vld [vmem:[#allocation30_spill] sm:$0xff]  ;;  %v2084_v23 = vmul.f32 0.2, %v2047_v53  ;;  %v2098_v48 = vsel %vm2066_vm8, %v2041_v4, %v2082_v34  ;;  %vm2065_vm11 = vcmp.ge.f32.partialorder %v2039_v18, 0.0  ;;  %v11630_v33 = vsel %vm2329_vm9, %v2299_v59, %v2345_v37 }
 0x2a8   :  { %13638 = vst [vmem:[#allocation101_spill] sm:$0xff] %v11608_v24  ;;  %v2045_v36 = vadd.f32 %v13639_v14, %v10501_v40  ;;  %8599 = vmatpush3.bf16.msra.mxu0 %v13590_v29  ;;  %5079 = vmatprep.mubr.f32.mxu0 %v11613_v27  ;;  %v13640_v24 = vld [vmem:[#allocation16_spill] sm:$0xff]  ;;  %v2347_v55 = vmul.f32 0.2, %v2305_v9  ;;  %vm2068_vm12 = vcmp.ge.f32.partialorder %v2047_v53, 0.0  ;;  %vm2331_vm13 = vcmp.ge.f32.partialorder %v2305_v9, 0.0 }
 0x2a9   :  { %v2053_v38 = vadd.f32 %v13640_v24, %v10509_v60  ;;  %4975 = vmatmul.mubr.f32.gmra.mrb[184].mxu1 %v2095_v49  ;;  %8601 = vmatprep.subr.bf16.mxu0 %v13451_v3  ;;  %v13641_v14 = vld [vmem:[#allocation32_spill] sm:$0xff]  ;;  %v2350_v24 = vmul.f32 0.2, %v2313_v11  ;;  %v13643_v49 = vld [vmem:[#allocation39_spill] sm:$0xff]  ;;  %v2097_v37 = vsel %vm2065_vm11, %v2039_v18, %v2081_v19  ;;  %vm2334_vm14 = vcmp.ge.f32.partialorder %v2313_v11, 0.0 }
 0x2aa   :  { %v2311_v5 = vadd.f32 %v13641_v14, %v10501_v40  ;;  %4979 = vmatprep.mubr.f32.mxu1 %v2098_v48  ;;  %8571 = vmatpush3.bf16.msra.mxu1 %v10319_v41  ;;  %v11627_v7 = vpop.f32.mrb[102].mxu0  ;;  %v2319_v4 = vadd.f32 %v13643_v49, %v10509_v60  ;;  %v11639_v48 = vsel %vm2332_vm10, %v2307_v44, %v2348_v17  ;;  %v2083_v14 = vmul.f32 0.2, %v2045_v36  ;;  %v13646_v17 = vld [vmem:[#allocation34_spill] sm:$0xff] }
 0x2ab   :  { %13642 = vst [vmem:[#allocation100_spill] sm:$0xff] %v11627_v7  ;;  %v11634_v34 = vpop.f32.mrb[103].mxu0  ;;  %5080 = vmatmul.mubr.f32.gmra.mrb[200].mxu0 %v11630_v33  ;;  %8573 = vmatprep.subr.bf16.mxu1 %v10334_v52  ;;  %v13645_v7 = vld [vmem:[#allocation35_spill] sm:$0xff]  ;;  %v2086_v49 = vmul.f32 0.2, %v2053_v38  ;;  %vm2067_vm15 = vcmp.ge.f32.partialorder %v2045_v36, 0.0  ;;  %v2317_v3 = vadd.f32 %v13646_v17, %v10501_v40  ;;  %v11654_v19 = vsel %vm2331_vm13, %v2305_v9, %v2347_v55 }
 0x2ac   :  { %13644 = vst [vmem:[#allocation109_spill] sm:$0xff] %v11634_v34  ;;  %v2051_v59 = vadd.f32 %v13645_v7, %v10501_v40  ;;  %8603 = vmatpush3.bf16.msra.mxu0 %v13595_v42  ;;  %5084 = vmatprep.mubr.f32.mxu0 %v11639_v48  ;;  %v2100_v34 = vsel %vm2068_vm12, %v2047_v53, %v2084_v23  ;;  %v2349_v44 = vmul.f32 0.2, %v2311_v5  ;;  %vm2070_vm1 = vcmp.ge.f32.partialorder %v2053_v38, 0.0 }
 0x2ad   :  { %4980 = vmatmul.mubr.f32.gmra.mrb[186].mxu1 %v2097_v37  ;;  %8605 = vmatprep.subr.bf16.mxu0 %v13458_v30  ;;  %v2352_v7 = vmul.f32 0.2, %v2319_v4  ;;  %v13648_v37 = vld [vmem:[#allocation43_spill] sm:$0xff]  ;;  %vm2333_vm2 = vcmp.ge.f32.partialorder %v2311_v5, 0.0  ;;  %vm2336_vm3 = vcmp.ge.f32.partialorder %v2319_v4, 0.0  ;;  %v2102_v9 = vsel %vm2070_vm1, %v2053_v38, %v2086_v49 }
 0x2ae   :  { %4984 = vmatprep.mubr.f32.mxu1 %v2100_v34  ;;  %8575 = vmatpush3.bf16.msra.mxu1 %v13413_v35  ;;  %v11651_v18 = vpop.f32.mrb[88].mxu1  ;;  %v2543_v53 = vadd.f32 %v13648_v37, %v10509_v60  ;;  %v11663_v34 = vsel %vm2334_vm14, %v2313_v11, %v2350_v24  ;;  %v2085_v17 = vmul.f32 0.2, %v2051_v59  ;;  %vm2069_vm0 = vcmp.ge.f32.partialorder %v2051_v59, 0.0  ;;  %v13650_v37 = vld [vmem:[#allocation36_spill] sm:$0xff] }
 0x2af   :  { %13647 = vst [vmem:[#allocation108_spill] sm:$0xff] %v11651_v18  ;;  %v11658_v23 = vpop.f32.mrb[89].mxu1  ;;  %5085 = vmatmul.mubr.f32.gmra.mrb[202].mxu0 %v11654_v19  ;;  %8577 = vmatprep.subr.bf16.mxu1 %v13415_v12  ;;  %v2099_v18 = vsel %vm2067_vm15, %v2045_v36, %v2083_v14  ;;  %v2351_v55 = vmul.f32 0.2, %v2317_v3  ;;  %v11674_v36 = vsel %vm2333_vm2, %v2311_v5, %v2349_v44  ;;  %vm2335_vm4 = vcmp.ge.f32.partialorder %v2317_v3, 0.0 }
 0x2b0   :  { %13649 = vst [vmem:[#allocation8_spill] sm:$0xff] %v11658_v23  ;;  %8607 = vmatpush3.bf16.msra.mxu0 %v13461_v45  ;;  %5089 = vmatprep.mubr.f32.mxu0 %v11663_v34  ;;  %v2541_v23 = vadd.f32 %v13650_v37, %v10501_v40  ;;  %v2604_v24 = vmul.f32 0.2, %v2543_v53  ;;  %v2549_v14 = vadd.f32 %v11288_v22, %v10509_v60  ;;  %vm2588_vm5 = vcmp.ge.f32.partialorder %v2543_v53, 0.0 }
 0x2b1   :  { %4985 = vmatmul.mubr.f32.gmra.mrb[188].mxu1 %v2099_v18  ;;  %8609 = vmatprep.subr.bf16.mxu0 %v13465_v50  ;;  %v11683_v38 = vsel %vm2336_vm3, %v2319_v4, %v2352_v7  ;;  %v2101_v49 = vsel %vm2069_vm0, %v2051_v59, %v2085_v17  ;;  %v2547_v5 = vadd.f32 %v11284_v32, %v10501_v40 }
 0x2b2   :  { %4989 = vmatprep.mubr.f32.mxu1 %v2102_v9  ;;  %8579 = vmatpush3.bf16.msra.mxu1 %v13420_v54  ;;  %v11672_v11 = vpop.f32.mrb[104].mxu0  ;;  %v2603_v22 = vmul.f32 0.2, %v2541_v23  ;;  %v11694_v44 = vsel %vm2335_vm4, %v2317_v3, %v2351_v55  ;;  %vm2587_vm6 = vcmp.ge.f32.partialorder %v2541_v23, 0.0  ;;  %v2606_v59 = vmul.f32 0.2, %v2549_v14 }
 0x2b3   :  { %13651 = vst [vmem:[#allocation52_spill] sm:$0xff] %v11672_v11  ;;  %v11678_v18 = vpop.f32.mrb[105].mxu0  ;;  %5090 = vmatmul.mubr.f32.gmra.mrb[204].mxu0 %v11674_v36  ;;  %8581 = vmatprep.subr.bf16.mxu1 %v10420_v47  ;;  %v2555_v7 = vadd.f32 %v11315_v43, %v10509_v60  ;;  %v2620_v32 = vsel %vm2588_vm5, %v2543_v53, %v2604_v24  ;;  %vm2590_vm8 = vcmp.ge.f32.partialorder %v2549_v14, 0.0  ;;  %v13655_v9 = vld [vmem:[#allocation46_spill] sm:$0xff]  ;;  %v13656_v55 = vld [vmem:[#allocation88_spill] sm:$0xff]  ;;  %vm2589_vm9 = vcmp.ge.f32.partialorder %v2547_v5, 0.0 }
 0x2b4   :  { %13652 = vst [vmem:[#allocation59_spill] sm:$0xff] %v11678_v18  ;;  %8611 = vmatpush3.bf16.msra.mxu0 %v13470_v31  ;;  %5094 = vmatprep.mubr.f32.mxu0 %v11683_v38  ;;  %v2619_v3 = vsel %vm2587_vm6, %v2541_v23, %v2603_v22  ;;  %v2553_v43 = vadd.f32 %v13655_v9, %v10501_v40  ;;  %v13658_v24 = vld [vmem:[#allocation54_spill] sm:$0xff]  ;;  %v13662_v22 = vld [vmem:[#allocation47_spill] sm:$0xff]  ;;  %v13697_v11 = vld [vmem:[#allocation76_spill] sm:$0xff] }
 0x2b5   :  { %4990 = vmatmul.mubr.f32.gmra.mrb[190].mxu1 %v2101_v49  ;;  %8613 = vmatprep.subr.bf16.mxu0 %v13473_v63  ;;  %v2608_v53 = vmul.f32 0.2, %v2555_v7  ;;  %v2561_v49 = vadd.f32 %v13658_v24, %v10509_v60  ;;  %vm2592_vm10 = vcmp.ge.f32.partialorder %v2555_v7, 0.0  ;;  %v2809_v9 = vadd.f32 %v13662_v22, %v10509_v60 }
 0x2b6   :  { %8583 = vmatpush3.bf16.msra.mxu1 %v13426_v28  ;;  %5244 = vmatprep.mubr.f32.mxu1 %v11509_v21  ;;  %v11692_v4 = vpop.f32.mrb[90].mxu1  ;;  %v2605_v21 = vmul.f32 0.2, %v2547_v5  ;;  %v2607_v24 = vmul.f32 0.2, %v2553_v43  ;;  %vm2591_vm11 = vcmp.ge.f32.partialorder %v2553_v43, 0.0 }
 0x2b7   :  { %13653 = vst [vmem:[#allocation13_spill] sm:$0xff] %v11692_v4  ;;  %v11698_v17 = vpop.f32.mrb[91].mxu1  ;;  %5095 = vmatmul.mubr.f32.gmra.mrb[206].mxu0 %v11694_v44  ;;  %8617 = vmatprep.subr.bf16.mxu1 %v13428_v6  ;;  %vm2594_vm12 = vcmp.ge.f32.partialorder %v2561_v49, 0.0  ;;  %vm2854_vm14 = vcmp.ge.f32.partialorder %v2809_v9, 0.0 }
 0x2b8   :  { %13654 = vst [vmem:[#allocation56_spill] sm:$0xff] %v11698_v17  ;;  %8615 = vmatpush3.bf16.msra.mxu0 %v13479_v25  ;;  %5349 = vmatprep.mubr.f32.mxu0 %v2620_v32  ;;  %v13676_v17 = vld [vmem:[#allocation55_spill] sm:$0xff] }
 0x2b9   :  { %5245 = vmatmul.mubr.f32.vlgmr.msra.gmra.mrb[192].mxu1 %v11521_v57  ;;  %8649 = vmatprep.subr.bf16.mxu0 %v13482_v8  ;;  %v13660_v57 = vld [vmem:[#allocation89_spill] sm:$0xff]  ;;  %v2622_v8 = vsel %vm2590_vm8, %v2549_v14, %v2606_v59  ;;  %v13664_v14 = vld [vmem:[#allocation90_spill] sm:$0xff]  ;;  %v2621_v59 = vsel %vm2589_vm9, %v2547_v5, %v2605_v21 }
 0x2ba   :  { %5249 = vmatprep.mubr.f32.mxu1 %v11535_v56  ;;  %8619 = vmatpush3.bf16.msra.mxu1 %v13656_v55  ;;  %v11709_v37 = vpop.f32.mrb[106].mxu0  ;;  %v13661_v56 = vld [vmem:[#allocation38_spill] sm:$0xff] }
 0x2bb   :  { %13657 = vst [vmem:[#allocation10_spill] sm:$0xff] %v11709_v37  ;;  %v11713_v32 = vpop.f32.mrb[107].mxu0  ;;  %5350 = vmatmul.mubr.f32.vlgmr.msra.gmra.mrb[208].mxu0 %v2619_v3  ;;  %8621 = vmatprep.subr.bf16.mxu1 %v13660_v57  ;;  %v2807_v23 = vadd.f32 %v13661_v56, %v10501_v40  ;;  %v13663_v3 = vld [vmem:[#allocation61_spill] sm:$0xff]  ;;  %v13669_v5 = vld [vmem:[#allocation42_spill] sm:$0xff] }
 0x2bc   :  { %13659 = vst [vmem:[#allocation70_spill] sm:$0xff] %v11713_v32  ;;  %8651 = vmatpush3.bf16.msra.mxu0 %v10152_v39  ;;  %5354 = vmatprep.mubr.f32.mxu0 %v2622_v8  ;;  %v2559_v32 = vadd.f32 %v13663_v3, %v10501_v40  ;;  %v2610_v8 = vmul.f32 0.2, %v2561_v49  ;;  %v13666_v56 = vld [vmem:[#allocation65_spill] sm:$0xff]  ;;  %v2870_v3 = vmul.f32 0.2, %v2809_v9  ;;  %v2813_v21 = vadd.f32 %v13669_v5, %v10501_v40 }
 0x2bd   :  { %5250 = vmatmul.mubr.f32.gmra.mrb[194].mxu1 %v11552_v62  ;;  %8653 = vmatprep.subr.bf16.mxu0 %v10154_v58  ;;  %v2567_v37 = vadd.f32 %v13666_v56, %v10509_v60  ;;  %v13668_v62 = vld [vmem:[#allocation91_spill] sm:$0xff]  ;;  %v2624_v58 = vsel %vm2592_vm10, %v2555_v7, %v2608_v53  ;;  %vm2853_vm13 = vcmp.ge.f32.partialorder %v2807_v23, 0.0  ;;  %v13670_v56 = vld [vmem:[#allocation72_spill] sm:$0xff]  ;;  %v2623_v7 = vsel %vm2591_vm11, %v2553_v43, %v2607_v24 }
 0x2be   :  { %5254 = vmatprep.mubr.f32.mxu1 %v11561_v15  ;;  %8623 = vmatpush3.bf16.msra.mxu1 %v13664_v14  ;;  %v11727_v39 = vpop.f32.mrb[92].mxu1  ;;  %v2869_v15 = vmul.f32 0.2, %v2807_v23  ;;  %vm2593_vm15 = vcmp.ge.f32.partialorder %v2559_v32, 0.0  ;;  %v2871_v24 = vmul.f32 0.2, %v2813_v21 }
 0x2bf   :  { %13665 = vst [vmem:[#allocation18_spill] sm:$0xff] %v11727_v39  ;;  %v11731_v22 = vpop.f32.mrb[93].mxu1  ;;  %5355 = vmatmul.mubr.f32.gmra.mrb[210].mxu0 %v2621_v59  ;;  %8625 = vmatprep.subr.bf16.mxu1 %v13668_v62  ;;  %v2609_v59 = vmul.f32 0.2, %v2559_v32  ;;  %v2612_v53 = vmul.f32 0.2, %v2567_v37 }
 0x2c0   :  { %13667 = vst [vmem:[#allocation68_spill] sm:$0xff] %v11731_v22  ;;  %8655 = vmatpush3.bf16.msra.mxu0 %v10191_v13  ;;  %5359 = vmatprep.mubr.f32.mxu0 %v2624_v58  ;;  %v2565_v22 = vadd.f32 %v13670_v56, %v10501_v40  ;;  %v13672_v58 = vld [vmem:[#allocation77_spill] sm:$0xff]  ;;  %vm2596_vm1 = vcmp.ge.f32.partialorder %v2567_v37, 0.0  ;;  %v11758_v43 = vsel %vm2853_vm13, %v2807_v23, %v2869_v15  ;;  %vm2855_vm2 = vcmp.ge.f32.partialorder %v2813_v21, 0.0 }
 0x2c1   :  { %5255 = vmatmul.mubr.f32.gmra.mrb[196].mxu1 %v11578_v51  ;;  %8657 = vmatprep.subr.bf16.mxu0 %v10205_v61  ;;  %v2573_v5 = vadd.f32 %v13672_v58, %v10509_v60  ;;  %v13674_v61 = vld [vmem:[#allocation95_spill] sm:$0xff]  ;;  %v2626_v51 = vsel %vm2594_vm12, %v2561_v49, %v2610_v8  ;;  %v11765_v49 = vsel %vm2854_vm14, %v2809_v9, %v2870_v3 }
 0x2c2   :  { %5259 = vmatprep.mubr.f32.mxu1 %v11587_v46  ;;  %8627 = vmatpush3.bf16.msra.mxu1 %v13535_v16  ;;  %v11744_v13 = vpop.f32.mrb[108].mxu0  ;;  %v13675_v46 = vld [vmem:[#allocation51_spill] sm:$0xff]  ;;  %v2611_v8 = vmul.f32 0.2, %v2565_v22  ;;  %v2625_v15 = vsel %vm2593_vm15, %v2559_v32, %v2609_v59  ;;  %v2628_v3 = vsel %vm2596_vm1, %v2567_v37, %v2612_v53  ;;  %vm2595_vm3 = vcmp.ge.f32.partialorder %v2565_v22, 0.0  ;;  %v13684_v59 = vld [vmem:[#allocation66_spill] sm:$0xff] }
 0x2c3   :  { %13671 = vst [vmem:[#allocation15_spill] sm:$0xff] %v11744_v13  ;;  %v11748_v39 = vpop.f32.mrb[109].mxu0  ;;  %5360 = vmatmul.mubr.f32.gmra.mrb[212].mxu0 %v2623_v7  ;;  %8629 = vmatprep.subr.bf16.mxu1 %v13674_v61  ;;  %v2815_v56 = vadd.f32 %v13675_v46, %v10509_v60  ;;  %v2819_v13 = vadd.f32 %v13676_v17, %v10501_v40  ;;  %v13677_v7 = vld [vmem:[#allocation50_spill] sm:$0xff]  ;;  %v2614_v46 = vmul.f32 0.2, %v2573_v5  ;;  %v13683_v9 = vld [vmem:[#allocation99_spill] sm:$0xff] }
 0x2c4   :  { %13673 = vst [vmem:[#allocation14_spill] sm:$0xff] %v11748_v39  ;;  %8659 = vmatpush3.bf16.msra.mxu0 %v10233_v20  ;;  %5364 = vmatprep.mubr.f32.mxu0 %v2626_v51  ;;  %v2821_v58 = vadd.f32 %v13677_v7, %v10509_v60  ;;  %v13678_v17 = vld [vmem:[#allocation74_spill] sm:$0xff]  ;;  %vm2598_vm0 = vcmp.ge.f32.partialorder %v2573_v5, 0.0  ;;  %v13685_v53 = vld [vmem:[#allocation80_spill] sm:$0xff] }
 0x2c5   :  { %5260 = vmatmul.mubr.f32.gmra.mrb[198].mxu1 %v11604_v10  ;;  %8661 = vmatprep.subr.bf16.mxu0 %v10248_v1  ;;  %v2571_v20 = vadd.f32 %v13678_v17, %v10501_v40  ;;  %v13679_v51 = vld [vmem:[#allocation98_spill] sm:$0xff]  ;;  %v13681_v10 = vld [vmem:[#allocation85_spill] sm:$0xff]  ;;  %v2873_v17 = vmul.f32 0.2, %v2819_v13  ;;  %vm2856_vm4 = vcmp.ge.f32.partialorder %v2815_v56, 0.0  ;;  %vm2857_vm5 = vcmp.ge.f32.partialorder %v2819_v13, 0.0 }
 0x2c6   :  { %5264 = vmatprep.mubr.f32.mxu1 %v11613_v27  ;;  %8631 = vmatpush3.bf16.msra.mxu1 %v13679_v51  ;;  %v11771_v23 = vpop.f32.mrb[94].mxu1  ;;  %v2579_v1 = vadd.f32 %v13681_v10, %v10509_v60  ;;  %v2872_v27 = vmul.f32 0.2, %v2815_v56  ;;  %v2874_v32 = vmul.f32 0.2, %v2821_v58  ;;  %v13686_v10 = vld [vmem:[#allocation102_spill] sm:$0xff] }
 0x2c7   :  { %13680 = vst [vmem:[#allocation21_spill] sm:$0xff] %v11771_v23  ;;  %v11776_v7 = vpop.f32.mrb[95].mxu1  ;;  %5365 = vmatmul.mubr.f32.gmra.mrb[214].mxu0 %v2625_v15  ;;  %8633 = vmatprep.subr.bf16.mxu1 %v13683_v9  ;;  %v11783_v23 = vadd.f32 %v13684_v59, %v10501_v40  ;;  %v11788_v15 = vsel %vm2855_vm2, %v2813_v21, %v2871_v24  ;;  %v2613_v37 = vmul.f32 0.2, %v2571_v20  ;;  %vm2858_vm6 = vcmp.ge.f32.partialorder %v2821_v58, 0.0  ;;  %v13688_v21 = vld [vmem:[#allocation94_spill] sm:$0xff] }
 0x2c8   :  { %13682 = vst [vmem:[#allocation12_spill] sm:$0xff] %v11776_v7  ;;  %8663 = vmatpush3.bf16.msra.mxu0 %v10276_v0  ;;  %5369 = vmatprep.mubr.f32.mxu0 %v2628_v3  ;;  %v11792_v0 = vadd.f32 %v13685_v53, %v10501_v40  ;;  %v2585_v24 = vadd.f32 %v13688_v21, %v10509_v60  ;;  %v13690_v53 = vld [vmem:[#allocation103_spill] sm:$0xff]  ;;  %vm2597_vm8 = vcmp.ge.f32.partialorder %v2571_v20, 0.0  ;;  %vm2600_vm9 = vcmp.ge.f32.partialorder %v2579_v1, 0.0 }
 0x2c9   :  { %5265 = vmatmul.mubr.f32.gmra.mrb[200].mxu1 %v11630_v33  ;;  %8665 = vmatprep.subr.bf16.mxu0 %v10291_v26  ;;  %v2627_v33 = vsel %vm2595_vm3, %v2565_v22, %v2611_v8  ;;  %v2616_v26 = vmul.f32 0.2, %v2579_v1  ;;  %v11807_v22 = vsel %vm2856_vm4, %v2815_v56, %v2872_v27  ;;  %v11810_v8 = vsel %vm2857_vm5, %v2819_v13, %v2873_v17  ;;  %v13693_v56 = vld [vmem:[#allocation96_spill] sm:$0xff] }
 0x2ca   :  { %5269 = vmatprep.mubr.f32.mxu1 %v11639_v48  ;;  %8635 = vmatpush3.bf16.msra.mxu1 %v13686_v10  ;;  %v11796_v3 = vpop.f32.mrb[110].mxu0  ;;  %v6660_v59 = vpop.f32.mrb[96].mxu1  ;;  %v2630_v48 = vsel %vm2598_vm0, %v2573_v5, %v2614_v46  ;;  %v2875_v21 = vmul.f32 0.2, %v11783_v23  ;;  %v2615_v13 = vmul.f32 0.2, %v11792_v0  ;;  %v11832_v46 = vadd.f32 %v13693_v56, %v10501_v40 }
 0x2cb   :  { %13687 = vst [vmem:[#allocation23_spill] sm:$0xff] %v11796_v3  ;;  %v11801_v7 = vpop.f32.mrb[111].mxu0  ;;  %v6661_v39 = vpop.f32.mrb[97].mxu1  ;;  %5370 = vmatmul.mubr.f32.gmra.mrb[216].mxu0 %v2627_v33  ;;  %8637 = vmatprep.subr.bf16.mxu1 %v13690_v53  ;;  %v13691_v33 = vld [vmem:[#allocation60_spill] sm:$0xff]  ;;  %vm2859_vm10 = vcmp.ge.f32.partialorder %v11783_v23, 0.0  ;;  %vm2599_vm11 = vcmp.ge.f32.partialorder %v11792_v0, 0.0 }
 0x2cc   :  { %13689 = vst [vmem:[#allocation17_spill] sm:$0xff] %v11801_v7  ;;  %v6662_v4 = vadd.f32 %v6661_v39, %v6660_v59  ;;  %8667 = vmatpush3.bf16.msra.mxu0 %v10319_v41  ;;  %5374 = vmatprep.mubr.f32.mxu0 %v2630_v48  ;;  %v2827_v3 = vadd.f32 %v13691_v33, %v10509_v60  ;;  %v13692_v7 = vld [vmem:[#allocation75_spill] sm:$0xff]  ;;  %vm2602_vm12 = vcmp.ge.f32.partialorder %v2585_v24, 0.0  ;;  %vm2601_vm14 = vcmp.ge.f32.partialorder %v11832_v46, 0.0 }
 0x2cd   :  { %v11817_v5 = vadd.f32 %v13692_v7, %v10501_v40  ;;  %v11822_v41 = vld [vmem:[%s13178_s4] ss:$0 sm:$0xff]  ;;  %5270 = vmatmul.mubr.f32.gmra.mrb[202].mxu1 %v11654_v19  ;;  %8669 = vmatprep.subr.bf16.mxu0 %v10334_v52  ;;  %v11827_v39 = vsel %vm2858_vm6, %v2821_v58, %v2874_v32  ;;  %v13694_v7 = vld [vmem:[#allocation106_spill] sm:$0xff]  ;;  %v2629_v59 = vsel %vm2597_vm8, %v2571_v20, %v2613_v37  ;;  %v2618_v58 = vmul.f32 0.2, %v2585_v24 }
 0x2ce   :  { %5274 = vmatprep.mubr.f32.mxu1 %v11663_v34  ;;  %8639 = vmatpush3.bf16.msra.mxu1 %v13694_v7  ;;  %v6663_v27 = vpop.f32.mrb[98].mxu1  ;;  %v6716_v17 = vpop.f32.mrb[112].mxu0  ;;  %v13695_v52 = vld [vmem:[#allocation71_spill] sm:$0xff]  ;;  %v2632_v34 = vsel %vm2600_vm9, %v2579_v1, %v2616_v26  ;;  %v3667_v56 = vadd.f32 %v6662_v4, %v11822_v41  ;;  %v2876_v37 = vmul.f32 0.2, %v2827_v3  ;;  %vm2860_vm13 = vcmp.ge.f32.partialorder %v2827_v3, 0.0 }
 0x2cf   :  { %v11840_v19 = vadd.f32 %v13695_v52, %v10509_v60  ;;  %v6664_v32 = vpop.f32.mrb[99].mxu1  ;;  %v6717_v48 = vpop.f32.mrb[113].mxu0  ;;  %5375 = vmatmul.mubr.f32.gmra.mrb[218].mxu0 %v2629_v59  ;;  %v13696_v33 = vld [vmem:[#allocation107_spill] sm:$0xff]  ;;  %v2877_v52 = vmul.f32 0.2, %v11817_v5  ;;  %v11850_v59 = vadd.f32 %v13697_v11, %v10501_v40  ;;  %v13698_v4 = vld [vmem:[#allocation81_spill] sm:$0xff] }
 0x2d0   :  { %8641 = vmatprep.subr.bf16.mxu1 %v13696_v33  ;;  %v6665_v18 = vadd.f32 %v6664_v32, %v6663_v27  ;;  %v6718_v20 = vadd.f32 %v6717_v48, %v6716_v17  ;;  %8671 = vmatpush3.bf16.msra.mxu0 %v13413_v35  ;;  %v11856_v1 = vadd.f32 %v13698_v4, %v10509_v60  ;;  %v2617_v35 = vmul.f32 0.2, %v11832_v46  ;;  %v13699_v48 = vld [vmem:[#allocation111_spill] sm:$0xff] }
 0x2d1   :  { %5379 = vmatprep.mubr.f32.mxu0 %v2632_v34  ;;  %5275 = vmatmul.mubr.f32.gmra.mrb[204].mxu1 %v11674_v36  ;;  %v2631_v36 = vsel %vm2599_vm11, %v11792_v0, %v2615_v13  ;;  %v2634_v34 = vsel %vm2602_vm12, %v2585_v24, %v2618_v58  ;;  %vm2861_vm15 = vcmp.ge.f32.partialorder %v11817_v5, 0.0  ;;  %vm2862_vm1 = vcmp.ge.f32.partialorder %v11840_v19, 0.0 }
 0x2d2   :  { %8673 = vmatprep.subr.bf16.mxu0 %v13415_v12  ;;  %v11859_v26 = vadd.f32 %v6718_v20, %v3667_v56  ;;  %5279 = vmatprep.mubr.f32.mxu1 %v11683_v38  ;;  %v6666_v27 = vpop.f32.mrb[100].mxu1  ;;  %v6719_v11 = vpop.f32.mrb[114].mxu0  ;;  %v2878_v12 = vmul.f32 0.2, %v11840_v19  ;;  %v3672_v38 = vadd.f32 %v6665_v18, %v11822_v41  ;;  %v2879_v0 = vmul.f32 0.2, %v11850_v59 }
 0x2d3   :  { %8643 = vmatpush3.bf16.msra.mxu1 %v13560_v2  ;;  %v6667_v17 = vpop.f32.mrb[101].mxu1  ;;  %v6720_v32 = vpop.f32.mrb[115].mxu0  ;;  %5380 = vmatmul.mubr.f32.gmra.mrb[220].mxu0 %v2631_v36  ;;  %v11878_v24 = vsel %vm2860_vm13, %v2827_v3, %v2876_v37  ;;  %v11883_v18 = vsel %vm2859_vm10, %v11783_v23, %v2875_v21  ;;  %vm2863_vm2 = vcmp.ge.f32.partialorder %v11850_v59, 0.0  ;;  %v13700_v3 = vld [vmem:[#allocation84_spill] sm:$0xff]  ;;  %v13701_v21 = vld [vmem:[#allocation57_spill] sm:$0xff]  ;;  %v2633_v4 = vsel %vm2601_vm14, %v11832_v46, %v2617_v35 }
 0x2d4   :  { %8645 = vmatprep.subr.bf16.mxu1 %v13699_v48  ;;  %v6668_v56 = vadd.f32 %v6667_v17, %v6666_v27  ;;  %v6721_v20 = vadd.f32 %v6720_v32, %v6719_v11  ;;  %8675 = vmatpush3.bf16.msra.mxu0 %v13420_v54  ;;  %v11889_v54 = vld [vmem:[%s13179_s5 + $0x80] sm:$0xff]  ;;  %v11899_v13 = vadd.f32 %v13700_v3, %v10501_v40  ;;  %v11916_v11 = vld [vmem:[%s13179_s5 + $0x8] sm:$0xff]  ;;  %vm2864_vm3 = vcmp.ge.f32.partialorder %v11856_v1, 0.0  ;;  %v11942_v3 = vld [vmem:[%s13179_s5 + $0x98] sm:$0xff] }
 0x2d5   :  { %5384 = vmatprep.mubr.f32.mxu0 %v2634_v34  ;;  %5280 = vmatmul.mubr.f32.gmra.mrb[206].mxu1 %v11694_v44  ;;  %v11894_v44 = vld [vmem:[%s13179_s5 + $0x88] sm:$0xff]  ;;  %v11911_v27 = vld [vmem:[%s13179_s5] sm:$0xff]  ;;  %13703 = vst [vmem:[#allocation19_spill] sm:$0xff] %v11916_v11  ;;  %v11926_v46 = vsel %vm2862_vm1, %v11840_v19, %v2878_v12  ;;  %v11931_v35 = vsel %vm2861_vm15, %v11817_v5, %v2877_v52  ;;  %13707 = vst [vmem:[#allocation25_spill] sm:$0xff] %v11942_v3 }
 0x2d6   :  { %8677 = vmatprep.subr.bf16.mxu0 %v10420_v47  ;;  %v2880_v47 = vmul.f32 0.2, %v11856_v1  ;;  %v11901_v23 = vadd.f32 %v6721_v20, %v3672_v38  ;;  %5454 = vmatprep.mubr.f32.mxu1 %v11765_v49  ;;  %v6669_v58 = vpop.f32.mrb[102].mxu1  ;;  %v6722_v37 = vpop.f32.mrb[116].mxu0  ;;  %13702 = vst [vmem:[#allocation62_spill] sm:$0xff] %v11911_v27  ;;  %v13704_v36 = vld [vmem:[#allocation97_spill] sm:$0xff]  ;;  %v3677_v19 = vadd.f32 %v6668_v56, %v11822_v41 }
 0x2d7   :  { %8647 = vmatpush3.bf16.msra.mxu1 %v13701_v21  ;;  %v11920_v17 = vadd.f32 %v13704_v36, %v10509_v60  ;;  %v6670_v32 = vpop.f32.mrb[103].mxu1  ;;  %v6723_v34 = vpop.f32.mrb[117].mxu0  ;;  %5385 = vmatmul.mubr.f32.gmra.mrb[222].mxu0 %v2633_v4  ;;  %v13705_v38 = vld [vmem:[#allocation20_spill] sm:$0xff]  ;;  %v11937_v20 = vld [vmem:[%s13179_s5 + $0x90] sm:$0xff]  ;;  %v11955_v52 = vld [vmem:[%s13179_s5 + $0x18] sm:$0xff]  ;;  %vm2865_vm0 = vcmp.ge.f32.partialorder %v11899_v13, 0.0 }
 0x2d8   :  { %8681 = vmatprep.subr.bf16.mxu1 %v13705_v38  ;;  %13706 = vst [vmem:[#allocation58_spill] sm:$0xff] %v11937_v20  ;;  %v6671_v12 = vadd.f32 %v6670_v32, %v6669_v58  ;;  %v6724_v4 = vadd.f32 %v6723_v34, %v6722_v37  ;;  %8679 = vmatpush3.bf16.msra.mxu0 %v13426_v28  ;;  %v11950_v5 = vld [vmem:[%s13179_s5 + $0x10] sm:$0xff]  ;;  %13709 = vst [vmem:[#allocation22_spill] sm:$0xff] %v11955_v52  ;;  %v11971_v58 = vld [vmem:[%s13179_s5 + $0xa0] sm:$0xff]  ;;  %v2881_v37 = vmul.f32 0.2, %v11899_v13 }
 0x2d9   :  { %5639 = vmatprep.mubr.f32.mxu0 %v11765_v49  ;;  %13708 = vst [vmem:[#allocation64_spill] sm:$0xff] %v11950_v5  ;;  %8713 = vmatprep.subr.bf16.mxu0 %v13428_v6  ;;  %v11962_v28 = vsel %vm2863_vm2, %v11850_v59, %v2879_v0  ;;  %13710 = vst [vmem:[#allocation29_spill] sm:$0xff] %v11971_v58  ;;  %v11976_v6 = vld [vmem:[%s13179_s5 + $0xa8] sm:$0xff]  ;;  %v11986_v34 = vsel %vm2864_vm3, %v11856_v1, %v2880_v47  ;;  %v11993_v56 = vld [vmem:[%s13179_s5 + $0x20] sm:$0xff]  ;;  %vm2866_vm4 = vcmp.ge.f32.partialorder %v11920_v17, 0.0 }
 0x2da   :  { %5455 = vmatmul.mubr.f32.vlgmr.msra.gmra.mrb[208].mxu1 %v11758_v43  ;;  %13711 = vst [vmem:[#allocation27_spill] sm:$0xff] %v11976_v6  ;;  %v11979_v59 = vadd.f32 %v6724_v4, %v3677_v19  ;;  %v13712_v0 = vld [vmem:[#allocation40_spill] sm:$0xff]  ;;  %v6672_v36 = vpop.f32.mrb[104].mxu1  ;;  %v6725_v32 = vpop.f32.mrb[118].mxu0  ;;  %13713 = vst [vmem:[#allocation69_spill] sm:$0xff] %v11993_v56  ;;  %v13716_v38 = vld [vmem:[#allocation41_spill] sm:$0xff]  ;;  %v3682_v3 = vadd.f32 %v6671_v12, %v11822_v41 }
 0x2db   :  { %5459 = vmatprep.mubr.f32.mxu1 %v11807_v22  ;;  %8683 = vmatpush3.bf16.msra.mxu1 %v13712_v0  ;;  %v11998_v19 = vld [vmem:[%s13179_s5 + $0x28] sm:$0xff]  ;;  %v2882_v4 = vmul.f32 0.2, %v11920_v17  ;;  %v6673_v1 = vpop.f32.mrb[105].mxu1  ;;  %v6726_v47 = vpop.f32.mrb[119].mxu0  ;;  %v12068_v56 = vld [vmem:[%s13179_s5 + $0x38] sm:$0xff] }
 0x2dc   :  { %13714 = vst [vmem:[#allocation24_spill] sm:$0xff] %v11998_v19  ;;  %v13715_v0 = vld [vmem:[#allocation105_spill] sm:$0xff]  ;;  %5640 = vmatmul.mubr.f32.vlgmr.msra.gmra.mrb[224].mxu0 %v11758_v43  ;;  %8685 = vmatprep.subr.bf16.mxu1 %v13716_v38  ;;  %v6674_v27 = vadd.f32 %v6673_v1, %v6672_v36  ;;  %v6727_v11 = vadd.f32 %v6726_v47, %v6725_v32  ;;  %v12022_v38 = vld [vmem:[%s13179_s5 + $0xb8] sm:$0xff]  ;;  %v13719_v12 = vld [vmem:[#allocation104_spill] sm:$0xff] }
 0x2dd   :  { %v12003_v49 = vadd.f32 %v13715_v0, %v10501_v40  ;;  %8715 = vmatpush3.bf16.msra.mxu0 %v13656_v55  ;;  %5644 = vmatprep.mubr.f32.mxu0 %v11807_v22  ;;  %v12017_v43 = vld [vmem:[%s13179_s5 + $0xb0] sm:$0xff]  ;;  %13718 = vst [vmem:[#allocation31_spill] sm:$0xff] %v12022_v38  ;;  %v12026_v36 = vadd.f32 %v13719_v12, %v10509_v60  ;;  %v13721_v47 = vld [vmem:[#allocation44_spill] sm:$0xff]  ;;  %13725 = vst [vmem:[#allocation26_spill] sm:$0xff] %v12068_v56 }
 0x2de   :  { %13717 = vst [vmem:[#allocation67_spill] sm:$0xff] %v12017_v43  ;;  %5460 = vmatmul.mubr.f32.gmra.mrb[210].mxu1 %v11788_v15  ;;  %8717 = vmatprep.subr.bf16.mxu0 %v13660_v57  ;;  %v13720_v32 = vld [vmem:[#allocation9_spill] sm:$0xff]  ;;  %v12038_v1 = vadd.f32 %v6727_v11, %v3682_v3  ;;  %v6675_v12 = vpop.f32.mrb[106].mxu1  ;;  %v6728_v20 = vpop.f32.mrb[120].mxu0  ;;  %v12045_v57 = vsel %vm2865_vm0, %v11899_v13, %v2881_v37  ;;  %v12087_v43 = vld [vmem:[%s13179_s5 + $0x40] sm:$0xff]  ;;  %v12120_v6 = vld [vmem:[%s13179_s5 + $0xd8] sm:$0xff] }
 0x2df   :  { %v12036_v0 = vadd.f32 %v13720_v32, %v10501_v40  ;;  %5464 = vmatprep.mubr.f32.mxu1 %v11827_v39  ;;  %8687 = vmatpush3.bf16.msra.mxu1 %v13721_v47  ;;  %v12050_v22 = vld [vmem:[%s13179_s5 + $0x30] sm:$0xff]  ;;  %v13723_v32 = vld [vmem:[#allocation112_spill] sm:$0xff]  ;;  %v6676_v3 = vpop.f32.mrb[107].mxu1  ;;  %v6729_v55 = vpop.f32.mrb[121].mxu0  ;;  %v12061_v13 = vsel %vm2866_vm4, %v11920_v17, %v2882_v4  ;;  %v2883_v17 = vmul.f32 0.2, %v12003_v49  ;;  %v3687_v4 = vadd.f32 %v6674_v27, %v11822_v41 }
 0x2e0   :  { %13722 = vst [vmem:[#allocation33_spill] sm:$0xff] %v12050_v22  ;;  %v12054_v11 = vadd.f32 %v13723_v32, %v10509_v60  ;;  %5645 = vmatmul.mubr.f32.gmra.mrb[226].mxu0 %v11788_v15  ;;  %v13724_v47 = vld [vmem:[#allocation45_spill] sm:$0xff]  ;;  %v12073_v32 = vld [vmem:[%s13179_s5 + $0xc0] sm:$0xff]  ;;  %v6730_v37 = vadd.f32 %v6729_v55, %v6728_v20  ;;  %v2884_v19 = vmul.f32 0.2, %v12026_v36  ;;  %vm2868_vm5 = vcmp.ge.f32.partialorder %v12026_v36, 0.0 }
 0x2e1   :  { %8689 = vmatprep.subr.bf16.mxu1 %v13724_v47  ;;  %13726 = vst [vmem:[#allocation73_spill] sm:$0xff] %v12073_v32  ;;  %v12078_v15 = vld [vmem:[%s13179_s5 + $0xc8] sm:$0xff]  ;;  %v6677_v47 = vadd.f32 %v6676_v3, %v6675_v12  ;;  %8719 = vmatpush3.bf16.msra.mxu0 %v13664_v14  ;;  %v13728_v27 = vld [vmem:[#allocation63_spill] sm:$0xff]  ;;  %vm2867_vm6 = vcmp.ge.f32.partialorder %v12003_v49, 0.0  ;;  %v12106_v14 = vld [vmem:[%s13179_s5 + $0xd0] sm:$0xff]  ;;  %vm3119_vm8 = vcmp.ge.f32.partialorder %v12036_v0, 0.0 }
 0x2e2   :  { %13727 = vst [vmem:[#allocation28_spill] sm:$0xff] %v12078_v15  ;;  %5649 = vmatprep.mubr.f32.mxu0 %v11827_v39  ;;  %v12092_v38 = vld [vmem:[%s13179_s5 + $0x48] sm:$0xff]  ;;  %v12097_v12 = vadd.f32 %v13728_v27, %v10501_v40  ;;  %5465 = vmatmul.mubr.f32.gmra.mrb[212].mxu1 %v11810_v8  ;;  %v3135_v39 = vmul.f32 0.2, %v12036_v0  ;;  %v12109_v20 = vadd.f32 %v6730_v37, %v3687_v4  ;;  %v6678_v3 = vpop.f32.mrb[108].mxu1  ;;  %v6731_v27 = vpop.f32.mrb[122].mxu0 }
 0x2e3   :  { %8721 = vmatprep.subr.bf16.mxu0 %v13668_v62  ;;  %5469 = vmatprep.mubr.f32.mxu1 %v11878_v24  ;;  %v13730_v55 = vld [vmem:[#allocation48_spill] sm:$0xff]  ;;  %v12125_v37 = vld [vmem:[%s13179_s5 + $0x50] sm:$0xff]  ;;  %v3136_v4 = vmul.f32 0.2, %v12054_v11  ;;  %v6679_v22 = vpop.f32.mrb[109].mxu1  ;;  %v6732_v58 = vpop.f32.mrb[123].mxu0 }
 0x2e4   :  { %13729 = vst [vmem:[#allocation37_spill] sm:$0xff] %v12109_v20  ;;  %8691 = vmatpush3.bf16.msra.mxu1 %v13730_v55  ;;  %13731 = vst [vmem:[#allocation30_spill] sm:$0xff] %v12125_v37  ;;  %v13732_v55 = vld [vmem:[#allocation79_spill] sm:$0xff]  ;;  %5650 = vmatmul.mubr.f32.gmra.mrb[228].mxu0 %v11810_v8  ;;  %v13733_v32 = vld [vmem:[#allocation49_spill] sm:$0xff]  ;;  %v3692_v20 = vadd.f32 %v6677_v47, %v11822_v41  ;;  %v6680_v5 = vadd.f32 %v6679_v22, %v6678_v3  ;;  %vm3120_vm9 = vcmp.ge.f32.partialorder %v12054_v11, 0.0 }
 0x2e5   :  { %v12131_v62 = vadd.f32 %v13732_v55, %v10509_v60  ;;  %8693 = vmatprep.subr.bf16.mxu1 %v13733_v32  ;;  %v12140_v56 = vld [vmem:[%s13179_s5 + $0x58] sm:$0xff]  ;;  %v6733_v52 = vadd.f32 %v6732_v58, %v6731_v27  ;;  %8723 = vmatpush3.bf16.msra.mxu0 %v13535_v16  ;;  %v3401_v8 = vmul.f32 0.2, %v12097_v12  ;;  %v12152_v32 = vsel %vm2868_vm5, %v12026_v36, %v2884_v19  ;;  %v13737_v22 = vld [vmem:[#allocation53_spill] sm:$0xff] }
 0x2e6   :  { %5654 = vmatprep.mubr.f32.mxu0 %v11878_v24  ;;  %5470 = vmatmul.mubr.f32.gmra.mrb[214].mxu1 %v11883_v18  ;;  %v12157_v58 = vsel %vm2867_vm6, %v12003_v49, %v2883_v17  ;;  %v12164_v24 = vld [vmem:[%s13179_s5 + $0xe0] sm:$0xff]  ;;  %vm3385_vm10 = vcmp.ge.f32.partialorder %v12097_v12, 0.0  ;;  %v6681_v49 = vpop.f32.mrb[110].mxu1  ;;  %v6734_v36 = vpop.f32.mrb[124].mxu0  ;;  %v12181_v17 = vld [vmem:[%s13179_s5 + $0xe8] sm:$0xff]  ;;  %v12207_v16 = vsel %vm3120_vm9, %v12054_v11, %v3136_v4  ;;  %v3697_v15 = vadd.f32 %v6680_v5, %v11822_v41  ;;  %v12221_v11 = vld [vmem:[%s13179_s5 + $0xf8] sm:$0xff] }
 0x2e7   :  { %8725 = vmatprep.subr.bf16.mxu0 %v13674_v61  ;;  %v12169_v61 = vsel %vm3119_vm8, %v12036_v0, %v3135_v39  ;;  %v12172_v19 = vadd.f32 %v6733_v52, %v3692_v20  ;;  %5474 = vmatprep.mubr.f32.mxu1 %v11926_v46  ;;  %v12186_v0 = vld [vmem:[%s13179_s5 + $0x60] sm:$0xff]  ;;  %v12191_v52 = vld [vmem:[%s13179_s5 + $0x68] sm:$0xff]  ;;  %v13736_v20 = vld [vmem:[#allocation78_spill] sm:$0xff]  ;;  %v6682_v27 = vpop.f32.mrb[111].mxu1  ;;  %v6735_v55 = vpop.f32.mrb[125].mxu0  ;;  %vm3386_vm11 = vcmp.ge.f32.partialorder %v12131_v62, 0.0  ;;  %v12226_v5 = vsel %vm3385_vm10, %v12097_v12, %v3401_v8 }
 0x2e8   :  { %8695 = vmatpush3.bf16.msra.mxu1 %v13590_v29  ;;  %13734 = vst [vmem:[#allocation16_spill] sm:$0xff] %v12186_v0  ;;  %v3402_v29 = vmul.f32 0.2, %v12131_v62  ;;  %v13735_v47 = vld [vmem:[#allocation11_spill] sm:$0xff]  ;;  %v12200_v3 = vadd.f32 %v13736_v20, %v10509_v60  ;;  %5655 = vmatmul.mubr.f32.gmra.mrb[230].mxu0 %v11883_v18  ;;  %v6683_v37 = vadd.f32 %v6682_v27, %v6681_v49  ;;  %v12216_v18 = vld [vmem:[%s13179_s5 + $0xf0] sm:$0xff] }
 0x2e9   :  { %v12196_v39 = vadd.f32 %v13735_v47, %v10501_v40  ;;  %8697 = vmatprep.subr.bf16.mxu1 %v13737_v22  ;;  %v6736_v47 = vadd.f32 %v6735_v55, %v6734_v36  ;;  %8727 = vmatpush3.bf16.msra.mxu0 %v13679_v51  ;;  %v13738_v4 = vld [vmem:[#allocation83_spill] sm:$0xff]  ;;  %v13739_v36 = vld [vmem:[#allocation110_spill] sm:$0xff] }
 0x2ea   :  { %5659 = vmatprep.mubr.f32.mxu0 %v11926_v46  ;;  %5475 = vmatmul.mubr.f32.gmra.mrb[216].mxu1 %v11931_v35  ;;  %v12236_v49 = vadd.f32 %v13738_v4, %v10501_v40  ;;  %v3347_v22 = vadd.f32 %v13739_v36, %v10509_v60  ;;  %v12247_v12 = vld [vmem:[%s13179_s5 + $0x70] sm:$0xff]  ;;  %v12252_v8 = vld [vmem:[%s13179_s5 + $0x78] sm:$0xff]  ;;  %v3138_v4 = vmul.f32 0.2, %v12200_v3  ;;  %vm3122_vm13 = vcmp.ge.f32.partialorder %v12200_v3, 0.0 }
 0x2eb   :  { %8729 = vmatprep.subr.bf16.mxu0 %v13683_v9  ;;  %v12240_v20 = vadd.f32 %v6736_v47, %v3697_v15  ;;  %5479 = vmatprep.mubr.f32.mxu1 %v11986_v34  ;;  %v6737_v9 = vpop.f32.mrb[126].mxu0  ;;  %v3137_v27 = vmul.f32 0.2, %v12196_v39  ;;  %v6772_v55 = vpop.f32.mrb[112].mxu1  ;;  %vm3121_vm12 = vcmp.ge.f32.partialorder %v12196_v39, 0.0  ;;  %v13740_v36 = vld [vmem:[#allocation82_spill] sm:$0xff] }
 0x2ec   :  { %8699 = vmatpush3.bf16.msra.mxu1 %v13595_v42  ;;  %v6738_v15 = vpop.f32.mrb[127].mxu0  ;;  %5660 = vmatmul.mubr.f32.gmra.mrb[232].mxu0 %v11931_v35  ;;  %v12260_v42 = vsel %vm3386_vm11, %v12131_v62, %v3402_v29  ;;  %v12268_v46 = vadd.f32 %v13740_v36, %v10501_v40  ;;  %v3702_v35 = vadd.f32 %v6683_v37, %v11822_v41  ;;  %v13741_v62 = vld [vmem:[#allocation87_spill] sm:$0xff]  ;;  %vm3388_vm14 = vcmp.ge.f32.partialorder %v3347_v22, 0.0 }
 0x2ed   :  { %8701 = vmatprep.subr.bf16.mxu1 %v13458_v30  ;;  %v6739_v51 = vadd.f32 %v6738_v15, %v6737_v9  ;;  %v6773_v30 = vpop.f32.mrb[113].mxu1  ;;  %8731 = vmatpush3.bf16.msra.mxu0 %v13686_v10  ;;  %v12275_v29 = vadd.f32 %v13741_v62, %v10509_v60  ;;  %v3403_v9 = vmul.f32 0.2, %v12236_v49  ;;  %v3404_v15 = vmul.f32 0.2, %v3347_v22  ;;  %v13742_v10 = vld [vmem:[#allocation86_spill] sm:$0xff] }
 0x2ee   :  { %5664 = vmatprep.mubr.f32.mxu0 %v11986_v34  ;;  %v6774_v0 = vadd.f32 %v6773_v30, %v6772_v55  ;;  %5480 = vmatmul.mubr.f32.gmra.mrb[218].mxu1 %v11962_v28  ;;  %v12285_v34 = vadd.f32 %v13742_v10, %v10501_v40  ;;  %v6828_v55 = vpop.f32.mrb[128].mxu0  ;;  %vm3387_vm15 = vcmp.ge.f32.partialorder %v12236_v49, 0.0  ;;  %vm3123_vm1 = vcmp.ge.f32.partialorder %v12268_v46, 0.0 }
 0x2ef   :  { %8733 = vmatprep.subr.bf16.mxu0 %v13690_v53  ;;  %v12287_v36 = vadd.f32 %v6739_v51, %v3702_v35  ;;  %5484 = vmatprep.mubr.f32.mxu1 %v12061_v13  ;;  %v13743_v53 = vld [vmem:[#allocation93_spill] sm:$0xff]  ;;  %v6775_v37 = vpop.f32.mrb[114].mxu1  ;;  %v6829_v47 = vpop.f32.mrb[129].mxu0  ;;  %v3139_v51 = vmul.f32 0.2, %v12268_v46  ;;  %vm3124_vm2 = vcmp.ge.f32.partialorder %v12275_v29, 0.0 }
 0x2f0   :  { %8703 = vmatpush3.bf16.msra.mxu1 %v13461_v45  ;;  %v12293_v30 = vadd.f32 %v13743_v53, %v10509_v60  ;;  %v12296_v62 = vadd.f32 %v6774_v0, %v11859_v26  ;;  %5665 = vmatmul.mubr.f32.gmra.mrb[234].mxu0 %v11962_v28  ;;  %v13744_v45 = vld [vmem:[#allocation92_spill] sm:$0xff]  ;;  %v6776_v10 = vpop.f32.mrb[115].mxu1  ;;  %v12306_v53 = vadd.f32 %v6829_v47, %v6828_v55  ;;  %v3140_v26 = vmul.f32 0.2, %v12275_v29 }
 0x2f1   :  { %8705 = vmatprep.subr.bf16.mxu1 %v13465_v50  ;;  %v12304_v35 = vadd.f32 %v13744_v45, %v10501_v40  ;;  %8735 = vmatpush3.bf16.msra.mxu0 %v13694_v7  ;;  %v12313_v50 = vsel %vm3121_vm12, %v12196_v39, %v3137_v27  ;;  %v6777_v28 = vadd.f32 %v6776_v10, %v6775_v37  ;;  %v3405_v7 = vmul.f32 0.2, %v12285_v34  ;;  %v5970_v47 = vld [vmem:[%s13179_s5 + $0x180] sm:$0xff]  ;;  %v13747_v10 = vld [vmem:[#allocation109_spill] sm:$0xff] }
 0x2f2   :  { %5669 = vmatprep.mubr.f32.mxu0 %v12061_v13  ;;  %5485 = vmatmul.mubr.f32.gmra.mrb[220].mxu1 %v12045_v57  ;;  %v12321_v0 = vsel %vm3122_vm13, %v12200_v3, %v3138_v4  ;;  %v13745_v13 = vld [vmem:[#allocation101_spill] sm:$0xff]  ;;  %v6831_v27 = vpop.f32.mrb[130].mxu0  ;;  %v12337_v3 = vsel %vm3387_vm15, %v12236_v49, %v3403_v9  ;;  %v3406_v37 = vmul.f32 0.2, %v12293_v30  ;;  %vm3389_vm3 = vcmp.ge.f32.partialorder %v12285_v34, 0.0 }
 0x2f3   :  { %8737 = vmatprep.subr.bf16.mxu0 %v13696_v33  ;;  %v12327_v39 = vadd.f32 %v13745_v13, %v10509_v60  ;;  %5489 = vmatprep.mubr.f32.mxu1 %v12152_v32  ;;  %v12332_v33 = vsel %vm3388_vm14, %v3347_v22, %v3404_v15  ;;  %v5971_v4 = vld [vmem:[%s13179_s5 + $0x188] sm:$0xff]  ;;  %v6778_v22 = vpop.f32.mrb[116].mxu1  ;;  %v6832_v15 = vpop.f32.mrb[131].mxu0  ;;  %v3141_v49 = vmul.f32 0.2, %v12304_v35  ;;  %vm3390_vm0 = vcmp.ge.f32.partialorder %v12293_v30, 0.0 }
 0x2f4   :  { %8707 = vmatpush3.bf16.msra.mxu1 %v13470_v31  ;;  %v12347_v31 = vadd.f32 %v6777_v28, %v11901_v23  ;;  %5670 = vmatmul.mubr.f32.gmra.mrb[236].mxu0 %v12045_v57  ;;  %v6779_v9 = vpop.f32.mrb[117].mxu1  ;;  %v12354_v55 = vadd.f32 %v6832_v15, %v6831_v27  ;;  %v12361_v23 = vsel %vm3123_vm1, %v12268_v46, %v3139_v51  ;;  %vm3125_vm4 = vcmp.ge.f32.partialorder %v12304_v35, 0.0  ;;  %v5955_v46 = vld [vmem:[%s13179_s5 + $0x108] sm:$0xff] }
 0x2f5   :  { %8709 = vmatprep.subr.bf16.mxu1 %v13473_v63  ;;  %8739 = vmatpush3.bf16.msra.mxu0 %v13560_v2  ;;  %v13746_v63 = vld [vmem:[#allocation100_spill] sm:$0xff]  ;;  %v6780_v45 = vadd.f32 %v6779_v9, %v6778_v22  ;;  %v8776_v2 = vpack.c.bf16 %v5971_v4, %v5970_v47  ;;  %v3142_v51 = vmul.f32 0.2, %v12327_v39  ;;  %v12380_v28 = vadd.f32 %v13747_v10, %v10509_v60  ;;  %v5972_v47 = vld [vmem:[%s13179_s5 + $0x190] sm:$0xff] }
 0x2f6   :  { %5674 = vmatprep.mubr.f32.mxu0 %v12152_v32  ;;  %v12366_v57 = vadd.f32 %v13746_v63, %v10501_v40  ;;  %5490 = vmatmul.mubr.f32.gmra.mrb[222].mxu1 %v12157_v58  ;;  %v5954_v32 = vld [vmem:[%s13179_s5 + $0x100] sm:$0xff]  ;;  %v3156_v13 = vsel %vm3124_vm2, %v12275_v29, %v3140_v26  ;;  %v12390_v27 = vsel %vm3389_vm3, %v12285_v34, %v3405_v7  ;;  %vm3126_vm5 = vcmp.ge.f32.partialorder %v12327_v39, 0.0 }
 0x2f7   :  { %8741 = vmatprep.subr.bf16.mxu0 %v13699_v48  ;;  %5744 = vmatprep.mubr.f32.mxu1 %v12207_v16  ;;  %v6834_v48 = vpop.f32.mrb[132].mxu0  ;;  %v13748_v16 = vld [vmem:[#allocation108_spill] sm:$0xff]  ;;  %v12403_v22 = vadd.f32 %v6780_v45, %v11979_v59  ;;  %v6781_v29 = vpop.f32.mrb[118].mxu1  ;;  %v13749_v34 = vpack.c.bf16 %v11894_v44, %v11889_v54  ;;  %v12413_v7 = vsel %vm3390_vm0, %v12293_v30, %v3406_v37  ;;  %vm3392_vm8 = vcmp.ge.f32.partialorder %v12380_v28, 0.0 }
 0x2f8   :  { %8711 = vmatpush3.bf16.msra.mxu1 %v13479_v25  ;;  %v5973_v25 = vld [vmem:[%s13179_s5 + $0x198] sm:$0xff]  ;;  %v12400_v4 = vadd.f32 %v13748_v16, %v10501_v40  ;;  %v6835_v26 = vpop.f32.mrb[133].mxu0  ;;  %5675 = vmatmul.mubr.f32.gmra.mrb[238].mxu0 %v12157_v58  ;;  %v6782_v15 = vpop.f32.mrb[119].mxu1  ;;  %v12422_v59 = vsel %vm3125_vm4, %v12304_v35, %v3141_v49  ;;  %v8778_v54 = vpack.c.bf16 %v5955_v46, %v5954_v32  ;;  %v3407_v44 = vmul.f32 0.2, %v12366_v57  ;;  %v13750_v58 = vld [vmem:[#allocation8_spill] sm:$0xff] }
 0x2f9   :  { %8745 = vmatprep.subr.bf16.mxu1 %v13749_v34  ;;  %v12415_v9 = vadd.f32 %v6835_v26, %v6834_v48  ;;  %8743 = vmatpush3.bf16.msra.mxu0 %v13701_v21  ;;  %v12427_v63 = vadd.f32 %v13750_v58, %v10509_v60  ;;  %v6783_v30 = vadd.f32 %v6782_v15, %v6781_v29  ;;  %v5956_v21 = vld [vmem:[%s13179_s5 + $0x110] sm:$0xff]  ;;  %v3408_v35 = vmul.f32 0.2, %v12380_v28  ;;  %v13751_v49 = vld [vmem:[#allocation52_spill] sm:$0xff]  ;;  %v13752_v32 = vld [vmem:[#allocation19_spill] sm:$0xff] }
 0x2fa   :  { %5849 = vmatprep.mubr.f32.mxu0 %v12260_v42  ;;  %8777 = vmatprep.subr.bf16.mxu0 %v8776_v2  ;;  %v8780_v37 = vpack.c.bf16 %v5973_v25, %v5972_v47  ;;  %v5957_v42 = vld [vmem:[%s13179_s5 + $0x118] sm:$0xff]  ;;  %v12439_v45 = vadd.f32 %v13751_v49, %v10501_v40  ;;  %v6837_v46 = vpop.f32.mrb[134].mxu0  ;;  %v3158_v10 = vsel %vm3126_vm5, %v12327_v39, %v3142_v51  ;;  %vm3391_vm6 = vcmp.ge.f32.partialorder %v12366_v57, 0.0  ;;  %v5974_v48 = vld [vmem:[%s13179_s5 + $0x1a0] sm:$0xff]  ;;  %v5975_v47 = vld [vmem:[%s13179_s5 + $0x1a8] sm:$0xff] }
 0x2fb   :  { %5745 = vmatmul.mubr.f32.vlgmr.msra.gmra.mrb[224].mxu1 %v12169_v61  ;;  %v13753_v61 = vld [vmem:[#allocation62_spill] sm:$0xff]  ;;  %v13755_v25 = vld [vmem:[#allocation59_spill] sm:$0xff]  ;;  %v12461_v29 = vadd.f32 %v6783_v30, %v12038_v1  ;;  %v6784_v39 = vpop.f32.mrb[120].mxu1  ;;  %v6838_v51 = vpop.f32.mrb[135].mxu0  ;;  %v13756_v26 = vld [vmem:[#allocation25_spill] sm:$0xff]  ;;  %vm3127_vm9 = vcmp.ge.f32.partialorder %v12400_v4, 0.0  ;;  %v8782_v1 = vpack.c.bf16 %v5957_v42, %v5956_v21 }
 0x2fc   :  { %5749 = vmatprep.mubr.f32.mxu1 %v12321_v0  ;;  %v13754_v2 = vpack.c.bf16 %v13752_v32, %v13753_v61  ;;  %v3143_v0 = vmul.f32 0.2, %v12400_v4  ;;  %v12458_v16 = vadd.f32 %v13755_v25, %v10509_v60  ;;  %5850 = vmatmul.mubr.f32.vlgmr.msra.gmra.mrb[240].mxu0 %v12226_v5  ;;  %v13757_v34 = vld [vmem:[#allocation58_spill] sm:$0xff]  ;;  %v13759_v58 = vld [vmem:[#allocation13_spill] sm:$0xff]  ;;  %v6785_v32 = vpop.f32.mrb[121].mxu1  ;;  %v12472_v61 = vadd.f32 %v6838_v51, %v6837_v46  ;;  %v13760_v42 = vld [vmem:[#allocation56_spill] sm:$0xff] }
 0x2fd   :  { %v13758_v15 = vpack.c.bf16 %v13756_v26, %v13757_v34  ;;  %v12470_v49 = vadd.f32 %v13759_v58, %v10501_v40  ;;  %5854 = vmatprep.mubr.f32.mxu0 %v12332_v33  ;;  %8779 = vmatpush3.bf16.msra.mxu0 %v8778_v54  ;;  %v3144_v5 = vmul.f32 0.2, %v12427_v63  ;;  %v6786_v30 = vadd.f32 %v6785_v32, %v6784_v39  ;;  %v5958_v33 = vld [vmem:[%s13179_s5 + $0x120] sm:$0xff]  ;;  %v5959_v54 = vld [vmem:[%s13179_s5 + $0x128] sm:$0xff]  ;;  %v13761_v46 = vld [vmem:[#allocation22_spill] sm:$0xff] }
 0x2fe   :  { %8747 = vmatpush3.bf16.msra.mxu1 %v13754_v2  ;;  %v12481_v2 = vsel %vm3391_vm6, %v12366_v57, %v3407_v44  ;;  %8781 = vmatprep.subr.bf16.mxu0 %v8780_v37  ;;  %v8784_v25 = vpack.c.bf16 %v5975_v47, %v5974_v48  ;;  %v3409_v21 = vmul.f32 0.2, %v12439_v45  ;;  %v13762_v57 = vld [vmem:[#allocation64_spill] sm:$0xff]  ;;  %v6840_v37 = vpop.f32.mrb[136].mxu0  ;;  %vm3128_vm10 = vcmp.ge.f32.partialorder %v12427_v63, 0.0  ;;  %v5976_v47 = vld [vmem:[%s13179_s5 + $0x1b0] sm:$0xff] }
 0x2ff   :  { %8749 = vmatprep.subr.bf16.mxu1 %v13758_v15  ;;  %5750 = vmatmul.mubr.f32.gmra.mrb[226].mxu1 %v12313_v50  ;;  %v12492_v50 = vadd.f32 %v13760_v42, %v10509_v60  ;;  %v13763_v44 = vpack.c.bf16 %v13761_v46, %v13762_v57  ;;  %v3424_v48 = vsel %vm3392_vm8, %v12380_v28, %v3408_v35  ;;  %v5977_v39 = vld [vmem:[%s13179_s5 + $0x1b8] sm:$0xff]  ;;  %v13764_v51 = vld [vmem:[#allocation37_spill] sm:$0xff]  ;;  %v6787_v34 = vpop.f32.mrb[122].mxu1  ;;  %v6841_v15 = vpop.f32.mrb[137].mxu0  ;;  %vm3393_vm11 = vcmp.ge.f32.partialorder %v12439_v45, 0.0 }
 0x300   :  { %5754 = vmatprep.mubr.f32.mxu1 %v3156_v13  ;;  %v3410_v13 = vmul.f32 0.2, %v12458_v16  ;;  %v12509_v26 = vadd.f32 %v6786_v30, %v13764_v51  ;;  %5855 = vmatmul.mubr.f32.gmra.mrb[242].mxu0 %v12337_v3  ;;  %v13765_v58 = vld [vmem:[#allocation27_spill] sm:$0xff]  ;;  %v13766_v32 = vld [vmem:[#allocation29_spill] sm:$0xff]  ;;  %v12518_v35 = vsel %vm3127_vm9, %v12400_v4, %v3143_v0  ;;  %v3145_v42 = vmul.f32 0.2, %v12470_v49 }
 0x301   :  { %v13767_v28 = vpack.c.bf16 %v13765_v58, %v13766_v32  ;;  %v6788_v46 = vpop.f32.mrb[123].mxu1  ;;  %v12522_v30 = vadd.f32 %v6841_v15, %v6840_v37  ;;  %5859 = vmatprep.mubr.f32.mxu0 %v12413_v7  ;;  %vm3394_vm12 = vcmp.ge.f32.partialorder %v12458_v16, 0.0  ;;  %8783 = vmatpush3.bf16.msra.mxu0 %v8782_v1  ;;  %v8786_v3 = vpack.c.bf16 %v5959_v54, %v5958_v33  ;;  %v13768_v57 = vld [vmem:[#allocation10_spill] sm:$0xff]  ;;  %v13771_v37 = vld [vmem:[#allocation69_spill] sm:$0xff]  ;;  %v5978_v15 = vld [vmem:[%s13179_s5 + $0x1c0] sm:$0xff] }
 0x302   :  { %8751 = vmatpush3.bf16.msra.mxu1 %v13763_v44  ;;  %v12528_v44 = vadd.f32 %v13768_v57, %v10501_v40  ;;  %v6789_v51 = vadd.f32 %v6788_v46, %v6787_v34  ;;  %vm3129_vm13 = vcmp.ge.f32.partialorder %v12470_v49, 0.0  ;;  %8785 = vmatprep.subr.bf16.mxu0 %v8784_v25  ;;  %v8788_v4 = vpack.c.bf16 %v5977_v39, %v5976_v47  ;;  %v5960_v0 = vld [vmem:[%s13179_s5 + $0x130] sm:$0xff]  ;;  %v5961_v7 = vld [vmem:[%s13179_s5 + $0x138] sm:$0xff]  ;;  %v6843_v25 = vpop.f32.mrb[138].mxu0 }
 0x303   :  { %8753 = vmatprep.subr.bf16.mxu1 %v13767_v28  ;;  %5755 = vmatmul.mubr.f32.gmra.mrb[228].mxu1 %v12361_v23  ;;  %v3146_v1 = vmul.f32 0.2, %v12492_v50  ;;  %v13769_v33 = vld [vmem:[#allocation70_spill] sm:$0xff]  ;;  %v13770_v23 = vld [vmem:[#allocation24_spill] sm:$0xff]  ;;  %v3160_v47 = vsel %vm3128_vm10, %v12427_v63, %v3144_v5  ;;  %v12552_v39 = vsel %vm3393_vm11, %v12439_v45, %v3409_v21  ;;  %v6790_v63 = vpop.f32.mrb[124].mxu1  ;;  %v6844_v5 = vpop.f32.mrb[139].mxu0  ;;  %v3426_v57 = vsel %vm3394_vm12, %v12458_v16, %v3410_v13 }
 0x304   :  { %v12541_v54 = vadd.f32 %v13769_v33, %v10509_v60  ;;  %5759 = vmatprep.mubr.f32.mxu1 %v3158_v10  ;;  %v13772_v34 = vpack.c.bf16 %v13770_v23, %v13771_v37  ;;  %v5979_v10 = vld [vmem:[%s13179_s5 + $0x1c8] sm:$0xff]  ;;  %v13773_v58 = vld [vmem:[#allocation18_spill] sm:$0xff]  ;;  %v12565_v28 = vadd.f32 %v6789_v51, %v12172_v19  ;;  %5860 = vmatmul.mubr.f32.gmra.mrb[244].mxu0 %v12390_v27  ;;  %v13774_v45 = vld [vmem:[#allocation31_spill] sm:$0xff]  ;;  %vm3130_vm14 = vcmp.ge.f32.partialorder %v12492_v50, 0.0  ;;  %v6791_v33 = vpop.f32.mrb[125].mxu1 }
 0x305   :  { %v12562_v32 = vadd.f32 %v13773_v58, %v10501_v40  ;;  %v13775_v21 = vld [vmem:[#allocation67_spill] sm:$0xff]  ;;  %v12575_v23 = vadd.f32 %v6844_v5, %v6843_v25  ;;  %5864 = vmatprep.mubr.f32.mxu0 %v3424_v48  ;;  %v12580_v19 = vsel %vm3129_vm13, %v12470_v49, %v3145_v42  ;;  %8787 = vmatpush3.bf16.msra.mxu0 %v8786_v3  ;;  %v3411_v51 = vmul.f32 0.2, %v12528_v44  ;;  %v13777_v37 = vld [vmem:[#allocation68_spill] sm:$0xff] }
 0x306   :  { %8755 = vmatpush3.bf16.msra.mxu1 %v13772_v34  ;;  %v13776_v46 = vpack.c.bf16 %v13774_v45, %v13775_v21  ;;  %v8790_v27 = vpack.c.bf16 %v5961_v7, %v5960_v0  ;;  %v12585_v34 = vadd.f32 %v13777_v37, %v10509_v60  ;;  %v6792_v58 = vadd.f32 %v6791_v33, %v6790_v63  ;;  %v5962_v48 = vld [vmem:[%s13179_s5 + $0x140] sm:$0xff]  ;;  %v5963_v49 = vld [vmem:[%s13179_s5 + $0x148] sm:$0xff]  ;;  %v13779_v0 = vld [vmem:[#allocation26_spill] sm:$0xff] }
 0x307   :  { %5760 = vmatmul.mubr.f32.gmra.mrb[230].mxu1 %v12422_v59  ;;  %8789 = vmatprep.subr.bf16.mxu0 %v8788_v4  ;;  %v8792_v16 = vpack.c.bf16 %v5979_v10, %v5978_v15  ;;  %v3412_v13 = vmul.f32 0.2, %v12541_v54  ;;  %v13778_v42 = vld [vmem:[#allocation15_spill] sm:$0xff]  ;;  %v13780_v7 = vld [vmem:[#allocation33_spill] sm:$0xff]  ;;  %v6846_v4 = vpop.f32.mrb[140].mxu0  ;;  %v3162_v25 = vsel %vm3130_vm14, %v12492_v50, %v3146_v1  ;;  %vm3395_vm15 = vcmp.ge.f32.partialorder %v12528_v44, 0.0 }
 0x308   :  { %8757 = vmatprep.subr.bf16.mxu1 %v13776_v46  ;;  %v12597_v3 = vadd.f32 %v13778_v42, %v10501_v40  ;;  %5764 = vmatprep.mubr.f32.mxu1 %v3160_v47  ;;  %v13781_v59 = vpack.c.bf16 %v13779_v0, %v13780_v7  ;;  %v5980_v15 = vld [vmem:[%s13179_s5 + $0x1d0] sm:$0xff]  ;;  %v5981_v10 = vld [vmem:[%s13179_s5 + $0x1d8] sm:$0xff]  ;;  %v12613_v47 = vmul.f32 0.2, %v12562_v32  ;;  %v12620_v45 = vadd.f32 %v6792_v58, %v12240_v20  ;;  %v6793_v50 = vpop.f32.mrb[126].mxu1  ;;  %v6847_v1 = vpop.f32.mrb[141].mxu0 }
 0x309   :  { %v13782_v63 = vld [vmem:[#allocation14_spill] sm:$0xff]  ;;  %5865 = vmatmul.mubr.f32.gmra.mrb[246].mxu0 %v12481_v2  ;;  %v13783_v21 = vld [vmem:[#allocation28_spill] sm:$0xff]  ;;  %v13784_v46 = vld [vmem:[#allocation73_spill] sm:$0xff]  ;;  %vm3396_vm1 = vcmp.ge.f32.partialorder %v12541_v54, 0.0  ;;  %v6794_v0 = vpop.f32.mrb[127].mxu1  ;;  %v12631_v7 = vadd.f32 %v6847_v1, %v6846_v4  ;;  %vm3131_vm2 = vcmp.ge.f32.partialorder %v12562_v32, 0.0  ;;  %v8794_v20 = vpack.c.bf16 %v5963_v49, %v5962_v48 }
 0x30a   :  { %8759 = vmatpush3.bf16.msra.mxu1 %v13781_v59  ;;  %v12617_v5 = vadd.f32 %v13782_v63, %v10509_v60  ;;  %v13785_v33 = vpack.c.bf16 %v13783_v21, %v13784_v46  ;;  %v13786_v37 = vld [vmem:[#allocation21_spill] sm:$0xff]  ;;  %5869 = vmatprep.mubr.f32.mxu0 %v3426_v57  ;;  %v3148_v2 = vmul.f32 0.2, %v12585_v34  ;;  %v13787_v58 = vld [vmem:[#allocation12_spill] sm:$0xff]  ;;  %v6795_v63 = vadd.f32 %v6794_v0, %v6793_v50  ;;  %v5965_v57 = vld [vmem:[%s13179_s5 + $0x158] sm:$0xff]  ;;  %v6849_v49 = vpop.f32.mrb[142].mxu0 }
 0x30b   :  { %v12629_v42 = vadd.f32 %v13786_v37, %v10501_v40  ;;  %8791 = vmatpush3.bf16.msra.mxu0 %v8790_v27  ;;  %v12637_v59 = vadd.f32 %v13787_v58, %v10509_v60  ;;  %5765 = vmatmul.mubr.f32.gmra.mrb[232].mxu1 %v12518_v35  ;;  %v8796_v21 = vpack.c.bf16 %v5981_v10, %v5980_v15  ;;  %v5964_v4 = vld [vmem:[%s13179_s5 + $0x150] sm:$0xff]  ;;  %v3413_v27 = vmul.f32 0.2, %v12597_v3  ;;  %v5982_v15 = vld [vmem:[%s13179_s5 + $0x1e0] sm:$0xff]  ;;  %v5967_v0 = vld [vmem:[%s13179_s5 + $0x168] sm:$0xff] }
 0x30c   :  { %8761 = vmatprep.subr.bf16.mxu1 %v13785_v33  ;;  %8793 = vmatprep.subr.bf16.mxu0 %v8792_v16  ;;  %v13788_v48 = vpack.c.bf16 %v12092_v38, %v12087_v43  ;;  %vm3132_vm3 = vcmp.ge.f32.partialorder %v12585_v34, 0.0  ;;  %v3428_v35 = vsel %vm3396_vm1, %v12541_v54, %v3412_v13  ;;  %v3427_v16 = vsel %vm3395_vm15, %v12528_v44, %v3411_v51  ;;  %v5983_v43 = vld [vmem:[%s13179_s5 + $0x1e8] sm:$0xff]  ;;  %v6850_v13 = vpop.f32.mrb[143].mxu0  ;;  %v6884_v50 = vpop.f32.mrb[128].mxu1  ;;  %v5966_v37 = vld [vmem:[%s13179_s5 + $0x160] sm:$0xff] }
 0x30d   :  { %5769 = vmatprep.mubr.f32.mxu1 %v3162_v25  ;;  %v3414_v38 = vmul.f32 0.2, %v12617_v5  ;;  %v13789_v25 = vld [vmem:[#allocation17_spill] sm:$0xff]  ;;  %v12669_v54 = vadd.f32 %v6795_v63, %v12287_v36  ;;  %5870 = vmatmul.mubr.f32.gmra.mrb[248].mxu0 %v12552_v39  ;;  %v13790_v44 = vpack.c.bf16 %v12120_v6, %v12106_v14  ;;  %vm3397_vm0 = vcmp.ge.f32.partialorder %v12597_v3, 0.0  ;;  %v13791_v39 = vld [vmem:[#allocation23_spill] sm:$0xff]  ;;  %v6885_v6 = vpop.f32.mrb[129].mxu1 }
 0x30e   :  { %8763 = vmatpush3.bf16.msra.mxu1 %v13788_v48  ;;  %v12666_v10 = vadd.f32 %v13789_v25, %v10509_v60  ;;  %v3149_v51 = vmul.f32 0.2, %v12629_v42  ;;  %v12677_v1 = vadd.f32 %v6850_v13, %v6849_v49  ;;  %5874 = vmatprep.mubr.f32.mxu0 %v3428_v35  ;;  %vm3398_vm4 = vcmp.ge.f32.partialorder %v12617_v5, 0.0  ;;  %v5985_v63 = vld [vmem:[%s13179_s5 + $0x1f8] sm:$0xff]  ;;  %v13795_v13 = vld [vmem:[#allocation16_spill] sm:$0xff] }
 0x30f   :  { %8765 = vmatprep.subr.bf16.mxu1 %v13790_v44  ;;  %8795 = vmatpush3.bf16.msra.mxu0 %v8794_v20  ;;  %v8798_v60 = vpack.c.bf16 %v5965_v57, %v5964_v4  ;;  %v3150_v36 = vmul.f32 0.2, %v12637_v59  ;;  %v12683_v46 = vadd.f32 %v13791_v39, %v10501_v40  ;;  %v3164_v14 = vsel %vm3132_vm3, %v12585_v34, %v3148_v2  ;;  %v6940_v34 = vpop.f32.mrb[144].mxu0  ;;  %v5984_v2 = vld [vmem:[%s13179_s5 + $0x1f0] sm:$0xff] }
 0x310   :  { %5770 = vmatmul.mubr.f32.gmra.mrb[234].mxu1 %v12580_v19  ;;  %8797 = vmatprep.subr.bf16.mxu0 %v8796_v21  ;;  %v8800_v33 = vpack.c.bf16 %v5983_v43, %v5982_v15  ;;  %v4062_v40 = vadd.f32 %v12306_v53, %v11822_v41  ;;  %v6886_v20 = vadd.f32 %v6885_v6, %v6884_v50  ;;  %v13792_v19 = vld [vmem:[#allocation30_spill] sm:$0xff]  ;;  %vm3134_vm5 = vcmp.ge.f32.partialorder %v12637_v59, 0.0  ;;  %v6941_v53 = vpop.f32.mrb[145].mxu0  ;;  %v6887_v49 = vpop.f32.mrb[130].mxu1  ;;  %v12739_v15 = vld [vmem:[%s13178_s4] ss:$0 sm:$0xff] }
 0x311   :  { %5774 = vmatprep.mubr.f32.mxu1 %v3164_v14  ;;  %v13793_v58 = vpack.c.bf16 %v12140_v56, %v13792_v19  ;;  %vm3133_vm6 = vcmp.ge.f32.partialorder %v12629_v42, 0.0  ;;  %v3416_v41 = vmul.f32 0.2, %v12666_v10  ;;  %v3163_v56 = vsel %vm3131_vm2, %v12562_v32, %v12613_v47  ;;  %5875 = vmatmul.mubr.f32.gmra.mrb[250].mxu0 %v3427_v16  ;;  %v5968_v47 = vld [vmem:[%s13179_s5 + $0x170] sm:$0xff] }
 0x312   :  { %v3430_v21 = vsel %vm3398_vm4, %v12617_v5, %v3414_v38  ;;  %v13794_v4 = vpack.c.bf16 %v12181_v17, %v12164_v24  ;;  %v3429_v57 = vsel %vm3397_vm0, %v12597_v3, %v3413_v27  ;;  %v4167_v48 = vadd.f32 %v6886_v20, %v4062_v40  ;;  %v5969_v24 = vld [vmem:[%s13179_s5 + $0x178] sm:$0xff]  ;;  %v6888_v5 = vpop.f32.mrb[131].mxu1  ;;  %v6943_v44 = vpop.f32.mrb[146].mxu0 }
 0x313   :  { %8767 = vmatpush3.bf16.msra.mxu1 %v13793_v58  ;;  %v6942_v35 = vadd.f32 %v6941_v53, %v6940_v34  ;;  %5879 = vmatprep.mubr.f32.mxu0 %v3430_v21  ;;  %vm3400_vm8 = vcmp.ge.f32.partialorder %v12666_v10, 0.0  ;;  %v8802_v32 = vpack.c.bf16 %v5967_v0, %v5966_v37  ;;  %v3415_v17 = vmul.f32 0.2, %v12683_v46 }
 0x314   :  { %8769 = vmatprep.subr.bf16.mxu1 %v13794_v4  ;;  %8799 = vmatpush3.bf16.msra.mxu0 %v8798_v60  ;;  %v3166_v3 = vsel %vm3134_vm5, %v12637_v59, %v3150_v36  ;;  %v3165_v27 = vsel %vm3133_vm6, %v12629_v42, %v3149_v51  ;;  %v8804_v16 = vpack.c.bf16 %v5985_v63, %v5984_v2  ;;  %vm3399_vm9 = vcmp.ge.f32.partialorder %v12683_v46, 0.0  ;;  %v6944_v51 = vpop.f32.mrb[147].mxu0  ;;  %v6890_v36 = vpop.f32.mrb[132].mxu1 }
 0x315   :  { %5775 = vmatmul.mubr.f32.gmra.mrb[236].mxu1 %v3163_v56  ;;  %8801 = vmatprep.subr.bf16.mxu0 %v8800_v33  ;;  %v4067_v43 = vadd.f32 %v12739_v15, %v12354_v55  ;;  %v6889_v38 = vadd.f32 %v6888_v5, %v6887_v49  ;;  %v4272_v25 = vadd.f32 %v6942_v35, %v4167_v48  ;;  %vm3915_vm10 = vcmp.ge.f32.partialorder %v12296_v62, 0.0  ;;  %v6891_v14 = vpop.f32.mrb[133].mxu1 }
 0x316   :  { %5779 = vmatprep.mubr.f32.mxu1 %v3166_v3  ;;  %v13796_v59 = vpack.c.bf16 %v12191_v52, %v13795_v13  ;;  %v3923_v42 = vmul.f32 0.2, %v12296_v62  ;;  %5880 = vmatmul.mubr.f32.gmra.mrb[252].mxu0 %v3429_v57  ;;  %v3432_v55 = vsel %vm3400_vm8, %v12666_v10, %v3416_v41  ;;  %v13797_v50 = vpack.c.bf16 %v12221_v11, %v12216_v18  ;;  %v6946_v0 = vpop.f32.mrb[148].mxu0 }
 0x317   :  { %v8806_v60 = vpack.c.bf16 %v5969_v24, %v5968_v47  ;;  %v4172_v52 = vadd.f32 %v6889_v38, %v4067_v43  ;;  %v6945_v39 = vadd.f32 %v6944_v51, %v6943_v44  ;;  %5884 = vmatprep.mubr.f32.mxu0 %v3432_v55  ;;  %vm4310_vm11 = vcmp.ge.f32.partialorder %v4272_v25, 0.0  ;;  %v6947_v20 = vpop.f32.mrb[149].mxu0 }
 0x318   :  { %8771 = vmatpush3.bf16.msra.mxu1 %v13796_v59  ;;  %v4318_v6 = vmul.f32 0.2, %v4272_v25  ;;  %8803 = vmatpush3.bf16.msra.mxu0 %v8802_v32  ;;  %v3431_v33 = vsel %vm3399_vm9, %v12683_v46, %v3415_v17  ;;  %v4072_v10 = vadd.f32 %v12739_v15, %v12415_v9  ;;  %v6892_v18 = vadd.f32 %v6891_v14, %v6890_v36  ;;  %v6893_v58 = vpop.f32.mrb[134].mxu1 }
 0x319   :  { %8773 = vmatprep.subr.bf16.mxu1 %v13797_v50  ;;  %5780 = vmatmul.mubr.f32.gmra.mrb[238].mxu1 %v3165_v27  ;;  %v4277_v11 = vadd.f32 %v6945_v39, %v4172_v52  ;;  %v13798_v37 = vpack.c.bf16 %v12252_v8, %v12247_v12  ;;  %v3931_v19 = vsel %vm3915_vm10, %v12296_v62, %v3923_v42  ;;  %vm3916_vm12 = vcmp.ge.f32.partialorder %v12347_v31, 0.0  ;;  %v6894_v12 = vpop.f32.mrb[135].mxu1 }
 0x31a   :  { %8805 = vmatprep.subr.bf16.mxu0 %v8804_v16  ;;  %v4326_v40 = vsel %vm4310_vm11, %v4272_v25, %v4318_v6  ;;  %5885 = vmatmul.mubr.f32.gmra.mrb[254].mxu0 %v3431_v33  ;;  %v3924_v46 = vmul.f32 0.2, %v12347_v31  ;;  %v4177_v9 = vadd.f32 %v6892_v18, %v4072_v10  ;;  %v6948_v34 = vadd.f32 %v6947_v20, %v6946_v0  ;;  %v6949_v53 = vpop.f32.mrb[150].mxu0 }
 0x31b   :  { %6137 = vmatprep.mubr.f32.mxu1 %v4326_v40  ;;  %vm4311_vm13 = vcmp.ge.f32.partialorder %v4277_v11, 0.0  ;;  %v4319_v2 = vmul.f32 0.2, %v4277_v11  ;;  %v4077_v8 = vadd.f32 %v12739_v15, %v12472_v61  ;;  %v6895_v63 = vadd.f32 %v6894_v12, %v6893_v58  ;;  %v6950_v62 = vpop.f32.mrb[151].mxu0 }
 0x31c   :  { %8775 = vmatpush3.bf16.msra.mxu1 %v13798_v37  ;;  %8807 = vmatpush3.bf16.msra.mxu0 %v8806_v60  ;;  %v4282_v41 = vadd.f32 %v6948_v34, %v4177_v9  ;;  %v3932_v21 = vsel %vm3916_vm12, %v12347_v31, %v3924_v46  ;;  %vm3917_vm14 = vcmp.ge.f32.partialorder %v12403_v22, 0.0  ;;  %v3925_v4 = vmul.f32 0.2, %v12403_v22  ;;  %v6896_v48 = vpop.f32.mrb[136].mxu1 }
 0x31d   :  { %v4327_v56 = vsel %vm4311_vm13, %v4277_v11, %v4319_v2  ;;  %v4182_v57 = vadd.f32 %v6895_v63, %v4077_v8  ;;  %v6951_v49 = vadd.f32 %v6950_v62, %v6949_v53  ;;  %v6897_v61 = vpop.f32.mrb[137].mxu1  ;;  %v4082_v32 = vadd.f32 %v12739_v15, %v12522_v30 }
 0x31e   :  { %vm4312_vm15 = vcmp.ge.f32.partialorder %v4282_v41, 0.0  ;;  %v4320_v35 = vmul.f32 0.2, %v4282_v41  ;;  %v6898_v47 = vadd.f32 %v6897_v61, %v6896_v48  ;;  %v6952_v17 = vpop.f32.mrb[152].mxu0  ;;  %v3933_v31 = vsel %vm3917_vm14, %v12403_v22, %v3925_v4 }
 0x31f   :  { %6138 = vmatmul.mubr.f32.vlgmr.msra.gmra.mrb[240].mxu1 %v3931_v19  ;;  %v4287_v24 = vadd.f32 %v6951_v49, %v4182_v57  ;;  %v6953_v3 = vpop.f32.mrb[153].mxu0  ;;  %vm3918_vm1 = vcmp.ge.f32.partialorder %v12461_v29, 0.0  ;;  %v3926_v27 = vmul.f32 0.2, %v12461_v29  ;;  %v4087_v13 = vadd.f32 %v12739_v15, %v12575_v23 }
 0x320   :  { %6142 = vmatprep.mubr.f32.mxu1 %v4327_v56  ;;  %v4328_v5 = vsel %vm4312_vm15, %v4282_v41, %v4320_v35  ;;  %v4187_v16 = vadd.f32 %v6898_v47, %v4082_v32  ;;  %v6899_v43 = vpop.f32.mrb[138].mxu1  ;;  %v6954_v38 = vadd.f32 %v6953_v3, %v6952_v17  ;;  %vm3919_vm3 = vcmp.ge.f32.partialorder %v12509_v26, 0.0 }
 0x321   :  { %vm4313_vm2 = vcmp.ge.f32.partialorder %v4287_v24, 0.0  ;;  %v4321_v25 = vmul.f32 0.2, %v4287_v24  ;;  %v6900_v30 = vpop.f32.mrb[139].mxu1  ;;  %v3934_v22 = vsel %vm3918_vm1, %v12461_v29, %v3926_v27  ;;  %v3927_v50 = vmul.f32 0.2, %v12509_v26 }
 0x322   :  { %v6901_v59 = vadd.f32 %v6900_v30, %v6899_v43  ;;  %v4292_v44 = vadd.f32 %v6954_v38, %v4187_v16  ;;  %v6955_v42 = vpop.f32.mrb[154].mxu0  ;;  %v4092_v6 = vadd.f32 %v12739_v15, %v12631_v7  ;;  %vm3920_vm4 = vcmp.ge.f32.partialorder %v12565_v28, 0.0 }
 0x323   :  { %6143 = vmatmul.mubr.f32.gmra.mrb[242].mxu1 %v3932_v21  ;;  %v4329_v51 = vsel %vm4313_vm2, %v4287_v24, %v4321_v25  ;;  %v6956_v55 = vpop.f32.mrb[155].mxu0  ;;  %v3935_v29 = vsel %vm3919_vm3, %v12509_v26, %v3927_v50  ;;  %v3928_v37 = vmul.f32 0.2, %v12565_v28  ;;  %v4097_v46 = vadd.f32 %v12739_v15, %v12677_v1 }
 0x324   :  { %6147 = vmatprep.mubr.f32.mxu1 %v4328_v5  ;;  %v4192_v60 = vadd.f32 %v6901_v59, %v4087_v13  ;;  %v6902_v52 = vpop.f32.mrb[140].mxu1  ;;  %v6957_v36 = vadd.f32 %v6956_v55, %v6955_v42  ;;  %vm4314_vm0 = vcmp.ge.f32.partialorder %v4292_v44, 0.0  ;;  %v4322_v39 = vmul.f32 0.2, %v4292_v44 }
 0x325   :  { %v6903_v23 = vpop.f32.mrb[141].mxu1  ;;  %v3936_v26 = vsel %vm3920_vm4, %v12565_v28, %v3928_v37  ;;  %vm3921_vm6 = vcmp.ge.f32.partialorder %v12620_v45, 0.0  ;;  %v3929_v8 = vmul.f32 0.2, %v12620_v45  ;;  %v3930_v28 = vmul.f32 0.2, %v12669_v54 }
 0x326   :  { %v6904_v14 = vadd.f32 %v6903_v23, %v6902_v52  ;;  %v4297_v33 = vadd.f32 %v6957_v36, %v4192_v60  ;;  %v6958_v10 = vpop.f32.mrb[156].mxu0  ;;  %v4330_v18 = vsel %vm4314_vm0, %v4292_v44, %v4322_v39  ;;  %vm3922_vm10 = vcmp.ge.f32.partialorder %v12669_v54, 0.0 }
 0x327   :  { %6148 = vmatmul.mubr.f32.gmra.mrb[244].mxu1 %v3933_v31  ;;  %v6959_v11 = vpop.f32.mrb[157].mxu0  ;;  %v3937_v49 = vsel %vm3921_vm6, %v12620_v45, %v3929_v8  ;;  %v3938_v38 = vsel %vm3922_vm10, %v12669_v54, %v3930_v28  ;;  %v5988_v8 = vld [vmem:[%s13179_s5 + $0x210] sm:$0xff]  ;;  %v6006_v28 = vld [vmem:[%s13179_s5 + $0x2a0] sm:$0xff] }
 0x328   :  { %6152 = vmatprep.mubr.f32.mxu1 %v4329_v51  ;;  %v4197_v0 = vadd.f32 %v6904_v14, %v4092_v6  ;;  %v6905_v40 = vpop.f32.mrb[142].mxu1  ;;  %v6960_v20 = vadd.f32 %v6959_v11, %v6958_v10  ;;  %vm4315_vm5 = vcmp.ge.f32.partialorder %v4297_v33, 0.0  ;;  %v4323_v19 = vmul.f32 0.2, %v4297_v33  ;;  %v6003_v11 = vld [vmem:[%s13179_s5 + $0x288] sm:$0xff] }
 0x329   :  { %v6906_v7 = vpop.f32.mrb[143].mxu1 }
 0x32a   :  { %v6907_v9 = vadd.f32 %v6906_v7, %v6905_v40  ;;  %v4302_v58 = vadd.f32 %v6960_v20, %v4197_v0  ;;  %v6961_v34 = vpop.f32.mrb[158].mxu0  ;;  %v4331_v2 = vsel %vm4315_vm5, %v4297_v33, %v4323_v19  ;;  %v5987_v40 = vld [vmem:[%s13179_s5 + $0x208] sm:$0xff] }
 0x32b   :  { %6153 = vmatmul.mubr.f32.gmra.mrb[246].mxu1 %v3934_v22  ;;  %v6962_v12 = vpop.f32.mrb[159].mxu0 }
 0x32c   :  { %6157 = vmatprep.mubr.f32.mxu1 %v4330_v18  ;;  %v4202_v63 = vadd.f32 %v6907_v9, %v4097_v46  ;;  %v6996_v41 = vpop.f32.mrb[144].mxu1  ;;  %v6963_v53 = vadd.f32 %v6962_v12, %v6961_v34  ;;  %vm4316_vm8 = vcmp.ge.f32.partialorder %v4302_v58, 0.0  ;;  %v4324_v56 = vmul.f32 0.2, %v4302_v58  ;;  %v6002_v18 = vld [vmem:[%s13179_s5 + $0x280] sm:$0xff]  ;;  %v6004_v12 = vld [vmem:[%s13179_s5 + $0x290] sm:$0xff] }
 0x32d   :  { %v6997_v1 = vpop.f32.mrb[145].mxu1  ;;  %v8808_v0 = vpack.c.bf16 %v6003_v11, %v6002_v18 }
 0x32e   :  { %v4307_v62 = vadd.f32 %v6963_v53, %v4202_v63  ;;  %v6998_v21 = vadd.f32 %v6997_v1, %v6996_v41  ;;  %v7052_v4 = vpop.f32.mrb[160].mxu0  ;;  %v4332_v57 = vsel %vm4316_vm8, %v4302_v58, %v4324_v56  ;;  %v5989_v53 = vld [vmem:[%s13179_s5 + $0x218] sm:$0xff] }
 0x32f   :  { %6158 = vmatmul.mubr.f32.gmra.mrb[248].mxu1 %v3935_v29  ;;  %v7053_v48 = vpop.f32.mrb[161].mxu0  ;;  %v5986_v29 = vld [vmem:[%s13179_s5 + $0x200] sm:$0xff]  ;;  %8809 = vmatprep.subr.bf16.mxu1 %v8808_v0 }
 0x330   :  { %6162 = vmatprep.mubr.f32.mxu1 %v4331_v2  ;;  %v4457_v35 = vadd.f32 %v12739_v15, %v6998_v21  ;;  %v6999_v61 = vpop.f32.mrb[146].mxu1  ;;  %v7054_v32 = vadd.f32 %v7053_v48, %v7052_v4  ;;  %vm4317_vm9 = vcmp.ge.f32.partialorder %v4307_v62, 0.0  ;;  %v4325_v47 = vmul.f32 0.2, %v4307_v62 }
 0x331   :  { %v7000_v24 = vpop.f32.mrb[147].mxu1  ;;  %v8810_v46 = vpack.c.bf16 %v5987_v40, %v5986_v29  ;;  %v8814_v21 = vpack.c.bf16 %v5989_v53, %v5988_v8  ;;  %v5995_v29 = vld [vmem:[%s13179_s5 + $0x248] sm:$0xff] }
 0x332   :  { %v7001_v17 = vadd.f32 %v7000_v24, %v6999_v61  ;;  %v12807_v5 = vadd.f32 %v7054_v32, %v4457_v35  ;;  %v7055_v3 = vpop.f32.mrb[162].mxu0  ;;  %v4333_v31 = vsel %vm4317_vm9, %v4307_v62, %v4325_v47  ;;  %v6007_v35 = vld [vmem:[%s13179_s5 + $0x2a8] sm:$0xff]  ;;  %v5990_v61 = vld [vmem:[%s13179_s5 + $0x220] sm:$0xff] }
 0x333   :  { %6163 = vmatmul.mubr.f32.gmra.mrb[250].mxu1 %v3936_v26  ;;  %v7056_v27 = vpop.f32.mrb[163].mxu0  ;;  %v6005_v26 = vld [vmem:[%s13179_s5 + $0x298] sm:$0xff]  ;;  %v8816_v47 = vpack.c.bf16 %v6007_v35, %v6006_v28  ;;  %v5991_v24 = vld [vmem:[%s13179_s5 + $0x228] sm:$0xff] }
 0x334   :  { %6167 = vmatprep.mubr.f32.mxu1 %v4332_v57  ;;  %v4462_v45 = vadd.f32 %v12739_v15, %v7001_v17  ;;  %v7002_v16 = vpop.f32.mrb[148].mxu1  ;;  %v7057_v43 = vadd.f32 %v7056_v27, %v7055_v3  ;;  %8811 = vmatpush3.bf16.msra.mxu1 %v8810_v46  ;;  %v8812_v41 = vpack.c.bf16 %v6005_v26, %v6004_v12  ;;  %v5996_v46 = vld [vmem:[%s13179_s5 + $0x250] sm:$0xff] }
 0x335   :  { %v7003_v25 = vpop.f32.mrb[149].mxu1  ;;  %v8818_v27 = vpack.c.bf16 %v5991_v24, %v5990_v61  ;;  %v6016_v24 = vld [vmem:[%s13179_s5 + $0x2f0] sm:$0xff] }
 0x336   :  { %v7004_v30 = vadd.f32 %v7003_v25, %v7002_v16  ;;  %v12811_v13 = vadd.f32 %v7057_v43, %v4462_v45  ;;  %v7058_v59 = vpop.f32.mrb[164].mxu0  ;;  %8813 = vmatprep.subr.bf16.mxu1 %v8812_v41  ;;  %v6008_v25 = vld [vmem:[%s13179_s5 + $0x2b0] sm:$0xff] }
 0x337   :  { %6168 = vmatmul.mubr.f32.gmra.mrb[252].mxu1 %v3937_v49  ;;  %v7059_v44 = vpop.f32.mrb[165].mxu0 }
 0x338   :  { %6172 = vmatprep.mubr.f32.mxu1 %v4333_v31  ;;  %v4467_v42 = vadd.f32 %v12739_v15, %v7004_v30  ;;  %v7005_v51 = vpop.f32.mrb[150].mxu1  ;;  %v7060_v55 = vadd.f32 %v7059_v44, %v7058_v59  ;;  %8815 = vmatpush3.bf16.msra.mxu1 %v8814_v21  ;;  %v6009_v30 = vld [vmem:[%s13179_s5 + $0x2b8] sm:$0xff]  ;;  %v5992_v59 = vld [vmem:[%s13179_s5 + $0x230] sm:$0xff] }
 0x339   :  { %v7006_v22 = vpop.f32.mrb[151].mxu1  ;;  %8817 = vmatprep.subr.bf16.mxu1 %v8816_v47 }
 0x33a   :  { %v7007_v50 = vadd.f32 %v7006_v22, %v7005_v51  ;;  %v12814_v60 = vadd.f32 %v7060_v55, %v4467_v42  ;;  %v7061_v52 = vpop.f32.mrb[166].mxu0  ;;  %v8820_v42 = vpack.c.bf16 %v6009_v30, %v6008_v25  ;;  %v5993_v51 = vld [vmem:[%s13179_s5 + $0x238] sm:$0xff] }
 0x33b   :  { %6173 = vmatmul.mubr.f32.gmra.mrb[254].mxu1 %v3938_v38  ;;  %v7062_v36 = vpop.f32.mrb[167].mxu0 }
 0x33c   :  { %v4472_v39 = vadd.f32 %v12739_v15, %v7007_v50  ;;  %v7008_v54 = vpop.f32.mrb[152].mxu1  ;;  %v7063_v23 = vadd.f32 %v7062_v36, %v7061_v52  ;;  %8819 = vmatpush3.bf16.msra.mxu1 %v8818_v27  ;;  %v8822_v52 = vpack.c.bf16 %v5993_v51, %v5992_v59 }
 0x33d   :  { %v7009_v6 = vpop.f32.mrb[153].mxu1  ;;  %8821 = vmatprep.subr.bf16.mxu1 %v8820_v42 }
 0x33e   :  { %v7010_v14 = vadd.f32 %v7009_v6, %v7008_v54  ;;  %v12817_v33 = vadd.f32 %v7063_v23, %v4472_v39  ;;  %v7064_v10 = vpop.f32.mrb[168].mxu0  ;;  %v6010_v6 = vld [vmem:[%s13179_s5 + $0x2c0] sm:$0xff] }
 0x33f   :  { %v7065_v37 = vpop.f32.mrb[169].mxu0 }
 0x340   :  { %v4477_v20 = vadd.f32 %v12739_v15, %v7010_v14  ;;  %v7011_v19 = vpop.f32.mrb[154].mxu1  ;;  %v7066_v7 = vadd.f32 %v7065_v37, %v7064_v10  ;;  %8823 = vmatpush3.bf16.msra.mxu1 %v8822_v52  ;;  %v6011_v14 = vld [vmem:[%s13179_s5 + $0x2c8] sm:$0xff]  ;;  %v5994_v10 = vld [vmem:[%s13179_s5 + $0x240] sm:$0xff] }
 0x341   :  { %v7012_v9 = vpop.f32.mrb[155].mxu1  ;;  %v8824_v11 = vpack.c.bf16 %v6011_v14, %v6010_v6 }
 0x342   :  { %v7013_v58 = vadd.f32 %v7012_v9, %v7011_v19  ;;  %v12832_v34 = vadd.f32 %v7066_v7, %v4477_v20  ;;  %v7067_v2 = vpop.f32.mrb[170].mxu0  ;;  %v8826_v20 = vpack.c.bf16 %v5995_v29, %v5994_v10  ;;  %v6012_v19 = vld [vmem:[%s13179_s5 + $0x2d0] sm:$0xff]  ;;  %v6013_v7 = vld [vmem:[%s13179_s5 + $0x2d8] sm:$0xff] }
 0x343   :  { %v7068_v63 = vpop.f32.mrb[171].mxu0  ;;  %8825 = vmatprep.subr.bf16.mxu1 %v8824_v11 }
 0x344   :  { %v4482_v56 = vadd.f32 %v12739_v15, %v7013_v58  ;;  %v7014_v1 = vpop.f32.mrb[156].mxu1  ;;  %v7069_v62 = vadd.f32 %v7068_v63, %v7067_v2  ;;  %v5997_v58 = vld [vmem:[%s13179_s5 + $0x258] sm:$0xff]  ;;  %8827 = vmatpush3.bf16.msra.mxu1 %v8826_v20 }
 0x345   :  { %v7015_v4 = vpop.f32.mrb[157].mxu1  ;;  %v8830_v8 = vpack.c.bf16 %v5997_v58, %v5996_v46 }
 0x346   :  { %v7016_v57 = vadd.f32 %v7015_v4, %v7014_v1  ;;  %v12847_v48 = vadd.f32 %v7069_v62, %v4482_v56  ;;  %v7070_v49 = vpop.f32.mrb[172].mxu0  ;;  %v6014_v56 = vld [vmem:[%s13179_s5 + $0x2e0] sm:$0xff]  ;;  %v6015_v1 = vld [vmem:[%s13179_s5 + $0x2e8] sm:$0xff] }
 0x347   :  { %v7071_v32 = vpop.f32.mrb[173].mxu0  ;;  %v5998_v62 = vld [vmem:[%s13179_s5 + $0x260] sm:$0xff]  ;;  %v8832_v4 = vpack.c.bf16 %v6015_v1, %v6014_v56 }
 0x348   :  { %v4487_v17 = vadd.f32 %v12739_v15, %v7016_v57  ;;  %v7017_v3 = vpop.f32.mrb[158].mxu1  ;;  %v7072_v31 = vadd.f32 %v7071_v32, %v7070_v49 }
 0x349   :  { %v7018_v45 = vpop.f32.mrb[159].mxu1 }
 0x34a   :  { %v7019_v16 = vadd.f32 %v7018_v45, %v7017_v3  ;;  %v12862_v43 = vadd.f32 %v7072_v31, %v4487_v17  ;;  %v7073_v38 = vpop.f32.mrb[174].mxu0  ;;  %v6017_v17 = vld [vmem:[%s13179_s5 + $0x2f8] sm:$0xff]  ;;  %v6000_v3 = vld [vmem:[%s13179_s5 + $0x270] sm:$0xff] }
 0x34b   :  { %v7074_v44 = vpop.f32.mrb[175].mxu0  ;;  %v8836_v27 = vpack.c.bf16 %v6017_v17, %v6016_v24 }
 0x34c   :  { %v4492_v55 = vadd.f32 %v12739_v15, %v7019_v16  ;;  %v7108_v22 = vpop.f32.mrb[160].mxu1  ;;  %v7075_v50 = vadd.f32 %v7074_v44, %v7073_v38 }
 0x34d   :  { %v7109_v36 = vpop.f32.mrb[161].mxu1 }
 0x34e   :  { %v12877_v39 = vadd.f32 %v7075_v50, %v4492_v55  ;;  %v7110_v54 = vadd.f32 %v7109_v36, %v7108_v22  ;;  %v7164_v23 = vpop.f32.mrb[176].mxu0 }
 0x34f   :  { %v7165_v18 = vpop.f32.mrb[177].mxu0 }
 0x350   :  { %v12892_v37 = vadd.f32 %v7110_v54, %v12807_v5  ;;  %v7111_v0 = vpop.f32.mrb[162].mxu1  ;;  %v12894_v40 = vadd.f32 %v7165_v18, %v7164_v23  ;;  %v8828_v5 = vpack.c.bf16 %v6013_v7, %v6012_v19 }
 0x351   :  { %v7112_v9 = vpop.f32.mrb[163].mxu1 }
 0x352   :  { %v7113_v2 = vadd.f32 %v7112_v9, %v7111_v0  ;;  %v7167_v12 = vpop.f32.mrb[178].mxu0  ;;  %8829 = vmatprep.subr.bf16.mxu1 %v8828_v5  ;;  %vm4705_vm11 = vcmp.ge.f32.partialorder %v12892_v37, 0.0 }
 0x353   :  { %v7168_v26 = vpop.f32.mrb[179].mxu0  ;;  %8831 = vmatpush3.bf16.msra.mxu1 %v8830_v8  ;;  %v4852_v8 = vadd.f32 %v12739_v15, %v12894_v40 }
 0x354   :  { %v12909_v63 = vadd.f32 %v7113_v2, %v12811_v13  ;;  %v7114_v41 = vpop.f32.mrb[164].mxu1  ;;  %v12911_v53 = vadd.f32 %v7168_v26, %v7167_v12  ;;  %v5999_v13 = vld [vmem:[%s13179_s5 + $0x268] sm:$0xff]  ;;  %8833 = vmatprep.subr.bf16.mxu1 %v8832_v4 }
 0x355   :  { %v7115_v21 = vpop.f32.mrb[165].mxu1  ;;  %v8834_v35 = vpack.c.bf16 %v5999_v13, %v5998_v62 }
 0x356   :  { %v7116_v57 = vadd.f32 %v7115_v21, %v7114_v41  ;;  %v7170_v49 = vpop.f32.mrb[180].mxu0  ;;  %v4857_v13 = vadd.f32 %v12739_v15, %v12911_v53  ;;  %vm4706_vm13 = vcmp.ge.f32.partialorder %v12909_v63, 0.0 }
 0x357   :  { %v7171_v28 = vpop.f32.mrb[181].mxu0  ;;  %8835 = vmatpush3.bf16.msra.mxu1 %v8834_v35 }
 0x358   :  { %v12926_v61 = vadd.f32 %v7116_v57, %v12814_v60  ;;  %v7117_v32 = vpop.f32.mrb[166].mxu1  ;;  %v12928_v47 = vadd.f32 %v7171_v28, %v7170_v49  ;;  %v6001_v60 = vld [vmem:[%s13179_s5 + $0x278] sm:$0xff]  ;;  %8837 = vmatprep.subr.bf16.mxu1 %v8836_v27  ;;  %v4713_v28 = vmul.f32 0.2, %v12892_v37 }
 0x359   :  { %v7118_v31 = vpop.f32.mrb[167].mxu1  ;;  %v8838_v25 = vpack.c.bf16 %v6001_v60, %v6000_v3 }
 0x35a   :  { %v7119_v45 = vadd.f32 %v7118_v31, %v7117_v32  ;;  %v7173_v16 = vpop.f32.mrb[182].mxu0  ;;  %v4862_v31 = vadd.f32 %v12739_v15, %v12928_v47  ;;  %vm4707_vm15 = vcmp.ge.f32.partialorder %v12926_v61, 0.0 }
 0x35b   :  { %v7174_v38 = vpop.f32.mrb[183].mxu0  ;;  %8839 = vmatpush3.bf16.msra.mxu1 %v8838_v25 }
 0x35c   :  { %v12943_v30 = vadd.f32 %v7119_v45, %v12817_v33  ;;  %v7120_v59 = vpop.f32.mrb[168].mxu1  ;;  %v12945_v44 = vadd.f32 %v7174_v38, %v7173_v16  ;;  %v4721_v16 = vsel %vm4705_vm11, %v12892_v37, %v4713_v28  ;;  %v4714_v38 = vmul.f32 0.2, %v12909_v63 }
 0x35d   :  { %v7121_v42 = vpop.f32.mrb[169].mxu1 }
 0x35e   :  { %v7122_v51 = vadd.f32 %v7121_v42, %v7120_v59  ;;  %v7176_v55 = vpop.f32.mrb[184].mxu0  ;;  %v4867_v47 = vadd.f32 %v12739_v15, %v12945_v44  ;;  %vm4708_vm2 = vcmp.ge.f32.partialorder %v12943_v30, 0.0 }
 0x35f   :  { %v7177_v22 = vpop.f32.mrb[185].mxu0 }
 0x360   :  { %v12948_v50 = vadd.f32 %v7122_v51, %v12832_v34  ;;  %v7123_v52 = vpop.f32.mrb[170].mxu1  ;;  %v12950_v36 = vadd.f32 %v7177_v22, %v7176_v55 }
 0x361   :  { %v7124_v54 = vpop.f32.mrb[171].mxu1 }
 0x362   :  { %v7125_v23 = vadd.f32 %v7124_v54, %v7123_v52  ;;  %v7179_v6 = vpop.f32.mrb[186].mxu0  ;;  %vm4709_vm0 = vcmp.ge.f32.partialorder %v12948_v50, 0.0 }
 0x363   :  { %v7180_v14 = vpop.f32.mrb[187].mxu0 }
 0x364   :  { %v12953_v33 = vadd.f32 %v7125_v23, %v12847_v48  ;;  %v7126_v10 = vpop.f32.mrb[172].mxu1  ;;  %v12955_v18 = vadd.f32 %v7180_v14, %v7179_v6  ;;  %v4715_v6 = vmul.f32 0.2, %v12926_v61 }
 0x365   :  { %v7127_v11 = vpop.f32.mrb[173].mxu1 }
 0x366   :  { %v7128_v29 = vadd.f32 %v7127_v11, %v7126_v10  ;;  %v7182_v0 = vpop.f32.mrb[188].mxu0  ;;  %v4722_v10 = vsel %vm4706_vm13, %v12909_v63, %v4714_v38  ;;  %v4723_v63 = vsel %vm4707_vm15, %v12926_v61, %v4715_v6  ;;  %vm4710_vm5 = vcmp.ge.f32.partialorder %v12953_v33, 0.0 }
 0x367   :  { %v7183_v20 = vpop.f32.mrb[189].mxu0 }
 0x368   :  { %v12958_v34 = vadd.f32 %v7128_v29, %v12862_v43  ;;  %v7129_v19 = vpop.f32.mrb[174].mxu1  ;;  %v12960_v7 = vadd.f32 %v7183_v20, %v7182_v0 }
 0x369   :  { %v7130_v46 = vpop.f32.mrb[175].mxu1 }
 0x36a   :  { %v7131_v9 = vadd.f32 %v7130_v46, %v7129_v19  ;;  %v7185_v5 = vpop.f32.mrb[190].mxu0  ;;  %v4872_v19 = vadd.f32 %v12739_v15, %v12950_v36  ;;  %vm4711_vm8 = vcmp.ge.f32.partialorder %v12958_v34, 0.0 }
 0x36b   :  { %v7186_v58 = vpop.f32.mrb[191].mxu0 }
 0x36c   :  { %v12963_v48 = vadd.f32 %v7131_v9, %v12877_v39  ;;  %v7220_v2 = vpop.f32.mrb[176].mxu1  ;;  %v12965_v12 = vadd.f32 %v7186_v58, %v7185_v5 }
 0x36d   :  { %v7221_v26 = vpop.f32.mrb[177].mxu1 }
 0x36e   :  { %v7222_v41 = vadd.f32 %v7221_v26, %v7220_v2  ;;  %v7276_v43 = vpop.f32.mrb[192].mxu0  ;;  %v4716_v2 = vmul.f32 0.2, %v12943_v30  ;;  %vm4712_vm10 = vcmp.ge.f32.partialorder %v12963_v48, 0.0 }
 0x36f   :  { %v7277_v56 = vpop.f32.mrb[193].mxu0 }
 0x370   :  { %v4957_v1 = vadd.f32 %v7222_v41, %v4852_v8  ;;  %v7223_v62 = vpop.f32.mrb[178].mxu1  ;;  %v7278_v21 = vadd.f32 %v7277_v56, %v7276_v43  ;;  %v4724_v61 = vsel %vm4708_vm2, %v12943_v30, %v4716_v2 }
 0x371   :  { %v7224_v4 = vpop.f32.mrb[179].mxu1 }
 0x372   :  { %v7225_v57 = vadd.f32 %v7224_v4, %v7223_v62  ;;  %v5062_v39 = vadd.f32 %v7278_v21, %v4957_v1  ;;  %v7279_v49 = vpop.f32.mrb[194].mxu0  ;;  %v4877_v1 = vadd.f32 %v12739_v15, %v12955_v18 }
 0x373   :  { %v7280_v35 = vpop.f32.mrb[195].mxu0 }
 0x374   :  { %v4962_v32 = vadd.f32 %v7225_v57, %v4857_v13  ;;  %v7226_v40 = vpop.f32.mrb[180].mxu1  ;;  %v7281_v24 = vadd.f32 %v7280_v35, %v7279_v49  ;;  %vm5100_vm12 = vcmp.ge.f32.partialorder %v5062_v39, 0.0  ;;  %v5108_v17 = vmul.f32 0.2, %v5062_v39 }
 0x375   :  { %v7227_v3 = vpop.f32.mrb[181].mxu1  ;;  %v4717_v57 = vmul.f32 0.2, %v12948_v50 }
 0x376   :  { %v7228_v27 = vadd.f32 %v7227_v3, %v7226_v40  ;;  %v5067_v60 = vadd.f32 %v7281_v24, %v4962_v32  ;;  %v7282_v53 = vpop.f32.mrb[196].mxu0  ;;  %v5116_v45 = vsel %vm5100_vm12, %v5062_v39, %v5108_v17  ;;  %v4882_v40 = vadd.f32 %v12739_v15, %v12960_v7 }
 0x377   :  { %v7283_v25 = vpop.f32.mrb[197].mxu0  ;;  %6242 = vmatprep.mubr.f32.mxu0 %v5116_v45  ;;  %v4725_v30 = vsel %vm4709_vm0, %v12948_v50, %v4717_v57 }
 0x378   :  { %v4967_v59 = vadd.f32 %v7228_v27, %v4862_v31  ;;  %v7229_v42 = vpop.f32.mrb[182].mxu1  ;;  %v7284_v51 = vadd.f32 %v7283_v25, %v7282_v53  ;;  %6243 = vmatmul.mubr.f32.vlgmr.msra.gmra.mrb[0].mxu0 %v4721_v16  ;;  %vm5101_vm14 = vcmp.ge.f32.partialorder %v5067_v60, 0.0  ;;  %v5109_v55 = vmul.f32 0.2, %v5067_v60 }
 0x379   :  { %v7230_v22 = vpop.f32.mrb[183].mxu1  ;;  %v4718_v27 = vmul.f32 0.2, %v12953_v33  ;;  %v4887_v25 = vadd.f32 %v12739_v15, %v12965_v12 }
 0x37a   :  { %v7231_v52 = vadd.f32 %v7230_v22, %v7229_v42  ;;  %v5072_v54 = vadd.f32 %v7284_v51, %v4967_v59  ;;  %v7285_v23 = vpop.f32.mrb[198].mxu0  ;;  %v5117_v37 = vsel %vm5101_vm14, %v5067_v60, %v5109_v55  ;;  %v4719_v22 = vmul.f32 0.2, %v12958_v34 }
 0x37b   :  { %v7286_v14 = vpop.f32.mrb[199].mxu0  ;;  %6247 = vmatprep.mubr.f32.mxu0 %v5117_v37  ;;  %v4726_v50 = vsel %vm4710_vm5, %v12953_v33, %v4718_v27 }
 0x37c   :  { %v4972_v11 = vadd.f32 %v7231_v52, %v4867_v47  ;;  %v7232_v29 = vpop.f32.mrb[184].mxu1  ;;  %v7287_v0 = vadd.f32 %v7286_v14, %v7285_v23  ;;  %6248 = vmatmul.mubr.f32.gmra.mrb[2].mxu0 %v4722_v10  ;;  %vm5102_vm1 = vcmp.ge.f32.partialorder %v5072_v54, 0.0  ;;  %v5110_v44 = vmul.f32 0.2, %v5072_v54 }
 0x37d   :  { %v7233_v20 = vpop.f32.mrb[185].mxu1  ;;  %v4727_v33 = vsel %vm4711_vm8, %v12958_v34, %v4719_v22 }
 0x37e   :  { %v7234_v46 = vadd.f32 %v7233_v20, %v7232_v29  ;;  %v5077_v9 = vadd.f32 %v7287_v0, %v4972_v11  ;;  %v7288_v5 = vpop.f32.mrb[200].mxu0  ;;  %v5118_v58 = vsel %vm5102_vm1, %v5072_v54, %v5110_v44  ;;  %v4720_v29 = vmul.f32 0.2, %v12963_v48 }
 0x37f   :  { %v7289_v26 = vpop.f32.mrb[201].mxu0  ;;  %6252 = vmatprep.mubr.f32.mxu0 %v5118_v58 }
 0x380   :  { %v4977_v8 = vadd.f32 %v7234_v46, %v4872_v19  ;;  %v7235_v41 = vpop.f32.mrb[186].mxu1  ;;  %v7290_v43 = vadd.f32 %v7289_v26, %v7288_v5  ;;  %6253 = vmatmul.mubr.f32.gmra.mrb[4].mxu0 %v4723_v63  ;;  %vm5103_vm3 = vcmp.ge.f32.partialorder %v5077_v9, 0.0  ;;  %v5111_v36 = vmul.f32 0.2, %v5077_v9 }
 0x381   :  { %v7236_v56 = vpop.f32.mrb[187].mxu1 }
 0x382   :  { %v7237_v62 = vadd.f32 %v7236_v56, %v7235_v41  ;;  %v5082_v21 = vadd.f32 %v7290_v43, %v4977_v8  ;;  %v7291_v4 = vpop.f32.mrb[202].mxu0  ;;  %v5119_v13 = vsel %vm5103_vm3, %v5077_v9, %v5111_v36  ;;  %v4728_v8 = vsel %vm4712_vm10, %v12963_v48, %v4720_v29 }
 0x383   :  { %v7292_v39 = vpop.f32.mrb[203].mxu0  ;;  %6257 = vmatprep.mubr.f32.mxu0 %v5119_v13 }
 0x384   :  { %v4982_v49 = vadd.f32 %v7237_v62, %v4877_v1  ;;  %v7238_v28 = vpop.f32.mrb[188].mxu1  ;;  %v7293_v35 = vadd.f32 %v7292_v39, %v7291_v4  ;;  %6258 = vmatmul.mubr.f32.gmra.mrb[6].mxu0 %v4724_v61  ;;  %vm5104_vm4 = vcmp.ge.f32.partialorder %v5082_v21, 0.0  ;;  %v5112_v18 = vmul.f32 0.2, %v5082_v21 }
 0x385   :  { %v7239_v32 = vpop.f32.mrb[189].mxu1 }
 0x386   :  { %v7240_v24 = vadd.f32 %v7239_v32, %v7238_v28  ;;  %v5087_v17 = vadd.f32 %v7293_v35, %v4982_v49  ;;  %v7294_v3 = vpop.f32.mrb[204].mxu0  ;;  %v5120_v31 = vsel %vm5104_vm4, %v5082_v21, %v5112_v18 }
 0x387   :  { %v7295_v60 = vpop.f32.mrb[205].mxu0  ;;  %6262 = vmatprep.mubr.f32.mxu0 %v5120_v31 }
 0x388   :  { %v4987_v53 = vadd.f32 %v7240_v24, %v4882_v40  ;;  %v7241_v45 = vpop.f32.mrb[190].mxu1  ;;  %v7296_v16 = vadd.f32 %v7295_v60, %v7294_v3  ;;  %6263 = vmatmul.mubr.f32.gmra.mrb[8].mxu0 %v4725_v30  ;;  %vm5105_vm6 = vcmp.ge.f32.partialorder %v5087_v17, 0.0  ;;  %v5113_v7 = vmul.f32 0.2, %v5087_v17 }
 0x389   :  { %v7242_v38 = vpop.f32.mrb[191].mxu1 }
 0x38a   :  { %v7243_v59 = vadd.f32 %v7242_v38, %v7241_v45  ;;  %v5092_v42 = vadd.f32 %v7296_v16, %v4987_v53  ;;  %v7297_v51 = vpop.f32.mrb[206].mxu0  ;;  %v5121_v55 = vsel %vm5105_vm6, %v5087_v17, %v5113_v7 }
 0x38b   :  { %v7298_v47 = vpop.f32.mrb[207].mxu0  ;;  %6267 = vmatprep.mubr.f32.mxu0 %v5121_v55 }
 0x38c   :  { %v4992_v52 = vadd.f32 %v7243_v59, %v4887_v25  ;;  %v7332_v54 = vpop.f32.mrb[192].mxu1  ;;  %v7299_v23 = vadd.f32 %v7298_v47, %v7297_v51  ;;  %6268 = vmatmul.mubr.f32.gmra.mrb[10].mxu0 %v4726_v50  ;;  %vm5106_vm9 = vcmp.ge.f32.partialorder %v5092_v42, 0.0  ;;  %v5114_v12 = vmul.f32 0.2, %v5092_v42 }
 0x38d   :  { %v7333_v37 = vpop.f32.mrb[193].mxu1 }
 0x38e   :  { %v5097_v6 = vadd.f32 %v7299_v23, %v4992_v52  ;;  %v7334_v14 = vadd.f32 %v7333_v37, %v7332_v54  ;;  %v7388_v10 = vpop.f32.mrb[208].mxu0  ;;  %v5122_v11 = vsel %vm5106_vm9, %v5092_v42, %v5114_v12  ;;  %v13032_v52 = vld [vmem:[%s13178_s4] ss:$0 sm:$0xff] }
 0x38f   :  { %v7389_v0 = vpop.f32.mrb[209].mxu0  ;;  %6272 = vmatprep.mubr.f32.mxu0 %v5122_v11 }
 0x390   :  { %v5247_v44 = vadd.f32 %v12739_v15, %v7334_v14  ;;  %v7335_v20 = vpop.f32.mrb[194].mxu1  ;;  %v7390_v19 = vadd.f32 %v7389_v0, %v7388_v10  ;;  %6273 = vmatmul.mubr.f32.gmra.mrb[12].mxu0 %v4727_v33  ;;  %vm5107_vm11 = vcmp.ge.f32.partialorder %v5097_v6, 0.0  ;;  %v5115_v46 = vmul.f32 0.2, %v5097_v6 }
 0x391   :  { %v7336_v9 = vpop.f32.mrb[195].mxu1 }
 0x392   :  { %v7337_v5 = vadd.f32 %v7336_v9, %v7335_v20  ;;  %v13019_v58 = vadd.f32 %v7390_v19, %v5247_v44  ;;  %v7391_v2 = vpop.f32.mrb[210].mxu0  ;;  %v5123_v26 = vsel %vm5107_vm11, %v5097_v6, %v5115_v46 }
 0x393   :  { %v7392_v63 = vpop.f32.mrb[211].mxu0  ;;  %6277 = vmatprep.mubr.f32.mxu0 %v5123_v26 }
 0x394   :  { %v5252_v34 = vadd.f32 %v12739_v15, %v7337_v5  ;;  %v7338_v41 = vpop.f32.mrb[196].mxu1  ;;  %v7393_v43 = vadd.f32 %v7392_v63, %v7391_v2  ;;  %6278 = vmatmul.mubr.f32.gmra.mrb[14].mxu0 %v4728_v8 }
 0x395   :  { %v7339_v36 = vpop.f32.mrb[197].mxu1 }
 0x396   :  { %v7340_v56 = vadd.f32 %v7339_v36, %v7338_v41  ;;  %v5357_v1 = vadd.f32 %v7393_v43, %v5252_v34  ;;  %v7394_v62 = vpop.f32.mrb[212].mxu0 }
 0x397   :  { %v7395_v21 = vpop.f32.mrb[213].mxu0 }
 0x398   :  { %v5257_v4 = vadd.f32 %v12739_v15, %v7340_v56  ;;  %v7341_v13 = vpop.f32.mrb[198].mxu1  ;;  %v7396_v57 = vadd.f32 %v7395_v21, %v7394_v62 }
 0x399   :  { %v7342_v39 = vpop.f32.mrb[199].mxu1 }
 0x39a   :  { %v7343_v61 = vadd.f32 %v7342_v39, %v7341_v13  ;;  %v5362_v49 = vadd.f32 %v7396_v57, %v5257_v4  ;;  %v7397_v28 = vpop.f32.mrb[214].mxu0 }
 0x39b   :  { %v7398_v35 = vpop.f32.mrb[215].mxu0 }
 0x39c   :  { %v5262_v48 = vadd.f32 %v12739_v15, %v7343_v61  ;;  %v7344_v18 = vpop.f32.mrb[200].mxu1  ;;  %v7399_v32 = vadd.f32 %v7398_v35, %v7397_v28 }
 0x39d   :  { %v7345_v40 = vpop.f32.mrb[201].mxu1 }
 0x39e   :  { %v7346_v24 = vadd.f32 %v7345_v40, %v7344_v18  ;;  %v5367_v17 = vadd.f32 %v7399_v32, %v5262_v48  ;;  %v7400_v3 = vpop.f32.mrb[216].mxu0 }
 0x39f   :  { %v7401_v31 = vpop.f32.mrb[217].mxu0 }
 0x3a0   :  { %v5267_v27 = vadd.f32 %v12739_v15, %v7346_v24  ;;  %v7347_v60 = vpop.f32.mrb[202].mxu1  ;;  %v7402_v30 = vadd.f32 %v7401_v31, %v7400_v3 }
 0x3a1   :  { %v7348_v53 = vpop.f32.mrb[203].mxu1 }
 0x3a2   :  { %v7349_v45 = vadd.f32 %v7348_v53, %v7347_v60  ;;  %v5372_v16 = vadd.f32 %v7402_v30, %v5267_v27  ;;  %v7403_v7 = vpop.f32.mrb[218].mxu0 }
 0x3a3   :  { %v7404_v38 = vpop.f32.mrb[219].mxu0 }
 0x3a4   :  { %v5272_v25 = vadd.f32 %v12739_v15, %v7349_v45  ;;  %v7350_v59 = vpop.f32.mrb[204].mxu1  ;;  %v7405_v42 = vadd.f32 %v7404_v38, %v7403_v7 }
 0x3a5   :  { %v7351_v51 = vpop.f32.mrb[205].mxu1 }
 0x3a6   :  { %v7352_v55 = vadd.f32 %v7351_v51, %v7350_v59  ;;  %v5377_v22 = vadd.f32 %v7405_v42, %v5272_v25  ;;  %v7406_v47 = vpop.f32.mrb[220].mxu0 }
 0x3a7   :  { %v7407_v50 = vpop.f32.mrb[221].mxu0 }
 0x3a8   :  { %v5277_v54 = vadd.f32 %v13032_v52, %v7352_v55  ;;  %v7353_v23 = vpop.f32.mrb[206].mxu1  ;;  %v7408_v12 = vadd.f32 %v7407_v50, %v7406_v47 }
 0x3a9   :  { %v7354_v37 = vpop.f32.mrb[207].mxu1 }
 0x3aa   :  { %v7355_v6 = vadd.f32 %v7354_v37, %v7353_v23  ;;  %v5382_v14 = vadd.f32 %v7408_v12, %v5277_v54  ;;  %v7409_v15 = vpop.f32.mrb[222].mxu0 }
 0x3ab   :  { %v7410_v10 = vpop.f32.mrb[223].mxu0 }
 0x3ac   :  { %v5282_v11 = vadd.f32 %v13032_v52, %v7355_v6  ;;  %v7411_v0 = vadd.f32 %v7410_v10, %v7409_v15 }
 0x3ad   :  { %v7444_v29 = vpop.f32.mrb[208].mxu1 }
 0x3ae   :  { %v7445_v33 = vpop.f32.mrb[209].mxu1  ;;  %v5387_v44 = vadd.f32 %v7411_v0, %v5282_v11 }
 0x3af   :  { %v7446_v20 = vadd.f32 %v7445_v33, %v7444_v29  ;;  %v7500_v19 = vpop.f32.mrb[224].mxu0 }
 0x3b0   :  { %v7501_v46 = vpop.f32.mrb[225].mxu0 }
 0x3b1   :  { %v13037_v9 = vadd.f32 %v7446_v20, %v13019_v58  ;;  %v7447_v5 = vpop.f32.mrb[210].mxu1  ;;  %v7502_v2 = vadd.f32 %v7501_v46, %v7500_v19 }
 0x3b2   :  { %v7448_v26 = vpop.f32.mrb[211].mxu1 }
 0x3b3   :  { %v7449_v63 = vadd.f32 %v7448_v26, %v7447_v5  ;;  %v7503_v8 = vpop.f32.mrb[226].mxu0  ;;  %v5642_v10 = vadd.f32 %v13032_v52, %v7502_v2  ;;  %vm5495_vm12 = vcmp.ge.f32.partialorder %v13037_v9, 0.0 }
 0x3b4   :  { %v7504_v34 = vpop.f32.mrb[227].mxu0 }
 0x3b5   :  { %v13039_v41 = vadd.f32 %v7449_v63, %v5357_v1  ;;  %v7450_v43 = vpop.f32.mrb[212].mxu1  ;;  %v7505_v36 = vadd.f32 %v7504_v34, %v7503_v8 }
 0x3b6   :  { %v7451_v56 = vpop.f32.mrb[213].mxu1 }
 0x3b7   :  { %v7452_v62 = vadd.f32 %v7451_v56, %v7450_v43  ;;  %v7506_v21 = vpop.f32.mrb[228].mxu0  ;;  %v5647_v46 = vadd.f32 %v13032_v52, %v7505_v36  ;;  %vm5496_vm14 = vcmp.ge.f32.partialorder %v13039_v41, 0.0 }
 0x3b8   :  { %v7507_v4 = vpop.f32.mrb[229].mxu0 }
 0x3b9   :  { %v13041_v13 = vadd.f32 %v7452_v62, %v5362_v49  ;;  %v7453_v57 = vpop.f32.mrb[214].mxu1  ;;  %v7508_v39 = vadd.f32 %v7507_v4, %v7506_v21 }
 0x3ba   :  { %v7454_v58 = vpop.f32.mrb[215].mxu1 }
 0x3bb   :  { %v7455_v61 = vadd.f32 %v7454_v58, %v7453_v57  ;;  %v7509_v28 = vpop.f32.mrb[230].mxu0  ;;  %v5652_v21 = vadd.f32 %v13032_v52, %v7508_v39  ;;  %vm5497_vm1 = vcmp.ge.f32.partialorder %v13041_v13, 0.0 }
 0x3bc   :  { %v7510_v35 = vpop.f32.mrb[231].mxu0 }
 0x3bd   :  { %v13043_v48 = vadd.f32 %v7455_v61, %v5367_v17  ;;  %v7456_v18 = vpop.f32.mrb[216].mxu1  ;;  %v13045_v32 = vadd.f32 %v7510_v35, %v7509_v28  ;;  %v5504_v28 = vmul.f32 0.2, %v13039_v41 }
 0x3be   :  { %v7457_v1 = vpop.f32.mrb[217].mxu1 }
 0x3bf   :  { %v7458_v40 = vadd.f32 %v7457_v1, %v7456_v18  ;;  %v7512_v24 = vpop.f32.mrb[232].mxu0  ;;  %v5657_v39 = vadd.f32 %v13032_v52, %v13045_v32  ;;  %vm5498_vm3 = vcmp.ge.f32.partialorder %v13043_v48, 0.0 }
 0x3c0   :  { %v7513_v3 = vpop.f32.mrb[233].mxu0 }
 0x3c1   :  { %v13047_v31 = vadd.f32 %v7458_v40, %v5372_v16  ;;  %v7459_v27 = vpop.f32.mrb[218].mxu1  ;;  %v13049_v49 = vadd.f32 %v7513_v3, %v7512_v24 }
 0x3c2   :  { %v7460_v60 = vpop.f32.mrb[219].mxu1 }
 0x3c3   :  { %v7461_v30 = vadd.f32 %v7460_v60, %v7459_v27  ;;  %v7515_v53 = vpop.f32.mrb[234].mxu0  ;;  %vm5499_vm4 = vcmp.ge.f32.partialorder %v13047_v31, 0.0 }
 0x3c4   :  { %v7516_v45 = vpop.f32.mrb[235].mxu0 }
 0x3c5   :  { %v13051_v7 = vadd.f32 %v7461_v30, %v5377_v22  ;;  %v7462_v17 = vpop.f32.mrb[220].mxu1  ;;  %v13053_v38 = vadd.f32 %v7516_v45, %v7515_v53  ;;  %v5505_v53 = vmul.f32 0.2, %v13041_v13 }
 0x3c6   :  { %v7463_v25 = vpop.f32.mrb[221].mxu1 }
 0x3c7   :  { %v7464_v59 = vadd.f32 %v7463_v25, %v7462_v17  ;;  %v7518_v42 = vpop.f32.mrb[236].mxu0  ;;  %v5512_v17 = vsel %vm5496_vm14, %v13039_v41, %v5504_v28  ;;  %v5513_v41 = vsel %vm5497_vm1, %v13041_v13, %v5505_v53  ;;  %vm5500_vm6 = vcmp.ge.f32.partialorder %v13051_v7, 0.0 }
 0x3c8   :  { %v7519_v51 = vpop.f32.mrb[237].mxu0 }
 0x3c9   :  { %v13055_v55 = vadd.f32 %v7464_v59, %v5382_v14  ;;  %v7465_v16 = vpop.f32.mrb[222].mxu1  ;;  %v13057_v47 = vadd.f32 %v7519_v51, %v7518_v42 }
 0x3ca   :  { %v7466_v50 = vpop.f32.mrb[223].mxu1 }
 0x3cb   :  { %v7467_v54 = vadd.f32 %v7466_v50, %v7465_v16  ;;  %v7521_v23 = vpop.f32.mrb[238].mxu0  ;;  %v5662_v16 = vadd.f32 %v13032_v52, %v13049_v49  ;;  %vm5501_vm9 = vcmp.ge.f32.partialorder %v13055_v55, 0.0 }
 0x3cc   :  { %v7522_v12 = vpop.f32.mrb[239].mxu0 }
 0x3cd   :  { %v13059_v37 = vadd.f32 %v7467_v54, %v5387_v44  ;;  %v13061_v6 = vadd.f32 %v7522_v12, %v7521_v23  ;;  %v5503_v44 = vmul.f32 0.2, %v13037_v9 }
 0x3ce   :  { %v7556_v22 = vpop.f32.mrb[224].mxu1 }
 0x3cf   :  { %v7557_v15 = vpop.f32.mrb[225].mxu1  ;;  %v7612_v29 = vpop.f32.mrb[240].mxu0  ;;  %v5511_v61 = vsel %vm5495_vm12, %v13037_v9, %v5503_v44  ;;  %vm5502_vm11 = vcmp.ge.f32.partialorder %v13059_v37, 0.0 }
 0x3d0   :  { %v7558_v11 = vadd.f32 %v7557_v15, %v7556_v22  ;;  %v7613_v0 = vpop.f32.mrb[241].mxu0  ;;  %v5506_v22 = vmul.f32 0.2, %v13043_v48 }
 0x3d1   :  { %v7614_v20 = vadd.f32 %v7613_v0, %v7612_v29 }
 0x3d2   :  { %v5747_v14 = vadd.f32 %v7558_v11, %v5642_v10  ;;  %v7559_v33 = vpop.f32.mrb[226].mxu1  ;;  %v5514_v13 = vsel %vm5498_vm3, %v13043_v48, %v5506_v22 }
 0x3d3   :  { %v7560_v19 = vpop.f32.mrb[227].mxu1  ;;  %v7615_v63 = vpop.f32.mrb[242].mxu0 }
 0x3d4   :  { %v7561_v5 = vadd.f32 %v7560_v19, %v7559_v33  ;;  %v5852_v26 = vadd.f32 %v7614_v20, %v5747_v14  ;;  %v7616_v8 = vpop.f32.mrb[243].mxu0  ;;  %v5667_v14 = vadd.f32 %v13032_v52, %v13053_v38 }
 0x3d5   :  { %v7617_v2 = vadd.f32 %v7616_v8, %v7615_v63 }
 0x3d6   :  { %v5752_v34 = vadd.f32 %v7561_v5, %v5647_v46  ;;  %v7562_v43 = vpop.f32.mrb[228].mxu1  ;;  %vm5890_vm13 = vcmp.ge.f32.partialorder %v5852_v26, 0.0  ;;  %v5898_v56 = vmul.f32 0.2, %v5852_v26  ;;  %v5507_v5 = vmul.f32 0.2, %v13047_v31 }
 0x3d7   :  { %v7563_v62 = vpop.f32.mrb[229].mxu1  ;;  %v7618_v58 = vpop.f32.mrb[244].mxu0 }
 0x3d8   :  { %v7564_v4 = vadd.f32 %v7563_v62, %v7562_v43  ;;  %v5857_v57 = vadd.f32 %v7617_v2, %v5752_v34  ;;  %v5906_v36 = vsel %vm5890_vm13, %v5852_v26, %v5898_v56  ;;  %v7619_v35 = vpop.f32.mrb[245].mxu0  ;;  %v5672_v43 = vadd.f32 %v13032_v52, %v13057_v47 }
 0x3d9   :  { %6347 = vmatprep.mubr.f32.mxu1 %v5906_v36  ;;  %v7620_v40 = vadd.f32 %v7619_v35, %v7618_v58  ;;  %v5515_v48 = vsel %vm5499_vm4, %v13047_v31, %v5507_v5  ;;  %v5677_v35 = vadd.f32 %v13032_v52, %v13061_v6 }
 0x3da   :  { %v5757_v18 = vadd.f32 %v7564_v4, %v5652_v21  ;;  %v7565_v1 = vpop.f32.mrb[230].mxu1  ;;  %6348 = vmatmul.mubr.f32.vlgmr.msra.gmra.mrb[0].mxu1 %v5511_v61  ;;  %vm5891_vm15 = vcmp.ge.f32.partialorder %v5857_v57, 0.0  ;;  %v5899_v24 = vmul.f32 0.2, %v5857_v57  ;;  %v5508_v4 = vmul.f32 0.2, %v13051_v7 }
 0x3db   :  { %v7566_v3 = vpop.f32.mrb[231].mxu1 }
 0x3dc   :  { %v7567_v27 = vadd.f32 %v7566_v3, %v7565_v1  ;;  %v5862_v60 = vadd.f32 %v7620_v40, %v5757_v18  ;;  %v7621_v30 = vpop.f32.mrb[246].mxu0  ;;  %v5907_v9 = vsel %vm5891_vm15, %v5857_v57, %v5899_v24  ;;  %v5509_v3 = vmul.f32 0.2, %v13055_v55 }
 0x3dd   :  { %v7622_v45 = vpop.f32.mrb[247].mxu0  ;;  %6352 = vmatprep.mubr.f32.mxu1 %v5907_v9  ;;  %v5516_v31 = vsel %vm5500_vm6, %v13051_v7, %v5508_v4 }
 0x3de   :  { %v5762_v25 = vadd.f32 %v7567_v27, %v5657_v39  ;;  %v7568_v59 = vpop.f32.mrb[232].mxu1  ;;  %v7623_v42 = vadd.f32 %v7622_v45, %v7621_v30  ;;  %6353 = vmatmul.mubr.f32.gmra.mrb[2].mxu1 %v5512_v17  ;;  %vm5892_vm2 = vcmp.ge.f32.partialorder %v5862_v60, 0.0  ;;  %v5900_v32 = vmul.f32 0.2, %v5862_v60 }
 0x3df   :  { %v7569_v51 = vpop.f32.mrb[233].mxu1  ;;  %v5510_v17 = vmul.f32 0.2, %v13059_v37 }
 0x3e0   :  { %v7570_v50 = vadd.f32 %v7569_v51, %v7568_v59  ;;  %v5867_v54 = vadd.f32 %v7623_v42, %v5762_v25  ;;  %v7624_v23 = vpop.f32.mrb[248].mxu0  ;;  %v5908_v12 = vsel %vm5892_vm2, %v5862_v60, %v5900_v32  ;;  %v5517_v25 = vsel %vm5501_vm9, %v13055_v55, %v5509_v3 }
 0x3e1   :  { %v7625_v15 = vpop.f32.mrb[249].mxu0  ;;  %6357 = vmatprep.mubr.f32.mxu1 %v5908_v12 }
 0x3e2   :  { %v5767_v10 = vadd.f32 %v7570_v50, %v5662_v16  ;;  %v7626_v29 = vadd.f32 %v7625_v15, %v7624_v23  ;;  %6358 = vmatmul.mubr.f32.gmra.mrb[4].mxu1 %v5513_v41  ;;  %vm5893_vm0 = vcmp.ge.f32.partialorder %v5867_v54, 0.0  ;;  %v5901_v49 = vmul.f32 0.2, %v5867_v54 }
 0x3e3   :  { %v7571_v11 = vpop.f32.mrb[234].mxu1  ;;  %v5518_v16 = vsel %vm5502_vm11, %v13059_v37, %v5510_v17  ;;  %v6625_v37 = vld [vmem:[%s13180_s6] ss:$0 sm:$0xff] }
 0x3e4   :  { %v7572_v0 = vpop.f32.mrb[235].mxu1  ;;  %v5872_v20 = vadd.f32 %v7626_v29, %v5767_v10  ;;  %v7627_v19 = vpop.f32.mrb[250].mxu0  ;;  %v5909_v46 = vsel %vm5893_vm0, %v5867_v54, %v5901_v49 }
 0x3e5   :  { %v7573_v33 = vadd.f32 %v7572_v0, %v7571_v11  ;;  %v7628_v26 = vpop.f32.mrb[251].mxu0  ;;  %6362 = vmatprep.mubr.f32.mxu1 %v5909_v46 }
 0x3e6   :  { %v7629_v8 = vadd.f32 %v7628_v26, %v7627_v19  ;;  %6363 = vmatmul.mubr.f32.gmra.mrb[6].mxu1 %v5514_v13  ;;  %vm5894_vm5 = vcmp.ge.f32.partialorder %v5872_v20, 0.0  ;;  %v5902_v38 = vmul.f32 0.2, %v5872_v20 }
 0x3e7   :  { %v5772_v63 = vadd.f32 %v7573_v33, %v5667_v14 }
 0x3e8   :  { %v7574_v44 = vpop.f32.mrb[236].mxu1  ;;  %v5910_v21 = vsel %vm5894_vm5, %v5872_v20, %v5902_v38 }
 0x3e9   :  { %v7575_v34 = vpop.f32.mrb[237].mxu1  ;;  %v5877_v56 = vadd.f32 %v7629_v8, %v5772_v63  ;;  %v7630_v62 = vpop.f32.mrb[252].mxu0  ;;  %6367 = vmatprep.mubr.f32.mxu1 %v5910_v21 }
 0x3ea   :  { %v7576_v2 = vadd.f32 %v7575_v34, %v7574_v44  ;;  %v7631_v57 = vpop.f32.mrb[253].mxu0  ;;  %6368 = vmatmul.mubr.f32.gmra.mrb[8].mxu1 %v5515_v48 }
 0x3eb   :  { %v7632_v61 = vadd.f32 %v7631_v57, %v7630_v62  ;;  %vm5895_vm8 = vcmp.ge.f32.partialorder %v5877_v56, 0.0  ;;  %v5903_v47 = vmul.f32 0.2, %v5877_v56 }
 0x3ec   :  { %v5777_v58 = vadd.f32 %v7576_v2, %v5672_v43  ;;  %v7577_v36 = vpop.f32.mrb[238].mxu1 }
 0x3ed   :  { %v7578_v28 = vpop.f32.mrb[239].mxu1  ;;  %v7633_v40 = vpop.f32.mrb[254].mxu0  ;;  %v5911_v24 = vsel %vm5895_vm8, %v5877_v56, %v5903_v47 }
 0x3ee   :  { %v7579_v18 = vadd.f32 %v7578_v28, %v7577_v36  ;;  %v5882_v1 = vadd.f32 %v7632_v61, %v5777_v58  ;;  %v7634_v39 = vpop.f32.mrb[255].mxu0  ;;  %6372 = vmatprep.mubr.f32.mxu1 %v5911_v24 }
 0x3ef   :  { %v7635_v60 = vadd.f32 %v7634_v39, %v7633_v40  ;;  %6373 = vmatmul.mubr.f32.gmra.mrb[10].mxu1 %v5516_v31 }
 0x3f0   :  { %v5782_v27 = vadd.f32 %v7579_v18, %v5677_v35  ;;  %vm5896_vm10 = vcmp.ge.f32.partialorder %v5882_v1, 0.0  ;;  %v5904_v52 = vmul.f32 0.2, %v5882_v1 }
 0x3f2   :  { %v7668_v30 = vpop.f32.mrb[240].mxu1  ;;  %v5887_v9 = vadd.f32 %v7635_v60, %v5782_v27  ;;  %v5912_v45 = vsel %vm5896_vm10, %v5882_v1, %v5904_v52 }
 0x3f3   :  { %v7669_v6 = vpop.f32.mrb[241].mxu1  ;;  %6377 = vmatprep.mubr.f32.mxu1 %v5912_v45 }
 0x3f4   :  { %v7670_v53 = vadd.f32 %v7669_v6, %v7668_v30  ;;  %6378 = vmatmul.mubr.f32.gmra.mrb[12].mxu1 %v5517_v25  ;;  %vm5897_vm12 = vcmp.ge.f32.partialorder %v5887_v9, 0.0  ;;  %v5905_v59 = vmul.f32 0.2, %v5887_v9 }
 0x3f6   :  { %v7671_v7 = vpop.f32.mrb[242].mxu1  ;;  %v5913_v51 = vsel %vm5897_vm12, %v5887_v9, %v5905_v59  ;;  %v6140_v13 = vadd.f32 %v7670_v53, %v6625_v37 }
 0x3f7   :  { %v7672_v42 = vpop.f32.mrb[243].mxu1  ;;  %6382 = vmatprep.mubr.f32.mxu1 %v5913_v51 }
 0x3f8   :  { %v7673_v32 = vadd.f32 %v7672_v42, %v7671_v7  ;;  %6383 = vmatmul.mubr.f32.gmra.mrb[14].mxu1 %v5518_v16 }
 0x3fa   :  { %v7674_v50 = vpop.f32.mrb[244].mxu1  ;;  %v6145_v34 = vadd.f32 %v7673_v32, %v6625_v37 }
 0x3fb   :  { %v7675_v54 = vpop.f32.mrb[245].mxu1 }
 0x3fc   :  { %v7676_v23 = vadd.f32 %v7675_v54, %v7674_v50 }
 0x3fe   :  { %v7677_v12 = vpop.f32.mrb[246].mxu1  ;;  %v6150_v21 = vadd.f32 %v7676_v23, %v6625_v37 }
 0x3ff   :  { %v7678_v22 = vpop.f32.mrb[247].mxu1 }
 0x400   :  { %v7679_v15 = vadd.f32 %v7678_v22, %v7677_v12  ;;  %v13122_v12 = vld [vmem:[%s13181_s7] ss:$0 sm:$0xff] }
 0x402   :  { %v7680_v55 = vpop.f32.mrb[248].mxu1  ;;  %v6155_v36 = vadd.f32 %v7679_v15, %v6625_v37 }
 0x403   :  { %v7681_v41 = vpop.f32.mrb[249].mxu1 }
 0x404   :  { %v7682_v10 = vadd.f32 %v7681_v41, %v7680_v55 }
 0x406   :  { %v7683_v11 = vpop.f32.mrb[250].mxu1  ;;  %v6160_v18 = vadd.f32 %v7682_v10, %v6625_v37 }
 0x407   :  { %v7684_v29 = vpop.f32.mrb[251].mxu1 }
 0x408   :  { %v7685_v49 = vadd.f32 %v7684_v29, %v7683_v11 }
 0x40a   :  { %v7686_v0 = vpop.f32.mrb[252].mxu1  ;;  %v6165_v39 = vadd.f32 %v7685_v49, %v6625_v37 }
 0x40b   :  { %v7687_v14 = vpop.f32.mrb[253].mxu1 }
 0x40c   :  { %v7688_v33 = vadd.f32 %v7687_v14, %v7686_v0 }
 0x40e   :  { %v7689_v20 = vpop.f32.mrb[254].mxu1  ;;  %v6170_v52 = vadd.f32 %v7688_v33, %v6625_v37 }
 0x40f   :  { %v7690_v19 = vpop.f32.mrb[255].mxu1 }
 0x410   :  { %v7691_v46 = vadd.f32 %v7690_v19, %v7689_v20 }
 0x412   :  { %v6175_v17 = vadd.f32 %v7691_v46, %v6625_v37 }
 0x44b   :  { %v7724_v5 = vpop.f32.mrb[0].mxu0 }
 0x44c   :  { %v7725_v26 = vpop.f32.mrb[1].mxu0 }
 0x44d   :  { %v7726_v63 = vadd.f32 %v7725_v26, %v7724_v5 }
 0x44f   :  { %v6245_v44 = vadd.f32 %v7726_v63, %v6140_v13  ;;  %v7727_v8 = vpop.f32.mrb[2].mxu0 }
 0x450   :  { %v7728_v38 = vpop.f32.mrb[3].mxu0 }
 0x451   :  { %v7729_v43 = vadd.f32 %v7728_v38, %v7727_v8 }
 0x453   :  { %v6250_v2 = vadd.f32 %v7729_v43, %v6145_v34  ;;  %v7730_v56 = vpop.f32.mrb[4].mxu0 }
 0x454   :  { %v7731_v62 = vpop.f32.mrb[5].mxu0 }
 0x455   :  { %v7732_v4 = vadd.f32 %v7731_v62, %v7730_v56 }
 0x457   :  { %v6255_v57 = vadd.f32 %v7732_v4, %v6150_v21  ;;  %v7733_v48 = vpop.f32.mrb[6].mxu0 }
 0x458   :  { %v7734_v58 = vpop.f32.mrb[7].mxu0 }
 0x459   :  { %v7735_v61 = vadd.f32 %v7734_v58, %v7733_v48 }
 0x45b   :  { %v6260_v47 = vadd.f32 %v7735_v61, %v6155_v36  ;;  %v7736_v28 = vpop.f32.mrb[8].mxu0 }
 0x45c   :  { %v7737_v35 = vpop.f32.mrb[9].mxu0 }
 0x45d   :  { %v7738_v1 = vadd.f32 %v7737_v35, %v7736_v28 }
 0x45f   :  { %v6265_v40 = vadd.f32 %v7738_v1, %v6160_v18  ;;  %v7739_v24 = vpop.f32.mrb[10].mxu0 }
 0x460   :  { %v7740_v3 = vpop.f32.mrb[11].mxu0 }
 0x461   :  { %v7741_v31 = vadd.f32 %v7740_v3, %v7739_v24 }
 0x463   :  { %v6270_v27 = vadd.f32 %v7741_v31, %v6165_v39  ;;  %v7742_v60 = vpop.f32.mrb[12].mxu0 }
 0x464   :  { %v7743_v30 = vpop.f32.mrb[13].mxu0 }
 0x465   :  { %v7744_v6 = vadd.f32 %v7743_v30, %v7742_v60 }
 0x467   :  { %v13115_v9 = vadd.f32 %v7744_v6, %v6170_v52  ;;  %v7745_v53 = vpop.f32.mrb[14].mxu0 }
 0x468   :  { %v7746_v45 = vpop.f32.mrb[15].mxu0 }
 0x469   :  { %v7747_v25 = vadd.f32 %v7746_v45, %v7745_v53 }
 0x46b   :  { %v13117_v7 = vadd.f32 %v7747_v25, %v6175_v17 }
 0x4ad   :  { %v7780_v59 = vpop.f32.mrb[0].mxu1 }
 0x4ae   :  { %v7781_v42 = vpop.f32.mrb[1].mxu1 }
 0x4af   :  { %v7782_v32 = vadd.f32 %v7781_v42, %v7780_v59 }
 0x4b1   :  { %v6350_v51 = vadd.f32 %v7782_v32, %v6245_v44  ;;  %v7783_v16 = vpop.f32.mrb[2].mxu1  ;;  %v6627_v32 = vld [vmem:[#allocation4] ss:$0 sm:$0xff] }
 0x4b2   :  { %v7784_v50 = vpop.f32.mrb[3].mxu1 }
 0x4b3   :  { %v6396_v54 = vmul.f32 0.2, %v6350_v51  ;;  %v7785_v23 = vadd.f32 %v7784_v50, %v7783_v16  ;;  %vm6388_vm13 = vcmp.ge.f32.partialorder %v6350_v51, 0.0 }
 0x4b5   :  { %v6355_v22 = vadd.f32 %v7785_v23, %v6250_v2  ;;  %v7786_v15 = vpop.f32.mrb[4].mxu1  ;;  %v6404_v55 = vsel %vm6388_vm13, %v6350_v51, %v6396_v54 }
 0x4b6   :  { %v7787_v41 = vpop.f32.mrb[5].mxu1  ;;  %v6420_v10 = vmul.f32 %v13122_v12, %v6404_v55 }
 0x4b7   :  { %v6397_v11 = vmul.f32 0.2, %v6355_v22  ;;  %v7788_v29 = vadd.f32 %v7787_v41, %v7786_v15  ;;  %vm6389_vm14 = vcmp.ge.f32.partialorder %v6355_v22, 0.0 }
 0x4b8   :  { %v6428_v49 = vsel %vm2183_vm7, %v6420_v10, 0.0 }
 0x4b9   :  { %v6360_v0 = vadd.f32 %v7788_v29, %v6255_v57  ;;  %v7789_v14 = vpop.f32.mrb[6].mxu1  ;;  %6429 = vadd.xlane.f32.xlu0 %v6428_v49  ;;  %v6405_v33 = vsel %vm6389_vm14, %v6355_v22, %v6397_v11 }
 0x4ba   :  { %v7790_v20 = vpop.f32.mrb[7].mxu1  ;;  %v6421_v19 = vmul.f32 %v13122_v12, %v6405_v33 }
 0x4bb   :  { %v6398_v46 = vmul.f32 0.2, %v6360_v0  ;;  %v7791_v37 = vadd.f32 %v7790_v20, %v7789_v14  ;;  %vm6390_vm15 = vcmp.ge.f32.partialorder %v6360_v0, 0.0 }
 0x4bc   :  { %v6431_v5 = vsel %vm2183_vm7, %v6421_v19, 0.0 }
 0x4bd   :  { %v6365_v26 = vadd.f32 %v7791_v37, %v6260_v47  ;;  %v7792_v13 = vpop.f32.mrb[8].mxu1  ;;  %6432 = vadd.xlane.f32.xlu1 %v6431_v5  ;;  %v6406_v63 = vsel %vm6390_vm15, %v6360_v0, %v6398_v46 }
 0x4be   :  { %v7793_v44 = vpop.f32.mrb[9].mxu1  ;;  %v6422_v8 = vmul.f32 %v13122_v12, %v6406_v63 }
 0x4bf   :  { %v6399_v38 = vmul.f32 0.2, %v6365_v26  ;;  %v7794_v34 = vadd.f32 %v7793_v44, %v7792_v13  ;;  %vm6391_vm1 = vcmp.ge.f32.partialorder %v6365_v26, 0.0 }
 0x4c0   :  { %v6434_v43 = vsel %vm2183_vm7, %v6422_v8, 0.0 }
 0x4c1   :  { %v6370_v2 = vadd.f32 %v7794_v34, %v6265_v40  ;;  %6435 = vadd.xlane.f32.xlu0 %v6434_v43  ;;  %v6407_v62 = vsel %vm6391_vm1, %v6365_v26, %v6399_v38 }
 0x4c2   :  { %v7795_v56 = vpop.f32.mrb[10].mxu1  ;;  %v6423_v4 = vmul.f32 %v13122_v12, %v6407_v62 }
 0x4c3   :  { %v7796_v21 = vpop.f32.mrb[11].mxu1  ;;  %v6400_v57 = vmul.f32 0.2, %v6370_v2  ;;  %vm6392_vm2 = vcmp.ge.f32.partialorder %v6370_v2, 0.0 }
 0x4c4   :  { %v7797_v48 = vadd.f32 %v7796_v21, %v7795_v56  ;;  %v6437_v58 = vsel %vm2183_vm7, %v6423_v4, 0.0 }
 0x4c5   :  { %6438 = vadd.xlane.f32.xlu0 %v6437_v58  ;;  %v6408_v47 = vsel %vm6392_vm2, %v6370_v2, %v6400_v57 }
 0x4c6   :  { %v6375_v36 = vadd.f32 %v7797_v48, %v6270_v27  ;;  %v6424_v35 = vmul.f32 %v13122_v12, %v6408_v47 }
 0x4c7   :  { %v7798_v61 = vpop.f32.mrb[12].mxu1 }
 0x4c8   :  { %v7799_v28 = vpop.f32.mrb[13].mxu1  ;;  %v6401_v18 = vmul.f32 0.2, %v6375_v36  ;;  %vm6393_vm3 = vcmp.ge.f32.partialorder %v6375_v36, 0.0  ;;  %v6440_v40 = vsel %vm2183_vm7, %v6424_v35, 0.0 }
 0x4c9   :  { %v7800_v1 = vadd.f32 %v7799_v28, %v7798_v61  ;;  %6441 = vadd.xlane.f32.xlu1 %v6440_v40 }
 0x4ca   :  { %v6409_v39 = vsel %vm6393_vm3, %v6375_v36, %v6401_v18 }
 0x4cb   :  { %v6380_v24 = vadd.f32 %v7800_v1, %v13115_v9  ;;  %v7801_v3 = vpop.f32.mrb[14].mxu1  ;;  %v6425_v60 = vmul.f32 %v13122_v12, %v6409_v39 }
 0x4cc   :  { %v7802_v31 = vpop.f32.mrb[15].mxu1 }
 0x4cd   :  { %v6402_v27 = vmul.f32 0.2, %v6380_v24  ;;  %v7803_v30 = vadd.f32 %v7802_v31, %v7801_v3  ;;  %vm6394_vm0 = vcmp.ge.f32.partialorder %v6380_v24, 0.0  ;;  %v6443_v52 = vsel %vm2183_vm7, %v6425_v60, 0.0 }
 0x4ce   :  { %6444 = vadd.xlane.f32.xlu0 %v6443_v52 }
 0x4cf   :  { %v6385_v6 = vadd.f32 %v7803_v30, %v13117_v7  ;;  %v6410_v53 = vsel %vm6394_vm0, %v6380_v24, %v6402_v27 }
 0x4d0   :  { %v6426_v45 = vmul.f32 %v13122_v12, %v6410_v53 }
 0x4d1   :  { %v6403_v17 = vmul.f32 0.2, %v6385_v6  ;;  %vm6395_vm4 = vcmp.ge.f32.partialorder %v6385_v6, 0.0 }
 0x4d2   :  { %v6446_v9 = vsel %vm2183_vm7, %v6426_v45, 0.0 }
 0x4d3   :  { %6447 = vadd.xlane.f32.xlu1 %v6446_v9  ;;  %v6411_v25 = vsel %vm6395_vm4, %v6385_v6, %v6403_v17 }
 0x4d4   :  { %v6427_v59 = vmul.f32 %v13122_v12, %v6411_v25 }
 0x4d6   :  { %v6449_v42 = vsel %vm2183_vm7, %v6427_v59, 0.0  ;;  %vm6506_vm7 = vcmask 7168  }
 0x4d7   :  { %6450 = vadd.xlane.f32.xlu0 %v6449_v42 }
 0x546   :  { %v6430_v51 = vpop.xlane.xlu0 %6429 }
 0x547   :  { %v6458_v16 = vadd.f32 %v6627_v32, %v6430_v51 }
 0x549   :  { %v6466_v50 = vsub.f32 0.0, %v6458_v16 }
 0x54a   :  { %v6433_v7 = vpop.xlane.xlu1 %6432 }
 0x54b   :  { %v6474_v54 = vmul.f32 1.442695, %v6466_v50  ;;  %v6459_v23 = vadd.f32 %v6627_v32, %v6433_v7 }
 0x54d   :  { %8856 = vpow2.f32 %v6474_v54  ;;  %v6467_v22 = vsub.f32 0.0, %v6459_v23 }
 0x54e   :  { %v6436_v15 = vpop.xlane.xlu0 %6435 }
 0x54f   :  { %v6476_v55 = vmul.f32 1.442695, %v6467_v22  ;;  %v6460_v41 = vadd.f32 %v6627_v32, %v6436_v15 }
 0x551   :  { %8858 = vpow2.f32 %v6476_v55  ;;  %v6468_v10 = vsub.f32 0.0, %v6460_v41 }
 0x552   :  { %v6439_v11 = vpop.xlane.xlu0 %6438 }
 0x553   :  { %v6478_v29 = vmul.f32 1.442695, %v6468_v10  ;;  %v6461_v12 = vadd.f32 %v6627_v32, %v6439_v11 }
 0x555   :  { %8860 = vpow2.f32 %v6478_v29  ;;  %v6469_v49 = vsub.f32 0.0, %v6461_v12 }
 0x556   :  { %v6442_v0 = vpop.xlane.xlu1 %6441 }
 0x557   :  { %v8857_v14 = vpop.eup %8856  ;;  %v6480_v33 = vmul.f32 1.442695, %v6469_v49  ;;  %v6462_v20 = vadd.f32 %v6627_v32, %v6442_v0 }
 0x558   :  { %v6490_v19 = vadd.f32 1.0, %v8857_v14 }
 0x559   :  { %8862 = vpow2.f32 %v6480_v33  ;;  %v6470_v46 = vsub.f32 0.0, %v6462_v20 }
 0x55a   :  { %8864 = vrcp.f32 %v6490_v19 }
 0x55b   :  { %v6445_v37 = vpop.xlane.xlu0 %6444  ;;  %v8859_v5 = vpop.eup %8858  ;;  %v6482_v26 = vmul.f32 1.442695, %v6470_v46 }
 0x55c   :  { %v6463_v13 = vadd.f32 %v6627_v32, %v6445_v37  ;;  %v6491_v63 = vadd.f32 1.0, %v8859_v5 }
 0x55d   :  { %8866 = vpow2.f32 %v6482_v26 }
 0x55e   :  { %v6471_v44 = vsub.f32 0.0, %v6463_v13  ;;  %8868 = vrcp.f32 %v6491_v63 }
 0x55f   :  { %v8861_v38 = vpop.eup %8860 }
 0x560   :  { %v6448_v8 = vpop.xlane.xlu1 %6447  ;;  %v6484_v34 = vmul.f32 1.442695, %v6471_v44  ;;  %v6492_v2 = vadd.f32 1.0, %v8861_v38 }
 0x561   :  { %v6464_v43 = vadd.f32 %v6627_v32, %v6448_v8 }
 0x562   :  { %8870 = vpow2.f32 %v6484_v34 }
 0x563   :  { %v6472_v56 = vsub.f32 0.0, %v6464_v43  ;;  %8872 = vrcp.f32 %v6492_v2  ;;  %v8863_v21 = vpop.eup %8862 }
 0x564   :  { %v6451_v62 = vpop.xlane.xlu0 %6450  ;;  %v8865_v48 = vpop.eup %8864  ;;  %v6493_v58 = vadd.f32 1.0, %v8863_v21 }
 0x565   :  { %v6486_v4 = vmul.f32 1.442695, %v6472_v56  ;;  %v6465_v57 = vadd.f32 %v6627_v32, %v6451_v62  ;;  %6507 = vst.msk [vmem:[%s13183_s9] sm:$0xff] %vm6506_vm7, %v8865_v48 }
 0x567   :  { %8874 = vpow2.f32 %v6486_v4  ;;  %v6473_v36 = vsub.f32 0.0, %v6465_v57  ;;  %v8867_v61 = vpop.eup %8866 }
 0x568   :  { %8876 = vrcp.f32 %v6493_v58  ;;  %v8869_v28 = vpop.eup %8868  ;;  %v6494_v35 = vadd.f32 1.0, %v8867_v61 }
 0x569   :  { %v6488_v47 = vmul.f32 1.442695, %v6473_v36  ;;  %6508 = vst.msk [vmem:[%s13183_s9 + $0x8] sm:$0xff] %vm6506_vm7, %v8869_v28 }
 0x56b   :  { %8878 = vpow2.f32 %v6488_v47 }
 0x56c   :  { %8880 = vrcp.f32 %v6494_v35  ;;  %v8871_v18 = vpop.eup %8870 }
 0x56d   :  { %v8873_v1 = vpop.eup %8872  ;;  %v6495_v40 = vadd.f32 1.0, %v8871_v18 }
 0x56e   :  { %6509 = vst.msk [vmem:[%s13183_s9 + $0x10] sm:$0xff] %vm6506_vm7, %v8873_v1 }
 0x56f   :  { %8882 = vrcp.f32 %v6495_v40 }
 0x571   :  { %v8875_v24 = vpop.eup %8874 }
 0x572   :  { %v8877_v3 = vpop.eup %8876  ;;  %v6496_v39 = vadd.f32 1.0, %v8875_v24 }
 0x573   :  { %6510 = vst.msk [vmem:[%s13183_s9 + $0x18] sm:$0xff] %vm6506_vm7, %v8877_v3 }
 0x574   :  { %8884 = vrcp.f32 %v6496_v39 }
 0x575   :  { %v8879_v31 = vpop.eup %8878 }
 0x576   :  { %v8881_v60 = vpop.eup %8880  ;;  %v6497_v27 = vadd.f32 1.0, %v8879_v31 }
 0x577   :  { %6511 = vst.msk [vmem:[%s13183_s9 + $0x20] sm:$0xff] %vm6506_vm7, %v8881_v60 }
 0x578   :  { %8886 = vrcp.f32 %v6497_v27 }
 0x579   :  { %v8883_v30 = vpop.eup %8882 }
 0x57a   :  { %6512 = vst.msk [vmem:[%s13183_s9 + $0x28] sm:$0xff] %vm6506_vm7, %v8883_v30 }
 0x57e   :  { %v8885_v52 = vpop.eup %8884 }
 0x57f   :  { %6513 = vst.msk [vmem:[%s13183_s9 + $0x30] sm:$0xff] %vm6506_vm7, %v8885_v52 }
 0x582   :  { %v8887_v6 = vpop.eup %8886 }
 0x583   :  { %6514 = vst.msk [vmem:[%s13183_s9 + $0x38] sm:$0xff] %vm6506_vm7, %v8887_v6 }
 0x584   :  { %6519 = vsyncpa [#allocation6], 1 }

</bundles_post_ra>
